<compile_context>
chip_gen: v5e
topology: v5e:2x2
jax: 0.10.0
libtpu: 0.0.40
codegen_flags: <defaults>
</compile_context>

<pallas_src>
import functools

import jax
import jax.numpy as jnp
from jax import lax
from jax.experimental import pallas as pl
from jax.experimental.pallas import tpu as pltpu

_NB_MAX = 64     # max samples per grid step (sublane-aligned batch block)
_HALF = 256      # lane half used to fold the 2x2-pool W-pairs (240/200 -> 256)
_K1 = 256        # conv1 fused contraction depth (5 taps * 28 cols = 140 -> 256)
_K2 = 256        # conv2 per-tap contraction depth (12 * 20 = 240 -> 256)


def _round_up(v, m):
    return ((v + m - 1) // m) * m


# --------------------------------------------------------------------------- #
# Wrapper-side weight preprocessing (pure jnp, tiny).                          #
# --------------------------------------------------------------------------- #
def _toeplitz_tap(w_tap, w_in, ow_total):
    """Lower one conv row-tap w_tap[kw, cin, cout] into a dense
    (w_in*cin, 2*_HALF) matrix so the conv row becomes a single MXU dot.
    Output columns are ordered (w_parity, pooled_w, cout), each half padded to
    _HALF lanes, so the 2x2 max-pool over W is one aligned lane-slice max."""
    kw_total, cin, cout = w_tap.shape
    owh = ow_total // 2
    j = jnp.arange(w_in)
    ow = jnp.arange(ow_total)
    kw = j[:, None] - ow[None, :]                        # (w_in, ow_total)
    valid = (kw >= 0) & (kw < kw_total)
    blk = w_tap[jnp.clip(kw, 0, kw_total - 1)]           # (w_in, ow, cin, cout)
    blk = jnp.where(valid[:, :, None, None], blk, 0.0)
    blk = blk.reshape(w_in, owh, 2, cin, cout)           # ow -> (pooled_w, parity)
    blk = jnp.transpose(blk, (0, 3, 2, 1, 4))            # (w_in, cin, par, owh, cout)
    blk = blk.reshape(w_in * cin, 2, owh * cout)
    blk = jnp.pad(blk, ((0, 0), (0, 0), (0, _HALF - owh * cout)))
    return blk.reshape(w_in * cin, 2 * _HALF)


def _pool_bias(b, reps):
    v = jnp.tile(b, reps)
    v = jnp.pad(v, (0, _HALF - v.shape[0]))
    return jnp.concatenate([v, v]).reshape(1, 2 * _HALF)


def _prepare(params):
    f32, bf16 = jnp.float32, jnp.bfloat16
    w1 = params["conv1_w"].astype(f32)          # (5,5,1,20)  HWIO
    w2 = params["conv2_w"].astype(f32)          # (5,5,20,50) HWIO

    # conv1: 5 row taps fused along K (kh-major, col-minor), padded 140 -> 256.
    w1t = jnp.concatenate([_toeplitz_tap(w1[kh], 28, 24) for kh in range(5)], 0)
    w1t = jnp.pad(w1t, ((0, _K1 - w1t.shape[0]), (0, 0))).astype(bf16)   # (256,512)

    # conv2: per-tap Toeplitz, K padded 240 -> 256 (p1 lanes 240.. are zero).
    w2t = jnp.stack([jnp.pad(_toeplitz_tap(w2[kh], 12, 8),
                             ((0, _K2 - 240), (0, 0))) for kh in range(5)])
    w2t = w2t.astype(bf16)                                               # (5,256,512)

    b1t = _pool_bias(params["conv1_b"].astype(f32), 12)                  # (1,512)
    b2t = _pool_bias(params["conv2_b"].astype(f32), 4)                   # (1,512)

    # fc1: permute rows from torch's NCHW flatten (c*16 + h*4 + w) to the
    # kernel's (h, w*50 + c) layout; pad 200 -> 256 rows per h, 500 -> 512 cols.
    wp = params["fc1_w"].astype(f32).reshape(50, 4, 4, 500)      # [c,h,w,j]
    wp = jnp.transpose(wp, (1, 2, 0, 3)).reshape(4, 200, 500)    # [h, w*50+c, j]
    w1p = jnp.pad(wp, ((0, 0), (0, _HALF - 200), (0, 12))).astype(bf16)  # (4,256,512)
    b1p = jnp.pad(params["fc1_b"].astype(f32), (0, 12)).reshape(1, 512)

    # fc2: pad to 512x128 so the final store is lane-dense (128 lanes).
    w2p = jnp.zeros((512, 128), f32).at[:500, :10].set(
        params["fc2_w"].astype(f32)).astype(bf16)
    b2p = jnp.pad(params["fc2_b"].astype(f32), (0, 118)).reshape(1, 128)
    return w1t, b1t, w2t, b2t, w1p, b1p, w2p, b2p


# --------------------------------------------------------------------------- #
# Fused forward kernel: conv1 -> pool -> conv2 -> pool -> fc1 -> fc2           #
# --------------------------------------------------------------------------- #
def _net_kernel(x_ref, w1t_ref, b1t_ref, w2t_ref, b2t_ref,
                w1p_ref, b1p_ref, w2p_ref, b2p_ref, o_ref, *, nb):
    f32, bf16 = jnp.float32, jnp.bfloat16

    # conv1 (5x5, 1->20): ONE bf16 MXU dot with K=256 (im2row'd input, taps
    # fused wrapper-side).  LHS rows are (output_row, sample); RHS lanes are
    # (W-parity, pooled_W, Cout).
    xs = x_ref[...].reshape(24 * nb, _K1).astype(bf16)
    acc1 = jnp.dot(xs, w1t_ref[...], preferred_element_type=f32)
    y1 = jnp.maximum(acc1 + b1t_ref[...], 0.0)                 # (24*nb, 512)

    # 2x2 max-pool: W pairs sit in the two aligned 256-lane halves, H pairs in
    # adjacent nb-row groups (pure tile re-indexing -> free reshape).
    y1 = jnp.maximum(y1[:, :256], y1[:, 256:])                 # (24*nb, 256)
    t1 = y1.reshape(12, 2, nb, 256)
    p1 = jnp.maximum(t1[:, 0], t1[:, 1])                       # (12, nb, 256)

    # conv2 (5x5, 20->50): 5 Toeplitz row taps, full 256-lane K each
    # (lanes 240..255 of p1 are exactly zero, weights zero-padded to match).
    def conv2_tap(kh):
        lhs = p1[kh:kh + 8].reshape(8 * nb, _K2).astype(bf16)
        return jnp.dot(lhs, w2t_ref[kh], preferred_element_type=f32)

    acc2 = conv2_tap(0)
    for kh in range(1, 5):
        acc2 = acc2 + conv2_tap(kh)
    y2 = jnp.maximum(acc2 + b2t_ref[...], 0.0)                 # (8*nb, 512)

    y2 = jnp.maximum(y2[:, :256], y2[:, 256:])                 # (8*nb, 256)
    t2 = y2.reshape(4, 2, nb, 256)
    p2 = jnp.maximum(t2[:, 0], t2[:, 1])                       # (4, nb, 256)

    # fc1 (800->500 padded to 512): contraction split over the 4 pooled rows;
    # fc1 weights were pre-permuted to this flatten order in the wrapper.
    accf = jnp.dot(p2[0].astype(bf16), w1p_ref[0], preferred_element_type=f32)
    for hh in range(1, 4):
        accf = accf + jnp.dot(p2[hh].astype(bf16), w1p_ref[hh],
                              preferred_element_type=f32)
    h1 = jnp.maximum(accf + b1p_ref[...], 0.0)                 # (nb, 512)

    # fc2 (500->10, lanes padded to 128 for a dense, unmasked store).
    o_ref[...] = jnp.dot(h1.astype(bf16), w2p_ref[...],
                         preferred_element_type=f32) + b2p_ref[...]


def net_forward(params, x_nchw):
    assert x_nchw.shape[1:] == (1, 28, 28), "Net implies 1x28x28 inputs"
    n = x_nchw.shape[0]
    nb = min(_NB_MAX, _round_up(max(n, 1), 8))
    npad = _round_up(n, nb)

    x = x_nchw.reshape(n, 28, 28).astype(jnp.float32)
    if npad != n:
        x = jnp.pad(x, ((0, npad - n), (0, 0), (0, 0)))

    # im2row for conv1: lanes = (kh, col) for the 5 row taps of each of the 24
    # output rows, padded 140 -> 256, so conv1 is a single K=256 MXU dot.
    rows = jnp.arange(24)[:, None] + jnp.arange(5)[None, :]        # (24, 5)
    xw = x[:, rows, :]                                             # (npad,24,5,28)
    xw = xw.reshape(npad, 24, 140)
    xw = jnp.transpose(xw, (1, 0, 2))                              # (24, npad, 140)
    xw = jnp.pad(xw, ((0, 0), (0, 0), (0, _K1 - 140)))             # (24, npad, 256)

    w1t, b1t, w2t, b2t, w1p, b1p, w2p, b2p = _prepare(params)

    out = pl.pallas_call(
        functools.partial(_net_kernel, nb=nb),
        grid=(npad // nb,),
        in_specs=[
            pl.BlockSpec((24, nb, _K1), lambda i: (0, i, 0)),      # im2row input
            pl.BlockSpec((_K1, 512), lambda i: (0, 0)),            # conv1 fused taps
            pl.BlockSpec((1, 512), lambda i: (0, 0)),
            pl.BlockSpec((5, _K2, 512), lambda i: (0, 0, 0)),      # conv2 taps
            pl.BlockSpec((1, 512), lambda i: (0, 0)),
            pl.BlockSpec((4, 256, 512), lambda i: (0, 0, 0)),      # fc1 (permuted)
            pl.BlockSpec((1, 512), lambda i: (0, 0)),
            pl.BlockSpec((512, 128), lambda i: (0, 0)),            # fc2 (padded)
            pl.BlockSpec((1, 128), lambda i: (0, 0)),
        ],
        out_specs=pl.BlockSpec((nb, 128), lambda i: (i, 0)),
        out_shape=jax.ShapeDtypeStruct((npad, 128), jnp.float32),
        compiler_params=pltpu.CompilerParams(
            dimension_semantics=("parallel",),
            vmem_limit_bytes=32 * 1024 * 1024),
    )(xw, w1t, b1t, w2t, b2t, w1p, b1p, w2p, b2p)
    return out[:n, :10]


# --------------------------------------------------------------------------- #
# Pure-JAX reference (mirrors the PyTorch module) and parameter init.          #
# --------------------------------------------------------------------------- #
def net_reference(params, x_nchw):
    x = x_nchw.astype(jnp.float32)
    y = lax.conv_general_dilated(x, params["conv1_w"], (1, 1), "VALID",
                                 dimension_numbers=("NCHW", "HWIO", "NCHW"))
    y = jnp.maximum(y + params["conv1_b"][None, :, None, None], 0.0)
    y = lax.reduce_window(y, -jnp.inf, lax.max, (1, 1, 2, 2), (1, 1, 2, 2), "VALID")
    y = lax.conv_general_dilated(y, params["conv2_w"], (1, 1), "VALID",
                                 dimension_numbers=("NCHW", "HWIO", "NCHW"))
    y = jnp.maximum(y + params["conv2_b"][None, :, None, None], 0.0)
    y = lax.reduce_window(y, -jnp.inf, lax.max, (1, 1, 2, 2), (1, 1, 2, 2), "VALID")
    y = y.reshape(y.shape[0], -1)                              # torch view order
    y = jnp.maximum(y @ params["fc1_w"] + params["fc1_b"], 0.0)
    return y @ params["fc2_w"] + params["fc2_b"]


def init_params(key):
    ks = jax.random.split(key, 8)

    def rnd(k, shape, scale):
        return (scale * jax.random.normal(k, shape)).astype(jnp.float32)

    return {
        # conv weights stored HWIO (PyTorch conv1.weight is (20,1,5,5) OIHW)
        "conv1_w": rnd(ks[0], (5, 5, 1, 20), 0.10),
        "conv1_b": rnd(ks[1], (20,), 0.01),
        "conv2_w": rnd(ks[2], (5, 5, 20, 50), 0.05),
        "conv2_b": rnd(ks[3], (50,), 0.01),
        # fc weights stored (in, out) so forward is x @ W + b
        "fc1_w": rnd(ks[4], (4 * 4 * 50, 500), 0.02),
        "fc1_b": rnd(ks[5], (500,), 0.01),
        "fc2_w": rnd(ks[6], (500, 10), 0.05),
        "fc2_b": rnd(ks[7], (10,), 0.01),
    }


if __name__ == "__main__":
    key = jax.random.PRNGKey(0)
    k_x, k_p = jax.random.split(key)

    # MNIST-style input implied by fc1 = Linear(4*4*50, 500): 1x28x28, batch 2.
    x = jax.random.normal(k_x, (2, 1, 28, 28), dtype=jnp.float32)  # PyTorch NCHW
    params = init_params(k_p)

    out = jax.jit(net_forward)(params, x)
    out = jax.block_until_ready(out)
    assert out.shape == (2, 10) and out.dtype == jnp.float32

    ref = net_reference(params, x)
    err = float(jnp.max(jnp.abs(out - ref)))
    assert err < 5e-2, f"mismatch vs reference: max abs err {err}"
    print("KERNEL_OK")
</pallas_src>

<mosaic_0001>
module attributes {stable_mosaic.version = 11 : i64} {
  func.func @_net_kernel(%arg0: i32, %arg1: memref<24x8x256xf32, #tpu.memory_space<vmem>>, %arg2: memref<256x512xbf16, #tpu.memory_space<vmem>>, %arg3: memref<1x512xf32, #tpu.memory_space<vmem>>, %arg4: memref<5x256x512xbf16, #tpu.memory_space<vmem>>, %arg5: memref<1x512xf32, #tpu.memory_space<vmem>>, %arg6: memref<4x256x512xbf16, #tpu.memory_space<vmem>>, %arg7: memref<1x512xf32, #tpu.memory_space<vmem>>, %arg8: memref<512x128xbf16, #tpu.memory_space<vmem>>, %arg9: memref<1x128xf32, #tpu.memory_space<vmem>>, %arg10: memref<8x128xf32, #tpu.memory_space<vmem>>) attributes {dimension_semantics = [#tpu.dimension_semantics<parallel>], iteration_bounds = array<i64: 1>, scalar_prefetch = 0 : i64, scratch_operands = 0 : i64, tpu.core_type = #tpu.core_type<tc>, window_params = [{transform_indices = @transform_0, window_bounds = array<i64: 24, 8, 256>}, {pipeline_mode = #tpu.pipeline_mode<synchronous>, transform_indices = @transform_1, window_bounds = array<i64: 256, 512>}, {pipeline_mode = #tpu.pipeline_mode<synchronous>, transform_indices = @transform_2, window_bounds = array<i64: 1, 512>}, {pipeline_mode = #tpu.pipeline_mode<synchronous>, transform_indices = @transform_3, window_bounds = array<i64: 5, 256, 512>}, {pipeline_mode = #tpu.pipeline_mode<synchronous>, transform_indices = @transform_4, window_bounds = array<i64: 1, 512>}, {pipeline_mode = #tpu.pipeline_mode<synchronous>, transform_indices = @transform_5, window_bounds = array<i64: 4, 256, 512>}, {pipeline_mode = #tpu.pipeline_mode<synchronous>, transform_indices = @transform_6, window_bounds = array<i64: 1, 512>}, {pipeline_mode = #tpu.pipeline_mode<synchronous>, transform_indices = @transform_7, window_bounds = array<i64: 512, 128>}, {pipeline_mode = #tpu.pipeline_mode<synchronous>, transform_indices = @transform_8, window_bounds = array<i64: 1, 128>}, {transform_indices = @transform_9, window_bounds = array<i64: 8, 128>}]} {
    %c0 = arith.constant 0 : index
    %c0_0 = arith.constant 0 : index
    %c0_1 = arith.constant 0 : index
    %0 = vector.load %arg1[%c0, %c0_0, %c0_1] : memref<24x8x256xf32, #tpu.memory_space<vmem>>, vector<24x8x256xf32>
    %1 = vector.shape_cast %0 : vector<24x8x256xf32> to vector<192x256xf32>
    %2 = arith.truncf %1 : vector<192x256xf32> to vector<192x256xbf16>
    %c0_2 = arith.constant 0 : index
    %c0_3 = arith.constant 0 : index
    %3 = vector.load %arg2[%c0_2, %c0_3] : memref<256x512xbf16, #tpu.memory_space<vmem>>, vector<256x512xbf16>
    %cst = arith.constant dense<0.000000e+00> : vector<192x512xf32>
    %4 = tpu.matmul %2, %3, %cst {dimension_numbers = #tpu.dot_dimension_numbers<[1], [0], [0], [1], [0, 0, 1, 1], [], []>} : vector<192x256xbf16>, vector<256x512xbf16>, vector<192x512xf32> -> vector<192x512xf32>
    %c0_4 = arith.constant 0 : index
    %c0_5 = arith.constant 0 : index
    %5 = vector.load %arg3[%c0_4, %c0_5] : memref<1x512xf32, #tpu.memory_space<vmem>>, vector<1x512xf32>
    %6 = vector.broadcast %5 : vector<1x512xf32> to vector<192x512xf32>
    %7 = arith.addf %4, %6 : vector<192x512xf32>
    %cst_6 = arith.constant 0.000000e+00 : f32
    %8 = vector.broadcast %cst_6 : f32 to vector<192x512xf32>
    %9 = arith.maximumf %7, %8 : vector<192x512xf32>
    %10 = vector.extract_strided_slice %9 {offsets = [0, 0], sizes = [192, 256], strides = [1, 1]} : vector<192x512xf32> to vector<192x256xf32>
    %11 = vector.extract_strided_slice %9 {offsets = [0, 256], sizes = [192, 256], strides = [1, 1]} : vector<192x512xf32> to vector<192x256xf32>
    %12 = arith.maximumf %10, %11 : vector<192x256xf32>
    %13 = vector.shape_cast %12 : vector<192x256xf32> to vector<12x2x8x256xf32>
    %14 = vector.extract_strided_slice %13 {offsets = [0, 0, 0, 0], sizes = [12, 1, 8, 256], strides = [1, 1, 1, 1]} : vector<12x2x8x256xf32> to vector<12x1x8x256xf32>
    %15 = vector.shape_cast %14 : vector<12x1x8x256xf32> to vector<12x8x256xf32>
    %16 = vector.extract_strided_slice %13 {offsets = [0, 1, 0, 0], sizes = [12, 1, 8, 256], strides = [1, 1, 1, 1]} : vector<12x2x8x256xf32> to vector<12x1x8x256xf32>
    %17 = vector.shape_cast %16 : vector<12x1x8x256xf32> to vector<12x8x256xf32>
    %18 = arith.maximumf %15, %17 : vector<12x8x256xf32>
    %19 = vector.extract_strided_slice %18 {offsets = [0, 0, 0], sizes = [8, 8, 256], strides = [1, 1, 1]} : vector<12x8x256xf32> to vector<8x8x256xf32>
    %20 = vector.shape_cast %19 : vector<8x8x256xf32> to vector<64x256xf32>
    %21 = arith.truncf %20 : vector<64x256xf32> to vector<64x256xbf16>
    %c0_7 = arith.constant 0 : index
    %c0_8 = arith.constant 0 : index
    %c0_9 = arith.constant 0 : index
    %22 = vector.load %arg4[%c0_7, %c0_8, %c0_9] : memref<5x256x512xbf16, #tpu.memory_space<vmem>>, vector<1x256x512xbf16>
    %23 = vector.shape_cast %22 : vector<1x256x512xbf16> to vector<256x512xbf16>
    %cst_10 = arith.constant dense<0.000000e+00> : vector<64x512xf32>
    %24 = tpu.matmul %21, %23, %cst_10 {dimension_numbers = #tpu.dot_dimension_numbers<[1], [0], [0], [1], [0, 0, 1, 1], [], []>} : vector<64x256xbf16>, vector<256x512xbf16>, vector<64x512xf32> -> vector<64x512xf32>
    %25 = vector.extract_strided_slice %18 {offsets = [1, 0, 0], sizes = [8, 8, 256], strides = [1, 1, 1]} : vector<12x8x256xf32> to vector<8x8x256xf32>
    %26 = vector.shape_cast %25 : vector<8x8x256xf32> to vector<64x256xf32>
    %27 = arith.truncf %26 : vector<64x256xf32> to vector<64x256xbf16>
    %c1 = arith.constant 1 : index
    %c0_11 = arith.constant 0 : index
    %c0_12 = arith.constant 0 : index
    %28 = vector.load %arg4[%c1, %c0_11, %c0_12] : memref<5x256x512xbf16, #tpu.memory_space<vmem>>, vector<1x256x512xbf16>
    %29 = vector.shape_cast %28 : vector<1x256x512xbf16> to vector<256x512xbf16>
    %cst_13 = arith.constant dense<0.000000e+00> : vector<64x512xf32>
    %30 = tpu.matmul %27, %29, %cst_13 {dimension_numbers = #tpu.dot_dimension_numbers<[1], [0], [0], [1], [0, 0, 1, 1], [], []>} : vector<64x256xbf16>, vector<256x512xbf16>, vector<64x512xf32> -> vector<64x512xf32>
    %31 = arith.addf %24, %30 : vector<64x512xf32>
    %32 = vector.extract_strided_slice %18 {offsets = [2, 0, 0], sizes = [8, 8, 256], strides = [1, 1, 1]} : vector<12x8x256xf32> to vector<8x8x256xf32>
    %33 = vector.shape_cast %32 : vector<8x8x256xf32> to vector<64x256xf32>
    %34 = arith.truncf %33 : vector<64x256xf32> to vector<64x256xbf16>
    %c2 = arith.constant 2 : index
    %c0_14 = arith.constant 0 : index
    %c0_15 = arith.constant 0 : index
    %35 = vector.load %arg4[%c2, %c0_14, %c0_15] : memref<5x256x512xbf16, #tpu.memory_space<vmem>>, vector<1x256x512xbf16>
    %36 = vector.shape_cast %35 : vector<1x256x512xbf16> to vector<256x512xbf16>
    %cst_16 = arith.constant dense<0.000000e+00> : vector<64x512xf32>
    %37 = tpu.matmul %34, %36, %cst_16 {dimension_numbers = #tpu.dot_dimension_numbers<[1], [0], [0], [1], [0, 0, 1, 1], [], []>} : vector<64x256xbf16>, vector<256x512xbf16>, vector<64x512xf32> -> vector<64x512xf32>
    %38 = arith.addf %31, %37 : vector<64x512xf32>
    %39 = vector.extract_strided_slice %18 {offsets = [3, 0, 0], sizes = [8, 8, 256], strides = [1, 1, 1]} : vector<12x8x256xf32> to vector<8x8x256xf32>
    %40 = vector.shape_cast %39 : vector<8x8x256xf32> to vector<64x256xf32>
    %41 = arith.truncf %40 : vector<64x256xf32> to vector<64x256xbf16>
    %c3 = arith.constant 3 : index
    %c0_17 = arith.constant 0 : index
    %c0_18 = arith.constant 0 : index
    %42 = vector.load %arg4[%c3, %c0_17, %c0_18] : memref<5x256x512xbf16, #tpu.memory_space<vmem>>, vector<1x256x512xbf16>
    %43 = vector.shape_cast %42 : vector<1x256x512xbf16> to vector<256x512xbf16>
    %cst_19 = arith.constant dense<0.000000e+00> : vector<64x512xf32>
    %44 = tpu.matmul %41, %43, %cst_19 {dimension_numbers = #tpu.dot_dimension_numbers<[1], [0], [0], [1], [0, 0, 1, 1], [], []>} : vector<64x256xbf16>, vector<256x512xbf16>, vector<64x512xf32> -> vector<64x512xf32>
    %45 = arith.addf %38, %44 : vector<64x512xf32>
    %46 = vector.extract_strided_slice %18 {offsets = [4, 0, 0], sizes = [8, 8, 256], strides = [1, 1, 1]} : vector<12x8x256xf32> to vector<8x8x256xf32>
    %47 = vector.shape_cast %46 : vector<8x8x256xf32> to vector<64x256xf32>
    %48 = arith.truncf %47 : vector<64x256xf32> to vector<64x256xbf16>
    %c4 = arith.constant 4 : index
    %c0_20 = arith.constant 0 : index
    %c0_21 = arith.constant 0 : index
    %49 = vector.load %arg4[%c4, %c0_20, %c0_21] : memref<5x256x512xbf16, #tpu.memory_space<vmem>>, vector<1x256x512xbf16>
    %50 = vector.shape_cast %49 : vector<1x256x512xbf16> to vector<256x512xbf16>
    %cst_22 = arith.constant dense<0.000000e+00> : vector<64x512xf32>
    %51 = tpu.matmul %48, %50, %cst_22 {dimension_numbers = #tpu.dot_dimension_numbers<[1], [0], [0], [1], [0, 0, 1, 1], [], []>} : vector<64x256xbf16>, vector<256x512xbf16>, vector<64x512xf32> -> vector<64x512xf32>
    %52 = arith.addf %45, %51 : vector<64x512xf32>
    %c0_23 = arith.constant 0 : index
    %c0_24 = arith.constant 0 : index
    %53 = vector.load %arg5[%c0_23, %c0_24] : memref<1x512xf32, #tpu.memory_space<vmem>>, vector<1x512xf32>
    %54 = vector.broadcast %53 : vector<1x512xf32> to vector<64x512xf32>
    %55 = arith.addf %52, %54 : vector<64x512xf32>
    %cst_25 = arith.constant 0.000000e+00 : f32
    %56 = vector.broadcast %cst_25 : f32 to vector<64x512xf32>
    %57 = arith.maximumf %55, %56 : vector<64x512xf32>
    %58 = vector.extract_strided_slice %57 {offsets = [0, 0], sizes = [64, 256], strides = [1, 1]} : vector<64x512xf32> to vector<64x256xf32>
    %59 = vector.extract_strided_slice %57 {offsets = [0, 256], sizes = [64, 256], strides = [1, 1]} : vector<64x512xf32> to vector<64x256xf32>
    %60 = arith.maximumf %58, %59 : vector<64x256xf32>
    %61 = vector.shape_cast %60 : vector<64x256xf32> to vector<4x2x8x256xf32>
    %62 = vector.extract_strided_slice %61 {offsets = [0, 0, 0, 0], sizes = [4, 1, 8, 256], strides = [1, 1, 1, 1]} : vector<4x2x8x256xf32> to vector<4x1x8x256xf32>
    %63 = vector.shape_cast %62 : vector<4x1x8x256xf32> to vector<4x8x256xf32>
    %64 = vector.extract_strided_slice %61 {offsets = [0, 1, 0, 0], sizes = [4, 1, 8, 256], strides = [1, 1, 1, 1]} : vector<4x2x8x256xf32> to vector<4x1x8x256xf32>
    %65 = vector.shape_cast %64 : vector<4x1x8x256xf32> to vector<4x8x256xf32>
    %66 = arith.maximumf %63, %65 : vector<4x8x256xf32>
    %67 = vector.extract_strided_slice %66 {offsets = [0, 0, 0], sizes = [1, 8, 256], strides = [1, 1, 1]} : vector<4x8x256xf32> to vector<1x8x256xf32>
    %68 = vector.shape_cast %67 : vector<1x8x256xf32> to vector<8x256xf32>
    %69 = arith.truncf %68 : vector<8x256xf32> to vector<8x256xbf16>
    %c0_26 = arith.constant 0 : index
    %c0_27 = arith.constant 0 : index
    %c0_28 = arith.constant 0 : index
    %70 = vector.load %arg6[%c0_26, %c0_27, %c0_28] : memref<4x256x512xbf16, #tpu.memory_space<vmem>>, vector<1x256x512xbf16>
    %71 = vector.shape_cast %70 : vector<1x256x512xbf16> to vector<256x512xbf16>
    %cst_29 = arith.constant dense<0.000000e+00> : vector<8x512xf32>
    %72 = tpu.matmul %69, %71, %cst_29 {dimension_numbers = #tpu.dot_dimension_numbers<[1], [0], [0], [1], [0, 0, 1, 1], [], []>} : vector<8x256xbf16>, vector<256x512xbf16>, vector<8x512xf32> -> vector<8x512xf32>
    %73 = vector.extract_strided_slice %66 {offsets = [1, 0, 0], sizes = [1, 8, 256], strides = [1, 1, 1]} : vector<4x8x256xf32> to vector<1x8x256xf32>
    %74 = vector.shape_cast %73 : vector<1x8x256xf32> to vector<8x256xf32>
    %75 = arith.truncf %74 : vector<8x256xf32> to vector<8x256xbf16>
    %c1_30 = arith.constant 1 : index
    %c0_31 = arith.constant 0 : index
    %c0_32 = arith.constant 0 : index
    %76 = vector.load %arg6[%c1_30, %c0_31, %c0_32] : memref<4x256x512xbf16, #tpu.memory_space<vmem>>, vector<1x256x512xbf16>
    %77 = vector.shape_cast %76 : vector<1x256x512xbf16> to vector<256x512xbf16>
    %cst_33 = arith.constant dense<0.000000e+00> : vector<8x512xf32>
    %78 = tpu.matmul %75, %77, %cst_33 {dimension_numbers = #tpu.dot_dimension_numbers<[1], [0], [0], [1], [0, 0, 1, 1], [], []>} : vector<8x256xbf16>, vector<256x512xbf16>, vector<8x512xf32> -> vector<8x512xf32>
    %79 = arith.addf %72, %78 : vector<8x512xf32>
    %80 = vector.extract_strided_slice %66 {offsets = [2, 0, 0], sizes = [1, 8, 256], strides = [1, 1, 1]} : vector<4x8x256xf32> to vector<1x8x256xf32>
    %81 = vector.shape_cast %80 : vector<1x8x256xf32> to vector<8x256xf32>
    %82 = arith.truncf %81 : vector<8x256xf32> to vector<8x256xbf16>
    %c2_34 = arith.constant 2 : index
    %c0_35 = arith.constant 0 : index
    %c0_36 = arith.constant 0 : index
    %83 = vector.load %arg6[%c2_34, %c0_35, %c0_36] : memref<4x256x512xbf16, #tpu.memory_space<vmem>>, vector<1x256x512xbf16>
    %84 = vector.shape_cast %83 : vector<1x256x512xbf16> to vector<256x512xbf16>
    %cst_37 = arith.constant dense<0.000000e+00> : vector<8x512xf32>
    %85 = tpu.matmul %82, %84, %cst_37 {dimension_numbers = #tpu.dot_dimension_numbers<[1], [0], [0], [1], [0, 0, 1, 1], [], []>} : vector<8x256xbf16>, vector<256x512xbf16>, vector<8x512xf32> -> vector<8x512xf32>
    %86 = arith.addf %79, %85 : vector<8x512xf32>
    %87 = vector.extract_strided_slice %66 {offsets = [3, 0, 0], sizes = [1, 8, 256], strides = [1, 1, 1]} : vector<4x8x256xf32> to vector<1x8x256xf32>
    %88 = vector.shape_cast %87 : vector<1x8x256xf32> to vector<8x256xf32>
    %89 = arith.truncf %88 : vector<8x256xf32> to vector<8x256xbf16>
    %c3_38 = arith.constant 3 : index
    %c0_39 = arith.constant 0 : index
    %c0_40 = arith.constant 0 : index
    %90 = vector.load %arg6[%c3_38, %c0_39, %c0_40] : memref<4x256x512xbf16, #tpu.memory_space<vmem>>, vector<1x256x512xbf16>
    %91 = vector.shape_cast %90 : vector<1x256x512xbf16> to vector<256x512xbf16>
    %cst_41 = arith.constant dense<0.000000e+00> : vector<8x512xf32>
    %92 = tpu.matmul %89, %91, %cst_41 {dimension_numbers = #tpu.dot_dimension_numbers<[1], [0], [0], [1], [0, 0, 1, 1], [], []>} : vector<8x256xbf16>, vector<256x512xbf16>, vector<8x512xf32> -> vector<8x512xf32>
    %93 = arith.addf %86, %92 : vector<8x512xf32>
    %c0_42 = arith.constant 0 : index
    %c0_43 = arith.constant 0 : index
    %94 = vector.load %arg7[%c0_42, %c0_43] : memref<1x512xf32, #tpu.memory_space<vmem>>, vector<1x512xf32>
    %95 = vector.broadcast %94 : vector<1x512xf32> to vector<8x512xf32>
    %96 = arith.addf %93, %95 : vector<8x512xf32>
    %cst_44 = arith.constant 0.000000e+00 : f32
    %97 = vector.broadcast %cst_44 : f32 to vector<8x512xf32>
    %98 = arith.maximumf %96, %97 : vector<8x512xf32>
    %99 = arith.truncf %98 : vector<8x512xf32> to vector<8x512xbf16>
    %c0_45 = arith.constant 0 : index
    %c0_46 = arith.constant 0 : index
    %100 = vector.load %arg8[%c0_45, %c0_46] : memref<512x128xbf16, #tpu.memory_space<vmem>>, vector<512x128xbf16>
    %cst_47 = arith.constant dense<0.000000e+00> : vector<8x128xf32>
    %101 = tpu.matmul %99, %100, %cst_47 {dimension_numbers = #tpu.dot_dimension_numbers<[1], [0], [0], [1], [0, 0, 1, 1], [], []>} : vector<8x512xbf16>, vector<512x128xbf16>, vector<8x128xf32> -> vector<8x128xf32>
    %c0_48 = arith.constant 0 : index
    %c0_49 = arith.constant 0 : index
    %102 = vector.load %arg9[%c0_48, %c0_49] : memref<1x128xf32, #tpu.memory_space<vmem>>, vector<1x128xf32>
    %103 = vector.broadcast %102 : vector<1x128xf32> to vector<8x128xf32>
    %104 = arith.addf %101, %103 : vector<8x128xf32>
    %c0_50 = arith.constant 0 : index
    %c0_51 = arith.constant 0 : index
    %105 = vector.load %arg10[%c0_50, %c0_51] : memref<8x128xf32, #tpu.memory_space<vmem>>, vector<8x128xf32>
    tpu.vector_store %arg10[%c0_50, %c0_51], %104 {strides = array<i32>} : memref<8x128xf32, #tpu.memory_space<vmem>>, vector<8x128xf32>,
    return
  }
  func.func @transform_0(%arg0: i32) -> (i32, i32, i32) {
    %c0_i32 = arith.constant 0 : i32
    %c0_i32_0 = arith.constant 0 : i32
    %c0_i32_1 = arith.constant 0 : i32
    return %c0_i32, %arg0, %c0_i32_0 : i32, i32, i32
  }
  func.func @transform_1(%arg0: i32) -> (i32, i32) {
    %c0_i32 = arith.constant 0 : i32
    %c0_i32_0 = arith.constant 0 : i32
    %c0_i32_1 = arith.constant 0 : i32
    return %c0_i32, %c0_i32_0 : i32, i32
  }
  func.func @transform_2(%arg0: i32) -> (i32, i32) {
    %c0_i32 = arith.constant 0 : i32
    %c0_i32_0 = arith.constant 0 : i32
    %c0_i32_1 = arith.constant 0 : i32
    return %c0_i32, %c0_i32_0 : i32, i32
  }
  func.func @transform_3(%arg0: i32) -> (i32, i32, i32) {
    %c0_i32 = arith.constant 0 : i32
    %c0_i32_0 = arith.constant 0 : i32
    %c0_i32_1 = arith.constant 0 : i32
    %c0_i32_2 = arith.constant 0 : i32
    return %c0_i32, %c0_i32_0, %c0_i32_1 : i32, i32, i32
  }
  func.func @transform_4(%arg0: i32) -> (i32, i32) {
    %c0_i32 = arith.constant 0 : i32
    %c0_i32_0 = arith.constant 0 : i32
    %c0_i32_1 = arith.constant 0 : i32
    return %c0_i32, %c0_i32_0 : i32, i32
  }
  func.func @transform_5(%arg0: i32) -> (i32, i32, i32) {
    %c0_i32 = arith.constant 0 : i32
    %c0_i32_0 = arith.constant 0 : i32
    %c0_i32_1 = arith.constant 0 : i32
    %c0_i32_2 = arith.constant 0 : i32
    return %c0_i32, %c0_i32_0, %c0_i32_1 : i32, i32, i32
  }
  func.func @transform_6(%arg0: i32) -> (i32, i32) {
    %c0_i32 = arith.constant 0 : i32
    %c0_i32_0 = arith.constant 0 : i32
    %c0_i32_1 = arith.constant 0 : i32
    return %c0_i32, %c0_i32_0 : i32, i32
  }
  func.func @transform_7(%arg0: i32) -> (i32, i32) {
    %c0_i32 = arith.constant 0 : i32
    %c0_i32_0 = arith.constant 0 : i32
    %c0_i32_1 = arith.constant 0 : i32
    return %c0_i32, %c0_i32_0 : i32, i32
  }
  func.func @transform_8(%arg0: i32) -> (i32, i32) {
    %c0_i32 = arith.constant 0 : i32
    %c0_i32_0 = arith.constant 0 : i32
    %c0_i32_1 = arith.constant 0 : i32
    return %c0_i32, %c0_i32_0 : i32, i32
  }
  func.func @transform_9(%arg0: i32) -> (i32, i32) {
    %c0_i32 = arith.constant 0 : i32
    %c0_i32_0 = arith.constant 0 : i32
    return %arg0, %c0_i32 : i32, i32
  }
}

</mosaic_0001>

<bundles_post_ra>
// kernel: tile.13
= control target key start
LH: loop header
LB: loop body
LE: loop exit
PB: predicated region body
PF: predicated region fallthrough
CT: control target
= control target key end

     0   :  { %s28_s0 = inlined_call_operand.vmem [shape: f32[20], index: 0, kind: input, shape index: {}]   ;;  %s29_s1 = inlined_call_operand.vmem [shape: f32[12,20], index: 1, kind: output, shape index: {}]  }
   0x1   :  { %v4_v0 = vld [vmem:[%s28_s0] ss:$0 sm:$0xff] }
   0x2   :  { %5 = vst [vmem:[%s29_s1] sm:$0xff] %v4_v0 }
   0x3   :  { %8 = vst [vmem:[%s29_s1 + $0x8] sm:$0xff] %v4_v0 }

// kernel: tile.14
= control target key start
LH: loop header
LB: loop body
LE: loop exit
PB: predicated region body
PF: predicated region fallthrough
CT: control target
= control target key end

     0   :  { %vm9_vm0 = vcmask 64512   ;;  %s112_s10 = smov 92   ;;  %s113_s13 = smov 120   ;;  %vm3_vm1 = vcmask 162816   ;;  %vm13_vm2 = vcmask 97280   ;;  %vm16_vm3 = vcmask 1048512   ;;  %s175_s0 = inlined_call_operand.vmem [shape: f32[12,20], index: 0, kind: input, shape index: {}]   ;;  %s176_s1 = inlined_call_operand.vmem [shape: f32[240], index: 1, kind: output, shape index: {}]  }
   0x1   :  { %v92_v0 = vld [vmem:[%s175_s0 + $0xb] sm:$0x1]   ;;  %v89_v1 = vld [vmem:[%s175_s0 + $0x6] sm:$0x1]   ;;  %v94_v4 = vld [vmem:[%s175_s0 + $0xa] sm:$0x1]  }
   0x2   :  { %26 = vrot.lane.b32.xlu1 %v92_v0, %s112_s10  ;;  %v90_v2 = vld [vmem:[%s175_s0 + $0x6] sm:$0x1]   ;;  %s114_s16 = smov 72   ;;  %v93_v5 = vld [vmem:[%s175_s0 + $0x4] sm:$0x1]   ;;  %s115_s21 = smov 80  }
   0x3   :  { %v10_v3 = vsel %vm9_vm0, %v90_v2, %v89_v1  ;;  %39 = vrot.lane.b32.xlu2 %v94_v4, %s114_s16  ;;  %v91_v6 = vld [vmem:[%s175_s0 + $0x5] sm:$0x1]   ;;  %v95_v7 = vld [vmem:[%s175_s0 + $0x3] sm:$0x1]   ;;  %s116_s24 = smov 100   ;;  %s117_s25 = smov 60  }
   0x4   :  { %11 = vrot.lane.b32.xlu0 %v10_v3, %s113_s13  ;;  %v97_v8 = vld [vmem:[%s175_s0 + $0x2] sm:$0x1]   ;;  %v96_v9 = vld [vmem:[%s175_s0 + $0x9] sm:$0x1]   ;;  %s118_s30 = smov 40   ;;  %s119_s4 = smov 52  }
   0x5   :  { %v98_v10 = vld [vmem:[%s175_s0 + $0x8] sm:$0x1]   ;;  %s120_s5 = smov 32   ;;  %v100_v11 = vld [vmem:[%s175_s0 + $0x7] sm:$0x1]   ;;  %s121_s10 = smov 12  }
   0x6   :  { %v99_v12 = vld [vmem:[%s175_s0 + $0x1] sm:$0x1]   ;;  %s122_s11 = smov 20   ;;  %v2_v13 = vld [vmem:[%s175_s0] sm:$0x1]   ;;  %vm28_vm4 = vcmask 917216  }
   0x7   :  { %4 = vst.msk [vmem:[#allocation0] sm:$0x1] %vm3_vm1, %v2_v13   ;;  %vm41_vm5 = vcmask 753216   ;;  %vm22_vm6 = vcmask 982816   ;;  %vm35_vm7 = vcmask 818816   ;;  %vm48_vm8 = vcmask 654816  }
   0x8   :  { %vm61_vm9 = vcmask 490816   ;;  %vm54_vm10 = vcmask 589216   ;;  %vm67_vm11 = vcmask 425216   ;;  %vm80_vm12 = vcmask 261216  }
   0x9   :  { %vm74_vm13 = vcmask 326816  }
   0xa   :  { %33 = vrot.lane.b32.xlu1 %v93_v5, %s115_s21 }
   0xb   :  { %46 = vrot.lane.b32.xlu2 %v95_v7, %s117_s25 }
   0xc   :  { %20 = vrot.lane.b32.xlu0 %v91_v6, %s116_s24 }
  0x12   :  { %59 = vrot.lane.b32.xlu1 %v97_v8, %s118_s30 }
  0x13   :  { %65 = vrot.lane.b32.xlu2 %v98_v10, %s120_s5 }
  0x14   :  { %52 = vrot.lane.b32.xlu0 %v96_v9, %s119_s4 }
  0x1a   :  { %78 = vrot.lane.b32.xlu1 %v100_v11, %s121_s10 }
  0x1c   :  { %72 = vrot.lane.b32.xlu0 %v99_v12, %s122_s11 }
  0x5d   :  { %v40_v14 = vpop.permute.xlu2 %39  }
  0x65   :  { %v47_v15 = vpop.permute.xlu2 %46  }
  0x6d   :  { %v66_v16 = vpop.permute.xlu2 %65  }
  0x74   :  { %v27_v17 = vpop.permute.xlu1 %26  }
  0x76   :  { %v12_v18 = vpop.permute.xlu0 %11  }
  0x77   :  { %15 = vst.msk [vmem:[#allocation0 + $0x1] sm:$0x1] %vm13_vm2, %v12_v18  }
  0x78   :  { %17 = vst.msk [vmem:[#allocation0] sm:$0x1] %vm16_vm3, %v12_v18  }
  0x79   :  { %30 = vst.msk [vmem:[#allocation0 + $0x1] sm:$0x1] %vm28_vm4, %v27_v17  }
  0x7a   :  { %43 = vst.msk [vmem:[#allocation0 + $0x1] sm:$0x1] %vm41_vm5, %v40_v14  }
  0x7c   :  { %v34_v19 = vpop.permute.xlu1 %33  }
  0x7e   :  { %v21_v20 = vpop.permute.xlu0 %20  }
  0x7f   :  { %23 = vst.msk [vmem:[#allocation0] sm:$0x1] %vm22_vm6, %v21_v20  }
  0x80   :  { %36 = vst.msk [vmem:[#allocation0] sm:$0x1] %vm35_vm7, %v34_v19  }
  0x81   :  { %49 = vst.msk [vmem:[#allocation0] sm:$0x1] %vm48_vm8, %v47_v15  }
  0x84   :  { %v60_v21 = vpop.permute.xlu1 %59  }
  0x85   :  { %62 = vst.msk [vmem:[#allocation0] sm:$0x1] %vm61_vm9, %v60_v21  }
  0x86   :  { %v53_v22 = vpop.permute.xlu0 %52  }
  0x87   :  { %56 = vst.msk [vmem:[#allocation0 + $0x1] sm:$0x1] %vm54_vm10, %v53_v22  }
  0x88   :  { %69 = vst.msk [vmem:[#allocation0 + $0x1] sm:$0x1] %vm67_vm11, %v66_v16  }
  0x8c   :  { %v79_v23 = vpop.permute.xlu1 %78  }
  0x8d   :  { %82 = vst.msk [vmem:[#allocation0 + $0x1] sm:$0x1] %vm80_vm12, %v79_v23  }
  0x8e   :  { %v73_v24 = vpop.permute.xlu0 %72  }
  0x8f   :  { %75 = vst.msk [vmem:[#allocation0] sm:$0x1] %vm74_vm13, %v73_v24  }
  0x96   :  { %v85_v25 = vld [vmem:[#allocation0] sm:$0x3] }
  0x97   :  { %88 = vst [vmem:[%s176_s1] sm:$0x3] %v85_v25 }

// kernel: tile.18
= control target key start
LH: loop header
LB: loop body
LE: loop exit
PB: predicated region body
PF: predicated region fallthrough
CT: control target
= control target key end

     0   :  { %s22_s0 = inlined_call_operand.vmem [shape: f32[50], index: 0, kind: input, shape index: {}]   ;;  %s23_s1 = inlined_call_operand.vmem [shape: f32[4,50], index: 1, kind: output, shape index: {}]  }
   0x1   :  { %v4_v0 = vld [vmem:[%s22_s0] ss:$0 sm:$0xff] }
   0x2   :  { %5 = vst [vmem:[%s23_s1] sm:$0xf] %v4_v0 }

// kernel: tile.19
= control target key start
LH: loop header
LB: loop body
LE: loop exit
PB: predicated region body
PF: predicated region fallthrough
CT: control target
= control target key end

     0   :  { %vm13_vm0 = vcmask 228352   ;;  %s45_s8 = smov 100   ;;  %s46_s9 = smov 50   ;;  %vm7_vm1 = vcmask 408576   ;;  %vm17_vm2 = vcmask 179200   ;;  %vm20_vm3 = vcmask 1048352   ;;  %s63_s0 = inlined_call_operand.vmem [shape: f32[4,50], index: 0, kind: input, shape index: {}]   ;;  %s64_s1 = inlined_call_operand.vmem [shape: f32[200], index: 1, kind: output, shape index: {}]  }
   0x1   :  { %v4_v0 = vld [vmem:[%s63_s0] sm:$0xf]  ;;  %s44_s0 = smov 22   ;;  %vm32_vm4 = vcmask 588976   ;;  %vm26_vm5 = vcmask 818576  }
   0x2   :  { %5 = vst [vmem:[#allocation1] sm:$0xf] %v4_v0 }
   0x9   :  { %v10_v1 = vld [vmem:[#allocation1 + $0x2] sm:$0x1]   ;;  %v29_v3 = vld [vmem:[#allocation1 + $0x3] sm:$0x1]   ;;  %v23_v5 = vld [vmem:[#allocation1 + $0x1] sm:$0x1]  }
   0xa   :  { %v12_v2 = vld [vmem:[#allocation1 + $0x2] sm:$0x1]   ;;  %30 = vrot.lane.b32.xlu1 %v29_v3, %s44_s0  ;;  %v6_v6 = vld [vmem:[#allocation1] sm:$0x1]  }
   0xb   :  { %v14_v4 = vsel %vm13_vm0, %v12_v2, %v10_v1  ;;  %8 = vst.msk [vmem:[#allocation0] sm:$0x1] %vm7_vm1, %v6_v6  }
   0xc   :  { %15 = vrot.lane.b32.xlu0 %v14_v4, %s45_s8 }
  0x14   :  { %24 = vrot.lane.b32.xlu0 %v23_v5, %s46_s9 }
  0x7c   :  { %v31_v7 = vpop.permute.xlu1 %30  }
  0x7e   :  { %v16_v8 = vpop.permute.xlu0 %15  }
  0x7f   :  { %19 = vst.msk [vmem:[#allocation0 + $0x1] sm:$0x1] %vm17_vm2, %v16_v8  }
  0x80   :  { %21 = vst.msk [vmem:[#allocation0] sm:$0x1] %vm20_vm3, %v16_v8  }
  0x81   :  { %34 = vst.msk [vmem:[#allocation0 + $0x1] sm:$0x1] %vm32_vm4, %v31_v7  }
  0x86   :  { %v25_v9 = vpop.permute.xlu0 %24  }
  0x87   :  { %27 = vst.msk [vmem:[#allocation0] sm:$0x1] %vm26_vm5, %v25_v9  }
  0x8e   :  { %v37_v10 = vld [vmem:[#allocation0] sm:$0x3] }
  0x8f   :  { %40 = vst [vmem:[%s64_s1] sm:$0x3] %v37_v10 }

// kernel: net_forward.1
= control target key start
LH: loop header
LB: loop body
LE: loop exit
PB: predicated region body
PF: predicated region fallthrough
CT: control target
= control target key end

     0   :  { %s16090_s1 = inlined_call_operand.vmem [shape: bf16[256,512], index: 1, kind: input, shape index: {}]   ;;  %s16091_s0 = inlined_call_operand.vmem [shape: f32[24,8,256], index: 0, kind: input, shape index: {}]   ;;  %s16092_s2 = inlined_call_operand.vmem [shape: f32[1,512], index: 2, kind: input, shape index: {}]   ;;  %s16093_s3 = inlined_call_operand.vmem [shape: bf16[5,256,512], index: 3, kind: input, shape index: {}]   ;;  %s16094_s5 = inlined_call_operand.vmem [shape: bf16[4,256,512], index: 5, kind: input, shape index: {}]   ;;  %s16095_s4 = inlined_call_operand.vmem [shape: f32[1,512], index: 4, kind: input, shape index: {}]   ;;  %s16096_s8 = inlined_call_operand.vmem [shape: f32[1,128], index: 8, kind: input, shape index: {}]   ;;  %s16097_s7 = inlined_call_operand.vmem [shape: bf16[512,128], index: 7, kind: input, shape index: {}]   ;;  %s16098_s6 = inlined_call_operand.vmem [shape: f32[1,512], index: 6, kind: input, shape index: {}]   ;;  %s16099_s9 = inlined_call_operand.vmem [shape: f32[8,128], index: 9, kind: output, shape index: {}]  }
   0x1   :  { %v6942_v0 = vld [vmem:[%s16090_s1 + $0xe0] sm:$0xf]  ;;  %v9994_v1 = vld [vmem:[%s16090_s1 + $0xec] sm:$0xf0]  ;;  %v9992_v5 = vld [vmem:[%s16090_s1 + $0xe4] sm:$0xf] }
   0x2   :  { %v7070_v2 = vld [vmem:[%s16090_s1 + $0x1e0] sm:$0xf]  ;;  %v6943_v3 = vor.u32 %v9994_v1, %v6942_v0  ;;  %v10026_v4 = vld [vmem:[%s16090_s1 + $0x1ec] sm:$0xf0]  ;;  %v6944_v6 = vld [vmem:[%s16090_s1 + $0xf0] sm:$0xf0] }
   0x3   :  { %v7071_v7 = vor.u32 %v10026_v4, %v7070_v2  ;;  %v6947_v8 = vor.u32 %v9992_v5, %v6944_v6  ;;  %v10024_v9 = vld [vmem:[%s16090_s1 + $0x1e4] sm:$0xf]  ;;  %v7072_v10 = vld [vmem:[%s16090_s1 + $0x1f0] sm:$0xf0]  ;;  %v6926_v11 = vld [vmem:[%s16090_s1 + $0xc0] sm:$0xf] }
   0x4   :  { %498 = vmatpush.bf16.msra.mxu0 %v6943_v3  ;;  %v7075_v12 = vor.u32 %v10024_v9, %v7072_v10  ;;  %v9990_v13 = vld [vmem:[%s16090_s1 + $0xcc] sm:$0xf0]  ;;  %v7054_v14 = vld [vmem:[%s16090_s1 + $0x1c0] sm:$0xf]  ;;  %v9988_v18 = vld [vmem:[%s16090_s1 + $0xc4] sm:$0xf] }
   0x5   :  { %v10022_v15 = vld [vmem:[%s16090_s1 + $0x1cc] sm:$0xf0]  ;;  %567 = vmatpush.bf16.msra.mxu1 %v7071_v7  ;;  %636 = vmatpush.bf16.msra.mxu2 %v6947_v8  ;;  %v6927_v16 = vor.u32 %v9990_v13, %v6926_v11  ;;  %v6928_v19 = vld [vmem:[%s16090_s1 + $0xd0] sm:$0xf0]  ;;  %v10020_v20 = vld [vmem:[%s16090_s1 + $0x1c4] sm:$0xf] }
   0x6   :  { %v7055_v17 = vor.u32 %v10022_v15, %v7054_v14  ;;  %705 = vmatpush.bf16.msra.mxu3 %v7075_v12  ;;  %v6931_v21 = vor.u32 %v9988_v18, %v6928_v19  ;;  %v7056_v22 = vld [vmem:[%s16090_s1 + $0x1d0] sm:$0xf0]  ;;  %v6910_v23 = vld [vmem:[%s16090_s1 + $0xa0] sm:$0xf]  ;;  %v9986_v24 = vld [vmem:[%s16090_s1 + $0xac] sm:$0xf0] }
   0x7   :  { %v7059_v25 = vor.u32 %v10020_v20, %v7056_v22  ;;  %v7038_v26 = vld [vmem:[%s16090_s1 + $0x1a0] sm:$0xf]  ;;  %v10018_v27 = vld [vmem:[%s16090_s1 + $0x1ac] sm:$0xf0]  ;;  %v9984_v28 = vld [vmem:[%s16090_s1 + $0xa4] sm:$0xf]  ;;  %v6911_v29 = vor.u32 %v9986_v24, %v6910_v23 }
   0x8   :  { %499 = vmatpush.bf16.msra.mxu0 %v6927_v16  ;;  %v6912_v30 = vld [vmem:[%s16090_s1 + $0xb0] sm:$0xf0]  ;;  %v10016_v31 = vld [vmem:[%s16090_s1 + $0x1a4] sm:$0xf]  ;;  %v7039_v33 = vor.u32 %v10018_v27, %v7038_v26  ;;  %v6894_v35 = vld [vmem:[%s16090_s1 + $0x80] sm:$0xf] }
   0x9   :  { %v7040_v32 = vld [vmem:[%s16090_s1 + $0x1b0] sm:$0xf0]  ;;  %568 = vmatpush.bf16.msra.mxu1 %v7055_v17  ;;  %637 = vmatpush.bf16.msra.mxu2 %v6931_v21  ;;  %v6915_v34 = vor.u32 %v9984_v28, %v6912_v30  ;;  %v9982_v36 = vld [vmem:[%s16090_s1 + $0x8c] sm:$0xf0]  ;;  %v7022_v37 = vld [vmem:[%s16090_s1 + $0x180] sm:$0xf] }
   0xa   :  { %706 = vmatpush.bf16.msra.mxu3 %v7059_v25  ;;  %v7043_v38 = vor.u32 %v10016_v31, %v7040_v32  ;;  %v10014_v39 = vld [vmem:[%s16090_s1 + $0x18c] sm:$0xf0]  ;;  %v9980_v40 = vld [vmem:[%s16090_s1 + $0x84] sm:$0xf]  ;;  %v6896_v41 = vld [vmem:[%s16090_s1 + $0x90] sm:$0xf0]  ;;  %v6895_v44 = vor.u32 %v9982_v36, %v6894_v35 }
   0xb   :  { %v10012_v42 = vld [vmem:[%s16090_s1 + $0x184] sm:$0xf]  ;;  %v7024_v43 = vld [vmem:[%s16090_s1 + $0x190] sm:$0xf0]  ;;  %v7023_v45 = vor.u32 %v10014_v39, %v7022_v37  ;;  %v6899_v46 = vor.u32 %v9980_v40, %v6896_v41  ;;  %v6878_v47 = vld [vmem:[%s16090_s1 + $0x60] sm:$0xf] }
   0xc   :  { %500 = vmatpush.bf16.msra.mxu0 %v6911_v29  ;;  %v9978_v48 = vld [vmem:[%s16090_s1 + $0x6c] sm:$0xf0]  ;;  %v7006_v49 = vld [vmem:[%s16090_s1 + $0x160] sm:$0xf]  ;;  %v7027_v50 = vor.u32 %v10012_v42, %v7024_v43  ;;  %v9976_v52 = vld [vmem:[%s16090_s1 + $0x64] sm:$0xf] }
   0xd   :  { %569 = vmatpush.bf16.msra.mxu1 %v7039_v33  ;;  %638 = vmatpush.bf16.msra.mxu2 %v6915_v34  ;;  %v10010_v51 = vld [vmem:[%s16090_s1 + $0x16c] sm:$0xf0]  ;;  %v6880_v53 = vld [vmem:[%s16090_s1 + $0x70] sm:$0xf0]  ;;  %v10008_v54 = vld [vmem:[%s16090_s1 + $0x164] sm:$0xf]  ;;  %v6879_v56 = vor.u32 %v9978_v48, %v6878_v47 }
   0xe   :  { %707 = vmatpush.bf16.msra.mxu3 %v7043_v38  ;;  %v7008_v55 = vld [vmem:[%s16090_s1 + $0x170] sm:$0xf0]  ;;  %v7007_v57 = vor.u32 %v10010_v51, %v7006_v49  ;;  %v6883_v58 = vor.u32 %v9976_v52, %v6880_v53  ;;  %v6862_v59 = vld [vmem:[%s16090_s1 + $0x40] sm:$0xf]  ;;  %v9974_v60 = vld [vmem:[%s16090_s1 + $0x4c] sm:$0xf0] }
   0xf   :  { %v6990_v61 = vld [vmem:[%s16090_s1 + $0x140] sm:$0xf]  ;;  %v7011_v62 = vor.u32 %v10008_v54, %v7008_v55  ;;  %v10006_v63 = vld [vmem:[%s16090_s1 + $0x14c] sm:$0xf0]  ;;  %v9972_v0 = vld [vmem:[%s16090_s1 + $0x44] sm:$0xf]  ;;  %v6863_v4 = vor.u32 %v9974_v60, %v6862_v59 }
  0x10   :  { %501 = vmatpush.bf16.msra.mxu0 %v6895_v44  ;;  %v6864_v1 = vld [vmem:[%s16090_s1 + $0x50] sm:$0xf0]  ;;  %v10004_v2 = vld [vmem:[%s16090_s1 + $0x144] sm:$0xf]  ;;  %v6991_v5 = vor.u32 %v10006_v63, %v6990_v61  ;;  %v6846_v7 = vld [vmem:[%s16090_s1 + $0x20] sm:$0xf] }
  0x11   :  { %570 = vmatpush.bf16.msra.mxu1 %v7023_v45  ;;  %639 = vmatpush.bf16.msra.mxu2 %v6899_v46  ;;  %v6992_v3 = vld [vmem:[%s16090_s1 + $0x150] sm:$0xf0]  ;;  %v6867_v6 = vor.u32 %v9972_v0, %v6864_v1  ;;  %v9970_v8 = vld [vmem:[%s16090_s1 + $0x2c] sm:$0xf0]  ;;  %v6974_v9 = vld [vmem:[%s16090_s1 + $0x120] sm:$0xf] }
  0x12   :  { %708 = vmatpush.bf16.msra.mxu3 %v7027_v50  ;;  %v6995_v10 = vor.u32 %v10004_v2, %v6992_v3  ;;  %v10002_v11 = vld [vmem:[%s16090_s1 + $0x12c] sm:$0xf0]  ;;  %v9968_v12 = vld [vmem:[%s16090_s1 + $0x24] sm:$0xf]  ;;  %v6848_v13 = vld [vmem:[%s16090_s1 + $0x30] sm:$0xf0]  ;;  %v6847_v16 = vor.u32 %v9970_v8, %v6846_v7 }
  0x13   :  { %v10000_v14 = vld [vmem:[%s16090_s1 + $0x124] sm:$0xf]  ;;  %v6976_v15 = vld [vmem:[%s16090_s1 + $0x130] sm:$0xf0]  ;;  %v6975_v17 = vor.u32 %v10002_v11, %v6974_v9  ;;  %v6851_v18 = vor.u32 %v9968_v12, %v6848_v13  ;;  %v6830_v19 = vld [vmem:[%s16090_s1] sm:$0xf] }
  0x14   :  { %502 = vmatpush.bf16.msra.mxu0 %v6879_v56  ;;  %v9966_v20 = vld [vmem:[%s16090_s1 + $0xc] sm:$0xf0]  ;;  %v6958_v21 = vld [vmem:[%s16090_s1 + $0x100] sm:$0xf]  ;;  %v6979_v22 = vor.u32 %v10000_v14, %v6976_v15  ;;  %v9964_v24 = vld [vmem:[%s16090_s1 + $0x4] sm:$0xf] }
  0x15   :  { %571 = vmatpush.bf16.msra.mxu1 %v7007_v57  ;;  %640 = vmatpush.bf16.msra.mxu2 %v6883_v58  ;;  %v9998_v23 = vld [vmem:[%s16090_s1 + $0x10c] sm:$0xf0]  ;;  %v6832_v25 = vld [vmem:[%s16090_s1 + $0x10] sm:$0xf0]  ;;  %v9996_v26 = vld [vmem:[%s16090_s1 + $0x104] sm:$0xf]  ;;  %v6831_v28 = vor.u32 %v9966_v20, %v6830_v19 }
  0x16   :  { %709 = vmatpush.bf16.msra.mxu3 %v7011_v62  ;;  %v6960_v27 = vld [vmem:[%s16090_s1 + $0x110] sm:$0xf0]  ;;  %v32_v29 = vld [vmem:[%s16091_s0] sm:$0xff]  ;;  %v6959_v31 = vor.u32 %v9998_v23, %v6958_v21  ;;  %v6835_v32 = vor.u32 %v9964_v24, %v6832_v25  ;;  %v33_v33 = vld [vmem:[%s16091_s0 + $0x8] sm:$0xff] }
  0x17   :  { %v34_v30 = vld [vmem:[%s16091_s0 + $0x10] sm:$0xff]  ;;  %v35_v34 = vld [vmem:[%s16091_s0 + $0x18] sm:$0xff]  ;;  %v6963_v35 = vor.u32 %v9996_v26, %v6960_v27  ;;  %v36_v38 = vld [vmem:[%s16091_s0 + $0x20] sm:$0xff] }
  0x18   :  { %503 = vmatpush.bf16.msra.mxu0 %v6863_v4  ;;  %v10891_v36 = vpack.c.bf16 %v34_v30, %v32_v29  ;;  %v10893_v37 = vpack.c.bf16 %v35_v34, %v33_v33  ;;  %v38_v39 = vld [vmem:[%s16091_s0 + $0x30] sm:$0xff]  ;;  %v37_v40 = vld [vmem:[%s16091_s0 + $0x28] sm:$0xff]  ;;  %v39_v41 = vld [vmem:[%s16091_s0 + $0x38] sm:$0xff] }
  0x19   :  { %572 = vmatpush.bf16.msra.mxu1 %v6991_v5  ;;  %641 = vmatpush.bf16.msra.mxu2 %v6867_v6  ;;  %v10911_v42 = vpack.c.bf16 %v38_v39, %v36_v38  ;;  %v10913_v43 = vpack.c.bf16 %v39_v41, %v37_v40  ;;  %v40_v44 = vld [vmem:[%s16091_s0 + $0x40] sm:$0xff]  ;;  %v42_v45 = vld [vmem:[%s16091_s0 + $0x50] sm:$0xff]  ;;  %v41_v46 = vld [vmem:[%s16091_s0 + $0x48] sm:$0xff] }
  0x1a   :  { %710 = vmatpush.bf16.msra.mxu3 %v6995_v10  ;;  %v43_v47 = vld [vmem:[%s16091_s0 + $0x58] sm:$0xff]  ;;  %v10931_v48 = vpack.c.bf16 %v42_v45, %v40_v44  ;;  %v9993_v50 = vld [vmem:[%s16090_s1 + $0xec] sm:$0xf]  ;;  %v6950_v55 = vld [vmem:[%s16090_s1 + $0xe8] sm:$0xf] }
  0x1b   :  { %v10933_v49 = vpack.c.bf16 %v43_v47, %v41_v46  ;;  %v6952_v51 = vld [vmem:[%s16090_s1 + $0xf8] sm:$0xf0]  ;;  %v10025_v52 = vld [vmem:[%s16090_s1 + $0x1ec] sm:$0xf]  ;;  %v9995_v56 = vld [vmem:[%s16090_s1 + $0xf4] sm:$0xf0] }
  0x1c   :  { %504 = vmatpush.bf16.msra.mxu0 %v6847_v16  ;;  %v6955_v53 = vor.u32 %v9993_v50, %v6952_v51  ;;  %v7080_v54 = vld [vmem:[%s16090_s1 + $0x1f8] sm:$0xf0]  ;;  %v6951_v58 = vor.u32 %v9995_v56, %v6950_v55  ;;  %v7078_v59 = vld [vmem:[%s16090_s1 + $0x1e8] sm:$0xf]  ;;  %v10027_v60 = vld [vmem:[%s16090_s1 + $0x1f4] sm:$0xf0] }
  0x1d   :  { %573 = vmatpush.bf16.msra.mxu1 %v6975_v17  ;;  %642 = vmatpush.bf16.msra.mxu2 %v6851_v18  ;;  %v7083_v57 = vor.u32 %v10025_v52, %v7080_v54  ;;  %v7079_v61 = vor.u32 %v10027_v60, %v7078_v59  ;;  %v44_v62 = vld [vmem:[%s16091_s0 + $0x60] sm:$0xff]  ;;  %v46_v63 = vld [vmem:[%s16091_s0 + $0x70] sm:$0xff]  ;;  %v45_v0 = vld [vmem:[%s16091_s0 + $0x68] sm:$0xff] }
  0x1e   :  { %711 = vmatpush.bf16.msra.mxu3 %v6979_v22  ;;  %v47_v1 = vld [vmem:[%s16091_s0 + $0x78] sm:$0xff]  ;;  %v10975_v2 = vpack.c.bf16 %v46_v63, %v44_v62  ;;  %v9989_v4 = vld [vmem:[%s16090_s1 + $0xcc] sm:$0xf]  ;;  %v6934_v9 = vld [vmem:[%s16090_s1 + $0xc8] sm:$0xf] }
  0x1f   :  { %v10977_v3 = vpack.c.bf16 %v47_v1, %v45_v0  ;;  %v6936_v5 = vld [vmem:[%s16090_s1 + $0xd8] sm:$0xf0]  ;;  %v10021_v6 = vld [vmem:[%s16090_s1 + $0x1cc] sm:$0xf]  ;;  %v9991_v10 = vld [vmem:[%s16090_s1 + $0xd4] sm:$0xf0] }
  0x20   :  { %505 = vmatpush.bf16.msra.mxu0 %v6831_v28  ;;  %v6939_v7 = vor.u32 %v9989_v4, %v6936_v5  ;;  %v7064_v8 = vld [vmem:[%s16090_s1 + $0x1d8] sm:$0xf0]  ;;  %v6935_v12 = vor.u32 %v9991_v10, %v6934_v9  ;;  %v48_v13 = vld [vmem:[%s16091_s0 + $0x80] sm:$0xff]  ;;  %v50_v14 = vld [vmem:[%s16091_s0 + $0x90] sm:$0xff] }
  0x21   :  { %574 = vmatpush.bf16.msra.mxu1 %v6959_v31  ;;  %643 = vmatpush.bf16.msra.mxu2 %v6835_v32  ;;  %v7067_v11 = vor.u32 %v10021_v6, %v7064_v8  ;;  %v49_v15 = vld [vmem:[%s16091_s0 + $0x88] sm:$0xff]  ;;  %v51_v16 = vld [vmem:[%s16091_s0 + $0x98] sm:$0xff]  ;;  %v11013_v17 = vpack.c.bf16 %v50_v14, %v48_v13  ;;  %v52_v22 = vld [vmem:[%s16091_s0 + $0xa0] sm:$0xff] }
  0x22   :  { %712 = vmatpush.bf16.msra.mxu3 %v6963_v35  ;;  %v11015_v18 = vpack.c.bf16 %v51_v16, %v49_v15  ;;  %v7062_v19 = vld [vmem:[%s16090_s1 + $0x1c8] sm:$0xf]  ;;  %v10023_v20 = vld [vmem:[%s16090_s1 + $0x1d4] sm:$0xf0]  ;;  %v54_v23 = vld [vmem:[%s16091_s0 + $0xb0] sm:$0xff] }
  0x23   :  { %506 = vmatmul.bf16.vlgmr.msra.gmra.mxu0 %v10891_v36  ;;  %v7063_v21 = vor.u32 %v10023_v20, %v7062_v19  ;;  %v53_v24 = vld [vmem:[%s16091_s0 + $0xa8] sm:$0xff]  ;;  %v55_v25 = vld [vmem:[%s16091_s0 + $0xb8] sm:$0xff]  ;;  %v11039_v26 = vpack.c.bf16 %v54_v23, %v52_v22  ;;  %v56_v44 = vld [vmem:[%s16091_s0 + $0xc0] sm:$0xff] }
  0x24   :  { %575 = vmatmul.bf16.vlgmr.msra.gmra.mxu1 %v10893_v37  ;;  %644 = vmatmul.bf16.vlgmr.msra.gmra.mxu2 %v10891_v36  ;;  %v11041_v27 = vpack.c.bf16 %v55_v25, %v53_v24  ;;  %v9985_v28 = vld [vmem:[%s16090_s1 + $0xac] sm:$0xf]  ;;  %v6920_v29 = vld [vmem:[%s16090_s1 + $0xb8] sm:$0xf0]  ;;  %v6918_v33 = vld [vmem:[%s16090_s1 + $0xa8] sm:$0xf] }
  0x25   :  { %713 = vmatmul.bf16.vlgmr.msra.gmra.mxu3 %v10893_v37  ;;  %912 = vmatpush.bf16.msrb.mxu2 %v6955_v53  ;;  %v10017_v30 = vld [vmem:[%s16090_s1 + $0x1ac] sm:$0xf]  ;;  %v6923_v31 = vor.u32 %v9985_v28, %v6920_v29  ;;  %v7048_v32 = vld [vmem:[%s16090_s1 + $0x1b8] sm:$0xf0]  ;;  %v9987_v34 = vld [vmem:[%s16090_s1 + $0xb4] sm:$0xf0] }
  0x26   :  { %981 = vmatpush.bf16.msrb.mxu3 %v7083_v57  ;;  %774 = vmatpush.bf16.msrb.mxu0 %v6951_v58  ;;  %v7051_v35 = vor.u32 %v10017_v30, %v7048_v32  ;;  %v6919_v38 = vor.u32 %v9987_v34, %v6918_v33  ;;  %v7046_v39 = vld [vmem:[%s16090_s1 + $0x1a8] sm:$0xf]  ;;  %v10019_v40 = vld [vmem:[%s16090_s1 + $0x1b4] sm:$0xf0]  ;;  %v58_v45 = vld [vmem:[%s16091_s0 + $0xd0] sm:$0xff] }
  0x27   :  { %843 = vmatpush.bf16.msrb.mxu1 %v7079_v61  ;;  %v7047_v41 = vor.u32 %v10019_v40, %v7046_v39  ;;  %v57_v46 = vld [vmem:[%s16091_s0 + $0xc8] sm:$0xff]  ;;  %v59_v47 = vld [vmem:[%s16091_s0 + $0xd8] sm:$0xff]  ;;  %v11083_v50 = vpack.c.bf16 %v58_v45, %v56_v44  ;;  %v60_v52 = vld [vmem:[%s16091_s0 + $0xe0] sm:$0xff] }
  0x28   :  { %v11085_v51 = vpack.c.bf16 %v59_v47, %v57_v46  ;;  %v62_v53 = vld [vmem:[%s16091_s0 + $0xf0] sm:$0xff]  ;;  %v61_v54 = vld [vmem:[%s16091_s0 + $0xe8] sm:$0xff]  ;;  %v63_v55 = vld [vmem:[%s16091_s0 + $0xf8] sm:$0xff] }
  0x29   :  { %913 = vmatpush.bf16.msrb.mxu2 %v6939_v7  ;;  %v9981_v56 = vld [vmem:[%s16090_s1 + $0x8c] sm:$0xf]  ;;  %v6904_v57 = vld [vmem:[%s16090_s1 + $0x98] sm:$0xf0]  ;;  %v11115_v61 = vpack.c.bf16 %v62_v53, %v60_v52  ;;  %v11117_v63 = vpack.c.bf16 %v63_v55, %v61_v54  ;;  %v6902_v0 = vld [vmem:[%s16090_s1 + $0x88] sm:$0xf] }
  0x2a   :  { %982 = vmatpush.bf16.msrb.mxu3 %v7067_v11  ;;  %775 = vmatpush.bf16.msrb.mxu0 %v6935_v12  ;;  %v10013_v58 = vld [vmem:[%s16090_s1 + $0x18c] sm:$0xf]  ;;  %v6907_v59 = vor.u32 %v9981_v56, %v6904_v57  ;;  %v7032_v60 = vld [vmem:[%s16090_s1 + $0x198] sm:$0xf0]  ;;  %v9983_v1 = vld [vmem:[%s16090_s1 + $0x94] sm:$0xf0] }
  0x2b   :  { %844 = vmatpush.bf16.msrb.mxu1 %v7063_v21  ;;  %v7035_v62 = vor.u32 %v10013_v58, %v7032_v60  ;;  %v7030_v4 = vld [vmem:[%s16090_s1 + $0x188] sm:$0xf]  ;;  %v6903_v5 = vor.u32 %v9983_v1, %v6902_v0  ;;  %v10015_v6 = vld [vmem:[%s16090_s1 + $0x194] sm:$0xf0]  ;;  %v11138_v8 = vld [vmem:[%s16092_s2] sm:$0xf] }
  0x2c   :  { %v7031_v7 = vor.u32 %v10015_v6, %v7030_v4  ;;  %v64_v9 = vld [vmem:[%s16091_s0 + $0x100] sm:$0xff]  ;;  %v66_v10 = vld [vmem:[%s16091_s0 + $0x110] sm:$0xff]  ;;  %v11147_v11 = vperm.slane %v11138_v8, 0  ;;  %v65_v12 = vld [vmem:[%s16091_s0 + $0x108] sm:$0xff]  ;;  %v11166_v22 = vperm.slane %v11138_v8, 1 }
  0x2d   :  { %914 = vmatpush.bf16.msrb.mxu2 %v6923_v31  ;;  %v67_v13 = vld [vmem:[%s16091_s0 + $0x118] sm:$0xff]  ;;  %v11155_v14 = vpack.c.bf16 %v66_v10, %v64_v9  ;;  %v9977_v23 = vld [vmem:[%s16090_s1 + $0x6c] sm:$0xf]  ;;  %v70_v44 = vld [vmem:[%s16091_s0 + $0x130] sm:$0xff] }
  0x2e   :  { %983 = vmatpush.bf16.msrb.mxu3 %v7051_v35  ;;  %776 = vmatpush.bf16.msrb.mxu0 %v6919_v38  ;;  %v11157_v16 = vpack.c.bf16 %v67_v13, %v65_v12  ;;  %v6888_v24 = vld [vmem:[%s16090_s1 + $0x78] sm:$0xf0]  ;;  %v10009_v28 = vld [vmem:[%s16090_s1 + $0x16c] sm:$0xf]  ;;  %v6886_v47 = vld [vmem:[%s16090_s1 + $0x68] sm:$0xf] }
  0x2f   :  { %845 = vmatpush.bf16.msrb.mxu1 %v7047_v41  ;;  %v6891_v25 = vor.u32 %v9977_v23, %v6888_v24  ;;  %v7016_v29 = vld [vmem:[%s16090_s1 + $0x178] sm:$0xf0]  ;;  %v68_v41 = vld [vmem:[%s16091_s0 + $0x120] sm:$0xff]  ;;  %v69_v45 = vld [vmem:[%s16091_s0 + $0x128] sm:$0xff] }
  0x30   :  { %v7019_v31 = vor.u32 %v10009_v28, %v7016_v29  ;;  %v71_v46 = vld [vmem:[%s16091_s0 + $0x138] sm:$0xff]  ;;  %v7014_v54 = vld [vmem:[%s16090_s1 + $0x168] sm:$0xf]  ;;  %v11211_v57 = vpack.c.bf16 %v70_v44, %v68_v41  ;;  %v9973_v24 = vld [vmem:[%s16090_s1 + $0x4c] sm:$0xf] }
  0x31   :  { %915 = vmatpush.bf16.msrb.mxu2 %v6907_v59  ;;  %v9979_v52 = vld [vmem:[%s16090_s1 + $0x74] sm:$0xf0]  ;;  %v11214_v0 = vpack.c.bf16 %v71_v46, %v69_v45  ;;  %v6870_v9 = vld [vmem:[%s16090_s1 + $0x48] sm:$0xf] }
  0x32   :  { %984 = vmatpush.bf16.msrb.mxu3 %v7035_v62  ;;  %777 = vmatpush.bf16.msrb.mxu0 %v6903_v5  ;;  %v6887_v53 = vor.u32 %v9979_v52, %v6886_v47  ;;  %v10011_v55 = vld [vmem:[%s16090_s1 + $0x174] sm:$0xf0]  ;;  %v6998_v12 = vld [vmem:[%s16090_s1 + $0x148] sm:$0xf] }
  0x33   :  { %511 = vmatmul.bf16.gmra.mxu0 %v10911_v42  ;;  %846 = vmatpush.bf16.msrb.mxu1 %v7031_v7  ;;  %v7015_v58 = vor.u32 %v10011_v55, %v7014_v54  ;;  %v9975_v10 = vld [vmem:[%s16090_s1 + $0x54] sm:$0xf0]  ;;  %v6854_v45 = vld [vmem:[%s16090_s1 + $0x28] sm:$0xf]  ;;  %v9969_v55 = vld [vmem:[%s16090_s1 + $0x2c] sm:$0xf] }
  0x34   :  { %580 = vmatmul.bf16.gmra.mxu1 %v10913_v43  ;;  %649 = vmatmul.bf16.gmra.mxu2 %v10911_v42  ;;  %v10007_v23 = vld [vmem:[%s16090_s1 + $0x154] sm:$0xf0]  ;;  %v6982_v47 = vld [vmem:[%s16090_s1 + $0x128] sm:$0xf] }
  0x35   :  { %718 = vmatmul.bf16.gmra.mxu3 %v10913_v43  ;;  %916 = vmatpush.bf16.msrb.mxu2 %v6891_v25  ;;  %v6872_v25 = vld [vmem:[%s16090_s1 + $0x58] sm:$0xf0]  ;;  %v9971_v46 = vld [vmem:[%s16090_s1 + $0x34] sm:$0xf0]  ;;  %v73_v52 = vld [vmem:[%s16091_s0 + $0x148] sm:$0xff] }
  0x36   :  { %985 = vmatpush.bf16.msrb.mxu3 %v7019_v31  ;;  %778 = vmatpush.bf16.msrb.mxu0 %v6887_v53  ;;  %v6875_v31 = vor.u32 %v9973_v24, %v6872_v25  ;;  %v6855_v53 = vor.u32 %v9971_v46, %v6854_v45  ;;  %v10003_v54 = vld [vmem:[%s16090_s1 + $0x134] sm:$0xf0] }
  0x37   :  { %847 = vmatpush.bf16.msrb.mxu1 %v7015_v58  ;;  %v6983_v58 = vor.u32 %v10003_v54, %v6982_v47  ;;  %v9999_v25 = vld [vmem:[%s16090_s1 + $0x114] sm:$0xf0] }
  0x39   :  { %917 = vmatpush.bf16.msrb.mxu2 %v6875_v31 }
  0x43   :  { %516 = vmatmul.bf16.gmra.mxu0 %v10931_v48 }
  0x44   :  { %585 = vmatmul.bf16.gmra.mxu1 %v10933_v49  ;;  %654 = vmatmul.bf16.gmra.mxu2 %v10931_v48 }
  0x45   :  { %723 = vmatmul.bf16.gmra.mxu3 %v10933_v49 }
  0x53   :  { %521 = vmatmul.bf16.gmra.mxu0 %v10975_v2 }
  0x54   :  { %590 = vmatmul.bf16.gmra.mxu1 %v10977_v3  ;;  %659 = vmatmul.bf16.gmra.mxu2 %v10975_v2 }
  0x55   :  { %728 = vmatmul.bf16.gmra.mxu3 %v10977_v3 }
  0x63   :  { %526 = vmatmul.bf16.gmra.mxu0 %v11013_v17 }
  0x64   :  { %595 = vmatmul.bf16.gmra.mxu1 %v11015_v18  ;;  %664 = vmatmul.bf16.gmra.mxu2 %v11013_v17 }
  0x65   :  { %733 = vmatmul.bf16.gmra.mxu3 %v11015_v18 }
  0x73   :  { %531 = vmatmul.bf16.gmra.mxu0 %v11039_v26 }
  0x74   :  { %600 = vmatmul.bf16.gmra.mxu1 %v11041_v27  ;;  %669 = vmatmul.bf16.gmra.mxu2 %v11039_v26 }
  0x75   :  { %738 = vmatmul.bf16.gmra.mxu3 %v11041_v27 }
  0x83   :  { %536 = vmatmul.bf16.gmra.mxu0 %v11083_v50 }
  0x84   :  { %605 = vmatmul.bf16.gmra.mxu1 %v11085_v51  ;;  %674 = vmatmul.bf16.gmra.mxu2 %v11083_v50 }
  0x85   :  { %743 = vmatmul.bf16.gmra.mxu3 %v11085_v51 }
  0x93   :  { %541 = vmatmul.bf16.gmra.mxu0 %v11115_v61 }
  0x94   :  { %610 = vmatmul.bf16.gmra.mxu1 %v11117_v63  ;;  %679 = vmatmul.bf16.gmra.mxu2 %v11115_v61 }
  0x95   :  { %748 = vmatmul.bf16.gmra.mxu3 %v11117_v63 }
  0xa0   :  { %v507_v15 = vpop.f32.mrf.mxu0 }
  0xa1   :  { %v508_v19 = vadd.f32 %v507_v15, %v11147_v11  ;;  %v576_v20 = vpop.f32.mrf.mxu1 }
  0xa3   :  { %v11160_v21 = vadd.f32 %v576_v20, %v508_v19  ;;  %546 = vmatmul.bf16.gmra.mxu0 %v11155_v14  ;;  %v6871_v20 = vor.u32 %v9975_v10, %v6870_v9  ;;  %v6838_v10 = vld [vmem:[%s16090_s1 + $0x8] sm:$0xf] }
  0xa4   :  { %615 = vmatmul.bf16.gmra.mxu1 %v11157_v16  ;;  %684 = vmatmul.bf16.gmra.mxu2 %v11155_v14 }
  0xa5   :  { %753 = vmatmul.bf16.gmra.mxu3 %v11157_v16  ;;  %779 = vmatpush.bf16.msrb.mxu0 %v6871_v20 }
  0xa7   :  { %v645_v30 = vpop.f32.mrf.mxu2 }
  0xa8   :  { %v646_v32 = vadd.f32 %v645_v30, %v11166_v22  ;;  %v714_v33 = vpop.f32.mrf.mxu3  ;;  %v509_v34 = vpop.f32.mrf.mxu0  ;;  %v6999_v30 = vor.u32 %v10007_v23, %v6998_v12  ;;  %v9967_v12 = vld [vmem:[%s16090_s1 + $0x14] sm:$0xf0] }
  0xa9   :  { %v510_v35 = vadd.f32 %v509_v34, %v11147_v11  ;;  %v578_v38 = vpop.f32.mrf.mxu1  ;;  %780 = vmatpush.bf16.msrb.mxu0 %v6855_v53  ;;  %v6839_v24 = vor.u32 %v9967_v12, %v6838_v10 }
  0xaa   :  { %v11183_v39 = vadd.f32 %v714_v33, %v646_v32  ;;  %v10005_v32 = vld [vmem:[%s16090_s1 + $0x14c] sm:$0xf]  ;;  %v7000_v33 = vld [vmem:[%s16090_s1 + $0x158] sm:$0xf0]  ;;  %848 = vmatpush.bf16.msrb.mxu1 %v6999_v30 }
  0xab   :  { %v11185_v40 = vadd.f32 %v578_v38, %v510_v35  ;;  %v72_v35 = vld [vmem:[%s16091_s0 + $0x140] sm:$0xff]  ;;  %v74_v38 = vld [vmem:[%s16091_s0 + $0x150] sm:$0xff]  ;;  %v7003_v41 = vor.u32 %v10005_v32, %v7000_v33 }
  0xad   :  { %986 = vmatpush.bf16.msrb.mxu3 %v7003_v41  ;;  %781 = vmatpush.bf16.msrb.mxu0 %v6839_v24 }
  0xae   :  { %849 = vmatpush.bf16.msrb.mxu1 %v6983_v58 }
  0xaf   :  { %v647_v56 = vpop.f32.mrf.mxu2 }
  0xb0   :  { %v648_v59 = vadd.f32 %v647_v56, %v11166_v22  ;;  %v716_v60 = vpop.f32.mrf.mxu3  ;;  %v512_v62 = vpop.f32.mrf.mxu0  ;;  %v75_v56 = vld [vmem:[%s16091_s0 + $0x158] sm:$0xff] }
  0xb1   :  { %v513_v1 = vadd.f32 %v512_v62, %v11147_v11  ;;  %v581_v4 = vpop.f32.mrf.mxu1  ;;  %v11303_v23 = vpack.c.bf16 %v75_v56, %v73_v52 }
  0xb2   :  { %v11217_v5 = vadd.f32 %v716_v60, %v648_v59  ;;  %v6856_v59 = vld [vmem:[%s16090_s1 + $0x38] sm:$0xf0]  ;;  %v10001_v60 = vld [vmem:[%s16090_s1 + $0x12c] sm:$0xf] }
  0xb3   :  { %v11219_v6 = vadd.f32 %v581_v4, %v513_v1  ;;  %551 = vmatmul.bf16.gmra.mxu0 %v11211_v57  ;;  %v6859_v62 = vor.u32 %v9969_v55, %v6856_v59  ;;  %v6984_v1 = vld [vmem:[%s16090_s1 + $0x138] sm:$0xf0] }
  0xb4   :  { %620 = vmatmul.bf16.gmra.mxu1 %v11214_v0  ;;  %689 = vmatmul.bf16.gmra.mxu2 %v11211_v57  ;;  %v6987_v9 = vor.u32 %v10001_v60, %v6984_v1  ;;  %v76_v60 = vld [vmem:[%s16091_s0 + $0x160] sm:$0xff]  ;;  %v77_v1 = vld [vmem:[%s16091_s0 + $0x168] sm:$0xff] }
  0xb5   :  { %758 = vmatmul.bf16.gmra.mxu3 %v11214_v0  ;;  %918 = vmatpush.bf16.msrb.mxu2 %v6859_v62  ;;  %v78_v62 = vld [vmem:[%s16091_s0 + $0x170] sm:$0xff] }
  0xb6   :  { %987 = vmatpush.bf16.msrb.mxu3 %v6987_v9  ;;  %v11347_v10 = vpack.c.bf16 %v78_v62, %v76_v60 }
  0xb7   :  { %v650_v7 = vpop.f32.mrf.mxu2 }
  0xb8   :  { %v651_v13 = vadd.f32 %v650_v7, %v11166_v22  ;;  %v719_v15 = vpop.f32.mrf.mxu3  ;;  %v514_v19 = vpop.f32.mrf.mxu0  ;;  %v11291_v7 = vpack.c.bf16 %v74_v38, %v72_v35  ;;  %v9997_v35 = vld [vmem:[%s16090_s1 + $0x10c] sm:$0xf]  ;;  %v6968_v38 = vld [vmem:[%s16090_s1 + $0x118] sm:$0xf0] }
  0xb9   :  { %v515_v28 = vadd.f32 %v514_v19, %v11147_v11  ;;  %v583_v29 = vpop.f32.mrf.mxu1  ;;  %v6971_v45 = vor.u32 %v9997_v35, %v6968_v38 }
  0xba   :  { %v11251_v34 = vadd.f32 %v719_v15, %v651_v13  ;;  %v6966_v13 = vld [vmem:[%s16090_s1 + $0x108] sm:$0xf] }
  0xbb   :  { %v11259_v44 = vadd.f32 %v583_v29, %v515_v28  ;;  %v9965_v28 = vld [vmem:[%s16090_s1 + $0xc] sm:$0xf]  ;;  %v6840_v29 = vld [vmem:[%s16090_s1 + $0x18] sm:$0xf0]  ;;  %v6967_v32 = vor.u32 %v9999_v25, %v6966_v13  ;;  %988 = vmatpush.bf16.msrb.mxu3 %v6971_v45 }
  0xbc   :  { %v6843_v33 = vor.u32 %v9965_v28, %v6840_v29 }
  0xbd   :  { %850 = vmatpush.bf16.msrb.mxu1 %v6967_v32 }
  0xbe   :  { %919 = vmatpush.bf16.msrb.mxu2 %v6843_v33 }
  0xbf   :  { %v652_v4 = vpop.f32.mrf.mxu2 }
  0xc0   :  { %v653_v15 = vadd.f32 %v652_v4, %v11166_v22  ;;  %v721_v19 = vpop.f32.mrf.mxu3  ;;  %v517_v20 = vpop.f32.mrf.mxu0  ;;  %v79_v4 = vld [vmem:[%s16091_s0 + $0x178] sm:$0xff] }
  0xc1   :  { %v518_v30 = vadd.f32 %v517_v20, %v11147_v11  ;;  %v586_v31 = vpop.f32.mrf.mxu1 }
  0xc2   :  { %v11321_v41 = vadd.f32 %v721_v19, %v653_v15  ;;  %v11350_v19 = vpack.c.bf16 %v79_v4, %v77_v1 }
  0xc3   :  { %v11323_v46 = vadd.f32 %v586_v31, %v518_v30  ;;  %556 = vmatmul.bf16.gmra.mxu0 %v11291_v7 }
  0xc4   :  { %625 = vmatmul.bf16.gmra.mxu1 %v11303_v23  ;;  %694 = vmatmul.bf16.gmra.mxu2 %v11291_v7 }
  0xc5   :  { %763 = vmatmul.bf16.gmra.mxu3 %v11303_v23 }
  0xc7   :  { %v655_v47 = vpop.f32.mrf.mxu2 }
  0xc8   :  { %v656_v52 = vadd.f32 %v655_v47, %v11166_v22  ;;  %v724_v53 = vpop.f32.mrf.mxu3  ;;  %v519_v54 = vpop.f32.mrf.mxu0 }
  0xc9   :  { %v520_v55 = vadd.f32 %v519_v54, %v11147_v11  ;;  %v588_v56 = vpop.f32.mrf.mxu1 }
  0xca   :  { %v11331_v58 = vadd.f32 %v724_v53, %v656_v52 }
  0xcb   :  { %v11333_v59 = vadd.f32 %v588_v56, %v520_v55 }
  0xcf   :  { %v657_v9 = vpop.f32.mrf.mxu2 }
  0xd0   :  { %v658_v12 = vadd.f32 %v657_v9, %v11166_v22  ;;  %v726_v13 = vpop.f32.mrf.mxu3  ;;  %v522_v15 = vpop.f32.mrf.mxu0 }
  0xd1   :  { %v523_v20 = vadd.f32 %v522_v15, %v11147_v11  ;;  %v591_v24 = vpop.f32.mrf.mxu1 }
  0xd2   :  { %v11353_v25 = vadd.f32 %v726_v13, %v658_v12 }
  0xd3   :  { %v11355_v28 = vadd.f32 %v591_v24, %v523_v20  ;;  %561 = vmatmul.bf16.gmra.mxu0 %v11347_v10 }
  0xd4   :  { %630 = vmatmul.bf16.gmra.mxu1 %v11350_v19  ;;  %699 = vmatmul.bf16.gmra.mxu2 %v11347_v10 }
  0xd5   :  { %768 = vmatmul.bf16.gmra.mxu3 %v11350_v19 }
  0xd7   :  { %v660_v29 = vpop.f32.mrf.mxu2 }
  0xd8   :  { %v661_v30 = vadd.f32 %v660_v29, %v11166_v22  ;;  %v729_v31 = vpop.f32.mrf.mxu3  ;;  %v524_v32 = vpop.f32.mrf.mxu0 }
  0xd9   :  { %v525_v33 = vadd.f32 %v524_v32, %v11147_v11  ;;  %v593_v35 = vpop.f32.mrf.mxu1 }
  0xda   :  { %v11363_v38 = vadd.f32 %v729_v31, %v661_v30 }
  0xdb   :  { %v11365_v45 = vadd.f32 %v593_v35, %v525_v33 }
  0xdf   :  { %v662_v47 = vpop.f32.mrf.mxu2 }
  0xe0   :  { %v663_v52 = vadd.f32 %v662_v47, %v11166_v22  ;;  %v731_v53 = vpop.f32.mrf.mxu3  ;;  %v527_v54 = vpop.f32.mrf.mxu0 }
  0xe1   :  { %v528_v55 = vadd.f32 %v527_v54, %v11147_v11  ;;  %v596_v56 = vpop.f32.mrf.mxu1 }
  0xe2   :  { %v11369_v60 = vadd.f32 %v731_v53, %v663_v52 }
  0xe3   :  { %v11371_v62 = vadd.f32 %v596_v56, %v528_v55  ;;  %782 = vmatmul.bf16.vlgmr.msrb.gmra.mxu0 %v10891_v36 }
  0xe4   :  { %851 = vmatmul.bf16.vlgmr.msrb.gmra.mxu1 %v10893_v37  ;;  %920 = vmatmul.bf16.vlgmr.msrb.gmra.mxu2 %v10891_v36 }
  0xe5   :  { %989 = vmatmul.bf16.vlgmr.msrb.gmra.mxu3 %v10893_v37 }
  0xe7   :  { %v665_v1 = vpop.f32.mrf.mxu2 }
  0xe8   :  { %v666_v4 = vadd.f32 %v665_v1, %v11166_v22  ;;  %v734_v9 = vpop.f32.mrf.mxu3  ;;  %v529_v12 = vpop.f32.mrf.mxu0 }
  0xe9   :  { %v530_v13 = vadd.f32 %v529_v12, %v11147_v11  ;;  %v598_v15 = vpop.f32.mrf.mxu1 }
  0xea   :  { %v11379_v20 = vadd.f32 %v734_v9, %v666_v4 }
  0xeb   :  { %v11381_v24 = vadd.f32 %v598_v15, %v530_v13 }
  0xef   :  { %v667_v29 = vpop.f32.mrf.mxu2 }
  0xf0   :  { %v668_v30 = vadd.f32 %v667_v29, %v11166_v22  ;;  %v736_v31 = vpop.f32.mrf.mxu3  ;;  %v532_v32 = vpop.f32.mrf.mxu0 }
  0xf1   :  { %v533_v36 = vadd.f32 %v532_v32, %v11147_v11  ;;  %v601_v37 = vpop.f32.mrf.mxu1 }
  0xf2   :  { %v11385_v33 = vadd.f32 %v736_v31, %v668_v30 }
  0xf3   :  { %v11387_v35 = vadd.f32 %v601_v37, %v533_v36  ;;  %787 = vmatmul.bf16.gmra.mxu0 %v10911_v42 }
  0xf4   :  { %856 = vmatmul.bf16.gmra.mxu1 %v10913_v43  ;;  %925 = vmatmul.bf16.gmra.mxu2 %v10911_v42 }
  0xf5   :  { %994 = vmatmul.bf16.gmra.mxu3 %v10913_v43 }
  0xf7   :  { %v670_v47 = vpop.f32.mrf.mxu2 }
  0xf8   :  { %v671_v52 = vadd.f32 %v670_v47, %v11166_v22  ;;  %v739_v53 = vpop.f32.mrf.mxu3  ;;  %v534_v54 = vpop.f32.mrf.mxu0 }
  0xf9   :  { %v535_v55 = vadd.f32 %v534_v54, %v11147_v11  ;;  %v603_v56 = vpop.f32.mrf.mxu1 }
  0xfa   :  { %v11395_v1 = vadd.f32 %v739_v53, %v671_v52 }
  0xfb   :  { %v11397_v4 = vadd.f32 %v603_v56, %v535_v55 }
  0xff   :  { %v672_v9 = vpop.f32.mrf.mxu2 }
 0x100   :  { %v673_v12 = vadd.f32 %v672_v9, %v11166_v22  ;;  %v741_v13 = vpop.f32.mrf.mxu3  ;;  %v537_v15 = vpop.f32.mrf.mxu0 }
 0x101   :  { %v538_v42 = vadd.f32 %v537_v15, %v11147_v11  ;;  %v606_v43 = vpop.f32.mrf.mxu1 }
 0x102   :  { %v11401_v29 = vadd.f32 %v741_v13, %v673_v12 }
 0x103   :  { %v11403_v30 = vadd.f32 %v606_v43, %v538_v42  ;;  %792 = vmatmul.bf16.gmra.mxu0 %v10931_v48 }
 0x104   :  { %861 = vmatmul.bf16.gmra.mxu1 %v10933_v49  ;;  %930 = vmatmul.bf16.gmra.mxu2 %v10931_v48 }
 0x105   :  { %999 = vmatmul.bf16.gmra.mxu3 %v10933_v49 }
 0x107   :  { %v675_v31 = vpop.f32.mrf.mxu2 }
 0x108   :  { %v676_v32 = vadd.f32 %v675_v31, %v11166_v22  ;;  %v744_v36 = vpop.f32.mrf.mxu3  ;;  %v539_v37 = vpop.f32.mrf.mxu0 }
 0x109   :  { %v540_v47 = vadd.f32 %v539_v37, %v11147_v11  ;;  %v608_v52 = vpop.f32.mrf.mxu1 }
 0x10a   :  { %v11411_v53 = vadd.f32 %v744_v36, %v676_v32 }
 0x10b   :  { %v11413_v54 = vadd.f32 %v608_v52, %v540_v47 }
 0x10f   :  { %v677_v55 = vpop.f32.mrf.mxu2 }
 0x110   :  { %v678_v56 = vadd.f32 %v677_v55, %v11166_v22  ;;  %v746_v9 = vpop.f32.mrf.mxu3  ;;  %v542_v12 = vpop.f32.mrf.mxu0 }
 0x111   :  { %v543_v48 = vadd.f32 %v542_v12, %v11147_v11  ;;  %v611_v49 = vpop.f32.mrf.mxu1 }
 0x112   :  { %v11417_v13 = vadd.f32 %v746_v9, %v678_v56 }
 0x113   :  { %v11419_v15 = vadd.f32 %v611_v49, %v543_v48  ;;  %797 = vmatmul.bf16.gmra.mxu0 %v10975_v2 }
 0x114   :  { %866 = vmatmul.bf16.gmra.mxu1 %v10977_v3  ;;  %935 = vmatmul.bf16.gmra.mxu2 %v10975_v2 }
 0x115   :  { %1004 = vmatmul.bf16.gmra.mxu3 %v10977_v3 }
 0x117   :  { %v680_v42 = vpop.f32.mrf.mxu2 }
 0x118   :  { %v681_v43 = vadd.f32 %v680_v42, %v11166_v22  ;;  %v749_v31 = vpop.f32.mrf.mxu3  ;;  %v544_v32 = vpop.f32.mrf.mxu0 }
 0x119   :  { %v545_v36 = vadd.f32 %v544_v32, %v11147_v11  ;;  %v613_v37 = vpop.f32.mrf.mxu1 }
 0x11a   :  { %v11427_v47 = vadd.f32 %v749_v31, %v681_v43 }
 0x11b   :  { %v11429_v52 = vadd.f32 %v613_v37, %v545_v36 }
 0x11f   :  { %v682_v55 = vpop.f32.mrf.mxu2 }
 0x120   :  { %v683_v56 = vadd.f32 %v682_v55, %v11166_v22  ;;  %v751_v9 = vpop.f32.mrf.mxu3  ;;  %v547_v12 = vpop.f32.mrf.mxu0 }
 0x121   :  { %v548_v2 = vadd.f32 %v547_v12, %v11147_v11  ;;  %v616_v3 = vpop.f32.mrf.mxu1  ;;  %v10152_v12 = vld [vmem:[%s16093_s3 + $0x3e4] sm:$0xf] }
 0x122   :  { %v11433_v48 = vadd.f32 %v751_v9, %v683_v56  ;;  %v10120_v9 = vld [vmem:[%s16093_s3 + $0x2e4] sm:$0xf] }
 0x123   :  { %v11435_v49 = vadd.f32 %v616_v3, %v548_v2  ;;  %802 = vmatmul.bf16.gmra.mxu0 %v11013_v17  ;;  %v7392_v2 = vld [vmem:[%s16093_s3 + $0x3f0] sm:$0xf0] }
 0x124   :  { %871 = vmatmul.bf16.gmra.mxu1 %v11015_v18  ;;  %940 = vmatmul.bf16.gmra.mxu2 %v11013_v17  ;;  %v7264_v17 = vld [vmem:[%s16093_s3 + $0x2f0] sm:$0xf0] }
 0x125   :  { %16108 = vst [vmem:[#allocation2_spill] sm:$0xff] %v11435_v49  ;;  %1009 = vmatmul.bf16.gmra.mxu3 %v11015_v18  ;;  %v7267_v18 = vor.u32 %v10120_v9, %v7264_v17 }
 0x127   :  { %v685_v42 = vpop.f32.mrf.mxu2  ;;  %1741 = vmatpush.bf16.msra.mxu2 %v7267_v18  ;;  %v7262_v18 = vld [vmem:[%s16093_s3 + $0x2e0] sm:$0xf] }
 0x128   :  { %v686_v43 = vadd.f32 %v685_v42, %v11166_v22  ;;  %v754_v31 = vpop.f32.mrf.mxu3  ;;  %v549_v32 = vpop.f32.mrf.mxu0  ;;  %v7395_v42 = vor.u32 %v10152_v12, %v7392_v2  ;;  %v10122_v12 = vld [vmem:[%s16093_s3 + $0x2ec] sm:$0xf0] }
 0x129   :  { %v550_v36 = vadd.f32 %v549_v32, %v11147_v11  ;;  %v618_v37 = vpop.f32.mrf.mxu1  ;;  %v7263_v2 = vor.u32 %v10122_v12, %v7262_v18 }
 0x12a   :  { %v11443_v55 = vadd.f32 %v754_v31, %v686_v43  ;;  %1770 = vmatpush.bf16.msra.mxu3 %v7395_v42  ;;  %v10154_v42 = vld [vmem:[%s16093_s3 + $0x3ec] sm:$0xf0] }
 0x12b   :  { %v11445_v56 = vadd.f32 %v618_v37, %v550_v36  ;;  %1683 = vmatpush.bf16.msra.mxu0 %v7263_v2 }
 0x12c   :  { %16109 = vst [vmem:[#allocation3_spill] sm:$0xff] %v11443_v55 }
 0x12d   :  { %16110 = vst [vmem:[#allocation4_spill] sm:$0xff] %v11445_v56 }
 0x12f   :  { %v687_v3 = vpop.f32.mrf.mxu2 }
 0x130   :  { %v688_v43 = vadd.f32 %v687_v3, %v11166_v22  ;;  %v756_v31 = vpop.f32.mrf.mxu3  ;;  %v552_v32 = vpop.f32.mrf.mxu0  ;;  %v7390_v3 = vld [vmem:[%s16093_s3 + $0x3e0] sm:$0xf] }
 0x131   :  { %v553_v36 = vadd.f32 %v552_v32, %v11147_v11  ;;  %v621_v37 = vpop.f32.mrf.mxu1 }
 0x132   :  { %v11461_v9 = vadd.f32 %v756_v31, %v688_v43  ;;  %v7391_v43 = vor.u32 %v10154_v42, %v7390_v3 }
 0x133   :  { %v11463_v17 = vadd.f32 %v621_v37, %v553_v36  ;;  %807 = vmatmul.bf16.gmra.mxu0 %v11039_v26 }
 0x134   :  { %16111 = vst [vmem:[#allocation5_spill] sm:$0xff] %v11461_v9  ;;  %876 = vmatmul.bf16.gmra.mxu1 %v11041_v27  ;;  %945 = vmatmul.bf16.gmra.mxu2 %v11039_v26 }
 0x135   :  { %16112 = vst [vmem:[#allocation6_spill] sm:$0xff] %v11463_v17  ;;  %1014 = vmatmul.bf16.gmra.mxu3 %v11041_v27  ;;  %1712 = vmatpush.bf16.msra.mxu1 %v7391_v43 }
 0x137   :  { %v690_v26 = vpop.f32.mrf.mxu2 }
 0x138   :  { %v691_v27 = vadd.f32 %v690_v26, %v11166_v22  ;;  %v759_v31 = vpop.f32.mrf.mxu3  ;;  %v554_v32 = vpop.f32.mrf.mxu0 }
 0x139   :  { %v555_v36 = vadd.f32 %v554_v32, %v11147_v11  ;;  %v623_v37 = vpop.f32.mrf.mxu1 }
 0x13a   :  { %v11483_v18 = vadd.f32 %v759_v31, %v691_v27 }
 0x13b   :  { %v11485_v12 = vadd.f32 %v623_v37, %v555_v36 }
 0x13f   :  { %v692_v17 = vpop.f32.mrf.mxu2 }
 0x140   :  { %v693_v9 = vadd.f32 %v692_v17, %v11166_v22  ;;  %v761_v55 = vpop.f32.mrf.mxu3  ;;  %v557_v56 = vpop.f32.mrf.mxu0  ;;  %v10116_v17 = vld [vmem:[%s16093_s3 + $0x2c4] sm:$0xf] }
 0x141   :  { %v558_v3 = vadd.f32 %v557_v56, %v11147_v11  ;;  %v626_v42 = vpop.f32.mrf.mxu1  ;;  %v10148_v56 = vld [vmem:[%s16093_s3 + $0x3c4] sm:$0xf] }
 0x142   :  { %v11489_v26 = vadd.f32 %v761_v55, %v693_v9  ;;  %v7248_v55 = vld [vmem:[%s16093_s3 + $0x2d0] sm:$0xf0] }
 0x143   :  { %v11491_v49 = vadd.f32 %v626_v42, %v558_v3  ;;  %812 = vmatmul.bf16.gmra.mxu0 %v11083_v50 }
 0x144   :  { %16113 = vst [vmem:[#allocation7_spill] sm:$0xff] %v11489_v26  ;;  %881 = vmatmul.bf16.gmra.mxu1 %v11085_v51  ;;  %950 = vmatmul.bf16.gmra.mxu2 %v11083_v50  ;;  %v7251_v50 = vor.u32 %v10116_v17, %v7248_v55 }
 0x145   :  { %16114 = vst [vmem:[#allocation8_spill] sm:$0xff] %v11491_v49  ;;  %1019 = vmatmul.bf16.gmra.mxu3 %v11085_v51  ;;  %v7376_v51 = vld [vmem:[%s16093_s3 + $0x3d0] sm:$0xf0] }
 0x146   :  { %v7379_v36 = vor.u32 %v10148_v56, %v7376_v51  ;;  %1742 = vmatpush.bf16.msra.mxu2 %v7251_v50  ;;  %v10118_v56 = vld [vmem:[%s16093_s3 + $0x2cc] sm:$0xf0] }
 0x147   :  { %v695_v2 = vpop.f32.mrf.mxu2 }
 0x148   :  { %v696_v9 = vadd.f32 %v695_v2, %v11166_v22  ;;  %v764_v43 = vpop.f32.mrf.mxu3  ;;  %v559_v27 = vpop.f32.mrf.mxu0  ;;  %1771 = vmatpush.bf16.msra.mxu3 %v7379_v36 }
 0x149   :  { %v560_v31 = vadd.f32 %v559_v27, %v11147_v11  ;;  %v628_v32 = vpop.f32.mrf.mxu1  ;;  %v7246_v27 = vld [vmem:[%s16093_s3 + $0x2c0] sm:$0xf] }
 0x14a   :  { %v11511_v37 = vadd.f32 %v764_v43, %v696_v9  ;;  %v7374_v9 = vld [vmem:[%s16093_s3 + $0x3c0] sm:$0xf]  ;;  %v7247_v50 = vor.u32 %v10118_v56, %v7246_v27  ;;  %v11544_v56 = vperm.slane %v11138_v8, 2 }
 0x14b   :  { %v11513_v3 = vadd.f32 %v628_v32, %v560_v31 }
 0x14c   :  { %1684 = vmatpush.bf16.msra.mxu0 %v7247_v50 }
 0x14f   :  { %v697_v42 = vpop.f32.mrf.mxu2 }
 0x150   :  { %v698_v2 = vadd.f32 %v697_v42, %v11166_v22  ;;  %v766_v49 = vpop.f32.mrf.mxu3  ;;  %v562_v26 = vpop.f32.mrf.mxu0 }
 0x151   :  { %v563_v17 = vadd.f32 %v562_v26, %v11147_v11  ;;  %v631_v55 = vpop.f32.mrf.mxu1  ;;  %v10150_v26 = vld [vmem:[%s16093_s3 + $0x3cc] sm:$0xf0] }
 0x152   :  { %v11526_v43 = vadd.f32 %v766_v49, %v698_v2  ;;  %v7375_v31 = vor.u32 %v10150_v26, %v7374_v9 }
 0x153   :  { %v11531_v51 = vadd.f32 %v631_v55, %v563_v17  ;;  %817 = vmatmul.bf16.gmra.mxu0 %v11115_v61 }
 0x154   :  { %886 = vmatmul.bf16.gmra.mxu1 %v11117_v63  ;;  %955 = vmatmul.bf16.gmra.mxu2 %v11115_v61 }
 0x155   :  { %16115 = vst [vmem:[#allocation9_spill] sm:$0xff] %v11531_v51  ;;  %1024 = vmatmul.bf16.gmra.mxu3 %v11117_v63  ;;  %1713 = vmatpush.bf16.msra.mxu1 %v7375_v31 }
 0x157   :  { %v700_v49 = vpop.f32.mrf.mxu2 }
 0x158   :  { %v701_v32 = vadd.f32 %v700_v49, %v11166_v22  ;;  %v769_v36 = vpop.f32.mrf.mxu3  ;;  %v564_v42 = vpop.f32.mrf.mxu0 }
 0x159   :  { %v565_v2 = vadd.f32 %v564_v42, %v11147_v11  ;;  %v633_v17 = vpop.f32.mrf.mxu1  ;;  %v10112_v11 = vld [vmem:[%s16093_s3 + $0x2a4] sm:$0xf] }
 0x15a   :  { %v11539_v55 = vadd.f32 %v769_v36, %v701_v32  ;;  %v7232_v32 = vld [vmem:[%s16093_s3 + $0x2b0] sm:$0xf0]  ;;  %v11563_v36 = vperm.slane %v11138_v8, 3 }
 0x15b   :  { %v11541_v27 = vadd.f32 %v633_v17, %v565_v2  ;;  %v7235_v42 = vor.u32 %v10112_v11, %v7232_v32  ;;  %v7360_v2 = vld [vmem:[%s16093_s3 + $0x3b0] sm:$0xf0]  ;;  %v1050_v17 = vmax.f32 %v11160_v21, 0.0  ;;  %v7230_v21 = vld [vmem:[%s16093_s3 + $0x2a0] sm:$0xf] }
 0x15c   :  { %16116 = vst [vmem:[#allocation10_spill] sm:$0xff] %v11539_v55 }
 0x15d   :  { %16117 = vst [vmem:[#allocation11_spill] sm:$0xff] %v11541_v27  ;;  %1743 = vmatpush.bf16.msra.mxu2 %v7235_v42 }
 0x15f   :  { %v702_v61 = vpop.f32.mrf.mxu2 }
 0x160   :  { %v703_v63 = vadd.f32 %v702_v61, %v11166_v22  ;;  %v771_v9 = vpop.f32.mrf.mxu3  ;;  %v783_v50 = vpop.f32.mrf.mxu0  ;;  %v10144_v22 = vld [vmem:[%s16093_s3 + $0x3a4] sm:$0xf] }
 0x161   :  { %v784_v26 = vadd.f32 %v783_v50, %v11544_v56  ;;  %v852_v31 = vpop.f32.mrf.mxu1 }
 0x162   :  { %v11548_v49 = vadd.f32 %v771_v9, %v703_v63  ;;  %v7363_v63 = vor.u32 %v10144_v22, %v7360_v2  ;;  %v10146_v2 = vld [vmem:[%s16093_s3 + $0x3ac] sm:$0xf0] }
 0x163   :  { %v853_v51 = vadd.f32 %v852_v31, %v784_v26  ;;  %822 = vmatmul.bf16.gmra.mxu0 %v11155_v14 }
 0x164   :  { %16118 = vst [vmem:[#allocation12_spill] sm:$0xff] %v11548_v49  ;;  %891 = vmatmul.bf16.gmra.mxu1 %v11157_v16  ;;  %960 = vmatmul.bf16.gmra.mxu2 %v11155_v14 }
 0x165   :  { %v1052_v61 = vmax.f32 %v853_v51, 0.0  ;;  %1029 = vmatmul.bf16.gmra.mxu3 %v11157_v16  ;;  %v10114_v16 = vld [vmem:[%s16093_s3 + $0x2ac] sm:$0xf0]  ;;  %v7358_v51 = vld [vmem:[%s16093_s3 + $0x3a0] sm:$0xf] }
 0x166   :  { %1772 = vmatpush.bf16.msra.mxu3 %v7363_v63  ;;  %v7231_v42 = vor.u32 %v10114_v16, %v7230_v21  ;;  %v7359_v63 = vor.u32 %v10146_v2, %v7358_v51  ;;  %v10142_v51 = vld [vmem:[%s16093_s3 + $0x38c] sm:$0xf0] }
 0x167   :  { %v11570_v9 = vmax.f32 %v1050_v17, %v1052_v61  ;;  %v921_v50 = vpop.f32.mrf.mxu2  ;;  %v1051_v17 = vmax.f32 %v11183_v39, 0.0  ;;  %v10110_v39 = vld [vmem:[%s16093_s3 + $0x28c] sm:$0xf0] }
 0x168   :  { %v922_v14 = vadd.f32 %v921_v50, %v11563_v36  ;;  %v990_v8 = vpop.f32.mrf.mxu3  ;;  %v785_v26 = vpop.f32.mrf.mxu0  ;;  %v1054_v50 = vmax.f32 %v11185_v40, 0.0  ;;  %1685 = vmatpush.bf16.msra.mxu0 %v7231_v42  ;;  %1714 = vmatpush.bf16.msra.mxu1 %v7359_v63  ;;  %v7342_v40 = vld [vmem:[%s16093_s3 + $0x380] sm:$0xf]  ;;  %v7216_v42 = vld [vmem:[%s16093_s3 + $0x290] sm:$0xf0] }
 0x169   :  { %v786_v31 = vadd.f32 %v785_v26, %v11544_v56  ;;  %v854_v11 = vpop.f32.mrf.mxu1  ;;  %v10140_v63 = vld [vmem:[%s16093_s3 + $0x384] sm:$0xf] }
 0x16a   :  { %v991_v32 = vadd.f32 %v990_v8, %v922_v14 }
 0x16b   :  { %v855_v22 = vadd.f32 %v854_v11, %v786_v31  ;;  %v7214_v31 = vld [vmem:[%s16093_s3 + $0x280] sm:$0xf] }
 0x16c   :  { %v1053_v61 = vmax.f32 %v991_v32, 0.0  ;;  %v7215_v16 = vor.u32 %v10110_v39, %v7214_v31 }
 0x16d   :  { %v1056_v14 = vmax.f32 %v855_v22, 0.0  ;;  %v10108_v22 = vld [vmem:[%s16093_s3 + $0x284] sm:$0xf] }
 0x16e   :  { %v11588_v8 = vmax.f32 %v1051_v17, %v1053_v61  ;;  %v7219_v61 = vor.u32 %v10108_v22, %v7216_v42  ;;  %1686 = vmatpush.bf16.msra.mxu0 %v7215_v16  ;;  %v7326_v22 = vld [vmem:[%s16093_s3 + $0x360] sm:$0xf]  ;;  %v10138_v16 = vld [vmem:[%s16093_s3 + $0x36c] sm:$0xf0]  ;;  %v10104_v42 = vld [vmem:[%s16093_s3 + $0x264] sm:$0xf] }
 0x16f   :  { %v11590_v26 = vmax.f32 %v1054_v50, %v1056_v14  ;;  %v923_v49 = vpop.f32.mrf.mxu2  ;;  %v7344_v50 = vld [vmem:[%s16093_s3 + $0x390] sm:$0xf0] }
 0x170   :  { %v924_v11 = vadd.f32 %v923_v49, %v11563_v36  ;;  %v992_v32 = vpop.f32.mrf.mxu3  ;;  %v788_v21 = vpop.f32.mrf.mxu0  ;;  %v7343_v49 = vor.u32 %v10142_v51, %v7342_v40  ;;  %v7347_v39 = vor.u32 %v10140_v63, %v7344_v50  ;;  %v7198_v40 = vld [vmem:[%s16093_s3 + $0x260] sm:$0xf]  ;;  %v10106_v51 = vld [vmem:[%s16093_s3 + $0x26c] sm:$0xf0]  ;;  %1744 = vmatpush.bf16.msra.mxu2 %v7219_v61 }
 0x171   :  { %v857_v17 = vpop.f32.mrf.mxu1  ;;  %v789_v31 = vadd.f32 %v788_v21, %v11544_v56  ;;  %v7199_v21 = vor.u32 %v10106_v51, %v7198_v40  ;;  %v7182_v51 = vld [vmem:[%s16093_s3 + $0x240] sm:$0xf] }
 0x172   :  { %v993_v14 = vadd.f32 %v992_v32, %v924_v11  ;;  %1715 = vmatpush.bf16.msra.mxu1 %v7343_v49  ;;  %v1055_v11 = vmax.f32 %v11217_v5, 0.0  ;;  %v7327_v49 = vor.u32 %v10138_v16, %v7326_v22  ;;  %v7200_v5 = vld [vmem:[%s16093_s3 + $0x270] sm:$0xf0]  ;;  %1773 = vmatpush.bf16.msra.mxu3 %v7347_v39  ;;  %v10102_v22 = vld [vmem:[%s16093_s3 + $0x24c] sm:$0xf0] }
 0x173   :  { %827 = vmatmul.bf16.gmra.mxu0 %v11211_v57  ;;  %v858_v50 = vadd.f32 %v857_v17, %v789_v31  ;;  %v7310_v17 = vld [vmem:[%s16093_s3 + $0x340] sm:$0xf]  ;;  %v10100_v16 = vld [vmem:[%s16093_s3 + $0x244] sm:$0xf] }
 0x174   :  { %v1057_v32 = vmax.f32 %v993_v14, 0.0  ;;  %896 = vmatmul.bf16.gmra.mxu1 %v11214_v0  ;;  %965 = vmatmul.bf16.gmra.mxu2 %v11211_v57  ;;  %v10136_v57 = vld [vmem:[%s16093_s3 + $0x364] sm:$0xf]  ;;  %v7203_v14 = vor.u32 %v10104_v42, %v7200_v5  ;;  %v7184_v42 = vld [vmem:[%s16093_s3 + $0x250] sm:$0xf0] }
 0x175   :  { %1034 = vmatmul.bf16.gmra.mxu3 %v11214_v0  ;;  %1687 = vmatpush.bf16.msra.mxu0 %v7199_v21  ;;  %v7328_v0 = vld [vmem:[%s16093_s3 + $0x370] sm:$0xf0]  ;;  %v10134_v21 = vld [vmem:[%s16093_s3 + $0x34c] sm:$0xf0]  ;;  %v1060_v31 = vmax.f32 %v858_v50, 0.0  ;;  %v1058_v50 = vmax.f32 %v11219_v6, 0.0 }
 0x176   :  { %v11646_v63 = vmax.f32 %v1055_v11, %v1057_v32  ;;  %1716 = vmatpush.bf16.msra.mxu1 %v7327_v49  ;;  %v7331_v40 = vor.u32 %v10136_v57, %v7328_v0  ;;  %v7183_v32 = vor.u32 %v10102_v22, %v7182_v51  ;;  %1745 = vmatpush.bf16.msra.mxu2 %v7203_v14  ;;  %v10132_v51 = vld [vmem:[%s16093_s3 + $0x344] sm:$0xf]  ;;  %v7312_v22 = vld [vmem:[%s16093_s3 + $0x350] sm:$0xf0]  ;;  %v7166_v14 = vld [vmem:[%s16093_s3 + $0x220] sm:$0xf] }
 0x177   :  { %v926_v61 = vpop.f32.mrf.mxu2  ;;  %v7311_v57 = vor.u32 %v10134_v21, %v7310_v17  ;;  %v7187_v0 = vor.u32 %v10100_v16, %v7184_v42  ;;  %v7315_v27 = vor.u32 %v10132_v51, %v7312_v22  ;;  %v10098_v17 = vld [vmem:[%s16093_s3 + $0x22c] sm:$0xf0]  ;;  %v1062_v21 = vmax.f32 %v11259_v44, 0.0  ;;  %v10128_v6 = vld [vmem:[%s16093_s3 + $0x324] sm:$0xf] }
 0x178   :  { %v995_v39 = vpop.f32.mrf.mxu3  ;;  %v790_v11 = vpop.f32.mrf.mxu0  ;;  %v927_v2 = vadd.f32 %v926_v61, %v11563_v36  ;;  %1774 = vmatpush.bf16.msra.mxu3 %v7331_v40  ;;  %v7167_v61 = vor.u32 %v10098_v17, %v7166_v14  ;;  %v10130_v40 = vld [vmem:[%s16093_s3 + $0x32c] sm:$0xf0]  ;;  %v7296_v51 = vld [vmem:[%s16093_s3 + $0x330] sm:$0xf0]  ;;  %v1150_v44 = vmax.f32 %v1058_v50, %v1060_v31  ;;  %v7150_v14 = vld [vmem:[%s16093_s3 + $0x200] sm:$0xf] }
 0x179   :  { %v791_v49 = vadd.f32 %v790_v11, %v11544_v56  ;;  %v859_v5 = vpop.f32.mrf.mxu1  ;;  %1688 = vmatpush.bf16.msra.mxu0 %v7183_v32  ;;  %v7294_v11 = vld [vmem:[%s16093_s3 + $0x320] sm:$0xf]  ;;  %v10096_v32 = vld [vmem:[%s16093_s3 + $0x224] sm:$0xf]  ;;  %v7299_v22 = vor.u32 %v10128_v6, %v7296_v51  ;;  %v10126_v50 = vld [vmem:[%s16093_s3 + $0x30c] sm:$0xf0] }
 0x17a   :  { %1717 = vmatpush.bf16.msra.mxu1 %v7311_v57  ;;  %1746 = vmatpush.bf16.msra.mxu2 %v7187_v0  ;;  %v7295_v42 = vor.u32 %v10130_v40, %v7294_v11  ;;  %v7152_v40 = vld [vmem:[%s16093_s3 + $0x210] sm:$0xf0] }
 0x17b   :  { %v860_v55 = vadd.f32 %v859_v5, %v791_v49  ;;  %v7168_v49 = vld [vmem:[%s16093_s3 + $0x230] sm:$0xf0]  ;;  %v996_v5 = vadd.f32 %v995_v39, %v927_v2  ;;  %v10094_v2 = vld [vmem:[%s16093_s3 + $0x20c] sm:$0xf0] }
 0x17c   :  { %1775 = vmatpush.bf16.msra.mxu3 %v7315_v27  ;;  %v7171_v57 = vor.u32 %v10096_v32, %v7168_v49  ;;  %v7278_v27 = vld [vmem:[%s16093_s3 + $0x300] sm:$0xf]  ;;  %v7151_v11 = vor.u32 %v10094_v2, %v7150_v14  ;;  %v10124_v49 = vld [vmem:[%s16093_s3 + $0x304] sm:$0xf]  ;;  %v7280_v6 = vld [vmem:[%s16093_s3 + $0x310] sm:$0xf0] }
 0x17d   :  { %v1064_v16 = vmax.f32 %v860_v55, 0.0  ;;  %1689 = vmatpush.bf16.msra.mxu0 %v7167_v61  ;;  %v10092_v61 = vld [vmem:[%s16093_s3 + $0x204] sm:$0xf]  ;;  %v1061_v51 = vmax.f32 %v996_v5, 0.0  ;;  %v7283_v14 = vor.u32 %v10124_v49, %v7280_v6  ;;  %v1059_v2 = vmax.f32 %v11251_v34, 0.0 }
 0x17e   :  { %1718 = vmatpush.bf16.msra.mxu1 %v7295_v42  ;;  %1747 = vmatpush.bf16.msra.mxu2 %v7171_v57  ;;  %v7155_v42 = vor.u32 %v10092_v61, %v7152_v40 }
 0x17f   :  { %v1152_v55 = vmax.f32 %v1062_v21, %v1064_v16  ;;  %v928_v0 = vpop.f32.mrf.mxu2  ;;  %v7279_v16 = vor.u32 %v10126_v50, %v7278_v27  ;;  %v1063_v27 = vmax.f32 %v11321_v41, 0.0  ;;  %v16120_v41 = vmax.f32 %v11588_v8, %v11646_v63 }
 0x180   :  { %v929_v39 = vadd.f32 %v928_v0, %v11563_v36  ;;  %v997_v17 = vpop.f32.mrf.mxu3  ;;  %v793_v31 = vpop.f32.mrf.mxu0  ;;  %1776 = vmatpush.bf16.msra.mxu3 %v7299_v22 }
 0x181   :  { %v1196_v32 = vmax.f32 %v1150_v44, %v1152_v55  ;;  %v862_v21 = vpop.f32.mrf.mxu1  ;;  %1690 = vmatpush.bf16.msra.mxu0 %v7151_v11  ;;  %v16119_v44 = vmax.f32 %v11570_v9, %v11590_v26  ;;  %v794_v57 = vadd.f32 %v793_v31, %v11544_v56  ;;  %v1151_v9 = vmax.f32 %v1059_v2, %v1061_v51 }
 0x182   :  { %v998_v0 = vadd.f32 %v997_v17, %v929_v39  ;;  %1719 = vmatpush.bf16.msra.mxu1 %v7279_v16  ;;  %1748 = vmatpush.bf16.msra.mxu2 %v7155_v42  ;;  %v1066_v16 = vmax.f32 %v11323_v46, 0.0  ;;  %v1067_v46 = vmax.f32 %v11331_v58, 0.0 }
 0x183   :  { %v11733_v55 = vpack.c.bf16 %v1196_v32, %v16119_v44  ;;  %832 = vmatmul.bf16.gmra.mxu0 %v11291_v7  ;;  %v863_v5 = vadd.f32 %v862_v21, %v794_v57  ;;  %v1070_v21 = vmax.f32 %v11333_v59, 0.0  ;;  %v1071_v59 = vmax.f32 %v11353_v25, 0.0 }
 0x184   :  { %v1065_v50 = vmax.f32 %v998_v0, 0.0  ;;  %901 = vmatmul.bf16.gmra.mxu1 %v11303_v23  ;;  %970 = vmatmul.bf16.gmra.mxu2 %v11291_v7 }
 0x185   :  { %1039 = vmatmul.bf16.gmra.mxu3 %v11303_v23  ;;  %v1068_v23 = vmax.f32 %v863_v5, 0.0 }
 0x186   :  { %v1153_v26 = vmax.f32 %v1063_v27, %v1065_v50  ;;  %1777 = vmatpush.bf16.msra.mxu3 %v7283_v14 }
 0x187   :  { %v931_v22 = vpop.f32.mrf.mxu2  ;;  %v1154_v6 = vmax.f32 %v1066_v16, %v1068_v23 }
 0x188   :  { %v1197_v39 = vmax.f32 %v1151_v9, %v1153_v26  ;;  %v1000_v17 = vpop.f32.mrf.mxu3  ;;  %v795_v31 = vpop.f32.mrf.mxu0  ;;  %v932_v7 = vadd.f32 %v931_v22, %v11563_v36 }
 0x189   :  { %v796_v34 = vadd.f32 %v795_v31, %v11544_v56  ;;  %v864_v11 = vpop.f32.mrf.mxu1 }
 0x18a   :  { %v11746_v61 = vpack.c.bf16 %v1197_v39, %v16120_v41  ;;  %v1001_v49 = vadd.f32 %v1000_v17, %v932_v7 }
 0x18b   :  { %v865_v40 = vadd.f32 %v864_v11, %v796_v34 }
 0x18c   :  { %v1069_v2 = vmax.f32 %v1001_v49, 0.0 }
 0x18d   :  { %v1072_v42 = vmax.f32 %v865_v40, 0.0 }
 0x18e   :  { %v1155_v5 = vmax.f32 %v1067_v46, %v1069_v2 }
 0x18f   :  { %v1156_v51 = vmax.f32 %v1070_v21, %v1072_v42  ;;  %v933_v0 = vpop.f32.mrf.mxu2 }
 0x190   :  { %v934_v14 = vadd.f32 %v933_v0, %v11563_v36  ;;  %v1002_v44 = vpop.f32.mrf.mxu3  ;;  %v798_v57 = vpop.f32.mrf.mxu0 }
 0x191   :  { %v1198_v8 = vmax.f32 %v1154_v6, %v1156_v51  ;;  %v867_v63 = vpop.f32.mrf.mxu1  ;;  %v799_v9 = vadd.f32 %v798_v57, %v11544_v56 }
 0x192   :  { %v1003_v27 = vadd.f32 %v1002_v44, %v934_v14 }
 0x193   :  { %v11752_v50 = vpack.c.bf16 %v1198_v8, %v1196_v32  ;;  %837 = vmatmul.bf16.gmra.mxu0 %v11347_v10  ;;  %v868_v17 = vadd.f32 %v867_v63, %v799_v9 }
 0x194   :  { %v1073_v26 = vmax.f32 %v1003_v27, 0.0  ;;  %906 = vmatmul.bf16.gmra.mxu1 %v11350_v19  ;;  %975 = vmatmul.bf16.gmra.mxu2 %v11347_v10  ;;  %v1074_v10 = vmax.f32 %v11355_v28, 0.0  ;;  %v1075_v28 = vmax.f32 %v11363_v38, 0.0 }
 0x195   :  { %1044 = vmatmul.bf16.gmra.mxu3 %v11350_v19  ;;  %v1076_v23 = vmax.f32 %v868_v17, 0.0  ;;  %v1078_v19 = vmax.f32 %v11365_v45, 0.0  ;;  %v1079_v45 = vmax.f32 %v11369_v60, 0.0 }
 0x196   :  { %v1157_v22 = vmax.f32 %v1071_v59, %v1073_v26 }
 0x197   :  { %v936_v32 = vpop.f32.mrf.mxu2  ;;  %v1158_v42 = vmax.f32 %v1074_v10, %v1076_v23 }
 0x198   :  { %v1199_v31 = vmax.f32 %v1155_v5, %v1157_v22  ;;  %v1005_v34 = vpop.f32.mrf.mxu3  ;;  %v800_v11 = vpop.f32.mrf.mxu0  ;;  %v937_v25 = vadd.f32 %v936_v32, %v11563_v36 }
 0x199   :  { %v801_v41 = vadd.f32 %v800_v11, %v11544_v56  ;;  %v869_v7 = vpop.f32.mrf.mxu1 }
 0x19a   :  { %v11762_v58 = vpack.c.bf16 %v1199_v31, %v1197_v39  ;;  %v1006_v21 = vadd.f32 %v1005_v34, %v937_v25  ;;  %v1086_v25 = vmax.f32 %v11381_v24, 0.0  ;;  %v1087_v24 = vmax.f32 %v11385_v33, 0.0 }
 0x19b   :  { %v870_v40 = vadd.f32 %v869_v7, %v801_v41  ;;  %v1082_v7 = vmax.f32 %v11371_v62, 0.0  ;;  %v1083_v62 = vmax.f32 %v11379_v20, 0.0 }
 0x19c   :  { %v1077_v57 = vmax.f32 %v1006_v21, 0.0 }
 0x19d   :  { %v1080_v16 = vmax.f32 %v870_v40, 0.0 }
 0x19e   :  { %v1159_v46 = vmax.f32 %v1075_v28, %v1077_v57 }
 0x19f   :  { %v1160_v49 = vmax.f32 %v1078_v19, %v1080_v16  ;;  %v938_v6 = vpop.f32.mrf.mxu2 }
 0x1a0   :  { %v939_v51 = vadd.f32 %v938_v6, %v11563_v36  ;;  %v1007_v0 = vpop.f32.mrf.mxu3  ;;  %v803_v14 = vpop.f32.mrf.mxu0 }
 0x1a1   :  { %v1200_v44 = vmax.f32 %v1158_v42, %v1160_v49  ;;  %v872_v39 = vpop.f32.mrf.mxu1  ;;  %v804_v27 = vadd.f32 %v803_v14, %v11544_v56 }
 0x1a2   :  { %v1008_v63 = vadd.f32 %v1007_v0, %v939_v51 }
 0x1a3   :  { %v11768_v2 = vpack.c.bf16 %v1200_v44, %v1198_v8  ;;  %1691 = vmatmul.bf16.vlgmr.msra.gmra.mxu0 %v11752_v50  ;;  %v873_v26 = vadd.f32 %v872_v39, %v804_v27 }
 0x1a4   :  { %v1081_v9 = vmax.f32 %v1008_v63, 0.0  ;;  %1720 = vmatmul.bf16.vlgmr.msra.gmra.mxu1 %v11762_v58  ;;  %1749 = vmatmul.bf16.vlgmr.msra.gmra.mxu2 %v11752_v50 }
 0x1a5   :  { %1778 = vmatmul.bf16.vlgmr.msra.gmra.mxu3 %v11762_v58  ;;  %v1084_v11 = vmax.f32 %v873_v26, 0.0 }
 0x1a6   :  { %v1161_v59 = vmax.f32 %v1079_v45, %v1081_v9 }
 0x1a7   :  { %v941_v8 = vpop.f32.mrf.mxu2  ;;  %v1162_v10 = vmax.f32 %v1082_v7, %v1084_v11 }
 0x1a8   :  { %v1201_v5 = vmax.f32 %v1159_v46, %v1161_v59  ;;  %v1010_v22 = vpop.f32.mrf.mxu3  ;;  %v805_v17 = vpop.f32.mrf.mxu0  ;;  %v942_v60 = vadd.f32 %v941_v8, %v11563_v36 }
 0x1a9   :  { %v806_v32 = vadd.f32 %v805_v17, %v11544_v56  ;;  %v874_v34 = vpop.f32.mrf.mxu1  ;;  %v1090_v17 = vmax.f32 %v11387_v35, 0.0 }
 0x1aa   :  { %v11778_v38 = vpack.c.bf16 %v1201_v5, %v1199_v31  ;;  %v1011_v40 = vadd.f32 %v1010_v22, %v942_v60 }
 0x1ab   :  { %v875_v41 = vadd.f32 %v874_v34, %v806_v32  ;;  %v1094_v32 = vmax.f32 %v11397_v4, 0.0  ;;  %v1091_v4 = vmax.f32 %v11395_v1, 0.0  ;;  %v7272_v1 = vld [vmem:[%s16093_s3 + $0x2f8] sm:$0xf0] }
 0x1ac   :  { %v1085_v51 = vmax.f32 %v1011_v40, 0.0 }
 0x1ad   :  { %v1088_v23 = vmax.f32 %v875_v41, 0.0 }
 0x1ae   :  { %v1163_v63 = vmax.f32 %v1083_v62, %v1085_v51  ;;  %v10123_v51 = vld [vmem:[%s16093_s3 + $0x2f4] sm:$0xf0] }
 0x1af   :  { %v1164_v19 = vmax.f32 %v1086_v25, %v1088_v23  ;;  %v943_v16 = vpop.f32.mrf.mxu2 }
 0x1b0   :  { %v944_v21 = vadd.f32 %v943_v16, %v11563_v36  ;;  %v1012_v42 = vpop.f32.mrf.mxu3  ;;  %v808_v49 = vpop.f32.mrf.mxu0 }
 0x1b1   :  { %v1202_v6 = vmax.f32 %v1162_v10, %v1164_v19  ;;  %v877_v31 = vpop.f32.mrf.mxu1  ;;  %v809_v39 = vadd.f32 %v808_v49, %v11544_v56 }
 0x1b2   :  { %v1013_v0 = vadd.f32 %v1012_v42, %v944_v21  ;;  %v1095_v42 = vmax.f32 %v11401_v29, 0.0 }
 0x1b3   :  { %v11784_v14 = vpack.c.bf16 %v1202_v6, %v1200_v44  ;;  %v878_v28 = vadd.f32 %v877_v31, %v809_v39  ;;  %v7270_v31 = vld [vmem:[%s16093_s3 + $0x2e8] sm:$0xf] }
 0x1b4   :  { %v1089_v57 = vmax.f32 %v1013_v0, 0.0 }
 0x1b5   :  { %1696 = vmatmul.bf16.gmra.mxu0 %v11784_v14  ;;  %1754 = vmatmul.bf16.gmra.mxu2 %v11784_v14  ;;  %v1092_v33 = vmax.f32 %v878_v28, 0.0 }
 0x1b6   :  { %v1165_v27 = vmax.f32 %v1087_v24, %v1089_v57  ;;  %v7271_v24 = vor.u32 %v10123_v51, %v7270_v31 }
 0x1b7   :  { %v946_v45 = vpop.f32.mrf.mxu2  ;;  %v1166_v11 = vmax.f32 %v1090_v17, %v1092_v33 }
 0x1b8   :  { %v1203_v9 = vmax.f32 %v1163_v63, %v1165_v27  ;;  %v1015_v46 = vpop.f32.mrf.mxu3  ;;  %v810_v59 = vpop.f32.mrf.mxu0  ;;  %v947_v20 = vadd.f32 %v946_v45, %v11563_v36  ;;  %1799 = vmatpush.bf16.msrb.mxu0 %v7271_v24  ;;  %v10149_v24 = vld [vmem:[%s16093_s3 + $0x3cc] sm:$0xf] }
 0x1b9   :  { %v811_v44 = vadd.f32 %v810_v59, %v11544_v56  ;;  %v879_v26 = vpop.f32.mrf.mxu1 }
 0x1ba   :  { %v11792_v8 = vpack.c.bf16 %v1203_v9, %v1201_v5  ;;  %v1016_v60 = vadd.f32 %v1015_v46, %v947_v20  ;;  %v10117_v20 = vld [vmem:[%s16093_s3 + $0x2cc] sm:$0xf] }
 0x1bb   :  { %v880_v22 = vadd.f32 %v879_v26, %v811_v44  ;;  %v7254_v44 = vld [vmem:[%s16093_s3 + $0x2c8] sm:$0xf]  ;;  %v10119_v26 = vld [vmem:[%s16093_s3 + $0x2d4] sm:$0xf0] }
 0x1bc   :  { %1725 = vmatmul.bf16.gmra.mxu1 %v11792_v8  ;;  %1783 = vmatmul.bf16.gmra.mxu3 %v11792_v8  ;;  %v1093_v19 = vmax.f32 %v1016_v60, 0.0  ;;  %v7255_v17 = vor.u32 %v10119_v26, %v7254_v44  ;;  %v7222_v44 = vld [vmem:[%s16093_s3 + $0x288] sm:$0xf]  ;;  %v10111_v26 = vld [vmem:[%s16093_s3 + $0x294] sm:$0xf0] }
 0x1bd   :  { %v1096_v34 = vmax.f32 %v880_v22, 0.0 }
 0x1be   :  { %v1167_v0 = vmax.f32 %v1091_v4, %v1093_v19  ;;  %1800 = vmatpush.bf16.msrb.mxu0 %v7255_v17 }
 0x1bf   :  { %v1168_v41 = vmax.f32 %v1094_v32, %v1096_v34  ;;  %v948_v7 = vpop.f32.mrf.mxu2  ;;  %v7256_v32 = vld [vmem:[%s16093_s3 + $0x2d8] sm:$0xf0] }
 0x1c0   :  { %v949_v5 = vadd.f32 %v948_v7, %v11563_v36  ;;  %v1017_v25 = vpop.f32.mrf.mxu3  ;;  %v813_v23 = vpop.f32.mrf.mxu0  ;;  %v7259_v60 = vor.u32 %v10117_v20, %v7256_v32  ;;  %v1098_v7 = vmax.f32 %v11403_v30, 0.0  ;;  %v10115_v30 = vld [vmem:[%s16093_s3 + $0x2b4] sm:$0xf0]  ;;  %v10109_v20 = vld [vmem:[%s16093_s3 + $0x28c] sm:$0xf] }
 0x1c1   :  { %v11800_v40 = vmax.f32 %v1166_v11, %v1168_v41  ;;  %v882_v10 = vpop.f32.mrf.mxu1  ;;  %v814_v21 = vadd.f32 %v813_v23, %v11544_v56  ;;  %v7398_v11 = vld [vmem:[%s16093_s3 + $0x3e8] sm:$0xf]  ;;  %v10155_v41 = vld [vmem:[%s16093_s3 + $0x3f4] sm:$0xf0]  ;;  %v7400_v23 = vld [vmem:[%s16093_s3 + $0x3f8] sm:$0xf0] }
 0x1c2   :  { %v1018_v16 = vadd.f32 %v1017_v25, %v949_v5  ;;  %v7399_v25 = vor.u32 %v10155_v41, %v7398_v11 }
 0x1c3   :  { %v11804_v35 = vpack.c.bf16 %v11800_v40, %v1202_v6  ;;  %v883_v62 = vadd.f32 %v882_v10, %v814_v21  ;;  %v10121_v6 = vld [vmem:[%s16093_s3 + $0x2ec] sm:$0xf]  ;;  %v1102_v10 = vmax.f32 %v11413_v54, 0.0  ;;  %v7238_v21 = vld [vmem:[%s16093_s3 + $0x2a8] sm:$0xf] }
 0x1c4   :  { %v1097_v49 = vmax.f32 %v1018_v16, 0.0  ;;  %v7275_v57 = vor.u32 %v10121_v6, %v7272_v1  ;;  %1828 = vmatpush.bf16.msrb.mxu1 %v7399_v25  ;;  %v7239_v4 = vor.u32 %v10115_v30, %v7238_v21  ;;  %v7240_v54 = vld [vmem:[%s16093_s3 + $0x2b8] sm:$0xf0] }
 0x1c5   :  { %v1100_v22 = vmax.f32 %v883_v62, 0.0  ;;  %v10151_v62 = vld [vmem:[%s16093_s3 + $0x3d4] sm:$0xf0] }
 0x1c6   :  { %v1169_v39 = vmax.f32 %v1095_v42, %v1097_v49  ;;  %1857 = vmatpush.bf16.msrb.mxu2 %v7275_v57  ;;  %v10113_v42 = vld [vmem:[%s16093_s3 + $0x2ac] sm:$0xf]  ;;  %1801 = vmatpush.bf16.msrb.mxu0 %v7239_v4 }
 0x1c7   :  { %v951_v29 = vpop.f32.mrf.mxu2  ;;  %v1170_v49 = vmax.f32 %v1098_v7, %v1100_v22  ;;  %v1099_v22 = vmax.f32 %v11411_v53, 0.0  ;;  %v10147_v53 = vld [vmem:[%s16093_s3 + $0x3b4] sm:$0xf0]  ;;  %v10145_v7 = vld [vmem:[%s16093_s3 + $0x3ac] sm:$0xf] }
 0x1c8   :  { %v11820_v63 = vmax.f32 %v1167_v0, %v1169_v39  ;;  %v952_v27 = vadd.f32 %v951_v29, %v11563_v36  ;;  %v1020_v28 = vpop.f32.mrf.mxu3  ;;  %v815_v45 = vpop.f32.mrf.mxu0  ;;  %v7243_v0 = vor.u32 %v10113_v42, %v7240_v54  ;;  %v7382_v39 = vld [vmem:[%s16093_s3 + $0x3c8] sm:$0xf]  ;;  %v10105_v42 = vld [vmem:[%s16093_s3 + $0x26c] sm:$0xf]  ;;  %v7208_v54 = vld [vmem:[%s16093_s3 + $0x278] sm:$0xf0] }
 0x1c9   :  { %v816_v46 = vadd.f32 %v815_v45, %v11544_v56  ;;  %v884_v59 = vpop.f32.mrf.mxu1 }
 0x1ca   :  { %v11834_v33 = vpack.c.bf16 %v11820_v63, %v1203_v9  ;;  %v10153_v9 = vld [vmem:[%s16093_s3 + $0x3ec] sm:$0xf]  ;;  %v1021_v5 = vadd.f32 %v1020_v28, %v952_v27  ;;  %1858 = vmatpush.bf16.msrb.mxu2 %v7259_v60  ;;  %v7383_v27 = vor.u32 %v10151_v62, %v7382_v39  ;;  %v7384_v28 = vld [vmem:[%s16093_s3 + $0x3d8] sm:$0xf0] }
 0x1cb   :  { %v885_v34 = vadd.f32 %v884_v59, %v816_v46  ;;  %v7403_v16 = vor.u32 %v10153_v9, %v7400_v23  ;;  %v7387_v59 = vor.u32 %v10149_v24, %v7384_v28  ;;  %v7224_v60 = vld [vmem:[%s16093_s3 + $0x298] sm:$0xf0]  ;;  %v7366_v9 = vld [vmem:[%s16093_s3 + $0x3a8] sm:$0xf]  ;;  %v10141_v39 = vld [vmem:[%s16093_s3 + $0x38c] sm:$0xf] }
 0x1cc   :  { %v1101_v6 = vmax.f32 %v1021_v5, 0.0  ;;  %1829 = vmatpush.bf16.msrb.mxu1 %v7383_v27  ;;  %v7227_v41 = vor.u32 %v10109_v20, %v7224_v60  ;;  %v1103_v5 = vmax.f32 %v11417_v13, 0.0  ;;  %v7368_v23 = vld [vmem:[%s16093_s3 + $0x3b8] sm:$0xf0]  ;;  %v10107_v13 = vld [vmem:[%s16093_s3 + $0x274] sm:$0xf0] }
 0x1cd   :  { %v1104_v19 = vmax.f32 %v885_v34, 0.0  ;;  %1886 = vmatpush.bf16.msrb.mxu3 %v7403_v16  ;;  %v7223_v34 = vor.u32 %v10111_v26, %v7222_v44  ;;  %v7206_v16 = vld [vmem:[%s16093_s3 + $0x268] sm:$0xf]  ;;  %v10101_v44 = vld [vmem:[%s16093_s3 + $0x24c] sm:$0xf] }
 0x1ce   :  { %1859 = vmatpush.bf16.msrb.mxu2 %v7243_v0  ;;  %v7207_v4 = vor.u32 %v10107_v13, %v7206_v16  ;;  %v10143_v0 = vld [vmem:[%s16093_s3 + $0x394] sm:$0xf0]  ;;  %v10097_v13 = vld [vmem:[%s16093_s3 + $0x22c] sm:$0xf] }
 0x1cf   :  { %v1172_v31 = vmax.f32 %v1102_v10, %v1104_v19  ;;  %v953_v51 = vpop.f32.mrf.mxu2  ;;  %1802 = vmatpush.bf16.msrb.mxu0 %v7223_v34  ;;  %v1171_v10 = vmax.f32 %v1099_v22, %v1101_v6  ;;  %v7371_v19 = vor.u32 %v10145_v7, %v7368_v23 }
 0x1d0   :  { %v954_v1 = vadd.f32 %v953_v51, %v11563_v36  ;;  %v1022_v29 = vpop.f32.mrf.mxu3  ;;  %v818_v57 = vpop.f32.mrf.mxu0  ;;  %v7350_v51 = vld [vmem:[%s16093_s3 + $0x388] sm:$0xf] }
 0x1d1   :  { %v11878_v45 = vmax.f32 %v1170_v49, %v1172_v31  ;;  %v887_v46 = vpop.f32.mrf.mxu1  ;;  %v819_v32 = vadd.f32 %v818_v57, %v11544_v56  ;;  %1887 = vmatpush.bf16.msrb.mxu3 %v7387_v59  ;;  %v7211_v31 = vor.u32 %v10105_v42, %v7208_v54  ;;  %v10103_v59 = vld [vmem:[%s16093_s3 + $0x254] sm:$0xf0]  ;;  %v7318_v54 = vld [vmem:[%s16093_s3 + $0x348] sm:$0xf] }
 0x1d2   :  { %v1023_v17 = vadd.f32 %v1022_v29, %v954_v1  ;;  %1860 = vmatpush.bf16.msrb.mxu2 %v7227_v41  ;;  %v7351_v1 = vor.u32 %v10143_v0, %v7350_v51  ;;  %v7352_v29 = vld [vmem:[%s16093_s3 + $0x398] sm:$0xf0]  ;;  %v7334_v41 = vld [vmem:[%s16093_s3 + $0x368] sm:$0xf] }
 0x1d3   :  { %v11896_v11 = vpack.c.bf16 %v11878_v45, %v11800_v40  ;;  %v7367_v40 = vor.u32 %v10147_v53, %v7366_v9  ;;  %v888_v30 = vadd.f32 %v887_v46, %v819_v32  ;;  %1803 = vmatpush.bf16.msrb.mxu0 %v7207_v4  ;;  %v7355_v28 = vor.u32 %v10141_v39, %v7352_v29  ;;  %v7190_v46 = vld [vmem:[%s16093_s3 + $0x248] sm:$0xf]  ;;  %v7192_v32 = vld [vmem:[%s16093_s3 + $0x258] sm:$0xf0]  ;;  %v10137_v9 = vld [vmem:[%s16093_s3 + $0x36c] sm:$0xf] }
 0x1d4   :  { %v1105_v25 = vmax.f32 %v1023_v17, 0.0  ;;  %v7191_v17 = vor.u32 %v10103_v59, %v7190_v46  ;;  %v7195_v60 = vor.u32 %v10101_v44, %v7192_v32  ;;  %v1106_v53 = vmax.f32 %v11419_v15, 0.0  ;;  %v10099_v15 = vld [vmem:[%s16093_s3 + $0x234] sm:$0xf0]  ;;  %v10093_v46 = vld [vmem:[%s16093_s3 + $0x20c] sm:$0xf] }
 0x1d5   :  { %1701 = vmatmul.bf16.gmra.mxu0 %v11896_v11  ;;  %1759 = vmatmul.bf16.gmra.mxu2 %v11896_v11  ;;  %v1108_v20 = vmax.f32 %v888_v30, 0.0 }
 0x1d6   :  { %v1173_v21 = vmax.f32 %v1103_v5, %v1105_v25  ;;  %1830 = vmatpush.bf16.msrb.mxu1 %v7367_v40  ;;  %1888 = vmatpush.bf16.msrb.mxu3 %v7371_v19  ;;  %v7336_v5 = vld [vmem:[%s16093_s3 + $0x378] sm:$0xf0]  ;;  %v1110_v25 = vmax.f32 %v11429_v52, 0.0 }
 0x1d7   :  { %v956_v49 = vpop.f32.mrf.mxu2  ;;  %1861 = vmatpush.bf16.msrb.mxu2 %v7211_v31  ;;  %1804 = vmatpush.bf16.msrb.mxu0 %v7191_v17  ;;  %v7339_v23 = vor.u32 %v10137_v9, %v7336_v5  ;;  %v7176_v52 = vld [vmem:[%s16093_s3 + $0x238] sm:$0xf0]  ;;  %v10133_v31 = vld [vmem:[%s16093_s3 + $0x34c] sm:$0xf]  ;;  %v1107_v9 = vmax.f32 %v11427_v47, 0.0 }
 0x1d8   :  { %v11934_v62 = vmax.f32 %v1171_v10, %v1173_v21  ;;  %v1025_v24 = vpop.f32.mrf.mxu3  ;;  %v820_v6 = vpop.f32.mrf.mxu0  ;;  %v957_v22 = vadd.f32 %v956_v49, %v11563_v36  ;;  %v7174_v10 = vld [vmem:[%s16093_s3 + $0x228] sm:$0xf]  ;;  %v1174_v21 = vmax.f32 %v1106_v53, %v1108_v20  ;;  %v7179_v42 = vor.u32 %v10097_v13, %v7176_v52  ;;  %v10135_v49 = vld [vmem:[%s16093_s3 + $0x354] sm:$0xf0]  ;;  %v7304_v5 = vld [vmem:[%s16093_s3 + $0x338] sm:$0xf0] }
 0x1d9   :  { %v821_v57 = vadd.f32 %v820_v6, %v11544_v56  ;;  %v889_v27 = vpop.f32.mrf.mxu1  ;;  %v7175_v16 = vor.u32 %v10099_v15, %v7174_v10  ;;  %v7320_v6 = vld [vmem:[%s16093_s3 + $0x358] sm:$0xf0]  ;;  %v7286_v47 = vld [vmem:[%s16093_s3 + $0x308] sm:$0xf] }
 0x1da   :  { %v11951_v26 = vpack.c.bf16 %v11934_v62, %v11820_v63  ;;  %1831 = vmatpush.bf16.msrb.mxu1 %v7351_v1  ;;  %1889 = vmatpush.bf16.msrb.mxu3 %v7355_v28  ;;  %v10139_v63 = vld [vmem:[%s16093_s3 + $0x374] sm:$0xf0]  ;;  %v1026_v19 = vadd.f32 %v1025_v24, %v957_v22  ;;  %v7319_v24 = vor.u32 %v10135_v49, %v7318_v54  ;;  %v7160_v22 = vld [vmem:[%s16093_s3 + $0x218] sm:$0xf0] }
 0x1db   :  { %v890_v34 = vadd.f32 %v889_v27, %v821_v57  ;;  %v7335_v7 = vor.u32 %v10139_v63, %v7334_v41  ;;  %1862 = vmatpush.bf16.msrb.mxu2 %v7195_v60  ;;  %1805 = vmatpush.bf16.msrb.mxu0 %v7175_v16  ;;  %v7323_v57 = vor.u32 %v10133_v31, %v7320_v6  ;;  %v7158_v27 = vld [vmem:[%s16093_s3 + $0x208] sm:$0xf]  ;;  %v10095_v28 = vld [vmem:[%s16093_s3 + $0x214] sm:$0xf0]  ;;  %v10129_v63 = vld [vmem:[%s16093_s3 + $0x32c] sm:$0xf] }
 0x1dc   :  { %1730 = vmatmul.bf16.gmra.mxu1 %v11951_v26  ;;  %1788 = vmatmul.bf16.gmra.mxu3 %v11951_v26  ;;  %v1109_v59 = vmax.f32 %v1026_v19, 0.0  ;;  %v7159_v20 = vor.u32 %v10095_v28, %v7158_v27  ;;  %v7302_v60 = vld [vmem:[%s16093_s3 + $0x328] sm:$0xf]  ;;  %v10131_v41 = vld [vmem:[%s16093_s3 + $0x334] sm:$0xf0]  ;;  %v16122_v6 = vld [vmem:[#allocation4_spill] sm:$0xff] }
 0x1dd   :  { %v1112_v40 = vmax.f32 %v890_v34, 0.0  ;;  %v7163_v34 = vor.u32 %v10093_v46, %v7160_v22  ;;  %v10125_v19 = vld [vmem:[%s16093_s3 + $0x30c] sm:$0xf] }
 0x1de   :  { %1832 = vmatpush.bf16.msrb.mxu1 %v7335_v7  ;;  %1890 = vmatpush.bf16.msrb.mxu3 %v7339_v23  ;;  %v7303_v7 = vor.u32 %v10131_v41, %v7302_v60 }
 0x1df   :  { %v1176_v30 = vmax.f32 %v1110_v25, %v1112_v40  ;;  %v958_v4 = vpop.f32.mrf.mxu2  ;;  %1863 = vmatpush.bf16.msrb.mxu2 %v7179_v42  ;;  %1806 = vmatpush.bf16.msrb.mxu0 %v7159_v20  ;;  %v7307_v25 = vor.u32 %v10129_v63, %v7304_v5  ;;  %v1175_v40 = vmax.f32 %v1107_v9, %v1109_v59 }
 0x1e0   :  { %v959_v51 = vadd.f32 %v958_v4, %v11563_v36  ;;  %v1027_v0 = vpop.f32.mrf.mxu3  ;;  %v823_v39 = vpop.f32.mrf.mxu0 }
 0x1e1   :  { %v11998_v1 = vmax.f32 %v1174_v21, %v1176_v30  ;;  %v892_v29 = vpop.f32.mrf.mxu1  ;;  %v824_v32 = vadd.f32 %v823_v39, %v11544_v56  ;;  %v7288_v30 = vld [vmem:[%s16093_s3 + $0x318] sm:$0xf0]  ;;  %v16121_v39 = vld [vmem:[#allocation2_spill] sm:$0xff] }
 0x1e2   :  { %v1028_v44 = vadd.f32 %v1027_v0, %v959_v51  ;;  %1833 = vmatpush.bf16.msrb.mxu1 %v7319_v24  ;;  %1891 = vmatpush.bf16.msrb.mxu3 %v7323_v57  ;;  %v7291_v54 = vor.u32 %v10125_v19, %v7288_v30  ;;  %v1114_v24 = vmax.f32 %v16121_v39, 0.0  ;;  %v1126_v39 = vmax.f32 %v11485_v12, 0.0 }
 0x1e3   :  { %v12014_v17 = vpack.c.bf16 %v11998_v1, %v11878_v45  ;;  %v1111_v45 = vmax.f32 %v11433_v48, 0.0  ;;  %1864 = vmatpush.bf16.msrb.mxu2 %v7163_v34  ;;  %v893_v10 = vadd.f32 %v892_v29, %v824_v32  ;;  %v10127_v48 = vld [vmem:[%s16093_s3 + $0x314] sm:$0xf0]  ;;  %v1118_v29 = vmax.f32 %v16122_v6, 0.0 }
 0x1e4   :  { %v1113_v53 = vmax.f32 %v1028_v44, 0.0  ;;  %v7287_v21 = vor.u32 %v10127_v48, %v7286_v47 }
 0x1e5   :  { %v1116_v51 = vmax.f32 %v893_v10, 0.0 }
 0x1e6   :  { %v1177_v23 = vmax.f32 %v1111_v45, %v1113_v53  ;;  %1834 = vmatpush.bf16.msrb.mxu1 %v7303_v7  ;;  %1892 = vmatpush.bf16.msrb.mxu3 %v7307_v25  ;;  %v16124_v45 = vld [vmem:[#allocation3_spill] sm:$0xff]  ;;  %v16125_v7 = vld [vmem:[#allocation5_spill] sm:$0xff] }
 0x1e7   :  { %v961_v15 = vpop.f32.mrf.mxu2  ;;  %v1178_v28 = vmax.f32 %v1114_v24, %v1116_v51  ;;  %v1115_v53 = vmax.f32 %v16124_v45, 0.0  ;;  %v1119_v5 = vmax.f32 %v16125_v7, 0.0  ;;  %v1123_v51 = vmax.f32 %v11483_v18, 0.0  ;;  %v7518_v45 = vld [vmem:[%s16093_s3 + $0xe0] sm:$0xf] }
 0x1e8   :  { %v1209_v16 = vmax.f32 %v1175_v40, %v1177_v23  ;;  %v1030_v13 = vpop.f32.mrf.mxu3  ;;  %v825_v52 = vpop.f32.mrf.mxu0  ;;  %v962_v31 = vadd.f32 %v961_v15, %v11563_v36  ;;  %v16126_v40 = vld [vmem:[#allocation6_spill] sm:$0xff] }
 0x1e9   :  { %v826_v4 = vadd.f32 %v825_v52, %v11544_v56  ;;  %v894_v42 = vpop.f32.mrf.mxu1  ;;  %v1122_v23 = vmax.f32 %v16126_v40, 0.0 }
 0x1ea   :  { %v12045_v49 = vpack.c.bf16 %v1209_v16, %v11934_v62  ;;  %1835 = vmatpush.bf16.msrb.mxu1 %v7287_v21  ;;  %1893 = vmatpush.bf16.msrb.mxu3 %v7291_v54  ;;  %v1031_v27 = vadd.f32 %v1030_v13, %v962_v31 }
 0x1eb   :  { %v895_v0 = vadd.f32 %v894_v42, %v826_v4 }
 0x1ec   :  { %v1117_v60 = vmax.f32 %v1031_v27, 0.0 }
 0x1ed   :  { %v1120_v57 = vmax.f32 %v895_v0, 0.0 }
 0x1ee   :  { %v1179_v15 = vmax.f32 %v1115_v53, %v1117_v60  ;;  %v16129_v60 = vld [vmem:[#allocation8_spill] sm:$0xff] }
 0x1ef   :  { %v1180_v46 = vmax.f32 %v1118_v29, %v1120_v57  ;;  %v963_v59 = vpop.f32.mrf.mxu2 }
 0x1f0   :  { %v964_v44 = vadd.f32 %v963_v59, %v11563_v36  ;;  %v1032_v20 = vpop.f32.mrf.mxu3  ;;  %v828_v62 = vpop.f32.mrf.mxu0 }
 0x1f1   :  { %v1210_v22 = vmax.f32 %v1178_v28, %v1180_v46  ;;  %v829_v32 = vadd.f32 %v828_v62, %v11544_v56  ;;  %v897_v34 = vpop.f32.mrf.mxu1 }
 0x1f2   :  { %v1033_v41 = vadd.f32 %v1032_v20, %v964_v44 }
 0x1f3   :  { %v12053_v63 = vpack.c.bf16 %v1210_v22, %v11998_v1  ;;  %v898_v9 = vadd.f32 %v897_v34, %v829_v32  ;;  %v16128_v32 = vld [vmem:[#allocation7_spill] sm:$0xff] }
 0x1f4   :  { %v1121_v25 = vmax.f32 %v1033_v41, 0.0  ;;  %v1127_v12 = vmax.f32 %v16128_v32, 0.0  ;;  %v1130_v41 = vmax.f32 %v16129_v60, 0.0  ;;  %v10048_v32 = vld [vmem:[%s16093_s3 + $0xa4] sm:$0xf] }
 0x1f5   :  { %16123 = vst [vmem:[#allocation2_spill] sm:$0xff] %v12053_v63  ;;  %v1124_v10 = vmax.f32 %v898_v9, 0.0  ;;  %1706 = vmatmul.bf16.gmra.mxu0 %v12053_v63  ;;  %1764 = vmatmul.bf16.gmra.mxu2 %v12053_v63 }
 0x1f6   :  { %v1181_v47 = vmax.f32 %v1119_v5, %v1121_v25  ;;  %v10056_v5 = vld [vmem:[%s16093_s3 + $0xe4] sm:$0xf]  ;;  %v7520_v25 = vld [vmem:[%s16093_s3 + $0xf0] sm:$0xf0] }
 0x1f7   :  { %v1182_v48 = vmax.f32 %v1122_v23, %v1124_v10  ;;  %v966_v19 = vpop.f32.mrf.mxu2  ;;  %v7523_v23 = vor.u32 %v10056_v5, %v7520_v25  ;;  %v7632_v25 = vld [vmem:[%s16093_s3 + $0x1d0] sm:$0xf0] }
 0x1f8   :  { %v1211_v13 = vmax.f32 %v1179_v15, %v1181_v47  ;;  %v967_v1 = vadd.f32 %v966_v19, %v11563_v36  ;;  %v1035_v52 = vpop.f32.mrf.mxu3  ;;  %v830_v21 = vpop.f32.mrf.mxu0 }
 0x1f9   :  { %v831_v30 = vadd.f32 %v830_v21, %v11544_v56  ;;  %v899_v4 = vpop.f32.mrf.mxu1  ;;  %2293 = vmatpush.bf16.msra.mxu2 %v7523_v23  ;;  %v10054_v21 = vld [vmem:[%s16093_s3 + $0xcc] sm:$0xf0] }
 0x1fa   :  { %v12062_v42 = vpack.c.bf16 %v1211_v13, %v1209_v16  ;;  %v1036_v54 = vadd.f32 %v1035_v52, %v967_v1  ;;  %v7502_v52 = vld [vmem:[%s16093_s3 + $0xc0] sm:$0xf] }
 0x1fb   :  { %v900_v31 = vadd.f32 %v899_v4, %v831_v30  ;;  %v10052_v30 = vld [vmem:[%s16093_s3 + $0xc4] sm:$0xf] }
 0x1fc   :  { %16127 = vst [vmem:[#allocation4_spill] sm:$0xff] %v12062_v42  ;;  %v1125_v0 = vmax.f32 %v1036_v54, 0.0  ;;  %1735 = vmatmul.bf16.gmra.mxu1 %v12062_v42  ;;  %1793 = vmatmul.bf16.gmra.mxu3 %v12062_v42 }
 0x1fd   :  { %v1128_v24 = vmax.f32 %v900_v31, 0.0  ;;  %v7503_v31 = vor.u32 %v10054_v21, %v7502_v52  ;;  %v7472_v21 = vld [vmem:[%s16093_s3 + $0x90] sm:$0xf0] }
 0x1fe   :  { %v1183_v6 = vmax.f32 %v1123_v51, %v1125_v0  ;;  %v7504_v51 = vld [vmem:[%s16093_s3 + $0xd0] sm:$0xf0] }
 0x1ff   :  { %v1184_v29 = vmax.f32 %v1126_v39, %v1128_v24  ;;  %v968_v57 = vpop.f32.mrf.mxu2  ;;  %v7507_v39 = vor.u32 %v10052_v30, %v7504_v51  ;;  %v7646_v24 = vld [vmem:[%s16093_s3 + $0x1e0] sm:$0xf] }
 0x200   :  { %v969_v27 = vadd.f32 %v968_v57, %v11563_v36  ;;  %v1037_v28 = vpop.f32.mrf.mxu3  ;;  %v833_v16 = vpop.f32.mrf.mxu0  ;;  %v7614_v30 = vld [vmem:[%s16093_s3 + $0x1a0] sm:$0xf] }
 0x201   :  { %v12069_v46 = vmax.f32 %v1182_v48, %v1184_v29  ;;  %v834_v59 = vadd.f32 %v833_v16, %v11544_v56  ;;  %v902_v18 = vpop.f32.mrf.mxu1  ;;  %v1131_v29 = vmax.f32 %v11511_v37, 0.0  ;;  %v1134_v16 = vmax.f32 %v11513_v3, 0.0  ;;  %2294 = vmatpush.bf16.msra.mxu2 %v7507_v39  ;;  %v7486_v37 = vld [vmem:[%s16093_s3 + $0xa0] sm:$0xf]  ;;  %v7488_v3 = vld [vmem:[%s16093_s3 + $0xb0] sm:$0xf0] }
 0x202   :  { %v1038_v44 = vadd.f32 %v1037_v28, %v969_v27  ;;  %v7648_v28 = vld [vmem:[%s16093_s3 + $0x1f0] sm:$0xf0]  ;;  %v7491_v60 = vor.u32 %v10048_v32, %v7488_v3  ;;  %v10080_v39 = vld [vmem:[%s16093_s3 + $0x1a4] sm:$0xf] }
 0x203   :  { %v12073_v20 = vpack.c.bf16 %v12069_v46, %v1210_v22  ;;  %v903_v62 = vadd.f32 %v902_v18, %v834_v59  ;;  %v10058_v22 = vld [vmem:[%s16093_s3 + $0xec] sm:$0xf0] }
 0x204   :  { %v1129_v34 = vmax.f32 %v1038_v44, 0.0  ;;  %v7519_v7 = vor.u32 %v10058_v22, %v7518_v45  ;;  %v10050_v44 = vld [vmem:[%s16093_s3 + $0xac] sm:$0xf0]  ;;  %v10084_v45 = vld [vmem:[%s16093_s3 + $0x1c4] sm:$0xf] }
 0x205   :  { %v1132_v9 = vmax.f32 %v903_v62, 0.0  ;;  %1807 = vmatmul.bf16.vlgmr.msrb.gmra.mxu0 %v11752_v50  ;;  %1865 = vmatmul.bf16.vlgmr.msrb.gmra.mxu2 %v11752_v50  ;;  %v7487_v62 = vor.u32 %v10050_v44, %v7486_v37  ;;  %v10040_v37 = vld [vmem:[%s16093_s3 + $0x64] sm:$0xf]  ;;  %v7456_v44 = vld [vmem:[%s16093_s3 + $0x70] sm:$0xf0] }
 0x206   :  { %v1185_v53 = vmax.f32 %v1127_v12, %v1129_v34  ;;  %2235 = vmatpush.bf16.msra.mxu0 %v7519_v7  ;;  %2295 = vmatpush.bf16.msra.mxu2 %v7491_v60  ;;  %v7459_v3 = vor.u32 %v10040_v37, %v7456_v44  ;;  %v10076_v60 = vld [vmem:[%s16093_s3 + $0x184] sm:$0xf] }
 0x207   :  { %v1186_v40 = vmax.f32 %v1130_v41, %v1132_v9  ;;  %v971_v50 = vpop.f32.mrf.mxu2  ;;  %v7630_v41 = vld [vmem:[%s16093_s3 + $0x1c0] sm:$0xf]  ;;  %v10086_v9 = vld [vmem:[%s16093_s3 + $0x1cc] sm:$0xf0] }
 0x208   :  { %v12091_v10 = vmax.f32 %v1183_v6, %v1185_v53  ;;  %v972_v15 = vadd.f32 %v971_v50, %v11563_v36  ;;  %v1040_v47 = vpop.f32.mrf.mxu3  ;;  %v835_v48 = vpop.f32.mrf.mxu0  ;;  %v10090_v6 = vld [vmem:[%s16093_s3 + $0x1ec] sm:$0xf0]  ;;  %v7631_v5 = vor.u32 %v10086_v9, %v7630_v41 }
 0x209   :  { %v836_v19 = vadd.f32 %v835_v48, %v11544_v56  ;;  %v904_v1 = vpop.f32.mrf.mxu1  ;;  %v7647_v27 = vor.u32 %v10090_v6, %v7646_v24  ;;  %v7470_v48 = vld [vmem:[%s16093_s3 + $0x80] sm:$0xf]  ;;  %v7616_v24 = vld [vmem:[%s16093_s3 + $0x1b0] sm:$0xf0] }
 0x20a   :  { %v12105_v4 = vpack.c.bf16 %v12091_v10, %v1211_v13  ;;  %v1041_v54 = vadd.f32 %v1040_v47, %v972_v15  ;;  %v10088_v13 = vld [vmem:[%s16093_s3 + $0x1e4] sm:$0xf]  ;;  %2236 = vmatpush.bf16.msra.mxu0 %v7503_v31  ;;  %v7635_v47 = vor.u32 %v10084_v45, %v7632_v25 }
 0x20b   :  { %v905_v0 = vadd.f32 %v904_v1, %v836_v19  ;;  %v7651_v18 = vor.u32 %v10088_v13, %v7648_v28  ;;  %2264 = vmatpush.bf16.msra.mxu1 %v7647_v27  ;;  %v10046_v19 = vld [vmem:[%s16093_s3 + $0x8c] sm:$0xf0]  ;;  %v10044_v1 = vld [vmem:[%s16093_s3 + $0x84] sm:$0xf]  ;;  %v1135_v13 = vmax.f32 %v11526_v43, 0.0  ;;  %v16131_v27 = vld [vmem:[#allocation9_spill] sm:$0xff] }
 0x20c   :  { %v1133_v57 = vmax.f32 %v1041_v54, 0.0  ;;  %1836 = vmatmul.bf16.vlgmr.msrb.gmra.mxu1 %v11762_v58  ;;  %1894 = vmatmul.bf16.vlgmr.msrb.gmra.mxu3 %v11762_v58  ;;  %v7471_v52 = vor.u32 %v10046_v19, %v7470_v48  ;;  %v10082_v54 = vld [vmem:[%s16093_s3 + $0x1ac] sm:$0xf0]  ;;  %v7475_v51 = vor.u32 %v10044_v1, %v7472_v21  ;;  %v1138_v28 = vmax.f32 %v16131_v27, 0.0  ;;  %v7582_v21 = vld [vmem:[%s16093_s3 + $0x160] sm:$0xf] }
 0x20d   :  { %v1136_v59 = vmax.f32 %v905_v0, 0.0  ;;  %2322 = vmatpush.bf16.msra.mxu3 %v7651_v18  ;;  %v7615_v0 = vor.u32 %v10082_v54, %v7614_v30  ;;  %v10074_v30 = vld [vmem:[%s16093_s3 + $0x16c] sm:$0xf0]  ;;  %v10072_v54 = vld [vmem:[%s16093_s3 + $0x164] sm:$0xf] }
 0x20e   :  { %v1187_v58 = vmax.f32 %v1131_v29, %v1133_v57  ;;  %2237 = vmatpush.bf16.msra.mxu0 %v7487_v62  ;;  %v7619_v57 = vor.u32 %v10080_v39, %v7616_v24  ;;  %2296 = vmatpush.bf16.msra.mxu2 %v7475_v51  ;;  %v7584_v39 = vld [vmem:[%s16093_s3 + $0x170] sm:$0xf0]  ;;  %v16134_v24 = vld [vmem:[#allocation11_spill] sm:$0xff]  ;;  %v7422_v27 = vld [vmem:[%s16093_s3 + $0x20] sm:$0xf] }
 0x20f   :  { %v1188_v12 = vmax.f32 %v1134_v16, %v1136_v59  ;;  %v973_v34 = vpop.f32.mrf.mxu2  ;;  %2265 = vmatpush.bf16.msra.mxu1 %v7631_v5  ;;  %v7454_v59 = vld [vmem:[%s16093_s3 + $0x60] sm:$0xf] }
 0x210   :  { %v974_v22 = vadd.f32 %v973_v34, %v11563_v36  ;;  %v1042_v53 = vpop.f32.mrf.mxu3  ;;  %v838_v7 = vpop.f32.mrf.mxu0  ;;  %v10078_v34 = vld [vmem:[%s16093_s3 + $0x18c] sm:$0xf0] }
 0x211   :  { %v12151_v50 = vmax.f32 %v1186_v40, %v1188_v12  ;;  %v839_v23 = vadd.f32 %v838_v7, %v11544_v56  ;;  %v907_v15 = vpop.f32.mrf.mxu1  ;;  %2323 = vmatpush.bf16.msra.mxu3 %v7635_v47  ;;  %v7598_v12 = vld [vmem:[%s16093_s3 + $0x180] sm:$0xf]  ;;  %v7600_v7 = vld [vmem:[%s16093_s3 + $0x190] sm:$0xf0]  ;;  %v10036_v47 = vld [vmem:[%s16093_s3 + $0x44] sm:$0xf] }
 0x212   :  { %v1043_v40 = vadd.f32 %v1042_v53, %v974_v22  ;;  %2238 = vmatpush.bf16.msra.mxu0 %v7471_v52  ;;  %v7599_v53 = vor.u32 %v10078_v34, %v7598_v12  ;;  %2297 = vmatpush.bf16.msra.mxu2 %v7459_v3  ;;  %v10070_v3 = vld [vmem:[%s16093_s3 + $0x14c] sm:$0xf0]  ;;  %v10068_v12 = vld [vmem:[%s16093_s3 + $0x144] sm:$0xf] }
 0x213   :  { %v908_v31 = vadd.f32 %v907_v15, %v839_v23  ;;  %v12180_v6 = vpack.c.bf16 %v12151_v50, %v12069_v46  ;;  %v10042_v46 = vld [vmem:[%s16093_s3 + $0x6c] sm:$0xf0]  ;;  %2266 = vmatpush.bf16.msra.mxu1 %v7615_v0  ;;  %v7603_v23 = vor.u32 %v10076_v60, %v7600_v7  ;;  %v7438_v15 = vld [vmem:[%s16093_s3 + $0x40] sm:$0xf]  ;;  %v7583_v0 = vor.u32 %v10074_v30, %v7582_v21  ;;  %v7552_v21 = vld [vmem:[%s16093_s3 + $0x130] sm:$0xf0] }
 0x214   :  { %v1137_v29 = vmax.f32 %v1043_v40, 0.0  ;;  %v7455_v43 = vor.u32 %v10042_v46, %v7454_v59  ;;  %v10032_v46 = vld [vmem:[%s16093_s3 + $0x24] sm:$0xf] }
 0x215   :  { %16130 = vst [vmem:[#allocation3_spill] sm:$0xff] %v12180_v6  ;;  %v1140_v16 = vmax.f32 %v908_v31, 0.0  ;;  %1812 = vmatmul.bf16.gmra.mxu0 %v11784_v14  ;;  %1870 = vmatmul.bf16.gmra.mxu2 %v11784_v14  ;;  %v16133_v31 = vld [vmem:[#allocation10_spill] sm:$0xff]  ;;  %v7830_v6 = vld [vmem:[%s16093_s3 + $0x4c8] sm:$0xf] }
 0x216   :  { %v1189_v18 = vmax.f32 %v1135_v13, %v1137_v29  ;;  %2324 = vmatpush.bf16.msra.mxu3 %v7619_v57  ;;  %2239 = vmatpush.bf16.msra.mxu0 %v7455_v43  ;;  %v1139_v51 = vmax.f32 %v16133_v31, 0.0  ;;  %v1142_v13 = vmax.f32 %v16134_v24, 0.0  ;;  %v7587_v57 = vor.u32 %v10072_v54, %v7584_v39  ;;  %v16136_v54 = vld [vmem:[#allocation12_spill] sm:$0xff]  ;;  %v7534_v24 = vld [vmem:[%s16093_s3 + $0x100] sm:$0xf] }
 0x217   :  { %v12198_v62 = vmax.f32 %v1138_v28, %v1140_v16  ;;  %v976_v32 = vpop.f32.mrf.mxu2  ;;  %2267 = vmatpush.bf16.msra.mxu1 %v7599_v53  ;;  %v10034_v28 = vld [vmem:[%s16093_s3 + $0x2c] sm:$0xf0]  ;;  %v1143_v31 = vmax.f32 %v16136_v54, 0.0  ;;  %v10051_v54 = vld [vmem:[%s16093_s3 + $0xb4] sm:$0xf0] }
 0x218   :  { %v12209_v41 = vmax.f32 %v1187_v58, %v1189_v18  ;;  %v977_v9 = vadd.f32 %v976_v32, %v11563_v36  ;;  %v1045_v45 = vpop.f32.mrf.mxu3  ;;  %v840_v22 = vpop.f32.mrf.mxu0  ;;  %v10038_v58 = vld [vmem:[%s16093_s3 + $0x4c] sm:$0xf0]  ;;  %v7423_v59 = vor.u32 %v10034_v28, %v7422_v27  ;;  %v7424_v18 = vld [vmem:[%s16093_s3 + $0x30] sm:$0xf0]  ;;  %v7566_v32 = vld [vmem:[%s16093_s3 + $0x140] sm:$0xf] }
 0x219   :  { %v841_v5 = vadd.f32 %v840_v22, %v11544_v56  ;;  %v909_v25 = vpop.f32.mrf.mxu1  ;;  %v7439_v19 = vor.u32 %v10038_v58, %v7438_v15  ;;  %v7440_v56 = vld [vmem:[%s16093_s3 + $0x50] sm:$0xf0]  ;;  %v7427_v44 = vor.u32 %v10032_v46, %v7424_v18 }
 0x21a   :  { %v1046_v48 = vadd.f32 %v1045_v45, %v977_v9  ;;  %v12230_v1 = vpack.c.bf16 %v12209_v41, %v12091_v10  ;;  %2325 = vmatpush.bf16.msra.mxu3 %v7603_v23  ;;  %v7443_v52 = vor.u32 %v10036_v47, %v7440_v56  ;;  %v7567_v45 = vor.u32 %v10070_v3, %v7566_v32  ;;  %v7568_v22 = vld [vmem:[%s16093_s3 + $0x150] sm:$0xf0]  ;;  %v10030_v23 = vld [vmem:[%s16093_s3 + $0xc] sm:$0xf0] }
 0x21b   :  { %v910_v40 = vadd.f32 %v909_v25, %v841_v5  ;;  %2240 = vmatpush.bf16.msra.mxu0 %v7439_v19  ;;  %2268 = vmatpush.bf16.msra.mxu1 %v7583_v0  ;;  %v7571_v5 = vor.u32 %v10068_v12, %v7568_v22  ;;  %v7406_v25 = vld [vmem:[%s16093_s3] sm:$0xf]  ;;  %v7408_v47 = vld [vmem:[%s16093_s3 + $0x10] sm:$0xf0]  ;;  %v10066_v19 = vld [vmem:[%s16093_s3 + $0x12c] sm:$0xf0] }
 0x21c   :  { %16132 = vst [vmem:[#allocation5_spill] sm:$0xff] %v12230_v1  ;;  %v1141_v10 = vmax.f32 %v1046_v48, 0.0  ;;  %1841 = vmatmul.bf16.gmra.mxu1 %v11792_v8  ;;  %1899 = vmatmul.bf16.gmra.mxu3 %v11792_v8  ;;  %v7550_v48 = vld [vmem:[%s16093_s3 + $0x120] sm:$0xf]  ;;  %v7536_v28 = vld [vmem:[%s16093_s3 + $0x110] sm:$0xf0] }
 0x21d   :  { %v1144_v29 = vmax.f32 %v910_v40, 0.0  ;;  %2298 = vmatpush.bf16.msra.mxu2 %v7443_v52  ;;  %v7551_v40 = vor.u32 %v10066_v19, %v7550_v48  ;;  %v10064_v52 = vld [vmem:[%s16093_s3 + $0x124] sm:$0xf]  ;;  %v10057_v22 = vld [vmem:[%s16093_s3 + $0xec] sm:$0xf] }
 0x21e   :  { %v1191_v16 = vmax.f32 %v1139_v51, %v1141_v10  ;;  %2326 = vmatpush.bf16.msra.mxu3 %v7587_v57  ;;  %v7555_v10 = vor.u32 %v10064_v52, %v7552_v21  ;;  %v7654_v48 = vld [vmem:[%s16093_s3 + $0x1e8] sm:$0xf]  ;;  %v10091_v19 = vld [vmem:[%s16093_s3 + $0x1f4] sm:$0xf0]  ;;  %v7656_v52 = vld [vmem:[%s16093_s3 + $0x1f8] sm:$0xf0] }
 0x21f   :  { %v1192_v43 = vmax.f32 %v1142_v13, %v1144_v29  ;;  %v978_v37 = vpop.f32.mrf.mxu2  ;;  %2241 = vmatpush.bf16.msra.mxu0 %v7423_v59  ;;  %2269 = vmatpush.bf16.msra.mxu1 %v7567_v45  ;;  %v10060_v13 = vld [vmem:[%s16093_s3 + $0x104] sm:$0xf]  ;;  %v10059_v45 = vld [vmem:[%s16093_s3 + $0xf4] sm:$0xf0]  ;;  %v7494_v21 = vld [vmem:[%s16093_s3 + $0xa8] sm:$0xf] }
 0x220   :  { %v979_v34 = vadd.f32 %v978_v37, %v11563_v36  ;;  %v1047_v60 = vpop.f32.mrf.mxu3  ;;  %v1692_v9 = vpop.f32.mrf.mxu0  ;;  %v10028_v36 = vld [vmem:[%s16093_s3 + $0x4] sm:$0xf]  ;;  %v7539_v46 = vor.u32 %v10060_v13, %v7536_v28  ;;  %v10085_v13 = vld [vmem:[%s16093_s3 + $0x1cc] sm:$0xf] }
 0x221   :  { %v1216_v53 = vmax.f32 %v12198_v62, %v1192_v43  ;;  %v1721_v7 = vpop.f32.mrf.mxu1  ;;  %2299 = vmatpush.bf16.msra.mxu2 %v7427_v44  ;;  %v7407_v62 = vor.u32 %v10030_v23, %v7406_v25  ;;  %v7411_v56 = vor.u32 %v10028_v36, %v7408_v47  ;;  %v7510_v25 = vld [vmem:[%s16093_s3 + $0xc8] sm:$0xf]  ;;  %v10055_v23 = vld [vmem:[%s16093_s3 + $0xd4] sm:$0xf0]  ;;  %v10053_v36 = vld [vmem:[%s16093_s3 + $0xcc] sm:$0xf] }
 0x222   :  { %v1048_v15 = vadd.f32 %v1047_v60, %v979_v34  ;;  %v12283_v58 = vadd.f32 %v1721_v7, %v1692_v9  ;;  %2327 = vmatpush.bf16.msra.mxu3 %v7571_v5  ;;  %v7526_v9 = vld [vmem:[%s16093_s3 + $0xe8] sm:$0xf]  ;;  %v7528_v7 = vld [vmem:[%s16093_s3 + $0xf8] sm:$0xf0] }
 0x223   :  { %v12301_v30 = vpack.c.bf16 %v1216_v53, %v12151_v50  ;;  %2242 = vmatpush.bf16.msra.mxu0 %v7407_v62  ;;  %2270 = vmatpush.bf16.msra.mxu1 %v7551_v40  ;;  %v10062_v50 = vld [vmem:[%s16093_s3 + $0x10c] sm:$0xf0]  ;;  %v7527_v53 = vor.u32 %v10059_v45, %v7526_v9  ;;  %v7531_v5 = vor.u32 %v10057_v22, %v7528_v7  ;;  %v7512_v62 = vld [vmem:[%s16093_s3 + $0xd8] sm:$0xf0]  ;;  %v7622_v45 = vld [vmem:[%s16093_s3 + $0x1a8] sm:$0xf] }
 0x224   :  { %v1145_v51 = vmax.f32 %v1048_v15, 0.0  ;;  %v7535_v27 = vor.u32 %v10062_v50, %v7534_v24  ;;  %v7511_v15 = vor.u32 %v10055_v23, %v7510_v25  ;;  %v7515_v47 = vor.u32 %v10053_v36, %v7512_v62  ;;  %v10087_v50 = vld [vmem:[%s16093_s3 + $0x1d4] sm:$0xf0]  ;;  %v7480_v9 = vld [vmem:[%s16093_s3 + $0x98] sm:$0xf0] }
 0x225   :  { %16135 = vst [vmem:[#allocation6_spill] sm:$0xff] %v12301_v30  ;;  %1817 = vmatmul.bf16.gmra.mxu0 %v11896_v11  ;;  %1875 = vmatmul.bf16.gmra.mxu2 %v11896_v11  ;;  %v7655_v40 = vor.u32 %v10091_v19, %v7654_v48  ;;  %v10083_v22 = vld [vmem:[%s16093_s3 + $0x1b4] sm:$0xf0]  ;;  %v7624_v25 = vld [vmem:[%s16093_s3 + $0x1b8] sm:$0xf0] }
 0x226   :  { %v1193_v0 = vmax.f32 %v1143_v31, %v1145_v51  ;;  %2300 = vmatpush.bf16.msra.mxu2 %v7411_v56  ;;  %2328 = vmatpush.bf16.msra.mxu3 %v7555_v10  ;;  %v10089_v56 = vld [vmem:[%s16093_s3 + $0x1ec] sm:$0xf]  ;;  %v7495_v51 = vor.u32 %v10051_v54, %v7494_v21  ;;  %v7623_v7 = vor.u32 %v10083_v22, %v7622_v45  ;;  %v7462_v36 = vld [vmem:[%s16093_s3 + $0x68] sm:$0xf]  ;;  %v7464_v48 = vld [vmem:[%s16093_s3 + $0x78] sm:$0xf0] }
 0x227   :  { %v1750_v39 = vpop.f32.mrf.mxu2  ;;  %2271 = vmatpush.bf16.msra.mxu1 %v7535_v27  ;;  %2351 = vmatpush.bf16.msrb.mxu0 %v7527_v53  ;;  %v7659_v31 = vor.u32 %v10089_v56, %v7656_v52  ;;  %v10049_v10 = vld [vmem:[%s16093_s3 + $0xac] sm:$0xf]  ;;  %v7606_v52 = vld [vmem:[%s16093_s3 + $0x188] sm:$0xf]  ;;  %v10079_v21 = vld [vmem:[%s16093_s3 + $0x194] sm:$0xf0] }
 0x228   :  { %v1217_v29 = vmax.f32 %v1191_v16, %v1193_v0  ;;  %v1779_v57 = vpop.f32.mrf.mxu3  ;;  %v12325_v43 = vpop.f32.mrf.mxu0  ;;  %v7496_v0 = vld [vmem:[%s16093_s3 + $0xb8] sm:$0xf0]  ;;  %v10041_v62 = vld [vmem:[%s16093_s3 + $0x6c] sm:$0xf] }
 0x229   :  { %v12318_v59 = vadd.f32 %v1779_v57, %v1750_v39  ;;  %v12327_v16 = vpop.f32.mrf.mxu1  ;;  %v7638_v39 = vld [vmem:[%s16093_s3 + $0x1c8] sm:$0xf]  ;;  %v7499_v24 = vor.u32 %v10049_v10, %v7496_v0  ;;  %v10077_v54 = vld [vmem:[%s16093_s3 + $0x18c] sm:$0xf]  ;;  %v7592_v45 = vld [vmem:[%s16093_s3 + $0x178] sm:$0xf0] }
 0x22a   :  { %v12321_v18 = vpack.c.bf16 %v1217_v29, %v12209_v41  ;;  %2329 = vmatpush.bf16.msra.mxu3 %v7539_v46  ;;  %2409 = vmatpush.bf16.msrb.mxu2 %v7531_v5  ;;  %v7640_v29 = vld [vmem:[%s16093_s3 + $0x1d8] sm:$0xf0]  ;;  %v7639_v57 = vor.u32 %v10087_v50, %v7638_v39  ;;  %v10081_v5 = vld [vmem:[%s16093_s3 + $0x1ac] sm:$0xf]  ;;  %v10039_v50 = vld [vmem:[%s16093_s3 + $0x54] sm:$0xf0] }
 0x22b   :  { %2352 = vmatpush.bf16.msrb.mxu0 %v7511_v15  ;;  %2380 = vmatpush.bf16.msrb.mxu1 %v7655_v40  ;;  %v7643_v27 = vor.u32 %v10085_v13, %v7640_v29  ;;  %v7627_v23 = vor.u32 %v10081_v5, %v7624_v25  ;;  %v10043_v15 = vld [vmem:[%s16093_s3 + $0x74] sm:$0xf0]  ;;  %v7467_v40 = vor.u32 %v10041_v62, %v7464_v48  ;;  %v10037_v13 = vld [vmem:[%s16093_s3 + $0x4c] sm:$0xf] }
 0x22c   :  { %16137 = vst [vmem:[#allocation7_spill] sm:$0xff] %v12321_v18  ;;  %1846 = vmatmul.bf16.gmra.mxu1 %v11951_v26  ;;  %1904 = vmatmul.bf16.gmra.mxu3 %v11951_v26  ;;  %v10033_v5 = vld [vmem:[%s16093_s3 + $0x2c] sm:$0xf]  ;;  %v10071_v48 = vld [vmem:[%s16093_s3 + $0x154] sm:$0xf0] }
 0x22e   :  { %2410 = vmatpush.bf16.msrb.mxu2 %v7515_v47  ;;  %2438 = vmatpush.bf16.msrb.mxu3 %v7659_v31  ;;  %v7463_v47 = vor.u32 %v10043_v15, %v7462_v36  ;;  %v7607_v31 = vor.u32 %v10079_v21, %v7606_v52 }
 0x22f   :  { %v12331_v37 = vpop.f32.mrf.mxu2  ;;  %2353 = vmatpush.bf16.msrb.mxu0 %v7495_v51  ;;  %2381 = vmatpush.bf16.msrb.mxu1 %v7639_v57  ;;  %v7608_v51 = vld [vmem:[%s16093_s3 + $0x198] sm:$0xf0] }
 0x230   :  { %v12333_v44 = vpop.f32.mrf.mxu3  ;;  %v7611_v39 = vor.u32 %v10077_v54, %v7608_v51  ;;  %v7576_v54 = vld [vmem:[%s16093_s3 + $0x158] sm:$0xf0]  ;;  %v7414_v51 = vld [vmem:[%s16093_s3 + $0x8] sm:$0xf] }
 0x232   :  { %v1697_v41 = vpop.f32.mrf.mxu0  ;;  %2411 = vmatpush.bf16.msrb.mxu2 %v7499_v24  ;;  %2439 = vmatpush.bf16.msrb.mxu3 %v7643_v27  ;;  %v7446_v24 = vld [vmem:[%s16093_s3 + $0x48] sm:$0xf]  ;;  %v7448_v27 = vld [vmem:[%s16093_s3 + $0x58] sm:$0xf0] }
 0x233   :  { %2382 = vmatpush.bf16.msrb.mxu1 %v7623_v7  ;;  %v7447_v57 = vor.u32 %v10039_v50, %v7446_v24  ;;  %v10035_v7 = vld [vmem:[%s16093_s3 + $0x34] sm:$0xf0]  ;;  %v7416_v24 = vld [vmem:[%s16093_s3 + $0x18] sm:$0xf0]  ;;  %v7558_v50 = vld [vmem:[%s16093_s3 + $0x128] sm:$0xf] }
 0x235   :  { %1822 = vmatmul.bf16.gmra.mxu0 %v12053_v63  ;;  %1880 = vmatmul.bf16.gmra.mxu2 %v12053_v63  ;;  %v7798_v63 = vld [vmem:[%s16093_s3 + $0x488] sm:$0xf] }
 0x236   :  { %2440 = vmatpush.bf16.msrb.mxu3 %v7627_v23  ;;  %v7432_v23 = vld [vmem:[%s16093_s3 + $0x38] sm:$0xf0] }
 0x237   :  { %2383 = vmatpush.bf16.msrb.mxu1 %v7607_v31  ;;  %v7435_v62 = vor.u32 %v10033_v5, %v7432_v23 }
 0x238   :  { %v1755_v12 = vpop.f32.mrf.mxu2 }
 0x239   :  { %v1726_v32 = vpop.f32.mrf.mxu1 }
 0x23a   :  { %v12335_v3 = vadd.f32 %v1726_v32, %v1697_v41  ;;  %v12405_v28 = vpop.f32.mrf.mxu0  ;;  %v7478_v41 = vld [vmem:[%s16093_s3 + $0x88] sm:$0xf]  ;;  %v10047_v32 = vld [vmem:[%s16093_s3 + $0x94] sm:$0xf0]  ;;  %2441 = vmatpush.bf16.msrb.mxu3 %v7611_v39 }
 0x23c   :  { %1851 = vmatmul.bf16.gmra.mxu1 %v12062_v42  ;;  %1909 = vmatmul.bf16.gmra.mxu3 %v12062_v42  ;;  %v10215_v42 = vld [vmem:[%s16093_s3 + $0x5d4] sm:$0xf0] }
 0x23f   :  { %v1784_v34 = vpop.f32.mrf.mxu3 }
 0x240   :  { %v12339_v60 = vadd.f32 %v1784_v34, %v1755_v12  ;;  %v10045_v12 = vld [vmem:[%s16093_s3 + $0x8c] sm:$0xf]  ;;  %v7479_v34 = vor.u32 %v10047_v32, %v7478_v41  ;;  %v12447_v19 = vpop.f32.mrf.mxu2  ;;  %v7451_v41 = vor.u32 %v10037_v13, %v7448_v27  ;;  %v7590_v32 = vld [vmem:[%s16093_s3 + $0x168] sm:$0xf]  ;;  %v10067_v13 = vld [vmem:[%s16093_s3 + $0x134] sm:$0xf0] }
 0x241   :  { %v12407_v46 = vpop.f32.mrf.mxu1  ;;  %v7483_v53 = vor.u32 %v10045_v12, %v7480_v9  ;;  %v10075_v12 = vld [vmem:[%s16093_s3 + $0x174] sm:$0xf0]  ;;  %v7559_v27 = vor.u32 %v10067_v13, %v7558_v50  ;;  %v10184_v50 = vld [vmem:[%s16093_s3 + $0x4e4] sm:$0xf] }
 0x242   :  { %2354 = vmatpush.bf16.msrb.mxu0 %v7479_v34  ;;  %v10073_v34 = vld [vmem:[%s16093_s3 + $0x16c] sm:$0xf]  ;;  %v7591_v9 = vor.u32 %v10075_v12, %v7590_v32  ;;  %v7560_v32 = vld [vmem:[%s16093_s3 + $0x138] sm:$0xf0] }
 0x243   :  { %2412 = vmatpush.bf16.msrb.mxu2 %v7483_v53  ;;  %v7595_v22 = vor.u32 %v10073_v34, %v7592_v45  ;;  %v7430_v53 = vld [vmem:[%s16093_s3 + $0x28] sm:$0xf]  ;;  %v10061_v45 = vld [vmem:[%s16093_s3 + $0x10c] sm:$0xf] }
 0x244   :  { %v7431_v25 = vor.u32 %v10035_v7, %v7430_v53  ;;  %2384 = vmatpush.bf16.msrb.mxu1 %v7591_v9  ;;  %v7542_v34 = vld [vmem:[%s16093_s3 + $0x108] sm:$0xf]  ;;  %v10063_v9 = vld [vmem:[%s16093_s3 + $0x114] sm:$0xf0]  ;;  %v7544_v53 = vld [vmem:[%s16093_s3 + $0x118] sm:$0xf0] }
 0x245   :  { %2243 = vmatmul.bf16.vlgmr.msra.gmra.mxu0 %v11733_v55  ;;  %2301 = vmatmul.bf16.vlgmr.msra.gmra.mxu2 %v11733_v55  ;;  %v7547_v7 = vor.u32 %v10061_v45, %v7544_v53  ;;  %v10180_v45 = vld [vmem:[%s16093_s3 + $0x4c4] sm:$0xf] }
 0x246   :  { %2355 = vmatpush.bf16.msrb.mxu0 %v7463_v47  ;;  %2442 = vmatpush.bf16.msrb.mxu3 %v7595_v22  ;;  %v7574_v47 = vld [vmem:[%s16093_s3 + $0x148] sm:$0xf]  ;;  %v7543_v22 = vor.u32 %v10063_v9, %v7542_v34  ;;  %v7822_v34 = vld [vmem:[%s16093_s3 + $0x4c0] sm:$0xf]  ;;  %v10182_v9 = vld [vmem:[%s16093_s3 + $0x4cc] sm:$0xf0] }
 0x247   :  { %v12449_v56 = vpop.f32.mrf.mxu3  ;;  %2413 = vmatpush.bf16.msrb.mxu2 %v7467_v40  ;;  %v10069_v40 = vld [vmem:[%s16093_s3 + $0x14c] sm:$0xf]  ;;  %v7575_v21 = vor.u32 %v10071_v48, %v7574_v47 }
 0x248   :  { %v7579_v31 = vor.u32 %v10069_v40, %v7576_v54 }
 0x249   :  { %2385 = vmatpush.bf16.msrb.mxu1 %v7575_v21 }
 0x24a   :  { %2356 = vmatpush.bf16.msrb.mxu0 %v7447_v57  ;;  %2443 = vmatpush.bf16.msrb.mxu3 %v7579_v31 }
 0x24b   :  { %2414 = vmatpush.bf16.msrb.mxu2 %v7451_v41  ;;  %v10065_v41 = vld [vmem:[%s16093_s3 + $0x12c] sm:$0xf] }
 0x24c   :  { %2272 = vmatmul.bf16.vlgmr.msra.gmra.mxu1 %v11746_v61  ;;  %2330 = vmatmul.bf16.vlgmr.msra.gmra.mxu3 %v11746_v61  ;;  %v7563_v12 = vor.u32 %v10065_v41, %v7560_v32 }
 0x24d   :  { %2386 = vmatpush.bf16.msrb.mxu1 %v7559_v27 }
 0x24e   :  { %2357 = vmatpush.bf16.msrb.mxu0 %v7431_v25  ;;  %2444 = vmatpush.bf16.msrb.mxu3 %v7563_v12 }
 0x24f   :  { %2415 = vmatpush.bf16.msrb.mxu2 %v7435_v62 }
 0x251   :  { %2387 = vmatpush.bf16.msrb.mxu1 %v7543_v22 }
 0x252   :  { %v1702_v10 = vpop.f32.mrf.mxu0  ;;  %2445 = vmatpush.bf16.msrb.mxu3 %v7547_v7  ;;  %v7823_v7 = vor.u32 %v10182_v9, %v7822_v34  ;;  %v10212_v34 = vld [vmem:[%s16093_s3 + $0x5c4] sm:$0xf] }
 0x255   :  { %2248 = vmatmul.bf16.gmra.mxu0 %v11768_v2  ;;  %2306 = vmatmul.bf16.gmra.mxu2 %v11768_v2 }
 0x258   :  { %v1760_v36 = vpop.f32.mrf.mxu2 }
 0x259   :  { %v1731_v0 = vpop.f32.mrf.mxu1 }
 0x25a   :  { %v12472_v29 = vadd.f32 %v1731_v0, %v1702_v10  ;;  %v10031_v10 = vld [vmem:[%s16093_s3 + $0x14] sm:$0xf0]  ;;  %v10029_v0 = vld [vmem:[%s16093_s3 + $0xc] sm:$0xf]  ;;  %v12555_v5 = vpop.f32.mrf.mxu0 }
 0x25b   :  { %v7415_v39 = vor.u32 %v10031_v10, %v7414_v51  ;;  %v7419_v57 = vor.u32 %v10029_v0, %v7416_v24  ;;  %v10186_v24 = vld [vmem:[%s16093_s3 + $0x4ec] sm:$0xf0] }
 0x25c   :  { %2277 = vmatmul.bf16.gmra.mxu1 %v11778_v38  ;;  %2335 = vmatmul.bf16.gmra.mxu3 %v11778_v38 }
 0x25d   :  { %2358 = vmatpush.bf16.msrb.mxu0 %v7415_v39  ;;  %2416 = vmatpush.bf16.msrb.mxu2 %v7419_v57  ;;  %v7838_v39 = vld [vmem:[%s16093_s3 + $0x4e0] sm:$0xf]  ;;  %v7840_v57 = vld [vmem:[%s16093_s3 + $0x4f0] sm:$0xf0] }
 0x25e   :  { %v7839_v13 = vor.u32 %v10186_v24, %v7838_v39  ;;  %v7843_v41 = vor.u32 %v10184_v50, %v7840_v57  ;;  %v7806_v39 = vld [vmem:[%s16093_s3 + $0x4a0] sm:$0xf]  ;;  %v10178_v24 = vld [vmem:[%s16093_s3 + $0x4ac] sm:$0xf0] }
 0x25f   :  { %v1789_v15 = vpop.f32.mrf.mxu3  ;;  %v7807_v50 = vor.u32 %v10178_v24, %v7806_v39  ;;  %v7792_v39 = vld [vmem:[%s16093_s3 + $0x490] sm:$0xf0]  ;;  %v7934_v24 = vld [vmem:[%s16093_s3 + $0x5a0] sm:$0xf] }
 0x260   :  { %v12512_v52 = vadd.f32 %v1789_v15, %v1760_v36  ;;  %v12559_v25 = vpop.f32.mrf.mxu2 }
 0x261   :  { %v12561_v23 = vpop.f32.mrf.mxu1  ;;  %2854 = vmatpush.bf16.msra.mxu0 %v7839_v13  ;;  %2912 = vmatpush.bf16.msra.mxu2 %v7843_v41  ;;  %v7808_v13 = vld [vmem:[%s16093_s3 + $0x4b0] sm:$0xf0]  ;;  %v7950_v41 = vld [vmem:[%s16093_s3 + $0x5c0] sm:$0xf] }
 0x265   :  { %2253 = vmatmul.bf16.gmra.mxu0 %v11804_v35  ;;  %2311 = vmatmul.bf16.gmra.mxu2 %v11804_v35 }
 0x266   :  { %2855 = vmatpush.bf16.msra.mxu0 %v7823_v7 }
 0x267   :  { %v12565_v15 = vpop.f32.mrf.mxu3 }
 0x26a   :  { %2856 = vmatpush.bf16.msra.mxu0 %v7807_v50 }
 0x26c   :  { %2282 = vmatmul.bf16.gmra.mxu1 %v11834_v33  ;;  %2340 = vmatmul.bf16.gmra.mxu3 %v11834_v33 }
 0x272   :  { %v1707_v36 = vpop.f32.mrf.mxu0 }
 0x275   :  { %2258 = vmatmul.bf16.gmra.mxu0 %v12014_v17  ;;  %2316 = vmatmul.bf16.gmra.mxu2 %v12014_v17 }
 0x278   :  { %v1765_v62 = vpop.f32.mrf.mxu2 }
 0x279   :  { %v1736_v47 = vpop.f32.mrf.mxu1 }
 0x27a   :  { %v12567_v48 = vadd.f32 %v1736_v47, %v1707_v36  ;;  %v1709_v40 = vpop.f32.mrf.mxu0  ;;  %v7824_v36 = vld [vmem:[%s16093_s3 + $0x4d0] sm:$0xf0]  ;;  %v7966_v47 = vld [vmem:[%s16093_s3 + $0x5e0] sm:$0xf] }
 0x27c   :  { %2287 = vmatmul.bf16.gmra.mxu1 %v12045_v49  ;;  %2345 = vmatmul.bf16.gmra.mxu3 %v12045_v49 }
 0x27f   :  { %v1794_v21 = vpop.f32.mrf.mxu3 }
 0x280   :  { %v12571_v54 = vadd.f32 %v1794_v21, %v1765_v62  ;;  %v1767_v31 = vpop.f32.mrf.mxu2  ;;  %v7827_v62 = vor.u32 %v10180_v45, %v7824_v36  ;;  %v10216_v21 = vld [vmem:[%s16093_s3 + $0x5e4] sm:$0xf]  ;;  %v7952_v36 = vld [vmem:[%s16093_s3 + $0x5d0] sm:$0xf0] }
 0x281   :  { %v1738_v51 = vpop.f32.mrf.mxu1 }
 0x282   :  { %v12573_v10 = vadd.f32 %v1738_v51, %v1709_v40  ;;  %v1808_v0 = vpop.f32.mrf.mxu0  ;;  %v10218_v40 = vld [vmem:[%s16093_s3 + $0x5ec] sm:$0xf0]  ;;  %v7968_v51 = vld [vmem:[%s16093_s3 + $0x5f0] sm:$0xf0]  ;;  %2913 = vmatpush.bf16.msra.mxu2 %v7827_v62 }
 0x285   :  { %2359 = vmatmul.bf16.vlgmr.msrb.gmra.mxu0 %v11733_v55  ;;  %2417 = vmatmul.bf16.vlgmr.msrb.gmra.mxu2 %v11733_v55 }
 0x287   :  { %v1796_v27 = vpop.f32.mrf.mxu3 }
 0x288   :  { %v12589_v55 = vadd.f32 %v1796_v27, %v1767_v31  ;;  %v1866_v32 = vpop.f32.mrf.mxu2  ;;  %v7967_v31 = vor.u32 %v10218_v40, %v7966_v47  ;;  %v7955_v47 = vor.u32 %v10212_v34, %v7952_v36  ;;  %v7790_v40 = vld [vmem:[%s16093_s3 + $0x480] sm:$0xf]  ;;  %v10168_v34 = vld [vmem:[%s16093_s3 + $0x464] sm:$0xf]  ;;  %v7776_v36 = vld [vmem:[%s16093_s3 + $0x470] sm:$0xf0] }
 0x289   :  { %v1837_v12 = vpop.f32.mrf.mxu1 }
 0x28a   :  { %v12600_v22 = vadd.f32 %v1837_v12, %v1808_v0  ;;  %v1810_v53 = vpop.f32.mrf.mxu0  ;;  %v7971_v0 = vor.u32 %v10216_v21, %v7968_v51  ;;  %2883 = vmatpush.bf16.msra.mxu1 %v7967_v31  ;;  %v10214_v12 = vld [vmem:[%s16093_s3 + $0x5cc] sm:$0xf0] }
 0x28b   :  { %v7951_v7 = vor.u32 %v10214_v12, %v7950_v41  ;;  %v10174_v21 = vld [vmem:[%s16093_s3 + $0x48c] sm:$0xf0]  ;;  %v7774_v41 = vld [vmem:[%s16093_s3 + $0x460] sm:$0xf] }
 0x28c   :  { %2388 = vmatmul.bf16.vlgmr.msrb.gmra.mxu1 %v11746_v61  ;;  %2446 = vmatmul.bf16.vlgmr.msrb.gmra.mxu3 %v11746_v61  ;;  %v10176_v61 = vld [vmem:[%s16093_s3 + $0x4a4] sm:$0xf]  ;;  %v10170_v12 = vld [vmem:[%s16093_s3 + $0x46c] sm:$0xf0] }
 0x28d   :  { %2941 = vmatpush.bf16.msra.mxu3 %v7971_v0  ;;  %v7811_v27 = vor.u32 %v10176_v61, %v7808_v13  ;;  %v7791_v0 = vor.u32 %v10174_v21, %v7790_v40  ;;  %v10210_v61 = vld [vmem:[%s16093_s3 + $0x5ac] sm:$0xf0]  ;;  %v7918_v40 = vld [vmem:[%s16093_s3 + $0x580] sm:$0xf] }
 0x28e   :  { %2884 = vmatpush.bf16.msra.mxu1 %v7951_v7  ;;  %v7935_v13 = vor.u32 %v10210_v61, %v7934_v24  ;;  %v7775_v7 = vor.u32 %v10170_v12, %v7774_v41  ;;  %v10206_v21 = vld [vmem:[%s16093_s3 + $0x58c] sm:$0xf0]  ;;  %v7920_v61 = vld [vmem:[%s16093_s3 + $0x590] sm:$0xf0] }
 0x28f   :  { %v1895_v57 = vpop.f32.mrf.mxu3  ;;  %2914 = vmatpush.bf16.msra.mxu2 %v7811_v27  ;;  %2857 = vmatpush.bf16.msra.mxu0 %v7791_v0  ;;  %v7919_v24 = vor.u32 %v10206_v21, %v7918_v40  ;;  %v7904_v40 = vld [vmem:[%s16093_s3 + $0x570] sm:$0xf0] }
 0x290   :  { %v12640_v9 = vadd.f32 %v1895_v57, %v1866_v32  ;;  %v1868_v45 = vpop.f32.mrf.mxu2  ;;  %v10172_v32 = vld [vmem:[%s16093_s3 + $0x484] sm:$0xf]  ;;  %v7936_v57 = vld [vmem:[%s16093_s3 + $0x5b0] sm:$0xf0] }
 0x291   :  { %v1839_v62 = vpop.f32.mrf.mxu1  ;;  %2942 = vmatpush.bf16.msra.mxu3 %v7955_v47  ;;  %v7795_v50 = vor.u32 %v10172_v32, %v7792_v39  ;;  %v7779_v47 = vor.u32 %v10168_v34, %v7776_v36  ;;  %v10204_v32 = vld [vmem:[%s16093_s3 + $0x584] sm:$0xf]  ;;  %v7760_v34 = vld [vmem:[%s16093_s3 + $0x450] sm:$0xf0] }
 0x292   :  { %v12654_v31 = vadd.f32 %v1839_v62, %v1810_v53  ;;  %v1813_v51 = vpop.f32.mrf.mxu0  ;;  %v10208_v53 = vld [vmem:[%s16093_s3 + $0x5a4] sm:$0xf]  ;;  %2885 = vmatpush.bf16.msra.mxu1 %v7935_v13  ;;  %v7923_v13 = vor.u32 %v10204_v32, %v7920_v61  ;;  %v7742_v32 = vld [vmem:[%s16093_s3 + $0x420] sm:$0xf] }
 0x293   :  { %v7939_v27 = vor.u32 %v10208_v53, %v7936_v57  ;;  %2915 = vmatpush.bf16.msra.mxu2 %v7795_v50  ;;  %v7758_v53 = vld [vmem:[%s16093_s3 + $0x440] sm:$0xf]  ;;  %v10166_v57 = vld [vmem:[%s16093_s3 + $0x44c] sm:$0xf0]  ;;  %2858 = vmatpush.bf16.msra.mxu0 %v7775_v7  ;;  %v10200_v7 = vld [vmem:[%s16093_s3 + $0x564] sm:$0xf] }
 0x294   :  { %v7759_v12 = vor.u32 %v10166_v57, %v7758_v53  ;;  %v7907_v21 = vor.u32 %v10200_v7, %v7904_v40  ;;  %v10160_v61 = vld [vmem:[%s16093_s3 + $0x424] sm:$0xf]  ;;  %v7888_v7 = vld [vmem:[%s16093_s3 + $0x550] sm:$0xf0] }
 0x295   :  { %2364 = vmatmul.bf16.gmra.mxu0 %v11768_v2  ;;  %2422 = vmatmul.bf16.gmra.mxu2 %v11768_v2 }
 0x296   :  { %2943 = vmatpush.bf16.msra.mxu3 %v7939_v27  ;;  %2886 = vmatpush.bf16.msra.mxu1 %v7919_v24  ;;  %v10162_v24 = vld [vmem:[%s16093_s3 + $0x42c] sm:$0xf0] }
 0x297   :  { %v1897_v62 = vpop.f32.mrf.mxu3  ;;  %2916 = vmatpush.bf16.msra.mxu2 %v7779_v47  ;;  %2859 = vmatpush.bf16.msra.mxu0 %v7759_v12  ;;  %v10196_v12 = vld [vmem:[%s16093_s3 + $0x544] sm:$0xf] }
 0x298   :  { %v12694_v0 = vadd.f32 %v1897_v62, %v1868_v45  ;;  %v1871_v39 = vpop.f32.mrf.mxu2  ;;  %v10164_v45 = vld [vmem:[%s16093_s3 + $0x444] sm:$0xf]  ;;  %v7902_v62 = vld [vmem:[%s16093_s3 + $0x560] sm:$0xf]  ;;  %v7891_v40 = vor.u32 %v10196_v12, %v7888_v7  ;;  %v7872_v12 = vld [vmem:[%s16093_s3 + $0x530] sm:$0xf0] }
 0x299   :  { %v1842_v50 = vpop.f32.mrf.mxu1  ;;  %v7763_v36 = vor.u32 %v10164_v45, %v7760_v34  ;;  %v7886_v45 = vld [vmem:[%s16093_s3 + $0x540] sm:$0xf]  ;;  %v10198_v34 = vld [vmem:[%s16093_s3 + $0x54c] sm:$0xf0] }
 0x29a   :  { %v12708_v27 = vadd.f32 %v1842_v50, %v1813_v51  ;;  %v1815_v41 = vpop.f32.mrf.mxu0  ;;  %2944 = vmatpush.bf16.msra.mxu3 %v7923_v13  ;;  %v10202_v51 = vld [vmem:[%s16093_s3 + $0x56c] sm:$0xf0]  ;;  %v7743_v50 = vor.u32 %v10162_v24, %v7742_v32  ;;  %v7744_v13 = vld [vmem:[%s16093_s3 + $0x430] sm:$0xf0] }
 0x29b   :  { %v7903_v47 = vor.u32 %v10202_v51, %v7902_v62  ;;  %2917 = vmatpush.bf16.msra.mxu2 %v7763_v36  ;;  %v7747_v57 = vor.u32 %v10160_v61, %v7744_v13  ;;  %v7887_v51 = vor.u32 %v10198_v34, %v7886_v45  ;;  %v10158_v32 = vld [vmem:[%s16093_s3 + $0x40c] sm:$0xf0]  ;;  %v7870_v34 = vld [vmem:[%s16093_s3 + $0x520] sm:$0xf] }
 0x29c   :  { %2393 = vmatmul.bf16.gmra.mxu1 %v11778_v38  ;;  %2451 = vmatmul.bf16.gmra.mxu3 %v11778_v38 }
 0x29d   :  { %2887 = vmatpush.bf16.msra.mxu1 %v7903_v47  ;;  %2860 = vmatpush.bf16.msra.mxu0 %v7743_v50  ;;  %v10192_v50 = vld [vmem:[%s16093_s3 + $0x524] sm:$0xf] }
 0x29e   :  { %2945 = vmatpush.bf16.msra.mxu3 %v7907_v21  ;;  %v7726_v21 = vld [vmem:[%s16093_s3 + $0x400] sm:$0xf] }
 0x29f   :  { %v1900_v53 = vpop.f32.mrf.mxu3  ;;  %2918 = vmatpush.bf16.msra.mxu2 %v7747_v57  ;;  %v7727_v13 = vor.u32 %v10158_v32, %v7726_v21  ;;  %v10188_v21 = vld [vmem:[%s16093_s3 + $0x504] sm:$0xf] }
 0x2a0   :  { %v12748_v36 = vadd.f32 %v1900_v53, %v1871_v39  ;;  %v1873_v62 = vpop.f32.mrf.mxu2  ;;  %v10156_v39 = vld [vmem:[%s16093_s3 + $0x404] sm:$0xf]  ;;  %v7728_v53 = vld [vmem:[%s16093_s3 + $0x410] sm:$0xf0] }
 0x2a1   :  { %v1844_v47 = vpop.f32.mrf.mxu1  ;;  %2888 = vmatpush.bf16.msra.mxu1 %v7887_v51  ;;  %v7731_v45 = vor.u32 %v10156_v39, %v7728_v53  ;;  %v7875_v51 = vor.u32 %v10192_v50, %v7872_v12  ;;  %2861 = vmatpush.bf16.msra.mxu0 %v7727_v13  ;;  %v7856_v53 = vld [vmem:[%s16093_s3 + $0x510] sm:$0xf0] }
 0x2a2   :  { %v12762_v24 = vadd.f32 %v1844_v47, %v1815_v41  ;;  %v1818_v61 = vpop.f32.mrf.mxu0  ;;  %2946 = vmatpush.bf16.msra.mxu3 %v7891_v40  ;;  %v10194_v41 = vld [vmem:[%s16093_s3 + $0x52c] sm:$0xf0]  ;;  %v7854_v47 = vld [vmem:[%s16093_s3 + $0x500] sm:$0xf] }
 0x2a3   :  { %v7871_v57 = vor.u32 %v10194_v41, %v7870_v34  ;;  %2919 = vmatpush.bf16.msra.mxu2 %v7731_v45  ;;  %v10190_v40 = vld [vmem:[%s16093_s3 + $0x50c] sm:$0xf0]  ;;  %v7859_v34 = vor.u32 %v10188_v21, %v7856_v53 }
 0x2a4   :  { %v7855_v13 = vor.u32 %v10190_v40, %v7854_v47 }
 0x2a5   :  { %2369 = vmatmul.bf16.gmra.mxu0 %v11804_v35  ;;  %2427 = vmatmul.bf16.gmra.mxu2 %v11804_v35 }
 0x2a6   :  { %2889 = vmatpush.bf16.msra.mxu1 %v7871_v57  ;;  %2947 = vmatpush.bf16.msra.mxu3 %v7875_v51 }
 0x2a7   :  { %v1902_v7 = vpop.f32.mrf.mxu3 }
 0x2a8   :  { %v12790_v32 = vadd.f32 %v1902_v7, %v1873_v62  ;;  %v1876_v39 = vpop.f32.mrf.mxu2 }
 0x2a9   :  { %v1847_v45 = vpop.f32.mrf.mxu1 }
 0x2aa   :  { %v12795_v41 = vadd.f32 %v1847_v45, %v1818_v61  ;;  %v1820_v50 = vpop.f32.mrf.mxu0  ;;  %2890 = vmatpush.bf16.msra.mxu1 %v7855_v13  ;;  %2948 = vmatpush.bf16.msra.mxu3 %v7859_v34 }
 0x2ac   :  { %2398 = vmatmul.bf16.gmra.mxu1 %v11834_v33  ;;  %2456 = vmatmul.bf16.gmra.mxu3 %v11834_v33 }
 0x2af   :  { %v1905_v57 = vpop.f32.mrf.mxu3 }
 0x2b0   :  { %v12799_v62 = vadd.f32 %v1905_v57, %v1876_v39  ;;  %v1878_v12 = vpop.f32.mrf.mxu2 }
 0x2b1   :  { %v1849_v51 = vpop.f32.mrf.mxu1 }
 0x2b2   :  { %v12801_v7 = vadd.f32 %v1849_v51, %v1820_v50  ;;  %v1823_v47 = vpop.f32.mrf.mxu0 }
 0x2b5   :  { %2374 = vmatmul.bf16.gmra.mxu0 %v12014_v17  ;;  %2432 = vmatmul.bf16.gmra.mxu2 %v12014_v17 }
 0x2b7   :  { %v1907_v61 = vpop.f32.mrf.mxu3 }
 0x2b8   :  { %v12805_v40 = vadd.f32 %v1907_v61, %v1878_v12  ;;  %v1881_v21 = vpop.f32.mrf.mxu2  ;;  %v10187_v61 = vld [vmem:[%s16093_s3 + $0x4f4] sm:$0xf0] }
 0x2b9   :  { %v1852_v13 = vpop.f32.mrf.mxu1 }
 0x2ba   :  { %v12807_v53 = vadd.f32 %v1852_v13, %v1823_v47  ;;  %v1825_v45 = vpop.f32.mrf.mxu0  ;;  %v7846_v47 = vld [vmem:[%s16093_s3 + $0x4e8] sm:$0xf] }
 0x2bb   :  { %v7847_v13 = vor.u32 %v10187_v61, %v7846_v47  ;;  %v10183_v47 = vld [vmem:[%s16093_s3 + $0x4d4] sm:$0xf0]  ;;  %v10181_v61 = vld [vmem:[%s16093_s3 + $0x4cc] sm:$0xf] }
 0x2bc   :  { %2403 = vmatmul.bf16.gmra.mxu1 %v12045_v49  ;;  %2461 = vmatmul.bf16.gmra.mxu3 %v12045_v49 }
 0x2bd   :  { %2970 = vmatpush.bf16.msrb.mxu0 %v7847_v13  ;;  %v7831_v13 = vor.u32 %v10183_v47, %v7830_v6  ;;  %v7814_v47 = vld [vmem:[%s16093_s3 + $0x4a8] sm:$0xf] }
 0x2bf   :  { %v1910_v39 = vpop.f32.mrf.mxu3 }
 0x2c0   :  { %v12811_v34 = vadd.f32 %v1910_v39, %v1881_v21  ;;  %v1883_v50 = vpop.f32.mrf.mxu2  ;;  %v10185_v21 = vld [vmem:[%s16093_s3 + $0x4ec] sm:$0xf] }
 0x2c1   :  { %v1854_v57 = vpop.f32.mrf.mxu1  ;;  %2971 = vmatpush.bf16.msrb.mxu0 %v7831_v13  ;;  %v7816_v13 = vld [vmem:[%s16093_s3 + $0x4b8] sm:$0xf0] }
 0x2c2   :  { %v12813_v51 = vadd.f32 %v1854_v57, %v1825_v45  ;;  %v2244_v18 = vpop.f32.mrf.mxu0 }
 0x2c3   :  { %v2245_v12 = vadd.f32 %v2244_v18, %v12283_v58  ;;  %v7848_v58 = vld [vmem:[%s16093_s3 + $0x4f8] sm:$0xf0] }
 0x2c4   :  { %v7851_v45 = vor.u32 %v10185_v21, %v7848_v58 }
 0x2c5   :  { %2862 = vmatmul.bf16.vlgmr.msra.gmra.mxu0 %v11768_v2  ;;  %2920 = vmatmul.bf16.vlgmr.msra.gmra.mxu2 %v11768_v2 }
 0x2c6   :  { %3028 = vmatpush.bf16.msrb.mxu2 %v7851_v45  ;;  %v10219_v45 = vld [vmem:[%s16093_s3 + $0x5f4] sm:$0xf0] }
 0x2c7   :  { %v1912_v18 = vpop.f32.mrf.mxu3 }
 0x2c8   :  { %v12830_v39 = vadd.f32 %v1912_v18, %v1883_v50  ;;  %v2302_v57 = vpop.f32.mrf.mxu2  ;;  %v7974_v18 = vld [vmem:[%s16093_s3 + $0x5e8] sm:$0xf] }
 0x2c9   :  { %v2273_v30 = vpop.f32.mrf.mxu1  ;;  %v2303_v1 = vadd.f32 %v2302_v57, %v12318_v59  ;;  %v7832_v59 = vld [vmem:[%s16093_s3 + $0x4d8] sm:$0xf0]  ;;  %v7975_v6 = vor.u32 %v10219_v45, %v7974_v18  ;;  %v1724_v18 = vadd.f32 %v12327_v16, %v12325_v43  ;;  %v10213_v43 = vld [vmem:[%s16093_s3 + $0x5cc] sm:$0xf] }
 0x2ca   :  { %v12842_v50 = vadd.f32 %v2273_v30, %v2245_v12  ;;  %v2246_v21 = vpop.f32.mrf.mxu0  ;;  %v7835_v58 = vor.u32 %v10181_v61, %v7832_v59  ;;  %v10217_v30 = vld [vmem:[%s16093_s3 + $0x5ec] sm:$0xf]  ;;  %v7976_v12 = vld [vmem:[%s16093_s3 + $0x5f8] sm:$0xf0]  ;;  %v10179_v61 = vld [vmem:[%s16093_s3 + $0x4b4] sm:$0xf0] }
 0x2cb   :  { %v7979_v57 = vor.u32 %v10217_v30, %v7976_v12  ;;  %v10177_v59 = vld [vmem:[%s16093_s3 + $0x4ac] sm:$0xf]  ;;  %2999 = vmatpush.bf16.msrb.mxu1 %v7975_v6  ;;  %v7815_v45 = vor.u32 %v10179_v61, %v7814_v47  ;;  %v7958_v12 = vld [vmem:[%s16093_s3 + $0x5c8] sm:$0xf]  ;;  %v2247_v16 = vadd.f32 %v2246_v21, %v1724_v18  ;;  %v10175_v21 = vld [vmem:[%s16093_s3 + $0x494] sm:$0xf0] }
 0x2cc   :  { %2891 = vmatmul.bf16.vlgmr.msra.gmra.mxu1 %v11778_v38  ;;  %2949 = vmatmul.bf16.vlgmr.msra.gmra.mxu3 %v11778_v38  ;;  %v7819_v30 = vor.u32 %v10177_v59, %v7816_v13  ;;  %v7959_v61 = vor.u32 %v10215_v42, %v7958_v12  ;;  %v10173_v42 = vld [vmem:[%s16093_s3 + $0x48c] sm:$0xf] }
 0x2cd   :  { %3029 = vmatpush.bf16.msrb.mxu2 %v7835_v58  ;;  %3057 = vmatpush.bf16.msrb.mxu3 %v7979_v57  ;;  %v7960_v57 = vld [vmem:[%s16093_s3 + $0x5d8] sm:$0xf0] }
 0x2ce   :  { %2972 = vmatpush.bf16.msrb.mxu0 %v7815_v45  ;;  %v7963_v13 = vor.u32 %v10213_v43, %v7960_v57  ;;  %v7800_v45 = vld [vmem:[%s16093_s3 + $0x498] sm:$0xf0]  ;;  %v7942_v43 = vld [vmem:[%s16093_s3 + $0x5a8] sm:$0xf] }
 0x2cf   :  { %v2331_v58 = vpop.f32.mrf.mxu3  ;;  %3000 = vmatpush.bf16.msrb.mxu1 %v7959_v61  ;;  %v7803_v12 = vor.u32 %v10173_v42, %v7800_v45  ;;  %v1782_v61 = vadd.f32 %v12333_v44, %v12331_v37  ;;  %v10169_v37 = vld [vmem:[%s16093_s3 + $0x46c] sm:$0xf] }
 0x2d0   :  { %v12884_v6 = vadd.f32 %v2331_v58, %v2303_v1  ;;  %v2304_v47 = vpop.f32.mrf.mxu2  ;;  %v7799_v58 = vor.u32 %v10175_v21, %v7798_v63  ;;  %v10209_v63 = vld [vmem:[%s16093_s3 + $0x5ac] sm:$0xf]  ;;  %v10171_v21 = vld [vmem:[%s16093_s3 + $0x474] sm:$0xf0] }
 0x2d1   :  { %v2275_v59 = vpop.f32.mrf.mxu1  ;;  %3030 = vmatpush.bf16.msrb.mxu2 %v7819_v30  ;;  %3058 = vmatpush.bf16.msrb.mxu3 %v7963_v13  ;;  %v7782_v13 = vld [vmem:[%s16093_s3 + $0x468] sm:$0xf]  ;;  %v2305_v44 = vadd.f32 %v2304_v47, %v1782_v61  ;;  %v10205_v47 = vld [vmem:[%s16093_s3 + $0x58c] sm:$0xf] }
 0x2d2   :  { %v12898_v1 = vadd.f32 %v2275_v59, %v2247_v16  ;;  %v2249_v18 = vpop.f32.mrf.mxu0  ;;  %v10211_v16 = vld [vmem:[%s16093_s3 + $0x5b4] sm:$0xf0]  ;;  %2973 = vmatpush.bf16.msrb.mxu0 %v7799_v58  ;;  %v7783_v42 = vor.u32 %v10171_v21, %v7782_v13  ;;  %v7766_v21 = vld [vmem:[%s16093_s3 + $0x448] sm:$0xf] }
 0x2d3   :  { %v2250_v30 = vadd.f32 %v2249_v18, %v12335_v3  ;;  %v7943_v57 = vor.u32 %v10211_v16, %v7942_v43  ;;  %v7944_v3 = vld [vmem:[%s16093_s3 + $0x5b8] sm:$0xf0]  ;;  %v7926_v16 = vld [vmem:[%s16093_s3 + $0x588] sm:$0xf] }
 0x2d4   :  { %v7947_v59 = vor.u32 %v10209_v63, %v7944_v3  ;;  %v7784_v18 = vld [vmem:[%s16093_s3 + $0x478] sm:$0xf0]  ;;  %v10207_v63 = vld [vmem:[%s16093_s3 + $0x594] sm:$0xf0] }
 0x2d5   :  { %2867 = vmatmul.bf16.gmra.mxu0 %v11804_v35  ;;  %2925 = vmatmul.bf16.gmra.mxu2 %v11804_v35  ;;  %v7787_v43 = vor.u32 %v10169_v37, %v7784_v18  ;;  %v7927_v61 = vor.u32 %v10207_v63, %v7926_v16  ;;  %v10167_v37 = vld [vmem:[%s16093_s3 + $0x454] sm:$0xf0] }
 0x2d6   :  { %3031 = vmatpush.bf16.msrb.mxu2 %v7803_v12  ;;  %3001 = vmatpush.bf16.msrb.mxu1 %v7943_v57  ;;  %v7928_v57 = vld [vmem:[%s16093_s3 + $0x598] sm:$0xf0]  ;;  %v7767_v16 = vor.u32 %v10167_v37, %v7766_v21  ;;  %v1729_v21 = vadd.f32 %v12407_v46, %v12405_v28  ;;  %v10197_v28 = vld [vmem:[%s16093_s3 + $0x54c] sm:$0xf] }
 0x2d7   :  { %v2333_v45 = vpop.f32.mrf.mxu3  ;;  %3059 = vmatpush.bf16.msrb.mxu3 %v7947_v59  ;;  %v7931_v13 = vor.u32 %v10205_v47, %v7928_v57  ;;  %2974 = vmatpush.bf16.msrb.mxu0 %v7783_v42  ;;  %v7910_v47 = vld [vmem:[%s16093_s3 + $0x568] sm:$0xf]  ;;  %v10201_v42 = vld [vmem:[%s16093_s3 + $0x56c] sm:$0xf] }
 0x2d8   :  { %v12941_v58 = vadd.f32 %v2333_v45, %v2305_v44  ;;  %v2307_v12 = vpop.f32.mrf.mxu2  ;;  %v10165_v44 = vld [vmem:[%s16093_s3 + $0x44c] sm:$0xf]  ;;  %v7750_v57 = vld [vmem:[%s16093_s3 + $0x428] sm:$0xf] }
 0x2d9   :  { %v2278_v3 = vpop.f32.mrf.mxu1  ;;  %v2308_v59 = vadd.f32 %v2307_v12, %v12339_v60  ;;  %v7768_v60 = vld [vmem:[%s16093_s3 + $0x458] sm:$0xf0] }
 0x2da   :  { %v12956_v18 = vadd.f32 %v2278_v3, %v2250_v30  ;;  %v2251_v45 = vpop.f32.mrf.mxu0  ;;  %3032 = vmatpush.bf16.msrb.mxu2 %v7787_v43  ;;  %3002 = vmatpush.bf16.msrb.mxu1 %v7927_v61  ;;  %v7771_v63 = vor.u32 %v10165_v44, %v7768_v60  ;;  %v10203_v30 = vld [vmem:[%s16093_s3 + $0x574] sm:$0xf0]  ;;  %v7912_v12 = vld [vmem:[%s16093_s3 + $0x578] sm:$0xf0] }
 0x2db   :  { %3060 = vmatpush.bf16.msrb.mxu3 %v7931_v13  ;;  %v7911_v43 = vor.u32 %v10203_v30, %v7910_v47  ;;  %v7915_v61 = vor.u32 %v10201_v42, %v7912_v12  ;;  %v10163_v3 = vld [vmem:[%s16093_s3 + $0x434] sm:$0xf0]  ;;  %v10161_v13 = vld [vmem:[%s16093_s3 + $0x42c] sm:$0xf]  ;;  %2975 = vmatpush.bf16.msrb.mxu0 %v7767_v16  ;;  %v7752_v44 = vld [vmem:[%s16093_s3 + $0x438] sm:$0xf0]  ;;  %v2252_v46 = vadd.f32 %v2251_v45, %v1729_v21 }
 0x2dc   :  { %2896 = vmatmul.bf16.gmra.mxu1 %v11834_v33  ;;  %2954 = vmatmul.bf16.gmra.mxu3 %v11834_v33  ;;  %v7751_v37 = vor.u32 %v10163_v3, %v7750_v57  ;;  %v7755_v47 = vor.u32 %v10161_v13, %v7752_v44  ;;  %v7894_v30 = vld [vmem:[%s16093_s3 + $0x548] sm:$0xf]  ;;  %v10199_v42 = vld [vmem:[%s16093_s3 + $0x554] sm:$0xf0] }
 0x2dd   :  { %v7895_v12 = vor.u32 %v10199_v42, %v7894_v30  ;;  %v7734_v3 = vld [vmem:[%s16093_s3 + $0x408] sm:$0xf]  ;;  %v10159_v13 = vld [vmem:[%s16093_s3 + $0x414] sm:$0xf0] }
 0x2de   :  { %3033 = vmatpush.bf16.msrb.mxu2 %v7771_v63  ;;  %3003 = vmatpush.bf16.msrb.mxu1 %v7911_v43  ;;  %v7896_v43 = vld [vmem:[%s16093_s3 + $0x558] sm:$0xf0]  ;;  %v7735_v44 = vor.u32 %v10159_v13, %v7734_v3  ;;  %v10189_v3 = vld [vmem:[%s16093_s3 + $0x50c] sm:$0xf] }
 0x2df   :  { %v2336_v60 = vpop.f32.mrf.mxu3  ;;  %3061 = vmatpush.bf16.msrb.mxu3 %v7915_v61  ;;  %v7899_v57 = vor.u32 %v10197_v28, %v7896_v43  ;;  %2976 = vmatpush.bf16.msrb.mxu0 %v7751_v37  ;;  %v7878_v28 = vld [vmem:[%s16093_s3 + $0x528] sm:$0xf]  ;;  %v10193_v37 = vld [vmem:[%s16093_s3 + $0x52c] sm:$0xf] }
 0x2e0   :  { %v12998_v16 = vadd.f32 %v2336_v60, %v2308_v59  ;;  %v2309_v63 = vpop.f32.mrf.mxu2  ;;  %v10157_v59 = vld [vmem:[%s16093_s3 + $0x40c] sm:$0xf]  ;;  %v7736_v60 = vld [vmem:[%s16093_s3 + $0x418] sm:$0xf0] }
 0x2e1   :  { %v2280_v61 = vpop.f32.mrf.mxu1  ;;  %v7739_v42 = vor.u32 %v10157_v59, %v7736_v60 }
 0x2e2   :  { %v13012_v45 = vadd.f32 %v2280_v61, %v2252_v46  ;;  %v2254_v21 = vpop.f32.mrf.mxu0  ;;  %3034 = vmatpush.bf16.msrb.mxu2 %v7755_v47  ;;  %3004 = vmatpush.bf16.msrb.mxu1 %v7895_v12  ;;  %v10195_v46 = vld [vmem:[%s16093_s3 + $0x534] sm:$0xf0]  ;;  %v1787_v47 = vadd.f32 %v12449_v56, %v12447_v19  ;;  %v7862_v19 = vld [vmem:[%s16093_s3 + $0x508] sm:$0xf] }
 0x2e3   :  { %v2255_v30 = vadd.f32 %v2254_v21, %v12472_v29  ;;  %3062 = vmatpush.bf16.msrb.mxu3 %v7899_v57  ;;  %v7879_v43 = vor.u32 %v10195_v46, %v7878_v28  ;;  %v7880_v29 = vld [vmem:[%s16093_s3 + $0x538] sm:$0xf0]  ;;  %2977 = vmatpush.bf16.msrb.mxu0 %v7735_v44  ;;  %v10191_v56 = vld [vmem:[%s16093_s3 + $0x514] sm:$0xf0] }
 0x2e4   :  { %v7883_v12 = vor.u32 %v10193_v37, %v7880_v29  ;;  %v2310_v61 = vadd.f32 %v2309_v63, %v1787_v47  ;;  %v7863_v59 = vor.u32 %v10191_v56, %v7862_v19  ;;  %v7864_v21 = vld [vmem:[%s16093_s3 + $0x518] sm:$0xf0]  ;;  %v1734_v37 = vadd.f32 %v12561_v23, %v12555_v5 }
 0x2e5   :  { %2872 = vmatmul.bf16.gmra.mxu0 %v12014_v17  ;;  %2930 = vmatmul.bf16.gmra.mxu2 %v12014_v17  ;;  %v1792_v47 = vadd.f32 %v12565_v15, %v12559_v25 }
 0x2e6   :  { %3035 = vmatpush.bf16.msrb.mxu2 %v7739_v42  ;;  %3005 = vmatpush.bf16.msrb.mxu1 %v7879_v43  ;;  %v7867_v42 = vor.u32 %v10189_v3, %v7864_v21 }
 0x2e7   :  { %v2338_v57 = vpop.f32.mrf.mxu3  ;;  %3063 = vmatpush.bf16.msrb.mxu3 %v7883_v12 }
 0x2e8   :  { %v13043_v13 = vadd.f32 %v2338_v57, %v2310_v61  ;;  %v2312_v63 = vpop.f32.mrf.mxu2 }
 0x2e9   :  { %v2283_v44 = vpop.f32.mrf.mxu1  ;;  %v2313_v60 = vadd.f32 %v2312_v63, %v12512_v52 }
 0x2ea   :  { %v13049_v28 = vadd.f32 %v2283_v44, %v2255_v30  ;;  %v2256_v46 = vpop.f32.mrf.mxu0  ;;  %3006 = vmatpush.bf16.msrb.mxu1 %v7863_v59 }
 0x2eb   :  { %3064 = vmatpush.bf16.msrb.mxu3 %v7867_v42  ;;  %v2257_v29 = vadd.f32 %v2256_v46, %v1734_v37 }
 0x2ec   :  { %2901 = vmatmul.bf16.gmra.mxu1 %v12045_v49  ;;  %2959 = vmatmul.bf16.gmra.mxu3 %v12045_v49 }
 0x2ef   :  { %v2341_v43 = vpop.f32.mrf.mxu3 }
 0x2f0   :  { %v13057_v12 = vadd.f32 %v2341_v43, %v2313_v60  ;;  %v2314_v52 = vpop.f32.mrf.mxu2  ;;  %v10250_v43 = vld [vmem:[%s16093_s3 + $0x6ec] sm:$0xf0] }
 0x2f1   :  { %v2285_v30 = vpop.f32.mrf.mxu1  ;;  %v2315_v61 = vadd.f32 %v2314_v52, %v1792_v47 }
 0x2f2   :  { %v13059_v57 = vadd.f32 %v2285_v30, %v2257_v29  ;;  %v2259_v19 = vpop.f32.mrf.mxu0 }
 0x2f3   :  { %v2260_v56 = vadd.f32 %v2259_v19, %v12567_v48 }
 0x2f5   :  { %2877 = vmatmul.bf16.gmra.mxu0 %v12073_v20  ;;  %2935 = vmatmul.bf16.gmra.mxu2 %v12073_v20 }
 0x2f7   :  { %v2343_v5 = vpop.f32.mrf.mxu3 }
 0x2f8   :  { %v13064_v23 = vadd.f32 %v2343_v5, %v2315_v61  ;;  %v2317_v25 = vpop.f32.mrf.mxu2  ;;  %v8142_v5 = vld [vmem:[%s16093_s3 + $0x6c0] sm:$0xf] }
 0x2f9   :  { %v2288_v15 = vpop.f32.mrf.mxu1  ;;  %v2318_v3 = vadd.f32 %v2317_v25, %v12571_v54  ;;  %v10246_v25 = vld [vmem:[%s16093_s3 + $0x6cc] sm:$0xf0] }
 0x2fa   :  { %v13067_v63 = vadd.f32 %v2288_v15, %v2260_v56  ;;  %v2261_v59 = vpop.f32.mrf.mxu0  ;;  %v10244_v15 = vld [vmem:[%s16093_s3 + $0x6c4] sm:$0xf] }
 0x2fb   :  { %v2262_v21 = vadd.f32 %v2261_v59, %v12573_v10  ;;  %v8158_v10 = vld [vmem:[%s16093_s3 + $0x6e0] sm:$0xf] }
 0x2fc   :  { %2906 = vmatmul.bf16.gmra.mxu1 %v12105_v4  ;;  %2964 = vmatmul.bf16.gmra.mxu3 %v12105_v4  ;;  %v8159_v29 = vor.u32 %v10250_v43, %v8158_v10  ;;  %v8126_v43 = vld [vmem:[%s16093_s3 + $0x6a0] sm:$0xf] }
 0x2fe   :  { %3505 = vmatpush.bf16.msra.mxu0 %v8159_v29 }
 0x2ff   :  { %v2346_v48 = vpop.f32.mrf.mxu3 }
 0x300   :  { %v13072_v44 = vadd.f32 %v2346_v48, %v2318_v3  ;;  %v2319_v60 = vpop.f32.mrf.mxu2 }
 0x301   :  { %v2290_v42 = vpop.f32.mrf.mxu1  ;;  %v2320_v46 = vadd.f32 %v2319_v60, %v12589_v55  ;;  %v10248_v55 = vld [vmem:[%s16093_s3 + $0x6e4] sm:$0xf] }
 0x302   :  { %v13075_v37 = vadd.f32 %v2290_v42, %v2262_v21  ;;  %v2360_v47 = vpop.f32.mrf.mxu0  ;;  %v8143_v21 = vor.u32 %v10246_v25, %v8142_v5  ;;  %v8286_v42 = vld [vmem:[%s16093_s3 + $0x7e0] sm:$0xf]  ;;  %v10276_v5 = vld [vmem:[%s16093_s3 + $0x7c4] sm:$0xf] }
 0x303   :  { %v2361_v54 = vadd.f32 %v2360_v47, %v12600_v22  ;;  %v8160_v22 = vld [vmem:[%s16093_s3 + $0x6f0] sm:$0xf0]  ;;  %v10280_v47 = vld [vmem:[%s16093_s3 + $0x7e4] sm:$0xf] }
 0x304   :  { %v8163_v30 = vor.u32 %v10248_v55, %v8160_v22  ;;  %3506 = vmatpush.bf16.msra.mxu0 %v8143_v21  ;;  %v10242_v55 = vld [vmem:[%s16093_s3 + $0x6ac] sm:$0xf0]  ;;  %v8128_v22 = vld [vmem:[%s16093_s3 + $0x6b0] sm:$0xf0] }
 0x305   :  { %2978 = vmatmul.bf16.vlgmr.msrb.gmra.mxu0 %v11768_v2  ;;  %3036 = vmatmul.bf16.vlgmr.msrb.gmra.mxu2 %v11768_v2  ;;  %v8127_v29 = vor.u32 %v10242_v55, %v8126_v43  ;;  %v8272_v21 = vld [vmem:[%s16093_s3 + $0x7d0] sm:$0xf0] }
 0x306   :  { %3563 = vmatpush.bf16.msra.mxu2 %v8163_v30 }
 0x307   :  { %v2348_v52 = vpop.f32.mrf.mxu3 }
 0x308   :  { %v13092_v2 = vadd.f32 %v2348_v52, %v2320_v46  ;;  %v2418_v61 = vpop.f32.mrf.mxu2  ;;  %v10282_v46 = vld [vmem:[%s16093_s3 + $0x7ec] sm:$0xf0]  ;;  %3507 = vmatpush.bf16.msra.mxu0 %v8127_v29  ;;  %v10272_v29 = vld [vmem:[%s16093_s3 + $0x7a4] sm:$0xf] }
 0x309   :  { %v2389_v19 = vpop.f32.mrf.mxu1  ;;  %v2419_v56 = vadd.f32 %v2418_v61, %v12640_v9  ;;  %v8144_v9 = vld [vmem:[%s16093_s3 + $0x6d0] sm:$0xf0]  ;;  %v8270_v61 = vld [vmem:[%s16093_s3 + $0x7c0] sm:$0xf] }
 0x30a   :  { %v13104_v3 = vadd.f32 %v2389_v19, %v2361_v54  ;;  %v2362_v59 = vpop.f32.mrf.mxu0  ;;  %v8147_v60 = vor.u32 %v10244_v15, %v8144_v9  ;;  %v8287_v54 = vor.u32 %v10282_v46, %v8286_v42  ;;  %v10278_v19 = vld [vmem:[%s16093_s3 + $0x7cc] sm:$0xf0]  ;;  %v8275_v42 = vor.u32 %v10276_v5, %v8272_v21  ;;  %v8110_v46 = vld [vmem:[%s16093_s3 + $0x680] sm:$0xf] }
 0x30b   :  { %v2363_v48 = vadd.f32 %v2362_v59, %v12654_v31  ;;  %v8288_v31 = vld [vmem:[%s16093_s3 + $0x7f0] sm:$0xf0]  ;;  %v8271_v59 = vor.u32 %v10278_v19, %v8270_v61  ;;  %v10234_v61 = vld [vmem:[%s16093_s3 + $0x66c] sm:$0xf0]  ;;  %v10232_v19 = vld [vmem:[%s16093_s3 + $0x664] sm:$0xf] }
 0x30c   :  { %3007 = vmatmul.bf16.vlgmr.msrb.gmra.mxu1 %v11778_v38  ;;  %3065 = vmatmul.bf16.vlgmr.msrb.gmra.mxu3 %v11778_v38  ;;  %v8291_v10 = vor.u32 %v10280_v47, %v8288_v31  ;;  %v10240_v38 = vld [vmem:[%s16093_s3 + $0x6a4] sm:$0xf] }
 0x30d   :  { %3564 = vmatpush.bf16.msra.mxu2 %v8147_v60  ;;  %3534 = vmatpush.bf16.msra.mxu1 %v8287_v54  ;;  %v8131_v30 = vor.u32 %v10240_v38, %v8128_v22  ;;  %v10236_v47 = vld [vmem:[%s16093_s3 + $0x684] sm:$0xf]  ;;  %v8254_v38 = vld [vmem:[%s16093_s3 + $0x7a0] sm:$0xf] }
 0x30e   :  { %3592 = vmatpush.bf16.msra.mxu3 %v8291_v10  ;;  %v8112_v10 = vld [vmem:[%s16093_s3 + $0x690] sm:$0xf0] }
 0x30f   :  { %v2447_v52 = vpop.f32.mrf.mxu3  ;;  %v8115_v55 = vor.u32 %v10236_v47, %v8112_v10 }
 0x310   :  { %v13145_v25 = vadd.f32 %v2447_v52, %v2419_v56  ;;  %v2420_v15 = vpop.f32.mrf.mxu2  ;;  %v10238_v56 = vld [vmem:[%s16093_s3 + $0x68c] sm:$0xf0]  ;;  %v8256_v52 = vld [vmem:[%s16093_s3 + $0x7b0] sm:$0xf0] }
 0x311   :  { %v2391_v9 = vpop.f32.mrf.mxu1  ;;  %v2421_v60 = vadd.f32 %v2420_v15, %v12694_v0  ;;  %3565 = vmatpush.bf16.msra.mxu2 %v8131_v30  ;;  %3535 = vmatpush.bf16.msra.mxu1 %v8271_v59  ;;  %v8111_v0 = vor.u32 %v10238_v56, %v8110_v46  ;;  %v8094_v30 = vld [vmem:[%s16093_s3 + $0x660] sm:$0xf]  ;;  %v8096_v15 = vld [vmem:[%s16093_s3 + $0x670] sm:$0xf0]  ;;  %v10268_v46 = vld [vmem:[%s16093_s3 + $0x784] sm:$0xf] }
 0x312   :  { %v13160_v54 = vadd.f32 %v2391_v9, %v2363_v48  ;;  %v2365_v31 = vpop.f32.mrf.mxu0  ;;  %3593 = vmatpush.bf16.msra.mxu3 %v8275_v42  ;;  %v10274_v48 = vld [vmem:[%s16093_s3 + $0x7ac] sm:$0xf0]  ;;  %v8095_v5 = vor.u32 %v10234_v61, %v8094_v30  ;;  %v8099_v21 = vor.u32 %v10232_v19, %v8096_v15  ;;  %v8238_v9 = vld [vmem:[%s16093_s3 + $0x780] sm:$0xf]  ;;  %v8224_v15 = vld [vmem:[%s16093_s3 + $0x770] sm:$0xf0] }
 0x313   :  { %v2366_v43 = vadd.f32 %v2365_v31, %v12708_v27  ;;  %v8255_v22 = vor.u32 %v10274_v48, %v8254_v38  ;;  %v8259_v27 = vor.u32 %v10272_v29, %v8256_v52  ;;  %3508 = vmatpush.bf16.msra.mxu0 %v8111_v0  ;;  %v10270_v42 = vld [vmem:[%s16093_s3 + $0x78c] sm:$0xf0]  ;;  %v8240_v0 = vld [vmem:[%s16093_s3 + $0x790] sm:$0xf0]  ;;  %v8078_v48 = vld [vmem:[%s16093_s3 + $0x640] sm:$0xf] }
 0x314   :  { %v8239_v31 = vor.u32 %v10270_v42, %v8238_v9  ;;  %v8243_v38 = vor.u32 %v10268_v46, %v8240_v0  ;;  %v10230_v29 = vld [vmem:[%s16093_s3 + $0x64c] sm:$0xf0]  ;;  %v8222_v19 = vld [vmem:[%s16093_s3 + $0x760] sm:$0xf]  ;;  %v10224_v42 = vld [vmem:[%s16093_s3 + $0x624] sm:$0xf] }
 0x315   :  { %2983 = vmatmul.bf16.gmra.mxu0 %v11804_v35  ;;  %3041 = vmatmul.bf16.gmra.mxu2 %v11804_v35  ;;  %v10226_v9 = vld [vmem:[%s16093_s3 + $0x62c] sm:$0xf0] }
 0x316   :  { %3566 = vmatpush.bf16.msra.mxu2 %v8115_v55  ;;  %3536 = vmatpush.bf16.msra.mxu1 %v8255_v22 }
 0x317   :  { %v2449_v59 = vpop.f32.mrf.mxu3  ;;  %3594 = vmatpush.bf16.msra.mxu3 %v8259_v27  ;;  %3509 = vmatpush.bf16.msra.mxu0 %v8095_v5  ;;  %v8079_v27 = vor.u32 %v10230_v29, %v8078_v48  ;;  %v10264_v5 = vld [vmem:[%s16093_s3 + $0x764] sm:$0xf] }
 0x318   :  { %v13201_v56 = vadd.f32 %v2449_v59, %v2421_v60  ;;  %v2423_v47 = vpop.f32.mrf.mxu2  ;;  %v10228_v60 = vld [vmem:[%s16093_s3 + $0x644] sm:$0xf]  ;;  %v8227_v59 = vor.u32 %v10264_v5, %v8224_v15  ;;  %v10222_v5 = vld [vmem:[%s16093_s3 + $0x60c] sm:$0xf0] }
 0x319   :  { %v2394_v10 = vpop.f32.mrf.mxu1  ;;  %v2424_v55 = vadd.f32 %v2423_v47, %v12748_v36  ;;  %v8080_v36 = vld [vmem:[%s16093_s3 + $0x650] sm:$0xf0]  ;;  %v10260_v48 = vld [vmem:[%s16093_s3 + $0x744] sm:$0xf] }
 0x31a   :  { %v13216_v22 = vadd.f32 %v2394_v10, %v2366_v43  ;;  %v2367_v52 = vpop.f32.mrf.mxu0  ;;  %3567 = vmatpush.bf16.msra.mxu2 %v8099_v21  ;;  %3537 = vmatpush.bf16.msra.mxu1 %v8239_v31  ;;  %v8083_v61 = vor.u32 %v10228_v60, %v8080_v36  ;;  %v10266_v43 = vld [vmem:[%s16093_s3 + $0x76c] sm:$0xf0]  ;;  %v8062_v21 = vld [vmem:[%s16093_s3 + $0x620] sm:$0xf]  ;;  %v8064_v47 = vld [vmem:[%s16093_s3 + $0x630] sm:$0xf0] }
 0x31b   :  { %v2368_v30 = vadd.f32 %v2367_v52, %v12762_v24  ;;  %3595 = vmatpush.bf16.msra.mxu3 %v8243_v38  ;;  %v8223_v24 = vor.u32 %v10266_v43, %v8222_v19  ;;  %3510 = vmatpush.bf16.msra.mxu0 %v8079_v27  ;;  %v8063_v46 = vor.u32 %v10226_v9, %v8062_v21  ;;  %v8206_v10 = vld [vmem:[%s16093_s3 + $0x740] sm:$0xf]  ;;  %v10262_v38 = vld [vmem:[%s16093_s3 + $0x74c] sm:$0xf0]  ;;  %v8208_v27 = vld [vmem:[%s16093_s3 + $0x750] sm:$0xf0] }
 0x31c   :  { %3012 = vmatmul.bf16.gmra.mxu1 %v11834_v33  ;;  %3070 = vmatmul.bf16.gmra.mxu3 %v11834_v33  ;;  %v8067_v0 = vor.u32 %v10224_v42, %v8064_v47  ;;  %v8207_v52 = vor.u32 %v10262_v38, %v8206_v10  ;;  %v8211_v19 = vor.u32 %v10260_v48, %v8208_v27  ;;  %v8046_v43 = vld [vmem:[%s16093_s3 + $0x600] sm:$0xf]  ;;  %v10258_v9 = vld [vmem:[%s16093_s3 + $0x72c] sm:$0xf0]  ;;  %v10256_v47 = vld [vmem:[%s16093_s3 + $0x724] sm:$0xf] }
 0x31d   :  { %v8190_v21 = vld [vmem:[%s16093_s3 + $0x720] sm:$0xf]  ;;  %v10254_v38 = vld [vmem:[%s16093_s3 + $0x70c] sm:$0xf0]  ;;  %v10252_v48 = vld [vmem:[%s16093_s3 + $0x704] sm:$0xf] }
 0x31e   :  { %3568 = vmatpush.bf16.msra.mxu2 %v8083_v61  ;;  %3538 = vmatpush.bf16.msra.mxu1 %v8223_v24  ;;  %v8174_v10 = vld [vmem:[%s16093_s3 + $0x700] sm:$0xf] }
 0x31f   :  { %v2452_v31 = vpop.f32.mrf.mxu3  ;;  %3596 = vmatpush.bf16.msra.mxu3 %v8227_v59  ;;  %3511 = vmatpush.bf16.msra.mxu0 %v8063_v46  ;;  %v8047_v59 = vor.u32 %v10222_v5, %v8046_v43  ;;  %v8191_v46 = vor.u32 %v10258_v9, %v8190_v21  ;;  %v8175_v27 = vor.u32 %v10254_v38, %v8174_v10 }
 0x320   :  { %v13257_v29 = vadd.f32 %v2452_v31, %v2424_v55  ;;  %v2425_v60 = vpop.f32.mrf.mxu2  ;;  %v10220_v55 = vld [vmem:[%s16093_s3 + $0x604] sm:$0xf]  ;;  %v8192_v31 = vld [vmem:[%s16093_s3 + $0x730] sm:$0xf0] }
 0x321   :  { %v2396_v36 = vpop.f32.mrf.mxu1  ;;  %v2426_v61 = vadd.f32 %v2425_v60, %v12790_v32  ;;  %v8048_v32 = vld [vmem:[%s16093_s3 + $0x610] sm:$0xf0] }
 0x322   :  { %v13272_v24 = vadd.f32 %v2396_v36, %v2368_v30  ;;  %v2370_v15 = vpop.f32.mrf.mxu0  ;;  %3569 = vmatpush.bf16.msra.mxu2 %v8067_v0  ;;  %3539 = vmatpush.bf16.msra.mxu1 %v8207_v52  ;;  %v8051_v30 = vor.u32 %v10220_v55, %v8048_v32  ;;  %v8195_v0 = vor.u32 %v10256_v47, %v8192_v31  ;;  %v8176_v36 = vld [vmem:[%s16093_s3 + $0x710] sm:$0xf0] }
 0x323   :  { %v2371_v42 = vadd.f32 %v2370_v15, %v12795_v41  ;;  %3597 = vmatpush.bf16.msra.mxu3 %v8211_v19  ;;  %3512 = vmatpush.bf16.msra.mxu0 %v8047_v59  ;;  %v8179_v5 = vor.u32 %v10252_v48, %v8176_v36 }
 0x325   :  { %2988 = vmatmul.bf16.gmra.mxu0 %v12014_v17  ;;  %3046 = vmatmul.bf16.gmra.mxu2 %v12014_v17 }
 0x326   :  { %3570 = vmatpush.bf16.msra.mxu2 %v8051_v30  ;;  %3540 = vmatpush.bf16.msra.mxu1 %v8191_v46 }
 0x327   :  { %v2454_v41 = vpop.f32.mrf.mxu3  ;;  %3598 = vmatpush.bf16.msra.mxu3 %v8195_v0 }
 0x328   :  { %v13301_v60 = vadd.f32 %v2454_v41, %v2426_v61  ;;  %v2428_v52 = vpop.f32.mrf.mxu2 }
 0x329   :  { %v2399_v19 = vpop.f32.mrf.mxu1  ;;  %v2429_v43 = vadd.f32 %v2428_v52, %v12799_v62 }
 0x32a   :  { %v13307_v55 = vadd.f32 %v2399_v19, %v2371_v42  ;;  %v2372_v15 = vpop.f32.mrf.mxu0  ;;  %3541 = vmatpush.bf16.msra.mxu1 %v8175_v27 }
 0x32b   :  { %v2373_v59 = vadd.f32 %v2372_v15, %v12801_v7  ;;  %3599 = vmatpush.bf16.msra.mxu3 %v8179_v5  ;;  %v10249_v5 = vld [vmem:[%s16093_s3 + $0x6ec] sm:$0xf]  ;;  %v8168_v15 = vld [vmem:[%s16093_s3 + $0x6f8] sm:$0xf0] }
 0x32c   :  { %3017 = vmatmul.bf16.gmra.mxu1 %v12045_v49  ;;  %3075 = vmatmul.bf16.gmra.mxu3 %v12045_v49 }
 0x32f   :  { %v2457_v61 = vpop.f32.mrf.mxu3 }
 0x330   :  { %v13312_v32 = vadd.f32 %v2457_v61, %v2429_v43  ;;  %v2430_v21 = vpop.f32.mrf.mxu2  ;;  %v8171_v61 = vor.u32 %v10249_v5, %v8168_v15  ;;  %v8134_v5 = vld [vmem:[%s16093_s3 + $0x6a8] sm:$0xf] }
 0x331   :  { %v2401_v9 = vpop.f32.mrf.mxu1  ;;  %v2431_v30 = vadd.f32 %v2430_v21, %v12805_v40 }
 0x332   :  { %v13315_v62 = vadd.f32 %v2401_v9, %v2373_v59  ;;  %v2375_v42 = vpop.f32.mrf.mxu0  ;;  %3679 = vmatpush.bf16.msrb.mxu2 %v8171_v61 }
 0x333   :  { %v2376_v46 = vadd.f32 %v2375_v42, %v12807_v53  ;;  %v8150_v42 = vld [vmem:[%s16093_s3 + $0x6c8] sm:$0xf] }
 0x335   :  { %2993 = vmatmul.bf16.gmra.mxu0 %v12073_v20  ;;  %3051 = vmatmul.bf16.gmra.mxu2 %v12073_v20 }
 0x337   :  { %v2459_v7 = vpop.f32.mrf.mxu3 }
 0x338   :  { %v13320_v47 = vadd.f32 %v2459_v7, %v2431_v30  ;;  %v2433_v31 = vpop.f32.mrf.mxu2  ;;  %v10245_v7 = vld [vmem:[%s16093_s3 + $0x6cc] sm:$0xf] }
 0x339   :  { %v2404_v0 = vpop.f32.mrf.mxu1  ;;  %v2434_v41 = vadd.f32 %v2433_v31, %v12811_v34  ;;  %v8166_v34 = vld [vmem:[%s16093_s3 + $0x6e8] sm:$0xf] }
 0x33a   :  { %v13323_v10 = vadd.f32 %v2404_v0, %v2376_v46  ;;  %v2377_v38 = vpop.f32.mrf.mxu0  ;;  %v10247_v46 = vld [vmem:[%s16093_s3 + $0x6d4] sm:$0xf0] }
 0x33b   :  { %v2378_v40 = vadd.f32 %v2377_v38, %v12813_v51  ;;  %v10251_v51 = vld [vmem:[%s16093_s3 + $0x6f4] sm:$0xf0]  ;;  %v8152_v38 = vld [vmem:[%s16093_s3 + $0x6d8] sm:$0xf0] }
 0x33c   :  { %3022 = vmatmul.bf16.gmra.mxu1 %v12105_v4  ;;  %3080 = vmatmul.bf16.gmra.mxu3 %v12105_v4 }
 0x33f   :  { %v2462_v53 = vpop.f32.mrf.mxu3 }
 0x340   :  { %v13328_v48 = vadd.f32 %v2462_v53, %v2434_v41  ;;  %v2435_v52 = vpop.f32.mrf.mxu2  ;;  %v8151_v41 = vor.u32 %v10247_v46, %v8150_v42  ;;  %v8294_v53 = vld [vmem:[%s16093_s3 + $0x7e8] sm:$0xf]  ;;  %v10279_v46 = vld [vmem:[%s16093_s3 + $0x7d4] sm:$0xf0] }
 0x341   :  { %v2406_v27 = vpop.f32.mrf.mxu1  ;;  %v2436_v36 = vadd.f32 %v2435_v52, %v12830_v39  ;;  %v8167_v39 = vor.u32 %v10251_v51, %v8166_v34  ;;  %v10283_v52 = vld [vmem:[%s16093_s3 + $0x7f4] sm:$0xf0]  ;;  %v8296_v34 = vld [vmem:[%s16093_s3 + $0x7f8] sm:$0xf0]  ;;  %v8278_v42 = vld [vmem:[%s16093_s3 + $0x7c8] sm:$0xf] }
 0x342   :  { %v13331_v19 = vadd.f32 %v2406_v27, %v2378_v40  ;;  %v2863_v43 = vpop.f32.mrf.mxu0  ;;  %v8155_v40 = vor.u32 %v10245_v7, %v8152_v38  ;;  %v10281_v27 = vld [vmem:[%s16093_s3 + $0x7ec] sm:$0xf]  ;;  %v8279_v38 = vor.u32 %v10279_v46, %v8278_v42  ;;  %v8264_v42 = vld [vmem:[%s16093_s3 + $0x7b8] sm:$0xf0] }
 0x343   :  { %3621 = vmatpush.bf16.msrb.mxu0 %v8167_v39  ;;  %v8299_v51 = vor.u32 %v10281_v27, %v8296_v34  ;;  %v10241_v39 = vld [vmem:[%s16093_s3 + $0x6ac] sm:$0xf]  ;;  %v8118_v27 = vld [vmem:[%s16093_s3 + $0x688] sm:$0xf] }
 0x344   :  { %3680 = vmatpush.bf16.msrb.mxu2 %v8155_v40  ;;  %v10277_v7 = vld [vmem:[%s16093_s3 + $0x7cc] sm:$0xf]  ;;  %v8280_v40 = vld [vmem:[%s16093_s3 + $0x7d8] sm:$0xf0] }
 0x345   :  { %3513 = vmatmul.bf16.vlgmr.msra.gmra.mxu0 %v11784_v14  ;;  %3571 = vmatmul.bf16.vlgmr.msra.gmra.mxu2 %v11784_v14 }
 0x346   :  { %3708 = vmatpush.bf16.msrb.mxu3 %v8299_v51 }
 0x347   :  { %v2464_v59 = vpop.f32.mrf.mxu3  ;;  %3622 = vmatpush.bf16.msrb.mxu0 %v8151_v41 }
 0x348   :  { %v13347_v21 = vadd.f32 %v2464_v59, %v2436_v36  ;;  %v2921_v9 = vpop.f32.mrf.mxu2  ;;  %v8136_v59 = vld [vmem:[%s16093_s3 + $0x6b8] sm:$0xf0] }
 0x349   :  { %v2892_v30 = vpop.f32.mrf.mxu1 }
 0x34a   :  { %v2893_v31 = vadd.f32 %v2892_v30, %v2863_v43  ;;  %v2865_v0 = vpop.f32.mrf.mxu0  ;;  %v8295_v43 = vor.u32 %v10283_v52, %v8294_v53  ;;  %v8139_v30 = vor.u32 %v10241_v39, %v8136_v59  ;;  %v8283_v52 = vor.u32 %v10277_v7, %v8280_v40  ;;  %v8120_v39 = vld [vmem:[%s16093_s3 + $0x698] sm:$0xf0]  ;;  %v8262_v59 = vld [vmem:[%s16093_s3 + $0x7a8] sm:$0xf] }
 0x34b   :  { %v8102_v7 = vld [vmem:[%s16093_s3 + $0x668] sm:$0xf]  ;;  %v8104_v40 = vld [vmem:[%s16093_s3 + $0x678] sm:$0xf0] }
 0x34c   :  { %v13371_v36 = vadd.f32 %v2893_v31, %v12842_v50  ;;  %3542 = vmatmul.bf16.vlgmr.msra.gmra.mxu1 %v11792_v8  ;;  %3600 = vmatmul.bf16.vlgmr.msra.gmra.mxu3 %v11792_v8  ;;  %v10243_v50 = vld [vmem:[%s16093_s3 + $0x6b4] sm:$0xf0] }
 0x34d   :  { %3650 = vmatpush.bf16.msrb.mxu1 %v8295_v43  ;;  %v8135_v15 = vor.u32 %v10243_v50, %v8134_v5  ;;  %3681 = vmatpush.bf16.msrb.mxu2 %v8139_v30  ;;  %v10239_v43 = vld [vmem:[%s16093_s3 + $0x694] sm:$0xf0] }
 0x34e   :  { %v8119_v50 = vor.u32 %v10239_v43, %v8118_v27  ;;  %3709 = vmatpush.bf16.msrb.mxu3 %v8283_v52  ;;  %v8246_v27 = vld [vmem:[%s16093_s3 + $0x788] sm:$0xf]  ;;  %v10271_v43 = vld [vmem:[%s16093_s3 + $0x794] sm:$0xf0] }
 0x34f   :  { %v2950_v61 = vpop.f32.mrf.mxu3  ;;  %3623 = vmatpush.bf16.msrb.mxu0 %v8135_v15 }
 0x350   :  { %v2951_v31 = vadd.f32 %v2950_v61, %v2921_v9  ;;  %v2923_v41 = vpop.f32.mrf.mxu2  ;;  %v10237_v9 = vld [vmem:[%s16093_s3 + $0x68c] sm:$0xf]  ;;  %v10275_v61 = vld [vmem:[%s16093_s3 + $0x7b4] sm:$0xf0] }
 0x351   :  { %v2894_v53 = vpop.f32.mrf.mxu1  ;;  %3651 = vmatpush.bf16.msrb.mxu1 %v8279_v38  ;;  %v8123_v15 = vor.u32 %v10237_v9, %v8120_v39  ;;  %v8263_v30 = vor.u32 %v10275_v61, %v8262_v59  ;;  %v10269_v9 = vld [vmem:[%s16093_s3 + $0x78c] sm:$0xf]  ;;  %v8247_v39 = vor.u32 %v10271_v43, %v8246_v27  ;;  %v8232_v27 = vld [vmem:[%s16093_s3 + $0x778] sm:$0xf0] }
 0x352   :  { %v13412_v34 = vadd.f32 %v2951_v31, %v12884_v6  ;;  %v2895_v51 = vadd.f32 %v2894_v53, %v2865_v0  ;;  %v2868_v5 = vpop.f32.mrf.mxu0  ;;  %v10273_v6 = vld [vmem:[%s16093_s3 + $0x7ac] sm:$0xf]  ;;  %v10235_v31 = vld [vmem:[%s16093_s3 + $0x674] sm:$0xf0] }
 0x353   :  { %v8267_v46 = vor.u32 %v10273_v6, %v8264_v42  ;;  %3624 = vmatpush.bf16.msrb.mxu0 %v8119_v50  ;;  %3682 = vmatpush.bf16.msrb.mxu2 %v8123_v15  ;;  %v8103_v38 = vor.u32 %v10235_v31, %v8102_v7  ;;  %v8248_v15 = vld [vmem:[%s16093_s3 + $0x798] sm:$0xf0]  ;;  %v8086_v6 = vld [vmem:[%s16093_s3 + $0x648] sm:$0xf] }
 0x354   :  { %v13427_v0 = vadd.f32 %v2895_v51, %v12898_v1  ;;  %v10233_v1 = vld [vmem:[%s16093_s3 + $0x66c] sm:$0xf]  ;;  %v8251_v61 = vor.u32 %v10269_v9, %v8248_v15  ;;  %v8070_v9 = vld [vmem:[%s16093_s3 + $0x628] sm:$0xf]  ;;  %v8072_v15 = vld [vmem:[%s16093_s3 + $0x638] sm:$0xf0] }
 0x355   :  { %3518 = vmatmul.bf16.gmra.mxu0 %v11896_v11  ;;  %3576 = vmatmul.bf16.gmra.mxu2 %v11896_v11  ;;  %v8107_v52 = vor.u32 %v10233_v1, %v8104_v40  ;;  %v8088_v1 = vld [vmem:[%s16093_s3 + $0x658] sm:$0xf0] }
 0x356   :  { %3652 = vmatpush.bf16.msrb.mxu1 %v8263_v30  ;;  %3710 = vmatpush.bf16.msrb.mxu3 %v8267_v46  ;;  %v10231_v30 = vld [vmem:[%s16093_s3 + $0x654] sm:$0xf0] }
 0x357   :  { %v2952_v53 = vpop.f32.mrf.mxu3  ;;  %3625 = vmatpush.bf16.msrb.mxu0 %v8103_v38  ;;  %3683 = vmatpush.bf16.msrb.mxu2 %v8107_v52  ;;  %v8087_v31 = vor.u32 %v10231_v30, %v8086_v6  ;;  %v8214_v6 = vld [vmem:[%s16093_s3 + $0x748] sm:$0xf]  ;;  %v10263_v30 = vld [vmem:[%s16093_s3 + $0x754] sm:$0xf0] }
 0x358   :  { %v2953_v51 = vadd.f32 %v2952_v53, %v2923_v41  ;;  %v2926_v50 = vpop.f32.mrf.mxu2  ;;  %v10229_v41 = vld [vmem:[%s16093_s3 + $0x64c] sm:$0xf]  ;;  %v8230_v53 = vld [vmem:[%s16093_s3 + $0x768] sm:$0xf] }
 0x359   :  { %v2897_v59 = vpop.f32.mrf.mxu1  ;;  %v8091_v40 = vor.u32 %v10229_v41, %v8088_v1  ;;  %v10261_v41 = vld [vmem:[%s16093_s3 + $0x74c] sm:$0xf]  ;;  %v8215_v1 = vor.u32 %v10263_v30, %v8214_v6  ;;  %v8200_v6 = vld [vmem:[%s16093_s3 + $0x738] sm:$0xf0]  ;;  %v16138_v30 = vld [vmem:[#allocation2_spill] sm:$0xff] }
 0x35a   :  { %v13468_v42 = vadd.f32 %v2953_v51, %v12941_v58  ;;  %v2898_v46 = vadd.f32 %v2897_v59, %v2868_v5  ;;  %v2870_v7 = vpop.f32.mrf.mxu0  ;;  %3653 = vmatpush.bf16.msrb.mxu1 %v8247_v39  ;;  %3711 = vmatpush.bf16.msrb.mxu3 %v8251_v61  ;;  %v10267_v58 = vld [vmem:[%s16093_s3 + $0x774] sm:$0xf0]  ;;  %v10265_v5 = vld [vmem:[%s16093_s3 + $0x76c] sm:$0xf] }
 0x35b   :  { %v8231_v52 = vor.u32 %v10267_v58, %v8230_v53  ;;  %v8235_v43 = vor.u32 %v10265_v5, %v8232_v27  ;;  %v10227_v51 = vld [vmem:[%s16093_s3 + $0x634] sm:$0xf0]  ;;  %3626 = vmatpush.bf16.msrb.mxu0 %v8087_v31  ;;  %3684 = vmatpush.bf16.msrb.mxu2 %v8091_v40  ;;  %v8216_v40 = vld [vmem:[%s16093_s3 + $0x758] sm:$0xf0]  ;;  %v8054_v5 = vld [vmem:[%s16093_s3 + $0x608] sm:$0xf] }
 0x35c   :  { %v13483_v38 = vadd.f32 %v2898_v46, %v12956_v18  ;;  %3547 = vmatmul.bf16.gmra.mxu1 %v11951_v26  ;;  %3605 = vmatmul.bf16.gmra.mxu3 %v11951_v26  ;;  %v10225_v18 = vld [vmem:[%s16093_s3 + $0x62c] sm:$0xf]  ;;  %v8071_v39 = vor.u32 %v10227_v51, %v8070_v9  ;;  %v8219_v58 = vor.u32 %v10261_v41, %v8216_v40 }
 0x35d   :  { %v8075_v61 = vor.u32 %v10225_v18, %v8072_v15  ;;  %v8056_v18 = vld [vmem:[%s16093_s3 + $0x618] sm:$0xf0]  ;;  %v10253_v40 = vld [vmem:[%s16093_s3 + $0x70c] sm:$0xf] }
 0x35e   :  { %3654 = vmatpush.bf16.msrb.mxu1 %v8231_v52  ;;  %3712 = vmatpush.bf16.msrb.mxu3 %v8235_v43  ;;  %v10223_v52 = vld [vmem:[%s16093_s3 + $0x614] sm:$0xf0] }
 0x35f   :  { %v2955_v59 = vpop.f32.mrf.mxu3  ;;  %3627 = vmatpush.bf16.msrb.mxu0 %v8071_v39  ;;  %3685 = vmatpush.bf16.msrb.mxu2 %v8075_v61  ;;  %v8055_v51 = vor.u32 %v10223_v52, %v8054_v5  ;;  %v8184_v52 = vld [vmem:[%s16093_s3 + $0x718] sm:$0xf0] }
 0x360   :  { %v2956_v46 = vadd.f32 %v2955_v59, %v2926_v50  ;;  %v2928_v31 = vpop.f32.mrf.mxu2  ;;  %v10221_v50 = vld [vmem:[%s16093_s3 + $0x60c] sm:$0xf]  ;;  %v8198_v59 = vld [vmem:[%s16093_s3 + $0x728] sm:$0xf] }
 0x361   :  { %v2899_v53 = vpop.f32.mrf.mxu1  ;;  %v8059_v15 = vor.u32 %v10221_v50, %v8056_v18 }
 0x362   :  { %v13524_v27 = vadd.f32 %v2956_v46, %v12998_v16  ;;  %v2900_v43 = vadd.f32 %v2899_v53, %v2870_v7  ;;  %v2873_v9 = vpop.f32.mrf.mxu0  ;;  %3655 = vmatpush.bf16.msrb.mxu1 %v8215_v1  ;;  %3713 = vmatpush.bf16.msrb.mxu3 %v8219_v58  ;;  %v10259_v16 = vld [vmem:[%s16093_s3 + $0x734] sm:$0xf0]  ;;  %v10257_v7 = vld [vmem:[%s16093_s3 + $0x72c] sm:$0xf] }
 0x363   :  { %v8199_v61 = vor.u32 %v10259_v16, %v8198_v59  ;;  %v8203_v41 = vor.u32 %v10257_v7, %v8200_v6  ;;  %3628 = vmatpush.bf16.msrb.mxu0 %v8055_v51  ;;  %3686 = vmatpush.bf16.msrb.mxu2 %v8059_v15  ;;  %v10255_v1 = vld [vmem:[%s16093_s3 + $0x714] sm:$0xf0]  ;;  %v16139_v16 = vld [vmem:[#allocation4_spill] sm:$0xff] }
 0x364   :  { %v13539_v39 = vadd.f32 %v2900_v43, %v13012_v45  ;;  %v8182_v45 = vld [vmem:[%s16093_s3 + $0x708] sm:$0xf]  ;;  %v8187_v43 = vor.u32 %v10253_v40, %v8184_v52 }
 0x365   :  { %3523 = vmatmul.bf16.gmra.mxu0 %v16138_v30  ;;  %3581 = vmatmul.bf16.gmra.mxu2 %v16138_v30  ;;  %v8183_v5 = vor.u32 %v10255_v1, %v8182_v45  ;;  %v16140_v45 = vld [vmem:[#allocation3_spill] sm:$0xff] }
 0x366   :  { %3656 = vmatpush.bf16.msrb.mxu1 %v8199_v61  ;;  %3714 = vmatpush.bf16.msrb.mxu3 %v8203_v41 }
 0x367   :  { %v2957_v46 = vpop.f32.mrf.mxu3 }
 0x368   :  { %v2958_v53 = vadd.f32 %v2957_v46, %v2928_v31  ;;  %v2931_v58 = vpop.f32.mrf.mxu2 }
 0x369   :  { %v2902_v50 = vpop.f32.mrf.mxu1 }
 0x36a   :  { %v13559_v51 = vadd.f32 %v2958_v53, %v13043_v13  ;;  %v2903_v18 = vadd.f32 %v2902_v50, %v2873_v9  ;;  %v2875_v15 = vpop.f32.mrf.mxu0  ;;  %3657 = vmatpush.bf16.msrb.mxu1 %v8183_v5  ;;  %3715 = vmatpush.bf16.msrb.mxu3 %v8187_v43  ;;  %v16141_v50 = vld [vmem:[#allocation5_spill] sm:$0xff] }
 0x36c   :  { %v13562_v59 = vadd.f32 %v2903_v18, %v13049_v28  ;;  %3552 = vmatmul.bf16.gmra.mxu1 %v16139_v16  ;;  %3610 = vmatmul.bf16.gmra.mxu3 %v16139_v16 }
 0x36f   :  { %v2960_v31 = vpop.f32.mrf.mxu3 }
 0x370   :  { %v2961_v7 = vadd.f32 %v2960_v31, %v2931_v58  ;;  %v2933_v61 = vpop.f32.mrf.mxu2 }
 0x371   :  { %v2904_v6 = vpop.f32.mrf.mxu1 }
 0x372   :  { %v13567_v41 = vadd.f32 %v2961_v7, %v13057_v12  ;;  %v2905_v13 = vadd.f32 %v2904_v6, %v2875_v15  ;;  %v2878_v46 = vpop.f32.mrf.mxu0  ;;  %v10314_v6 = vld [vmem:[%s16093_s3 + $0x8ec] sm:$0xf0] }
 0x374   :  { %v13570_v9 = vadd.f32 %v2905_v13, %v13059_v57 }
 0x375   :  { %3528 = vmatmul.bf16.gmra.mxu0 %v16140_v45  ;;  %3586 = vmatmul.bf16.gmra.mxu2 %v16140_v45 }
 0x377   :  { %v2962_v28 = vpop.f32.mrf.mxu3 }
 0x378   :  { %v2963_v1 = vadd.f32 %v2962_v28, %v2933_v61  ;;  %v2936_v40 = vpop.f32.mrf.mxu2 }
 0x379   :  { %v2907_v53 = vpop.f32.mrf.mxu1 }
 0x37a   :  { %v13575_v58 = vadd.f32 %v2963_v1, %v13064_v23  ;;  %v2908_v5 = vadd.f32 %v2907_v53, %v2878_v46  ;;  %v2880_v52 = vpop.f32.mrf.mxu0  ;;  %v8462_v53 = vld [vmem:[%s16093_s3 + $0x8c0] sm:$0xf] }
 0x37c   :  { %v13578_v12 = vadd.f32 %v2908_v5, %v13067_v63  ;;  %3557 = vmatmul.bf16.gmra.mxu1 %v16141_v50  ;;  %3615 = vmatmul.bf16.gmra.mxu3 %v16141_v50  ;;  %v8478_v63 = vld [vmem:[%s16093_s3 + $0x8e0] sm:$0xf]  ;;  %v10310_v5 = vld [vmem:[%s16093_s3 + $0x8cc] sm:$0xf0] }
 0x37d   :  { %v8479_v13 = vor.u32 %v10314_v6, %v8478_v63  ;;  %v8606_v6 = vld [vmem:[%s16093_s3 + $0x9e0] sm:$0xf] }
 0x37f   :  { %v2965_v57 = vpop.f32.mrf.mxu3  ;;  %4156 = vmatpush.bf16.msra.mxu0 %v8479_v13 }
 0x380   :  { %v2966_v43 = vadd.f32 %v2965_v57, %v2936_v40  ;;  %v2938_v18 = vpop.f32.mrf.mxu2 }
 0x381   :  { %v2909_v15 = vpop.f32.mrf.mxu1 }
 0x382   :  { %v13583_v31 = vadd.f32 %v2966_v43, %v13072_v44  ;;  %v2910_v7 = vadd.f32 %v2909_v15, %v2880_v52  ;;  %v2979_v61 = vpop.f32.mrf.mxu0  ;;  %v10312_v44 = vld [vmem:[%s16093_s3 + $0x8e4] sm:$0xf]  ;;  %v8463_v15 = vor.u32 %v10310_v5, %v8462_v53 }
 0x383   :  { %v10308_v52 = vld [vmem:[%s16093_s3 + $0x8c4] sm:$0xf] }
 0x384   :  { %v13586_v23 = vadd.f32 %v2910_v7, %v13075_v37  ;;  %v8480_v37 = vld [vmem:[%s16093_s3 + $0x8f0] sm:$0xf0]  ;;  %4157 = vmatpush.bf16.msra.mxu0 %v8463_v15  ;;  %v10340_v15 = vld [vmem:[%s16093_s3 + $0x9c4] sm:$0xf] }
 0x385   :  { %3629 = vmatmul.bf16.vlgmr.msrb.gmra.mxu0 %v11784_v14  ;;  %3687 = vmatmul.bf16.vlgmr.msrb.gmra.mxu2 %v11784_v14  ;;  %v8483_v28 = vor.u32 %v10312_v44, %v8480_v37  ;;  %v8464_v7 = vld [vmem:[%s16093_s3 + $0x8d0] sm:$0xf0]  ;;  %v10346_v44 = vld [vmem:[%s16093_s3 + $0x9ec] sm:$0xf0] }
 0x386   :  { %v8467_v63 = vor.u32 %v10308_v52, %v8464_v7  ;;  %v8607_v13 = vor.u32 %v10346_v44, %v8606_v6  ;;  %v8608_v37 = vld [vmem:[%s16093_s3 + $0x9f0] sm:$0xf0]  ;;  %v8590_v52 = vld [vmem:[%s16093_s3 + $0x9c0] sm:$0xf] }
 0x387   :  { %v2967_v46 = vpop.f32.mrf.mxu3  ;;  %4214 = vmatpush.bf16.msra.mxu2 %v8483_v28  ;;  %v8446_v28 = vld [vmem:[%s16093_s3 + $0x8a0] sm:$0xf]  ;;  %v8592_v44 = vld [vmem:[%s16093_s3 + $0x9d0] sm:$0xf0] }
 0x388   :  { %v2968_v14 = vadd.f32 %v2967_v46, %v2938_v18  ;;  %v3037_v1 = vpop.f32.mrf.mxu2  ;;  %4185 = vmatpush.bf16.msra.mxu1 %v8607_v13  ;;  %v8595_v13 = vor.u32 %v10340_v15, %v8592_v44  ;;  %v8576_v15 = vld [vmem:[%s16093_s3 + $0x9b0] sm:$0xf0]  ;;  %v10298_v44 = vld [vmem:[%s16093_s3 + $0x86c] sm:$0xf0] }
 0x389   :  { %v3008_v40 = vpop.f32.mrf.mxu1 }
 0x38a   :  { %v13612_v57 = vadd.f32 %v2968_v14, %v13092_v2  ;;  %v3009_v43 = vadd.f32 %v3008_v40, %v2979_v61  ;;  %v2981_v18 = vpop.f32.mrf.mxu0  ;;  %v10344_v2 = vld [vmem:[%s16093_s3 + $0x9e4] sm:$0xf]  ;;  %v8448_v40 = vld [vmem:[%s16093_s3 + $0x8b0] sm:$0xf0] }
 0x38b   :  { %4215 = vmatpush.bf16.msra.mxu2 %v8467_v63  ;;  %v8611_v46 = vor.u32 %v10344_v2, %v8608_v37  ;;  %v8430_v37 = vld [vmem:[%s16093_s3 + $0x880] sm:$0xf] }
 0x38c   :  { %v13627_v61 = vadd.f32 %v3009_v43, %v13104_v3  ;;  %3658 = vmatmul.bf16.vlgmr.msrb.gmra.mxu1 %v11792_v8  ;;  %3716 = vmatmul.bf16.vlgmr.msrb.gmra.mxu3 %v11792_v8  ;;  %v10306_v3 = vld [vmem:[%s16093_s3 + $0x8ac] sm:$0xf0]  ;;  %v10304_v8 = vld [vmem:[%s16093_s3 + $0x8a4] sm:$0xf] }
 0x38d   :  { %v8447_v14 = vor.u32 %v10306_v3, %v8446_v28  ;;  %4243 = vmatpush.bf16.msra.mxu3 %v8611_v46  ;;  %v8451_v5 = vor.u32 %v10304_v8, %v8448_v40  ;;  %v10342_v43 = vld [vmem:[%s16093_s3 + $0x9cc] sm:$0xf0]  ;;  %v8432_v40 = vld [vmem:[%s16093_s3 + $0x890] sm:$0xf0] }
 0x38e   :  { %v8591_v6 = vor.u32 %v10342_v43, %v8590_v52  ;;  %v10302_v46 = vld [vmem:[%s16093_s3 + $0x88c] sm:$0xf0] }
 0x38f   :  { %v3066_v53 = vpop.f32.mrf.mxu3  ;;  %4158 = vmatpush.bf16.msra.mxu0 %v8447_v14  ;;  %4216 = vmatpush.bf16.msra.mxu2 %v8451_v5  ;;  %v8431_v14 = vor.u32 %v10302_v46, %v8430_v37  ;;  %v8574_v5 = vld [vmem:[%s16093_s3 + $0x9a0] sm:$0xf]  ;;  %v10338_v52 = vld [vmem:[%s16093_s3 + $0x9ac] sm:$0xf0] }
 0x390   :  { %v3067_v7 = vadd.f32 %v3066_v53, %v3037_v1  ;;  %v3039_v63 = vpop.f32.mrf.mxu2  ;;  %v10300_v1 = vld [vmem:[%s16093_s3 + $0x884] sm:$0xf]  ;;  %4186 = vmatpush.bf16.msra.mxu1 %v8591_v6  ;;  %v8575_v43 = vor.u32 %v10338_v52, %v8574_v5  ;;  %v8414_v6 = vld [vmem:[%s16093_s3 + $0x860] sm:$0xf]  ;;  %v8560_v5 = vld [vmem:[%s16093_s3 + $0x990] sm:$0xf0] }
 0x391   :  { %v3010_v2 = vpop.f32.mrf.mxu1  ;;  %4244 = vmatpush.bf16.msra.mxu3 %v8595_v13  ;;  %v8435_v53 = vor.u32 %v10300_v1, %v8432_v40  ;;  %v8558_v46 = vld [vmem:[%s16093_s3 + $0x980] sm:$0xf]  ;;  %v10334_v1 = vld [vmem:[%s16093_s3 + $0x98c] sm:$0xf0] }
 0x392   :  { %v13668_v28 = vadd.f32 %v3067_v7, %v13145_v25  ;;  %v3011_v3 = vadd.f32 %v3010_v2, %v2981_v18  ;;  %v2984_v8 = vpop.f32.mrf.mxu0  ;;  %v10336_v25 = vld [vmem:[%s16093_s3 + $0x9a4] sm:$0xf]  ;;  %v8415_v2 = vor.u32 %v10298_v44, %v8414_v6 }
 0x393   :  { %v8579_v7 = vor.u32 %v10336_v25, %v8576_v15  ;;  %4159 = vmatpush.bf16.msra.mxu0 %v8431_v14  ;;  %4217 = vmatpush.bf16.msra.mxu2 %v8435_v53  ;;  %v8559_v53 = vor.u32 %v10334_v1, %v8558_v46  ;;  %v10294_v15 = vld [vmem:[%s16093_s3 + $0x84c] sm:$0xf0]  ;;  %v8542_v46 = vld [vmem:[%s16093_s3 + $0x960] sm:$0xf]  ;;  %v8544_v1 = vld [vmem:[%s16093_s3 + $0x970] sm:$0xf0] }
 0x394   :  { %v13683_v18 = vadd.f32 %v3011_v3, %v13160_v54  ;;  %v10296_v54 = vld [vmem:[%s16093_s3 + $0x864] sm:$0xf]  ;;  %4187 = vmatpush.bf16.msra.mxu1 %v8575_v43  ;;  %v8398_v43 = vld [vmem:[%s16093_s3 + $0x840] sm:$0xf] }
 0x395   :  { %3634 = vmatmul.bf16.gmra.mxu0 %v11896_v11  ;;  %3692 = vmatmul.bf16.gmra.mxu2 %v11896_v11  ;;  %v8416_v11 = vld [vmem:[%s16093_s3 + $0x870] sm:$0xf0]  ;;  %v10332_v3 = vld [vmem:[%s16093_s3 + $0x984] sm:$0xf] }
 0x396   :  { %4245 = vmatpush.bf16.msra.mxu3 %v8579_v7  ;;  %v8419_v37 = vor.u32 %v10296_v54, %v8416_v11  ;;  %v8563_v25 = vor.u32 %v10332_v3, %v8560_v5  ;;  %v8399_v54 = vor.u32 %v10294_v15, %v8398_v43  ;;  %v8400_v11 = vld [vmem:[%s16093_s3 + $0x850] sm:$0xf0]  ;;  %v8526_v43 = vld [vmem:[%s16093_s3 + $0x940] sm:$0xf]  ;;  %v10326_v15 = vld [vmem:[%s16093_s3 + $0x94c] sm:$0xf0] }
 0x397   :  { %v3068_v13 = vpop.f32.mrf.mxu3  ;;  %4160 = vmatpush.bf16.msra.mxu0 %v8415_v2  ;;  %v8384_v5 = vld [vmem:[%s16093_s3 + $0x830] sm:$0xf0] }
 0x398   :  { %v3069_v14 = vadd.f32 %v3068_v13, %v3039_v63  ;;  %v3042_v40 = vpop.f32.mrf.mxu2  ;;  %v10292_v63 = vld [vmem:[%s16093_s3 + $0x844] sm:$0xf]  ;;  %4218 = vmatpush.bf16.msra.mxu2 %v8419_v37  ;;  %4188 = vmatpush.bf16.msra.mxu1 %v8559_v53  ;;  %v10290_v53 = vld [vmem:[%s16093_s3 + $0x82c] sm:$0xf0] }
 0x399   :  { %v3013_v52 = vpop.f32.mrf.mxu1  ;;  %v8403_v13 = vor.u32 %v10292_v63, %v8400_v11  ;;  %v10324_v63 = vld [vmem:[%s16093_s3 + $0x944] sm:$0xf]  ;;  %v8527_v11 = vor.u32 %v10326_v15, %v8526_v43  ;;  %v8512_v43 = vld [vmem:[%s16093_s3 + $0x930] sm:$0xf0] }
 0x39a   :  { %v13724_v7 = vadd.f32 %v3069_v14, %v13201_v56  ;;  %v3014_v6 = vadd.f32 %v3013_v52, %v2984_v8  ;;  %v2986_v44 = vpop.f32.mrf.mxu0  ;;  %4246 = vmatpush.bf16.msra.mxu3 %v8563_v25  ;;  %v10330_v56 = vld [vmem:[%s16093_s3 + $0x96c] sm:$0xf0]  ;;  %v10328_v8 = vld [vmem:[%s16093_s3 + $0x964] sm:$0xf]  ;;  %v8382_v14 = vld [vmem:[%s16093_s3 + $0x820] sm:$0xf] }
 0x39b   :  { %v8543_v37 = vor.u32 %v10330_v56, %v8542_v46  ;;  %v8547_v3 = vor.u32 %v10328_v8, %v8544_v1  ;;  %4161 = vmatpush.bf16.msra.mxu0 %v8399_v54  ;;  %v8366_v8 = vld [vmem:[%s16093_s3 + $0x800] sm:$0xf] }
 0x39c   :  { %v13739_v2 = vadd.f32 %v3014_v6, %v13216_v22  ;;  %3663 = vmatmul.bf16.gmra.mxu1 %v11951_v26  ;;  %3721 = vmatmul.bf16.gmra.mxu3 %v11951_v26  ;;  %v10288_v22 = vld [vmem:[%s16093_s3 + $0x824] sm:$0xf]  ;;  %v8383_v26 = vor.u32 %v10290_v53, %v8382_v14 }
 0x39d   :  { %4219 = vmatpush.bf16.msra.mxu2 %v8403_v13  ;;  %4189 = vmatpush.bf16.msra.mxu1 %v8543_v37  ;;  %v8387_v25 = vor.u32 %v10288_v22, %v8384_v5  ;;  %v8528_v13 = vld [vmem:[%s16093_s3 + $0x950] sm:$0xf0]  ;;  %v10286_v37 = vld [vmem:[%s16093_s3 + $0x80c] sm:$0xf0] }
 0x39e   :  { %4247 = vmatpush.bf16.msra.mxu3 %v8547_v3  ;;  %v8531_v56 = vor.u32 %v10324_v63, %v8528_v13  ;;  %v8367_v53 = vor.u32 %v10286_v37, %v8366_v8  ;;  %v8368_v22 = vld [vmem:[%s16093_s3 + $0x810] sm:$0xf0] }
 0x39f   :  { %v3071_v52 = vpop.f32.mrf.mxu3  ;;  %4162 = vmatpush.bf16.msra.mxu0 %v8383_v26 }
 0x3a0   :  { %v3072_v6 = vadd.f32 %v3071_v52, %v3042_v40  ;;  %v3044_v54 = vpop.f32.mrf.mxu2  ;;  %v10284_v40 = vld [vmem:[%s16093_s3 + $0x804] sm:$0xf]  ;;  %v8510_v52 = vld [vmem:[%s16093_s3 + $0x920] sm:$0xf] }
 0x3a1   :  { %v3015_v46 = vpop.f32.mrf.mxu1  ;;  %4220 = vmatpush.bf16.msra.mxu2 %v8387_v25  ;;  %4190 = vmatpush.bf16.msra.mxu1 %v8527_v11  ;;  %v8371_v5 = vor.u32 %v10284_v40, %v8368_v22  ;;  %v10316_v11 = vld [vmem:[%s16093_s3 + $0x904] sm:$0xf] }
 0x3a2   :  { %v13780_v1 = vadd.f32 %v3072_v6, %v13257_v29  ;;  %v3016_v3 = vadd.f32 %v3015_v46, %v2986_v44  ;;  %v2989_v14 = vpop.f32.mrf.mxu0  ;;  %4248 = vmatpush.bf16.msra.mxu3 %v8531_v56  ;;  %v10322_v29 = vld [vmem:[%s16093_s3 + $0x92c] sm:$0xf0]  ;;  %v10320_v44 = vld [vmem:[%s16093_s3 + $0x924] sm:$0xf]  ;;  %v8496_v56 = vld [vmem:[%s16093_s3 + $0x910] sm:$0xf0] }
 0x3a3   :  { %v8511_v25 = vor.u32 %v10322_v29, %v8510_v52  ;;  %v8515_v15 = vor.u32 %v10320_v44, %v8512_v43  ;;  %4163 = vmatpush.bf16.msra.mxu0 %v8367_v53  ;;  %v10318_v6 = vld [vmem:[%s16093_s3 + $0x90c] sm:$0xf0]  ;;  %v8499_v37 = vor.u32 %v10316_v11, %v8496_v56 }
 0x3a4   :  { %v13795_v26 = vadd.f32 %v3016_v3, %v13272_v24  ;;  %v8494_v24 = vld [vmem:[%s16093_s3 + $0x900] sm:$0xf] }
 0x3a5   :  { %3639 = vmatmul.bf16.gmra.mxu0 %v16138_v30  ;;  %3697 = vmatmul.bf16.gmra.mxu2 %v16138_v30  ;;  %v8495_v46 = vor.u32 %v10318_v6, %v8494_v24 }
 0x3a6   :  { %4221 = vmatpush.bf16.msra.mxu2 %v8371_v5  ;;  %4191 = vmatpush.bf16.msra.mxu1 %v8511_v25 }
 0x3a7   :  { %v3073_v63 = vpop.f32.mrf.mxu3  ;;  %4249 = vmatpush.bf16.msra.mxu3 %v8515_v15 }
 0x3a8   :  { %v3074_v13 = vadd.f32 %v3073_v63, %v3044_v54  ;;  %v3047_v30 = vpop.f32.mrf.mxu2 }
 0x3a9   :  { %v3018_v8 = vpop.f32.mrf.mxu1 }
 0x3aa   :  { %v13815_v40 = vadd.f32 %v3074_v13, %v13301_v60  ;;  %v3019_v3 = vadd.f32 %v3018_v8, %v2989_v14  ;;  %v2991_v53 = vpop.f32.mrf.mxu0  ;;  %4192 = vmatpush.bf16.msra.mxu1 %v8495_v46 }
 0x3ab   :  { %4250 = vmatpush.bf16.msra.mxu3 %v8499_v37 }
 0x3ac   :  { %v13818_v22 = vadd.f32 %v3019_v3, %v13307_v55  ;;  %3668 = vmatmul.bf16.gmra.mxu1 %v16139_v16  ;;  %3726 = vmatmul.bf16.gmra.mxu3 %v16139_v16 }
 0x3af   :  { %v3076_v54 = vpop.f32.mrf.mxu3 }
 0x3b0   :  { %v3077_v5 = vadd.f32 %v3076_v54, %v3047_v30  ;;  %v3049_v52 = vpop.f32.mrf.mxu2 }
 0x3b1   :  { %v3020_v29 = vpop.f32.mrf.mxu1 }
 0x3b2   :  { %v13823_v44 = vadd.f32 %v3077_v5, %v13312_v32  ;;  %v3021_v60 = vadd.f32 %v3020_v29, %v2991_v53  ;;  %v2994_v25 = vpop.f32.mrf.mxu0  ;;  %v10311_v29 = vld [vmem:[%s16093_s3 + $0x8d4] sm:$0xf0] }
 0x3b4   :  { %v13826_v14 = vadd.f32 %v3021_v60, %v13315_v62  ;;  %v10309_v60 = vld [vmem:[%s16093_s3 + $0x8cc] sm:$0xf] }
 0x3b5   :  { %3644 = vmatmul.bf16.gmra.mxu0 %v16140_v45  ;;  %3702 = vmatmul.bf16.gmra.mxu2 %v16140_v45 }
 0x3b7   :  { %v3078_v55 = vpop.f32.mrf.mxu3 }
 0x3b8   :  { %v3079_v43 = vadd.f32 %v3078_v55, %v3049_v52  ;;  %v3052_v15 = vpop.f32.mrf.mxu2  ;;  %v8470_v52 = vld [vmem:[%s16093_s3 + $0x8c8] sm:$0xf] }
 0x3b9   :  { %v3023_v16 = vpop.f32.mrf.mxu1 }
 0x3ba   :  { %v13831_v63 = vadd.f32 %v3079_v43, %v13320_v47  ;;  %v3024_v24 = vadd.f32 %v3023_v16, %v2994_v25  ;;  %v2996_v6 = vpop.f32.mrf.mxu0  ;;  %v8472_v16 = vld [vmem:[%s16093_s3 + $0x8d8] sm:$0xf0] }
 0x3bc   :  { %16142 = vst [vmem:[#allocation8_spill] sm:$0xff] %v13831_v63  ;;  %v13834_v32 = vadd.f32 %v3024_v24, %v13323_v10  ;;  %3673 = vmatmul.bf16.gmra.mxu1 %v16141_v50  ;;  %3731 = vmatmul.bf16.gmra.mxu3 %v16141_v50  ;;  %v8486_v10 = vld [vmem:[%s16093_s3 + $0x8e8] sm:$0xf]  ;;  %v10315_v50 = vld [vmem:[%s16093_s3 + $0x8f4] sm:$0xf0]  ;;  %v8475_v24 = vor.u32 %v10309_v60, %v8472_v16 }
 0x3bd   :  { %v8487_v8 = vor.u32 %v10315_v50, %v8486_v10  ;;  %v10305_v10 = vld [vmem:[%s16093_s3 + $0x8ac] sm:$0xf]  ;;  %v8600_v60 = vld [vmem:[%s16093_s3 + $0x9d8] sm:$0xf0]  ;;  %v8438_v16 = vld [vmem:[%s16093_s3 + $0x888] sm:$0xf] }
 0x3be   :  { %v10412_v63 = vld [vmem:[%s16094_s5 + $0x204] sm:$0xf] }
 0x3bf   :  { %v3081_v62 = vpop.f32.mrf.mxu3  ;;  %4272 = vmatpush.bf16.msrb.mxu0 %v8487_v8 }
 0x3c0   :  { %v3082_v11 = vadd.f32 %v3081_v62, %v3052_v15  ;;  %v3054_v13 = vpop.f32.mrf.mxu2  ;;  %v8471_v15 = vor.u32 %v10311_v29, %v8470_v52  ;;  %v10347_v62 = vld [vmem:[%s16093_s3 + $0x9f4] sm:$0xf0] }
 0x3c1   :  { %v3025_v45 = vpop.f32.mrf.mxu1 }
 0x3c2   :  { %v13839_v30 = vadd.f32 %v3082_v11, %v13328_v48  ;;  %v3026_v46 = vadd.f32 %v3025_v45, %v2996_v6  ;;  %v3514_v56 = vpop.f32.mrf.mxu0  ;;  %v10313_v48 = vld [vmem:[%s16093_s3 + $0x8ec] sm:$0xf]  ;;  %v8614_v6 = vld [vmem:[%s16093_s3 + $0x9e8] sm:$0xf]  ;;  %v8616_v45 = vld [vmem:[%s16093_s3 + $0x9f8] sm:$0xf0] }
 0x3c3   :  { %4273 = vmatpush.bf16.msrb.mxu0 %v8471_v15 }
 0x3c4   :  { %v13842_v47 = vadd.f32 %v3026_v46, %v13331_v19  ;;  %v8488_v19 = vld [vmem:[%s16093_s3 + $0x8f8] sm:$0xf0] }
 0x3c5   :  { %4164 = vmatmul.bf16.vlgmr.msra.gmra.mxu0 %v11804_v35  ;;  %4222 = vmatmul.bf16.vlgmr.msra.gmra.mxu2 %v11804_v35  ;;  %v8491_v3 = vor.u32 %v10313_v48, %v8488_v19  ;;  %v8456_v48 = vld [vmem:[%s16093_s3 + $0x8b8] sm:$0xf0] }
 0x3c6   :  { %16143 = vst [vmem:[#allocation9_spill] sm:$0xff] %v13842_v47  ;;  %v8459_v19 = vor.u32 %v10305_v10, %v8456_v48  ;;  %v10420_v47 = vld [vmem:[%s16094_s5 + $0x244] sm:$0xf] }
 0x3c7   :  { %v3083_v37 = vpop.f32.mrf.mxu3  ;;  %4330 = vmatpush.bf16.msrb.mxu2 %v8491_v3  ;;  %v10343_v3 = vld [vmem:[%s16093_s3 + $0x9d4] sm:$0xf0] }
 0x3c8   :  { %v3084_v53 = vadd.f32 %v3083_v37, %v3054_v13  ;;  %v3572_v54 = vpop.f32.mrf.mxu2  ;;  %v8615_v13 = vor.u32 %v10347_v62, %v8614_v6  ;;  %v8598_v37 = vld [vmem:[%s16093_s3 + $0x9c8] sm:$0xf] }
 0x3c9   :  { %v3543_v5 = vpop.f32.mrf.mxu1  ;;  %v8599_v29 = vor.u32 %v10343_v3, %v8598_v37  ;;  %v8424_v3 = vld [vmem:[%s16093_s3 + $0x878] sm:$0xf0] }
 0x3ca   :  { %v13868_v25 = vadd.f32 %v3084_v53, %v13347_v21  ;;  %v3544_v55 = vadd.f32 %v3543_v5, %v3514_v56  ;;  %v3516_v43 = vpop.f32.mrf.mxu0  ;;  %v10345_v21 = vld [vmem:[%s16093_s3 + $0x9ec] sm:$0xf]  ;;  %v8454_v56 = vld [vmem:[%s16093_s3 + $0x8a8] sm:$0xf]  ;;  %4301 = vmatpush.bf16.msrb.mxu1 %v8615_v13 }
 0x3cb   :  { %4331 = vmatpush.bf16.msrb.mxu2 %v8475_v24  ;;  %v8619_v46 = vor.u32 %v10345_v21, %v8616_v45  ;;  %v10341_v53 = vld [vmem:[%s16093_s3 + $0x9cc] sm:$0xf]  ;;  %v10303_v24 = vld [vmem:[%s16093_s3 + $0x894] sm:$0xf0]  ;;  %v8440_v45 = vld [vmem:[%s16093_s3 + $0x898] sm:$0xf0] }
 0x3cc   :  { %16144 = vst [vmem:[#allocation10_spill] sm:$0xff] %v13868_v25  ;;  %v13883_v11 = vadd.f32 %v3544_v55, %v13371_v36  ;;  %4193 = vmatmul.bf16.vlgmr.msra.gmra.mxu1 %v11834_v33  ;;  %4251 = vmatmul.bf16.vlgmr.msra.gmra.mxu3 %v11834_v33  ;;  %v10307_v36 = vld [vmem:[%s16093_s3 + $0x8b4] sm:$0xf0]  ;;  %v8603_v15 = vor.u32 %v10341_v53, %v8600_v60 }
 0x3cd   :  { %v8455_v50 = vor.u32 %v10307_v36, %v8454_v56  ;;  %4359 = vmatpush.bf16.msrb.mxu3 %v8619_v46  ;;  %v8439_v13 = vor.u32 %v10303_v24, %v8438_v16  ;;  %v8582_v56 = vld [vmem:[%s16093_s3 + $0x9a8] sm:$0xf]  ;;  %v10339_v36 = vld [vmem:[%s16093_s3 + $0x9b4] sm:$0xf0] }
 0x3ce   :  { %4302 = vmatpush.bf16.msrb.mxu1 %v8599_v29  ;;  %v8583_v10 = vor.u32 %v10339_v36, %v8582_v56  ;;  %v8566_v29 = vld [vmem:[%s16093_s3 + $0x988] sm:$0xf]  ;;  %v10335_v60 = vld [vmem:[%s16093_s3 + $0x994] sm:$0xf0] }
 0x3cf   :  { %v3601_v8 = vpop.f32.mrf.mxu3  ;;  %4274 = vmatpush.bf16.msrb.mxu0 %v8455_v50  ;;  %4332 = vmatpush.bf16.msrb.mxu2 %v8459_v19  ;;  %v8584_v50 = vld [vmem:[%s16093_s3 + $0x9b8] sm:$0xf0]  ;;  %v10299_v19 = vld [vmem:[%s16093_s3 + $0x874] sm:$0xf0]  ;;  %v8567_v24 = vor.u32 %v10335_v60, %v8566_v29 }
 0x3d0   :  { %v3602_v5 = vadd.f32 %v3601_v8, %v3572_v54  ;;  %v3574_v52 = vpop.f32.mrf.mxu2  ;;  %v10301_v54 = vld [vmem:[%s16093_s3 + $0x88c] sm:$0xf]  ;;  %v8422_v8 = vld [vmem:[%s16093_s3 + $0x868] sm:$0xf]  ;;  %v8392_v60 = vld [vmem:[%s16093_s3 + $0x838] sm:$0xf0] }
 0x3d1   :  { %v3545_v55 = vpop.f32.mrf.mxu1  ;;  %4360 = vmatpush.bf16.msrb.mxu3 %v8603_v15  ;;  %v8443_v46 = vor.u32 %v10301_v54, %v8440_v45  ;;  %v8423_v37 = vor.u32 %v10299_v19, %v8422_v8  ;;  %v8568_v54 = vld [vmem:[%s16093_s3 + $0x998] sm:$0xf0]  ;;  %v8406_v45 = vld [vmem:[%s16093_s3 + $0x848] sm:$0xf] }
 0x3d2   :  { %v13924_v6 = vadd.f32 %v3602_v5, %v13412_v34  ;;  %v3546_v62 = vadd.f32 %v3545_v55, %v3516_v43  ;;  %v3519_v21 = vpop.f32.mrf.mxu0  ;;  %v10337_v34 = vld [vmem:[%s16093_s3 + $0x9ac] sm:$0xf]  ;;  %4303 = vmatpush.bf16.msrb.mxu1 %v8583_v10  ;;  %v8550_v8 = vld [vmem:[%s16093_s3 + $0x968] sm:$0xf] }
 0x3d3   :  { %v8587_v48 = vor.u32 %v10337_v34, %v8584_v50  ;;  %4275 = vmatpush.bf16.msrb.mxu0 %v8439_v13  ;;  %4333 = vmatpush.bf16.msrb.mxu2 %v8443_v46  ;;  %v10333_v55 = vld [vmem:[%s16093_s3 + $0x98c] sm:$0xf]  ;;  %v10295_v46 = vld [vmem:[%s16093_s3 + $0x854] sm:$0xf0]  ;;  %v8408_v50 = vld [vmem:[%s16093_s3 + $0x858] sm:$0xf0] }
 0x3d4   :  { %v13939_v43 = vadd.f32 %v3546_v62, %v13427_v0  ;;  %v10297_v0 = vld [vmem:[%s16093_s3 + $0x86c] sm:$0xf]  ;;  %v8571_v13 = vor.u32 %v10333_v55, %v8568_v54  ;;  %v8407_v10 = vor.u32 %v10295_v46, %v8406_v45  ;;  %v10327_v54 = vld [vmem:[%s16093_s3 + $0x954] sm:$0xf0] }
 0x3d5   :  { %4169 = vmatmul.bf16.gmra.mxu0 %v12014_v17  ;;  %4227 = vmatmul.bf16.gmra.mxu2 %v12014_v17  ;;  %v8427_v5 = vor.u32 %v10297_v0, %v8424_v3 }
 0x3d6   :  { %4361 = vmatpush.bf16.msrb.mxu3 %v8587_v48  ;;  %4304 = vmatpush.bf16.msrb.mxu1 %v8567_v24  ;;  %v8534_v24 = vld [vmem:[%s16093_s3 + $0x948] sm:$0xf] }
 0x3d7   :  { %v3603_v53 = vpop.f32.mrf.mxu3  ;;  %4276 = vmatpush.bf16.msrb.mxu0 %v8423_v37  ;;  %4334 = vmatpush.bf16.msrb.mxu2 %v8427_v5  ;;  %v8552_v37 = vld [vmem:[%s16093_s3 + $0x978] sm:$0xf0]  ;;  %v10291_v5 = vld [vmem:[%s16093_s3 + $0x834] sm:$0xf0]  ;;  %v8535_v46 = vor.u32 %v10327_v54, %v8534_v24  ;;  %v10317_v24 = vld [vmem:[%s16093_s3 + $0x90c] sm:$0xf] }
 0x3d8   :  { %v3604_v15 = vadd.f32 %v3603_v53, %v3574_v52  ;;  %v3577_v16 = vpop.f32.mrf.mxu2  ;;  %v10293_v52 = vld [vmem:[%s16093_s3 + $0x84c] sm:$0xf]  ;;  %v8390_v53 = vld [vmem:[%s16093_s3 + $0x828] sm:$0xf] }
 0x3d9   :  { %v3548_v62 = vpop.f32.mrf.mxu1  ;;  %v8411_v48 = vor.u32 %v10293_v52, %v8408_v50  ;;  %v8391_v29 = vor.u32 %v10291_v5, %v8390_v53  ;;  %v8536_v52 = vld [vmem:[%s16093_s3 + $0x958] sm:$0xf0]  ;;  %v8374_v50 = vld [vmem:[%s16093_s3 + $0x808] sm:$0xf] }
 0x3da   :  { %v13980_v56 = vadd.f32 %v3604_v15, %v13468_v42  ;;  %v3549_v36 = vadd.f32 %v3548_v62, %v3519_v21  ;;  %v3521_v34 = vpop.f32.mrf.mxu0  ;;  %4362 = vmatpush.bf16.msrb.mxu3 %v8571_v13  ;;  %v10331_v42 = vld [vmem:[%s16093_s3 + $0x974] sm:$0xf0]  ;;  %v10329_v21 = vld [vmem:[%s16093_s3 + $0x96c] sm:$0xf]  ;;  %v8518_v53 = vld [vmem:[%s16093_s3 + $0x928] sm:$0xf] }
 0x3db   :  { %v8551_v0 = vor.u32 %v10331_v42, %v8550_v8  ;;  %v8555_v3 = vor.u32 %v10329_v21, %v8552_v37  ;;  %4277 = vmatpush.bf16.msrb.mxu0 %v8407_v10  ;;  %4335 = vmatpush.bf16.msrb.mxu2 %v8411_v48  ;;  %v10325_v62 = vld [vmem:[%s16093_s3 + $0x94c] sm:$0xf]  ;;  %v10287_v48 = vld [vmem:[%s16093_s3 + $0x814] sm:$0xf0]  ;;  %v8376_v37 = vld [vmem:[%s16093_s3 + $0x818] sm:$0xf0] }
 0x3dc   :  { %v13995_v19 = vadd.f32 %v3549_v36, %v13483_v38  ;;  %4198 = vmatmul.bf16.gmra.mxu1 %v12045_v49  ;;  %4256 = vmatmul.bf16.gmra.mxu3 %v12045_v49  ;;  %v10289_v38 = vld [vmem:[%s16093_s3 + $0x82c] sm:$0xf]  ;;  %v8539_v10 = vor.u32 %v10325_v62, %v8536_v52 }
 0x3dd   :  { %4305 = vmatpush.bf16.msrb.mxu1 %v8551_v0  ;;  %v8395_v15 = vor.u32 %v10289_v38, %v8392_v60  ;;  %v8375_v0 = vor.u32 %v10287_v48, %v8374_v50 }
 0x3de   :  { %4363 = vmatpush.bf16.msrb.mxu3 %v8555_v3 }
 0x3df   :  { %v3606_v55 = vpop.f32.mrf.mxu3  ;;  %4278 = vmatpush.bf16.msrb.mxu0 %v8391_v29  ;;  %4336 = vmatpush.bf16.msrb.mxu2 %v8395_v15  ;;  %v8520_v29 = vld [vmem:[%s16093_s3 + $0x938] sm:$0xf0]  ;;  %v10319_v15 = vld [vmem:[%s16093_s3 + $0x914] sm:$0xf0] }
 0x3e0   :  { %v3607_v13 = vadd.f32 %v3606_v55, %v3577_v16  ;;  %v3579_v45 = vpop.f32.mrf.mxu2  ;;  %v10285_v16 = vld [vmem:[%s16093_s3 + $0x80c] sm:$0xf] }
 0x3e1   :  { %v3550_v36 = vpop.f32.mrf.mxu1  ;;  %4306 = vmatpush.bf16.msrb.mxu1 %v8535_v46  ;;  %v8379_v3 = vor.u32 %v10285_v16, %v8376_v37  ;;  %v8504_v46 = vld [vmem:[%s16093_s3 + $0x918] sm:$0xf0] }
 0x3e2   :  { %v14036_v8 = vadd.f32 %v3607_v13, %v13524_v27  ;;  %v3551_v42 = vadd.f32 %v3550_v36, %v3521_v34  ;;  %v3524_v21 = vpop.f32.mrf.mxu0  ;;  %4364 = vmatpush.bf16.msrb.mxu3 %v8539_v10  ;;  %v10323_v27 = vld [vmem:[%s16093_s3 + $0x934] sm:$0xf0]  ;;  %v10321_v34 = vld [vmem:[%s16093_s3 + $0x92c] sm:$0xf]  ;;  %v8507_v36 = vor.u32 %v10317_v24, %v8504_v46 }
 0x3e3   :  { %v8519_v38 = vor.u32 %v10323_v27, %v8518_v53  ;;  %v8523_v60 = vor.u32 %v10321_v34, %v8520_v29  ;;  %4279 = vmatpush.bf16.msrb.mxu0 %v8375_v0  ;;  %4337 = vmatpush.bf16.msrb.mxu2 %v8379_v3  ;;  %v16145_v27 = vld [vmem:[#allocation6_spill] sm:$0xff] }
 0x3e4   :  { %v14051_v5 = vadd.f32 %v3551_v42, %v13539_v39  ;;  %v8502_v39 = vld [vmem:[%s16093_s3 + $0x908] sm:$0xf] }
 0x3e5   :  { %4174 = vmatmul.bf16.gmra.mxu0 %v12073_v20  ;;  %4232 = vmatmul.bf16.gmra.mxu2 %v12073_v20  ;;  %v8503_v13 = vor.u32 %v10319_v15, %v8502_v39  ;;  %v16146_v15 = vld [vmem:[#allocation7_spill] sm:$0xff] }
 0x3e6   :  { %4307 = vmatpush.bf16.msrb.mxu1 %v8519_v38  ;;  %4365 = vmatpush.bf16.msrb.mxu3 %v8523_v60 }
 0x3e7   :  { %v3608_v55 = vpop.f32.mrf.mxu3 }
 0x3e8   :  { %v3609_v54 = vadd.f32 %v3608_v55, %v3579_v45  ;;  %v3582_v62 = vpop.f32.mrf.mxu2 }
 0x3e9   :  { %v3553_v52 = vpop.f32.mrf.mxu1 }
 0x3ea   :  { %v14071_v10 = vadd.f32 %v3609_v54, %v13559_v51  ;;  %v3554_v50 = vadd.f32 %v3553_v52, %v3524_v21  ;;  %v3526_v48 = vpop.f32.mrf.mxu0  ;;  %4308 = vmatpush.bf16.msrb.mxu1 %v8503_v13  ;;  %4366 = vmatpush.bf16.msrb.mxu3 %v8507_v36 }
 0x3ec   :  { %v14074_v16 = vadd.f32 %v3554_v50, %v13562_v59  ;;  %4203 = vmatmul.bf16.gmra.mxu1 %v12105_v4  ;;  %4261 = vmatmul.bf16.gmra.mxu3 %v12105_v4 }
 0x3ef   :  { %v3611_v45 = vpop.f32.mrf.mxu3 }
 0x3f0   :  { %v3612_v42 = vadd.f32 %v3611_v45, %v3582_v62  ;;  %v3584_v0 = vpop.f32.mrf.mxu2 }
 0x3f1   :  { %v3555_v37 = vpop.f32.mrf.mxu1 }
 0x3f2   :  { %v14079_v3 = vadd.f32 %v3612_v42, %v13567_v41  ;;  %v3556_v51 = vadd.f32 %v3555_v37, %v3526_v48  ;;  %v3529_v53 = vpop.f32.mrf.mxu0 }
 0x3f4   :  { %v14082_v21 = vadd.f32 %v3556_v51, %v13570_v9 }
 0x3f5   :  { %4179 = vmatmul.bf16.gmra.mxu0 %v16145_v27  ;;  %4237 = vmatmul.bf16.gmra.mxu2 %v16145_v27 }
 0x3f7   :  { %v3613_v59 = vpop.f32.mrf.mxu3 }
 0x3f8   :  { %v3614_v34 = vadd.f32 %v3613_v59, %v3584_v0  ;;  %v3587_v38 = vpop.f32.mrf.mxu2 }
 0x3f9   :  { %v3558_v29 = vpop.f32.mrf.mxu1 }
 0x3fa   :  { %v14087_v60 = vadd.f32 %v3614_v34, %v13575_v58  ;;  %v3559_v55 = vadd.f32 %v3558_v29, %v3529_v53  ;;  %v3531_v39 = vpop.f32.mrf.mxu0 }
 0x3fc   :  { %v14090_v41 = vadd.f32 %v3559_v55, %v13578_v12  ;;  %4208 = vmatmul.bf16.gmra.mxu1 %v16146_v15  ;;  %4266 = vmatmul.bf16.gmra.mxu3 %v16146_v15 }
 0x3ff   :  { %v3616_v9 = vpop.f32.mrf.mxu3 }
 0x400   :  { %v3617_v24 = vadd.f32 %v3616_v9, %v3587_v38  ;;  %v3589_v54 = vpop.f32.mrf.mxu2 }
 0x401   :  { %v3560_v62 = vpop.f32.mrf.mxu1 }
 0x402   :  { %v14095_v13 = vadd.f32 %v3617_v24, %v13583_v31  ;;  %v3561_v46 = vadd.f32 %v3560_v62, %v3531_v39  ;;  %v3630_v52 = vpop.f32.mrf.mxu0 }
 0x404   :  { %v14098_v58 = vadd.f32 %v3561_v46, %v13586_v23 }
 0x405   :  { %4280 = vmatmul.bf16.vlgmr.msrb.gmra.mxu0 %v11804_v35  ;;  %4338 = vmatmul.bf16.vlgmr.msrb.gmra.mxu2 %v11804_v35 }
 0x407   :  { %v3618_v12 = vpop.f32.mrf.mxu3 }
 0x408   :  { %v3619_v36 = vadd.f32 %v3618_v12, %v3589_v54  ;;  %v3688_v50 = vpop.f32.mrf.mxu2 }
 0x409   :  { %v3659_v48 = vpop.f32.mrf.mxu1 }
 0x40a   :  { %v14103_v45 = vadd.f32 %v3619_v36, %v13612_v57  ;;  %v3660_v42 = vadd.f32 %v3659_v48, %v3630_v52  ;;  %v14105_v0 = vpop.f32.mrf.mxu0 }
 0x40c   :  { %v14108_v31 = vadd.f32 %v3660_v42, %v13627_v61  ;;  %4309 = vmatmul.bf16.vlgmr.msrb.gmra.mxu1 %v11834_v33  ;;  %4367 = vmatmul.bf16.vlgmr.msrb.gmra.mxu3 %v11834_v33 }
 0x40f   :  { %v3717_v23 = vpop.f32.mrf.mxu3 }
 0x410   :  { %v3718_v37 = vadd.f32 %v3717_v23, %v3688_v50  ;;  %v14112_v35 = vpop.f32.mrf.mxu2 }
 0x411   :  { %v14114_v51 = vpop.f32.mrf.mxu1 }
 0x412   :  { %v14117_v53 = vadd.f32 %v3718_v37, %v13668_v28  ;;  %v3635_v57 = vpop.f32.mrf.mxu0 }
 0x415   :  { %4285 = vmatmul.bf16.gmra.mxu0 %v12014_v17  ;;  %4343 = vmatmul.bf16.gmra.mxu2 %v12014_v17 }
 0x417   :  { %v14121_v61 = vpop.f32.mrf.mxu3 }
 0x418   :  { %v3693_v59 = vpop.f32.mrf.mxu2 }
 0x419   :  { %v3664_v34 = vpop.f32.mrf.mxu1 }
 0x41a   :  { %v3665_v38 = vadd.f32 %v3664_v34, %v3635_v57  ;;  %v14123_v33 = vpop.f32.mrf.mxu0 }
 0x41c   :  { %v14126_v29 = vadd.f32 %v3665_v38, %v13739_v2  ;;  %4314 = vmatmul.bf16.gmra.mxu1 %v12045_v49  ;;  %4372 = vmatmul.bf16.gmra.mxu3 %v12045_v49 }
 0x41f   :  { %v3722_v28 = vpop.f32.mrf.mxu3 }
 0x420   :  { %v3723_v55 = vadd.f32 %v3722_v28, %v3693_v59  ;;  %v14130_v39 = vpop.f32.mrf.mxu2 }
 0x421   :  { %v14132_v9 = vpop.f32.mrf.mxu1 }
 0x422   :  { %v14135_v17 = vadd.f32 %v3723_v55, %v13780_v1  ;;  %v3640_v24 = vpop.f32.mrf.mxu0 }
 0x425   :  { %4290 = vmatmul.bf16.gmra.mxu0 %v12073_v20  ;;  %4348 = vmatmul.bf16.gmra.mxu2 %v12073_v20 }
 0x427   :  { %v14139_v2 = vpop.f32.mrf.mxu3 }
 0x428   :  { %v3698_v54 = vpop.f32.mrf.mxu2 }
 0x429   :  { %v3669_v62 = vpop.f32.mrf.mxu1 }
 0x42a   :  { %v3670_v46 = vadd.f32 %v3669_v62, %v3640_v24  ;;  %v14141_v49 = vpop.f32.mrf.mxu0 }
 0x42c   :  { %v14144_v52 = vadd.f32 %v3670_v46, %v13818_v22  ;;  %4319 = vmatmul.bf16.gmra.mxu1 %v12105_v4  ;;  %4377 = vmatmul.bf16.gmra.mxu3 %v12105_v4 }
 0x42f   :  { %v3727_v1 = vpop.f32.mrf.mxu3 }
 0x430   :  { %v3728_v12 = vadd.f32 %v3727_v1, %v3698_v54  ;;  %v14148_v36 = vpop.f32.mrf.mxu2 }
 0x431   :  { %16147 = vst [vmem:[#allocation11_spill] sm:$0xff] %v14148_v36  ;;  %v14150_v50 = vpop.f32.mrf.mxu1 }
 0x432   :  { %v14153_v20 = vadd.f32 %v3728_v12, %v13823_v44  ;;  %v3645_v48 = vpop.f32.mrf.mxu0 }
 0x434   :  { %16148 = vst [vmem:[#allocation12_spill] sm:$0xff] %v14153_v20  ;;  %v8808_v20 = vld [vmem:[%s16094_s5 + $0x2f8] sm:$0xf0] }
 0x435   :  { %4295 = vmatmul.bf16.gmra.mxu0 %v16145_v27  ;;  %4353 = vmatmul.bf16.gmra.mxu2 %v16145_v27 }
 0x437   :  { %v14157_v22 = vpop.f32.mrf.mxu3 }
 0x438   :  { %16149 = vst [vmem:[#allocation2_spill] sm:$0xff] %v14157_v22  ;;  %v3703_v42 = vpop.f32.mrf.mxu2  ;;  %v10441_v22 = vld [vmem:[%s16094_s5 + $0x2ec] sm:$0xf] }
 0x439   :  { %v3674_v23 = vpop.f32.mrf.mxu1 }
 0x43a   :  { %v3675_v37 = vadd.f32 %v3674_v23, %v3645_v48  ;;  %v14159_v4 = vpop.f32.mrf.mxu0  ;;  %v8798_v23 = vld [vmem:[%s16094_s5 + $0x2e0] sm:$0xf] }
 0x43b   :  { %16150 = vst [vmem:[#allocation4_spill] sm:$0xff] %v14159_v4  ;;  %v8862_v4 = vld [vmem:[%s16094_s5 + $0x360] sm:$0xf] }
 0x43c   :  { %v14162_v57 = vadd.f32 %v3675_v37, %v13834_v32  ;;  %4324 = vmatmul.bf16.gmra.mxu1 %v16146_v15  ;;  %4382 = vmatmul.bf16.gmra.mxu3 %v16146_v15  ;;  %v10442_v37 = vld [vmem:[%s16094_s5 + $0x2ec] sm:$0xf0] }
 0x43e   :  { %16151 = vst [vmem:[#allocation3_spill] sm:$0xff] %v14162_v57  ;;  %v10418_v57 = vld [vmem:[%s16094_s5 + $0x22c] sm:$0xf0] }
 0x43f   :  { %v3732_v44 = vpop.f32.mrf.mxu3 }
 0x440   :  { %v3733_v59 = vadd.f32 %v3732_v44, %v3703_v42  ;;  %v14166_v34 = vpop.f32.mrf.mxu2  ;;  %v8799_v44 = vor.u32 %v10442_v37, %v8798_v23  ;;  %v10436_v23 = vld [vmem:[%s16094_s5 + $0x2c4] sm:$0xf]  ;;  %v8784_v37 = vld [vmem:[%s16094_s5 + $0x2d0] sm:$0xf0] }
 0x441   :  { %16152 = vst [vmem:[#allocation5_spill] sm:$0xff] %v14166_v34  ;;  %v14168_v38 = vpop.f32.mrf.mxu1  ;;  %v8894_v34 = vld [vmem:[%s16094_s5 + $0x3a0] sm:$0xf] }
 0x442   :  { %16153 = vst [vmem:[#allocation6_spill] sm:$0xff] %v14168_v38  ;;  %v14171_v27 = vadd.f32 %v3733_v59, %v13839_v30  ;;  %v4165_v28 = vpop.f32.mrf.mxu0  ;;  %v8800_v59 = vld [vmem:[%s16094_s5 + $0x2f0] sm:$0xf0]  ;;  %4971 = vmatpush.bf16.msra.mxu0 %v8799_v44 }
 0x444   :  { %16154 = vst [vmem:[#allocation7_spill] sm:$0xff] %v14171_v27 }
 0x447   :  { %v14173_v55 = vpop.f32.mrf.mxu3 }
 0x448   :  { %16155 = vst [vmem:[#allocation13_spill] sm:$0xff] %v14173_v55  ;;  %v4223_v24 = vpop.f32.mrf.mxu2  ;;  %v10434_v55 = vld [vmem:[%s16094_s5 + $0x2ac] sm:$0xf0] }
 0x449   :  { %v4194_v54 = vpop.f32.mrf.mxu1 }
 0x44a   :  { %v4195_v32 = vadd.f32 %v4194_v54, %v4165_v28  ;;  %v14175_v62 = vpop.f32.mrf.mxu0  ;;  %v8782_v54 = vld [vmem:[%s16094_s5 + $0x2c0] sm:$0xf] }
 0x44c   :  { %v14178_v46 = vadd.f32 %v4195_v32, %v13883_v11  ;;  %v10440_v11 = vld [vmem:[%s16094_s5 + $0x2e4] sm:$0xf]  ;;  %v10438_v32 = vld [vmem:[%s16094_s5 + $0x2cc] sm:$0xf0] }
 0x44f   :  { %v4252_v15 = vpop.f32.mrf.mxu3 }
 0x450   :  { %v4253_v1 = vadd.f32 %v4252_v15, %v4223_v24  ;;  %v14180_v12 = vpop.f32.mrf.mxu2 }
 0x451   :  { %v14182_v48 = vpop.f32.mrf.mxu1 }
 0x452   :  { %v14185_v30 = vadd.f32 %v4253_v1, %v13924_v6  ;;  %v4170_v42 = vpop.f32.mrf.mxu0  ;;  %v8803_v6 = vor.u32 %v10440_v11, %v8800_v59  ;;  %v8783_v1 = vor.u32 %v10438_v32, %v8782_v54  ;;  %v8787_v59 = vor.u32 %v10436_v23, %v8784_v37  ;;  %v10474_v54 = vld [vmem:[%s16094_s5 + $0x3ec] sm:$0xf0]  ;;  %v10472_v32 = vld [vmem:[%s16094_s5 + $0x3e4] sm:$0xf]  ;;  %v8766_v37 = vld [vmem:[%s16094_s5 + $0x2a0] sm:$0xf] }
 0x454   :  { %4997 = vmatpush.bf16.msra.mxu2 %v8803_v6  ;;  %v8926_v6 = vld [vmem:[%s16094_s5 + $0x3e0] sm:$0xf]  ;;  %4972 = vmatpush.bf16.msra.mxu0 %v8783_v1  ;;  %v10432_v1 = vld [vmem:[%s16094_s5 + $0x2a4] sm:$0xf] }
 0x455   :  { %v8927_v25 = vor.u32 %v10474_v54, %v8926_v6  ;;  %v8767_v6 = vor.u32 %v10434_v55, %v8766_v37  ;;  %v10470_v54 = vld [vmem:[%s16094_s5 + $0x3cc] sm:$0xf0]  ;;  %v8912_v55 = vld [vmem:[%s16094_s5 + $0x3d0] sm:$0xf0] }
 0x457   :  { %v14199_v28 = vpop.f32.mrf.mxu3  ;;  %4984 = vmatpush.bf16.msra.mxu1 %v8927_v25  ;;  %v10468_v25 = vld [vmem:[%s16094_s5 + $0x3c4] sm:$0xf] }
 0x458   :  { %v4228_v24 = vpop.f32.mrf.mxu2  ;;  %4998 = vmatpush.bf16.msra.mxu2 %v8787_v59  ;;  %v8910_v59 = vld [vmem:[%s16094_s5 + $0x3c0] sm:$0xf]  ;;  %4973 = vmatpush.bf16.msra.mxu0 %v8767_v6  ;;  %v10430_v6 = vld [vmem:[%s16094_s5 + $0x28c] sm:$0xf0] }
 0x459   :  { %v4199_v15 = vpop.f32.mrf.mxu1 }
 0x45a   :  { %v4200_v11 = vadd.f32 %v4199_v15, %v4170_v42  ;;  %v14213_v44 = vpop.f32.mrf.mxu0  ;;  %v8928_v42 = vld [vmem:[%s16094_s5 + $0x3f0] sm:$0xf0] }
 0x45b   :  { %v8931_v23 = vor.u32 %v10472_v32, %v8928_v42  ;;  %v8911_v42 = vor.u32 %v10470_v54, %v8910_v59 }
 0x45c   :  { %v14228_v15 = vadd.f32 %v4200_v11, %v13995_v19  ;;  %v8768_v19 = vld [vmem:[%s16094_s5 + $0x2b0] sm:$0xf0] }
 0x45d   :  { %5010 = vmatpush.bf16.msra.mxu3 %v8931_v23  ;;  %v8771_v11 = vor.u32 %v10432_v1, %v8768_v19  ;;  %v8915_v1 = vor.u32 %v10468_v25, %v8912_v55  ;;  %v8750_v19 = vld [vmem:[%s16094_s5 + $0x280] sm:$0xf]  ;;  %4985 = vmatpush.bf16.msra.mxu1 %v8911_v42  ;;  %v10466_v42 = vld [vmem:[%s16094_s5 + $0x3ac] sm:$0xf0] }
 0x45e   :  { %v8751_v54 = vor.u32 %v10430_v6, %v8750_v19  ;;  %v10464_v19 = vld [vmem:[%s16094_s5 + $0x3a4] sm:$0xf]  ;;  %v8895_v6 = vor.u32 %v10466_v42, %v8894_v34  ;;  %v8878_v42 = vld [vmem:[%s16094_s5 + $0x380] sm:$0xf] }
 0x45f   :  { %v4257_v32 = vpop.f32.mrf.mxu3  ;;  %4999 = vmatpush.bf16.msra.mxu2 %v8771_v11  ;;  %v8752_v11 = vld [vmem:[%s16094_s5 + $0x290] sm:$0xf0] }
 0x460   :  { %v4258_v23 = vadd.f32 %v4257_v32, %v4228_v24  ;;  %v14254_v37 = vpop.f32.mrf.mxu2  ;;  %v10428_v24 = vld [vmem:[%s16094_s5 + $0x284] sm:$0xf]  ;;  %4974 = vmatpush.bf16.msra.mxu0 %v8751_v54  ;;  %v8736_v54 = vld [vmem:[%s16094_s5 + $0x270] sm:$0xf0] }
 0x461   :  { %v14262_v59 = vpop.f32.mrf.mxu1  ;;  %5011 = vmatpush.bf16.msra.mxu3 %v8915_v1  ;;  %v8755_v55 = vor.u32 %v10428_v24, %v8752_v11  ;;  %v8734_v1 = vld [vmem:[%s16094_s5 + $0x260] sm:$0xf]  ;;  %v10426_v24 = vld [vmem:[%s16094_s5 + $0x26c] sm:$0xf0]  ;;  %v10424_v11 = vld [vmem:[%s16094_s5 + $0x264] sm:$0xf]  ;;  %4986 = vmatpush.bf16.msra.mxu1 %v8895_v6 }
 0x462   :  { %v14271_v32 = vadd.f32 %v4258_v23, %v14036_v8  ;;  %v4175_v25 = vpop.f32.mrf.mxu0  ;;  %v8896_v8 = vld [vmem:[%s16094_s5 + $0x3b0] sm:$0xf0]  ;;  %v8735_v34 = vor.u32 %v10426_v24, %v8734_v1  ;;  %v10460_v6 = vld [vmem:[%s16094_s5 + $0x384] sm:$0xf]  ;;  %v14314_v1 = vld [vmem:[%s16095_s4] sm:$0xf] }
 0x463   :  { %5000 = vmatpush.bf16.msra.mxu2 %v8755_v55  ;;  %v8899_v23 = vor.u32 %v10464_v19, %v8896_v8  ;;  %v8739_v55 = vor.u32 %v10424_v11, %v8736_v54  ;;  %v10462_v19 = vld [vmem:[%s16094_s5 + $0x38c] sm:$0xf0] }
 0x464   :  { %4975 = vmatpush.bf16.msra.mxu0 %v8735_v34  ;;  %v8879_v27 = vor.u32 %v10462_v19, %v8878_v42  ;;  %v8718_v34 = vld [vmem:[%s16094_s5 + $0x240] sm:$0xf]  ;;  %v10422_v54 = vld [vmem:[%s16094_s5 + $0x24c] sm:$0xf0] }
 0x465   :  { %5012 = vmatpush.bf16.msra.mxu3 %v8899_v23  ;;  %v8880_v23 = vld [vmem:[%s16094_s5 + $0x390] sm:$0xf0]  ;;  %v8719_v19 = vor.u32 %v10422_v54, %v8718_v34  ;;  %v10456_v34 = vld [vmem:[%s16094_s5 + $0x364] sm:$0xf]  ;;  %v14338_v54 = vperm.slane %v14314_v1, 0 }
 0x466   :  { %v8883_v11 = vor.u32 %v10460_v6, %v8880_v23  ;;  %4987 = vmatpush.bf16.msra.mxu1 %v8879_v27  ;;  %v10458_v27 = vld [vmem:[%s16094_s5 + $0x36c] sm:$0xf0] }
 0x467   :  { %v14303_v8 = vpop.f32.mrf.mxu3  ;;  %5001 = vmatpush.bf16.msra.mxu2 %v8739_v55  ;;  %v8720_v55 = vld [vmem:[%s16094_s5 + $0x250] sm:$0xf0] }
 0x468   :  { %v4233_v24 = vpop.f32.mrf.mxu2  ;;  %v8723_v38 = vor.u32 %v10420_v47, %v8720_v55  ;;  %4976 = vmatpush.bf16.msra.mxu0 %v8719_v19  ;;  %v8864_v47 = vld [vmem:[%s16094_s5 + $0x370] sm:$0xf0]  ;;  %v8702_v55 = vld [vmem:[%s16094_s5 + $0x220] sm:$0xf] }
 0x469   :  { %v4204_v42 = vpop.f32.mrf.mxu1  ;;  %5013 = vmatpush.bf16.msra.mxu3 %v8883_v11  ;;  %v8703_v19 = vor.u32 %v10418_v57, %v8702_v55 }
 0x46a   :  { %v4205_v6 = vadd.f32 %v4204_v42, %v4175_v25  ;;  %v4177_v23 = vpop.f32.mrf.mxu0  ;;  %v8863_v25 = vor.u32 %v10458_v27, %v8862_v4  ;;  %v8867_v42 = vor.u32 %v10456_v34, %v8864_v47  ;;  %v10416_v4 = vld [vmem:[%s16094_s5 + $0x224] sm:$0xf]  ;;  %v8846_v27 = vld [vmem:[%s16094_s5 + $0x340] sm:$0xf]  ;;  %v10454_v34 = vld [vmem:[%s16094_s5 + $0x34c] sm:$0xf0] }
 0x46b   :  { %5002 = vmatpush.bf16.msra.mxu2 %v8723_v38  ;;  %v8847_v57 = vor.u32 %v10454_v34, %v8846_v27 }
 0x46c   :  { %v4404_v11 = vadd.f32 %v4205_v6, %v14074_v16  ;;  %4988 = vmatpush.bf16.msra.mxu1 %v8863_v25  ;;  %v8704_v16 = vld [vmem:[%s16094_s5 + $0x230] sm:$0xf0]  ;;  %4977 = vmatpush.bf16.msra.mxu0 %v8703_v19  ;;  %v10452_v25 = vld [vmem:[%s16094_s5 + $0x344] sm:$0xf]  ;;  %v10414_v19 = vld [vmem:[%s16094_s5 + $0x20c] sm:$0xf0] }
 0x46d   :  { %5014 = vmatpush.bf16.msra.mxu3 %v8867_v42  ;;  %v8707_v6 = vor.u32 %v10416_v4, %v8704_v16  ;;  %v8686_v16 = vld [vmem:[%s16094_s5 + $0x200] sm:$0xf] }
 0x46e   :  { %v14357_v38 = vadd.f32 %v14338_v54, %v4404_v11  ;;  %v8848_v11 = vld [vmem:[%s16094_s5 + $0x350] sm:$0xf0]  ;;  %v8687_v34 = vor.u32 %v10414_v19, %v8686_v16  ;;  %v10443_v19 = vld [vmem:[%s16094_s5 + $0x2f4] sm:$0xf0] }
 0x46f   :  { %v4262_v47 = vpop.f32.mrf.mxu3  ;;  %5003 = vmatpush.bf16.msra.mxu2 %v8707_v6  ;;  %v8851_v4 = vor.u32 %v10452_v25, %v8848_v11  ;;  %v8806_v6 = vld [vmem:[%s16094_s5 + $0x2e8] sm:$0xf] }
 0x470   :  { %v4263_v42 = vadd.f32 %v4262_v47, %v4233_v24  ;;  %v4235_v55 = vpop.f32.mrf.mxu2  ;;  %4989 = vmatpush.bf16.msra.mxu1 %v8847_v57  ;;  %v8688_v24 = vld [vmem:[%s16094_s5 + $0x210] sm:$0xf0]  ;;  %v14387_v47 = vperm.slane %v14314_v1, 1  ;;  %4978 = vmatpush.bf16.msra.mxu0 %v8687_v34  ;;  %v8807_v36 = vor.u32 %v10443_v19, %v8806_v6  ;;  %v10448_v34 = vld [vmem:[%s16094_s5 + $0x324] sm:$0xf] }
 0x471   :  { %v4206_v27 = vpop.f32.mrf.mxu1  ;;  %5015 = vmatpush.bf16.msra.mxu3 %v8851_v4  ;;  %v8691_v16 = vor.u32 %v10412_v63, %v8688_v24  ;;  %v10450_v63 = vld [vmem:[%s16094_s5 + $0x32c] sm:$0xf0]  ;;  %v8811_v4 = vor.u32 %v10441_v22, %v8808_v20  ;;  %v8832_v24 = vld [vmem:[%s16094_s5 + $0x330] sm:$0xf0]  ;;  %v10437_v20 = vld [vmem:[%s16094_s5 + $0x2cc] sm:$0xf] }
 0x472   :  { %v4405_v25 = vadd.f32 %v4263_v42, %v14079_v3  ;;  %v4207_v11 = vadd.f32 %v4206_v27, %v4177_v23  ;;  %v4180_v57 = vpop.f32.mrf.mxu0  ;;  %v8830_v3 = vld [vmem:[%s16094_s5 + $0x320] sm:$0xf]  ;;  %v8835_v6 = vor.u32 %v10448_v34, %v8832_v24 }
 0x473   :  { %5004 = vmatpush.bf16.msra.mxu2 %v8691_v16  ;;  %v8831_v27 = vor.u32 %v10450_v63, %v8830_v3  ;;  %v8814_v16 = vld [vmem:[%s16094_s5 + $0x300] sm:$0xf]  ;;  %v10446_v63 = vld [vmem:[%s16094_s5 + $0x30c] sm:$0xf0] }
 0x474   :  { %v14406_v23 = vadd.f32 %v14387_v47, %v4405_v25  ;;  %v4408_v42 = vadd.f32 %v4207_v11, %v14082_v21  ;;  %5023 = vmatpush.bf16.msrb.mxu0 %v8807_v36  ;;  %v8790_v25 = vld [vmem:[%s16094_s5 + $0x2c8] sm:$0xf]  ;;  %v10439_v21 = vld [vmem:[%s16094_s5 + $0x2d4] sm:$0xf0]  ;;  %v8792_v36 = vld [vmem:[%s16094_s5 + $0x2d8] sm:$0xf0]  ;;  %v8815_v24 = vor.u32 %v10446_v63, %v8814_v16 }
 0x475   :  { %4990 = vmatpush.bf16.msra.mxu1 %v8831_v27  ;;  %v8791_v11 = vor.u32 %v10439_v21, %v8790_v25  ;;  %5016 = vmatpush.bf16.msra.mxu3 %v8835_v6  ;;  %v8795_v3 = vor.u32 %v10437_v20, %v8792_v36  ;;  %v8934_v6 = vld [vmem:[%s16094_s5 + $0x3e8] sm:$0xf]  ;;  %v10475_v21 = vld [vmem:[%s16094_s5 + $0x3f4] sm:$0xf0] }
 0x476   :  { %v14425_v22 = vadd.f32 %v14338_v54, %v4408_v42  ;;  %v10444_v42 = vld [vmem:[%s16094_s5 + $0x304] sm:$0xf]  ;;  %v8935_v36 = vor.u32 %v10475_v21, %v8934_v6  ;;  %v8774_v16 = vld [vmem:[%s16094_s5 + $0x2a8] sm:$0xf]  ;;  %v10433_v6 = vld [vmem:[%s16094_s5 + $0x2ac] sm:$0xf] }
 0x477   :  { %5049 = vmatpush.bf16.msrb.mxu2 %v8811_v4  ;;  %v4264_v19 = vpop.f32.mrf.mxu3  ;;  %v8816_v4 = vld [vmem:[%s16094_s5 + $0x310] sm:$0xf0]  ;;  %v8776_v21 = vld [vmem:[%s16094_s5 + $0x2b8] sm:$0xf0] }
 0x478   :  { %16156 = vst [vmem:[#allocation14_spill] sm:$0xff] %v14425_v22  ;;  %v4265_v27 = vadd.f32 %v4264_v19, %v4235_v55  ;;  %v4238_v34 = vpop.f32.mrf.mxu2  ;;  %v8819_v25 = vor.u32 %v10444_v42, %v8816_v4  ;;  %5024 = vmatpush.bf16.msrb.mxu0 %v8791_v11  ;;  %v10473_v22 = vld [vmem:[%s16094_s5 + $0x3ec] sm:$0xf]  ;;  %v8936_v55 = vld [vmem:[%s16094_s5 + $0x3f8] sm:$0xf0] }
 0x479   :  { %v4209_v20 = vpop.f32.mrf.mxu1  ;;  %4991 = vmatpush.bf16.msra.mxu1 %v8815_v24  ;;  %v8939_v11 = vor.u32 %v10473_v22, %v8936_v55  ;;  %v10435_v4 = vld [vmem:[%s16094_s5 + $0x2b4] sm:$0xf0]  ;;  %v8918_v22 = vld [vmem:[%s16094_s5 + $0x3c8] sm:$0xf] }
 0x47a   :  { %v4409_v19 = vadd.f32 %v4265_v27, %v14087_v60  ;;  %v4210_v63 = vadd.f32 %v4209_v20, %v4180_v57  ;;  %v4182_v42 = vpop.f32.mrf.mxu0  ;;  %5017 = vmatpush.bf16.msra.mxu3 %v8819_v25  ;;  %v8775_v60 = vor.u32 %v10435_v4, %v8774_v16  ;;  %v8779_v57 = vor.u32 %v10433_v6, %v8776_v21  ;;  %v10469_v27 = vld [vmem:[%s16094_s5 + $0x3cc] sm:$0xf]  ;;  %v8758_v16 = vld [vmem:[%s16094_s5 + $0x288] sm:$0xf]  ;;  %v10431_v4 = vld [vmem:[%s16094_s5 + $0x294] sm:$0xf0] }
 0x47b   :  { %5050 = vmatpush.bf16.msrb.mxu2 %v8795_v3  ;;  %v10471_v3 = vld [vmem:[%s16094_s5 + $0x3d4] sm:$0xf0] }
 0x47c   :  { %v14477_v24 = vadd.f32 %v14387_v47, %v4409_v19  ;;  %v4412_v25 = vadd.f32 %v4210_v63, %v14090_v41  ;;  %v8919_v20 = vor.u32 %v10471_v3, %v8918_v22  ;;  %5025 = vmatpush.bf16.msrb.mxu0 %v8775_v60  ;;  %v10429_v41 = vld [vmem:[%s16094_s5 + $0x28c] sm:$0xf]  ;;  %v8759_v63 = vor.u32 %v10431_v4, %v8758_v16  ;;  %v8902_v60 = vld [vmem:[%s16094_s5 + $0x3a8] sm:$0xf]  ;;  %v10467_v22 = vld [vmem:[%s16094_s5 + $0x3b4] sm:$0xf0] }
 0x47d   :  { %5036 = vmatpush.bf16.msrb.mxu1 %v8935_v36  ;;  %v8920_v36 = vld [vmem:[%s16094_s5 + $0x3d8] sm:$0xf0]  ;;  %v8742_v4 = vld [vmem:[%s16094_s5 + $0x268] sm:$0xf] }
 0x47e   :  { %5062 = vmatpush.bf16.msrb.mxu3 %v8939_v11  ;;  %v8923_v55 = vor.u32 %v10469_v27, %v8920_v36  ;;  %v14493_v19 = vadd.f32 %v14338_v54, %v4412_v25  ;;  %v8760_v11 = vld [vmem:[%s16094_s5 + $0x298] sm:$0xf0]  ;;  %v8903_v25 = vor.u32 %v10467_v22, %v8902_v60 }
 0x47f   :  { %5051 = vmatpush.bf16.msrb.mxu2 %v8779_v57  ;;  %v4267_v6 = vpop.f32.mrf.mxu3  ;;  %v8763_v21 = vor.u32 %v10429_v41, %v8760_v11  ;;  %v10465_v57 = vld [vmem:[%s16094_s5 + $0x3ac] sm:$0xf]  ;;  %v10427_v41 = vld [vmem:[%s16094_s5 + $0x274] sm:$0xf0] }
 0x480   :  { %v4268_v3 = vadd.f32 %v4267_v6, %v4238_v34  ;;  %v4240_v27 = vpop.f32.mrf.mxu2  ;;  %5026 = vmatpush.bf16.msrb.mxu0 %v8759_v63  ;;  %v10425_v34 = vld [vmem:[%s16094_s5 + $0x26c] sm:$0xf]  ;;  %v8743_v60 = vor.u32 %v10427_v41, %v8742_v4  ;;  %v8744_v63 = vld [vmem:[%s16094_s5 + $0x278] sm:$0xf0]  ;;  %v8726_v4 = vld [vmem:[%s16094_s5 + $0x248] sm:$0xf] }
 0x481   :  { %5037 = vmatpush.bf16.msrb.mxu1 %v8919_v20  ;;  %v8904_v20 = vld [vmem:[%s16094_s5 + $0x3b8] sm:$0xf0]  ;;  %v4211_v36 = vpop.f32.mrf.mxu1  ;;  %v8747_v22 = vor.u32 %v10425_v34, %v8744_v63  ;;  %v10423_v41 = vld [vmem:[%s16094_s5 + $0x254] sm:$0xf0]  ;;  %v8870_v63 = vld [vmem:[%s16094_s5 + $0x368] sm:$0xf] }
 0x482   :  { %5063 = vmatpush.bf16.msrb.mxu3 %v8923_v55  ;;  %v8907_v16 = vor.u32 %v10465_v57, %v8904_v20  ;;  %v4413_v55 = vadd.f32 %v4268_v3, %v14095_v13  ;;  %v4212_v11 = vadd.f32 %v4211_v36, %v4182_v42  ;;  %v4281_v6 = vpop.f32.mrf.mxu0  ;;  %v8886_v57 = vld [vmem:[%s16094_s5 + $0x388] sm:$0xf]  ;;  %v10463_v20 = vld [vmem:[%s16094_s5 + $0x394] sm:$0xf0]  ;;  %v10461_v13 = vld [vmem:[%s16094_s5 + $0x38c] sm:$0xf]  ;;  %v8727_v34 = vor.u32 %v10423_v41, %v8726_v4 }
 0x483   :  { %5052 = vmatpush.bf16.msrb.mxu2 %v8763_v21  ;;  %v8887_v3 = vor.u32 %v10463_v20, %v8886_v57  ;;  %v10459_v57 = vld [vmem:[%s16094_s5 + $0x374] sm:$0xf0]  ;;  %v8710_v41 = vld [vmem:[%s16094_s5 + $0x228] sm:$0xf] }
 0x484   :  { %v14533_v42 = vadd.f32 %v14387_v47, %v4413_v55  ;;  %v4416_v21 = vadd.f32 %v4212_v11, %v14098_v58  ;;  %5027 = vmatpush.bf16.msrb.mxu0 %v8743_v60  ;;  %v10421_v58 = vld [vmem:[%s16094_s5 + $0x24c] sm:$0xf]  ;;  %v8728_v55 = vld [vmem:[%s16094_s5 + $0x258] sm:$0xf0] }
 0x485   :  { %5038 = vmatpush.bf16.msrb.mxu1 %v8903_v25  ;;  %v8888_v25 = vld [vmem:[%s16094_s5 + $0x398] sm:$0xf0]  ;;  %v8731_v60 = vor.u32 %v10421_v58, %v8728_v55  ;;  %v10419_v58 = vld [vmem:[%s16094_s5 + $0x234] sm:$0xf0] }
 0x486   :  { %5064 = vmatpush.bf16.msrb.mxu3 %v8907_v16  ;;  %v8891_v36 = vor.u32 %v10461_v13, %v8888_v25  ;;  %v14549_v16 = vadd.f32 %v14338_v54, %v4416_v21  ;;  %v8871_v21 = vor.u32 %v10459_v57, %v8870_v63  ;;  %v8711_v63 = vor.u32 %v10419_v58, %v8710_v41  ;;  %v8712_v57 = vld [vmem:[%s16094_s5 + $0x238] sm:$0xf0] }
 0x487   :  { %5053 = vmatpush.bf16.msrb.mxu2 %v8747_v22  ;;  %v4269_v11 = vpop.f32.mrf.mxu3  ;;  %v10457_v22 = vld [vmem:[%s16094_s5 + $0x36c] sm:$0xf]  ;;  %v8856_v41 = vld [vmem:[%s16094_s5 + $0x358] sm:$0xf0]  ;;  %v3662_v58 = vadd.f32 %v14114_v51, %v14105_v0 }
 0x488   :  { %v4270_v20 = vadd.f32 %v4269_v11, %v4240_v27  ;;  %v4339_v13 = vpop.f32.mrf.mxu2  ;;  %5028 = vmatpush.bf16.msrb.mxu0 %v8727_v34  ;;  %v10417_v27 = vld [vmem:[%s16094_s5 + $0x22c] sm:$0xf]  ;;  %v14577_v11 = vperm.slane %v14314_v1, 2  ;;  %v8696_v0 = vld [vmem:[%s16094_s5 + $0x218] sm:$0xf0] }
 0x489   :  { %5039 = vmatpush.bf16.msrb.mxu1 %v8887_v3  ;;  %v8872_v3 = vld [vmem:[%s16094_s5 + $0x378] sm:$0xf0]  ;;  %v4310_v25 = vpop.f32.mrf.mxu1 }
 0x48a   :  { %5065 = vmatpush.bf16.msrb.mxu3 %v8891_v36  ;;  %v8875_v4 = vor.u32 %v10457_v22, %v8872_v3  ;;  %v4417_v36 = vadd.f32 %v4270_v20, %v14103_v45  ;;  %v4311_v55 = vadd.f32 %v4310_v25, %v4281_v6  ;;  %v4283_v34 = vpop.f32.mrf.mxu0  ;;  %v4430_v22 = vadd.f32 %v14338_v54, %v14178_v46  ;;  %v8854_v45 = vld [vmem:[%s16094_s5 + $0x348] sm:$0xf]  ;;  %v10455_v6 = vld [vmem:[%s16094_s5 + $0x354] sm:$0xf0] }
 0x48b   :  { %5054 = vmatpush.bf16.msrb.mxu2 %v8731_v60  ;;  %v8715_v3 = vor.u32 %v10417_v27, %v8712_v57  ;;  %v10453_v60 = vld [vmem:[%s16094_s5 + $0x34c] sm:$0xf]  ;;  %v4197_v20 = vadd.f32 %v14182_v48, %v14175_v62  ;;  %v8694_v62 = vld [vmem:[%s16094_s5 + $0x208] sm:$0xf]  ;;  %v10415_v48 = vld [vmem:[%s16094_s5 + $0x214] sm:$0xf0] }
 0x48c   :  { %v14596_v25 = vadd.f32 %v14387_v47, %v4417_v36  ;;  %v4390_v46 = vadd.f32 %v4311_v55, %v14108_v31  ;;  %5029 = vmatpush.bf16.msrb.mxu0 %v8711_v63  ;;  %v8859_v27 = vor.u32 %v10453_v60, %v8856_v41  ;;  %v10413_v31 = vld [vmem:[%s16094_s5 + $0x20c] sm:$0xf]  ;;  %v8695_v36 = vor.u32 %v10415_v48, %v8694_v62 }
 0x48d   :  { %5040 = vmatpush.bf16.msrb.mxu1 %v8871_v21  ;;  %v8855_v21 = vor.u32 %v10455_v6, %v8854_v45  ;;  %v4462_v51 = vmax.f32 %v4430_v22, 0.0  ;;  %v8699_v63 = vor.u32 %v10413_v31, %v8696_v0  ;;  %v4392_v57 = vadd.f32 %v4197_v20, %v13939_v43  ;;  %v10451_v22 = vld [vmem:[%s16094_s5 + $0x334] sm:$0xf0] }
 0x48e   :  { %5066 = vmatpush.bf16.msrb.mxu3 %v8875_v4  ;;  %v4432_v4 = vadd.f32 %v14577_v11, %v4390_v46  ;;  %v14619_v60 = vperm.slane %v14314_v1, 3  ;;  %v3743_v46 = vadd.f32 %v3662_v58, %v13683_v18  ;;  %v4431_v43 = vadd.f32 %v14387_v47, %v14185_v30  ;;  %v10447_v31 = vld [vmem:[%s16094_s5 + $0x314] sm:$0xf0] }
 0x48f   :  { %5055 = vmatpush.bf16.msrb.mxu2 %v8715_v3  ;;  %v4368_v55 = vpop.f32.mrf.mxu3  ;;  %v8838_v3 = vld [vmem:[%s16094_s5 + $0x328] sm:$0xf] }
 0x490   :  { %v4464_v45 = vmax.f32 %v4432_v4, 0.0  ;;  %v4369_v6 = vadd.f32 %v4368_v55, %v4339_v13  ;;  %v4341_v41 = vpop.f32.mrf.mxu2  ;;  %v4255_v13 = vadd.f32 %v14199_v28, %v14180_v12  ;;  %5030 = vmatpush.bf16.msrb.mxu0 %v8695_v36  ;;  %v8839_v20 = vor.u32 %v10451_v22, %v8838_v3  ;;  %v8822_v28 = vld [vmem:[%s16094_s5 + $0x308] sm:$0xf] }
 0x491   :  { %5041 = vmatpush.bf16.msrb.mxu1 %v8855_v21  ;;  %v4312_v1 = vpop.f32.mrf.mxu1  ;;  %v10449_v21 = vld [vmem:[%s16094_s5 + $0x32c] sm:$0xf]  ;;  %v3720_v12 = vadd.f32 %v14121_v61, %v14112_v35  ;;  %v4434_v4 = vadd.f32 %v14338_v54, %v4392_v57  ;;  %v8823_v36 = vor.u32 %v10447_v31, %v8822_v28  ;;  %v8824_v61 = vld [vmem:[%s16094_s5 + $0x318] sm:$0xf0]  ;;  %v3667_v28 = vadd.f32 %v14132_v9, %v14123_v33 }
 0x492   :  { %5067 = vmatpush.bf16.msrb.mxu3 %v8859_v27  ;;  %v8840_v27 = vld [vmem:[%s16094_s5 + $0x338] sm:$0xf0]  ;;  %v4494_v62 = vmax.f32 %v4462_v51, %v4464_v45  ;;  %v4391_v18 = vadd.f32 %v4369_v6, %v14117_v53  ;;  %v4313_v58 = vadd.f32 %v4312_v1, %v4283_v34  ;;  %v4286_v48 = vpop.f32.mrf.mxu0  ;;  %v10445_v35 = vld [vmem:[%s16094_s5 + $0x30c] sm:$0xf]  ;;  %v4463_v51 = vmax.f32 %v4431_v43, 0.0 }
 0x493   :  { %5056 = vmatpush.bf16.msrb.mxu2 %v8699_v63  ;;  %v8843_v30 = vor.u32 %v10449_v21, %v8840_v27  ;;  %v8827_v0 = vor.u32 %v10445_v35, %v8824_v61  ;;  %v4393_v55 = vadd.f32 %v4255_v13, %v13980_v56  ;;  %v3744_v45 = vadd.f32 %v3720_v12, %v13724_v7 }
 0x494   :  { %v4433_v53 = vadd.f32 %v14619_v60, %v4391_v18  ;;  %v4394_v34 = vadd.f32 %v4313_v58, %v3743_v46  ;;  %v4466_v3 = vmax.f32 %v4434_v4, 0.0  ;;  %v4438_v13 = vadd.f32 %v14338_v54, %v14228_v15 }
 0x495   :  { %5042 = vmatpush.bf16.msrb.mxu1 %v8839_v20  ;;  %v4435_v27 = vadd.f32 %v14387_v47, %v4393_v55  ;;  %v4202_v7 = vadd.f32 %v14262_v59, %v14213_v44  ;;  %v4260_v33 = vadd.f32 %v14303_v8, %v14254_v37 }
 0x496   :  { %5068 = vmatpush.bf16.msrb.mxu3 %v8843_v30  ;;  %v4465_v63 = vmax.f32 %v4433_v53, 0.0  ;;  %v4436_v57 = vadd.f32 %v14577_v11, %v4394_v34  ;;  %v4470_v53 = vmax.f32 %v4438_v13, 0.0 }
 0x497   :  { %v4370_v6 = vpop.f32.mrf.mxu3  ;;  %v4467_v31 = vmax.f32 %v4435_v27, 0.0  ;;  %v4400_v15 = vadd.f32 %v4202_v7, %v14051_v5  ;;  %v3725_v5 = vadd.f32 %v14139_v2, %v14130_v39  ;;  %v3672_v7 = vadd.f32 %v14150_v50, %v14141_v49  ;;  %v10372_v49 = vld [vmem:[%s16094_s5 + $0xc4] sm:$0xf]  ;;  %v9040_v50 = vld [vmem:[%s16094_s5 + $0xd0] sm:$0xf0] }
 0x498   :  { %v4495_v22 = vmax.f32 %v4463_v51, %v4465_v63  ;;  %v4468_v46 = vmax.f32 %v4436_v57, 0.0  ;;  %v4371_v1 = vadd.f32 %v4370_v6, %v4341_v41  ;;  %v4344_v20 = vpop.f32.mrf.mxu2  ;;  %v4401_v6 = vadd.f32 %v4260_v33, %v14071_v10  ;;  %v10408_v33 = vld [vmem:[%s16094_s5 + $0x1e4] sm:$0xf] }
 0x499   :  { %5043 = vmatpush.bf16.msrb.mxu1 %v8823_v36  ;;  %v4315_v21 = vpop.f32.mrf.mxu1  ;;  %v4442_v57 = vadd.f32 %v14338_v54, %v4400_v15  ;;  %v9054_v54 = vld [vmem:[%s16094_s5 + $0xe0] sm:$0xf] }
 0x49a   :  { %5069 = vmatpush.bf16.msrb.mxu3 %v8827_v0  ;;  %v4496_v18 = vmax.f32 %v4466_v3, %v4468_v46  ;;  %v4395_v43 = vadd.f32 %v4371_v1, %v3744_v45  ;;  %v4316_v58 = vadd.f32 %v4315_v21, %v4286_v48  ;;  %v4288_v56 = vpop.f32.mrf.mxu0  ;;  %v3752_v3 = vadd.f32 %v3725_v5, %v13815_v40  ;;  %v10378_v40 = vld [vmem:[%s16094_s5 + $0xec] sm:$0xf0]  ;;  %v9022_v5 = vld [vmem:[%s16094_s5 + $0xa0] sm:$0xf] }
 0x49b   :  { %v4443_v21 = vadd.f32 %v14387_v47, %v4401_v6  ;;  %v10370_v6 = vld [vmem:[%s16094_s5 + $0xac] sm:$0xf0] }
 0x49c   :  { %v14663_v30 = vmax.f32 %v4494_v62, %v4496_v18  ;;  %v4437_v12 = vadd.f32 %v14619_v60, %v4395_v43  ;;  %v4398_v41 = vadd.f32 %v4316_v58, %v14126_v29  ;;  %v3751_v62 = vadd.f32 %v3667_v28, %v13795_v26  ;;  %v10376_v43 = vld [vmem:[%s16094_s5 + $0xe4] sm:$0xf]  ;;  %v9056_v58 = vld [vmem:[%s16094_s5 + $0xf0] sm:$0xf0] }
 0x49d   :  { %v4439_v29 = vadd.f32 %v14387_v47, %v14271_v32  ;;  %v9059_v28 = vor.u32 %v10376_v43, %v9056_v58  ;;  %v9006_v43 = vld [vmem:[%s16094_s5 + $0x80] sm:$0xf]  ;;  %v10366_v58 = vld [vmem:[%s16094_s5 + $0x8c] sm:$0xf0] }
 0x49e   :  { %v4469_v4 = vmax.f32 %v4437_v12, 0.0  ;;  %v4440_v48 = vadd.f32 %v14577_v11, %v4398_v41  ;;  %v9055_v41 = vor.u32 %v10378_v40, %v9054_v54 }
 0x49f   :  { %v4373_v34 = vpop.f32.mrf.mxu3  ;;  %v4471_v32 = vmax.f32 %v4439_v29, 0.0 }
 0x4a0   :  { %v4497_v36 = vmax.f32 %v4467_v31, %v4469_v4  ;;  %v4472_v35 = vmax.f32 %v4440_v48, 0.0  ;;  %v4374_v44 = vadd.f32 %v4373_v34, %v4344_v20  ;;  %v4346_v59 = vpop.f32.mrf.mxu2  ;;  %v9038_v31 = vld [vmem:[%s16094_s5 + $0xc0] sm:$0xf]  ;;  %v10374_v4 = vld [vmem:[%s16094_s5 + $0xcc] sm:$0xf0]  ;;  %v4475_v48 = vmax.f32 %v4443_v21, 0.0 }
 0x4a1   :  { %v4317_v9 = vpop.f32.mrf.mxu1  ;;  %v10406_v21 = vld [vmem:[%s16094_s5 + $0x1cc] sm:$0xf0] }
 0x4a2   :  { %v14676_v61 = vmax.f32 %v4495_v22, %v4497_v36  ;;  %v4498_v0 = vmax.f32 %v4470_v53, %v4472_v35  ;;  %v4399_v51 = vadd.f32 %v4374_v44, %v14135_v17  ;;  %v4318_v55 = vadd.f32 %v4317_v9, %v4288_v56  ;;  %v4291_v63 = vpop.f32.mrf.mxu0  ;;  %v9182_v36 = vld [vmem:[%s16094_s5 + $0x1e0] sm:$0xf]  ;;  %v10410_v35 = vld [vmem:[%s16094_s5 + $0x1ec] sm:$0xf0]  ;;  %v9184_v9 = vld [vmem:[%s16094_s5 + $0x1f0] sm:$0xf0] }
 0x4a3   :  { %v4474_v17 = vmax.f32 %v4442_v57, 0.0  ;;  %v4478_v44 = vmax.f32 %v14357_v38, 0.0 }
 0x4a4   :  { %v4441_v26 = vadd.f32 %v14619_v60, %v4399_v51  ;;  %v4402_v45 = vadd.f32 %v4318_v55, %v3751_v62  ;;  %v9039_v51 = vor.u32 %v10374_v4, %v9038_v31  ;;  %v9043_v55 = vor.u32 %v10372_v49, %v9040_v50  ;;  %v16161_v49 = vld [vmem:[#allocation14_spill] sm:$0xff] }
 0x4a5   :  { %v4482_v50 = vmax.f32 %v16161_v49, 0.0 }
 0x4a6   :  { %v4473_v37 = vmax.f32 %v4441_v26, 0.0  ;;  %v4444_v8 = vadd.f32 %v14577_v11, %v4402_v45  ;;  %v16157_v26 = vld [vmem:[#allocation12_spill] sm:$0xff] }
 0x4a7   :  { %v4375_v22 = vpop.f32.mrf.mxu3 }
 0x4a8   :  { %v4499_v46 = vmax.f32 %v4471_v32, %v4473_v37  ;;  %v4476_v1 = vmax.f32 %v4444_v8, 0.0  ;;  %v4376_v20 = vadd.f32 %v4375_v22, %v4346_v59  ;;  %v4349_v2 = vpop.f32.mrf.mxu2  ;;  %v9024_v37 = vld [vmem:[%s16094_s5 + $0xb0] sm:$0xf0]  ;;  %v16158_v8 = vld [vmem:[#allocation11_spill] sm:$0xff] }
 0x4a9   :  { %v4320_v39 = vpop.f32.mrf.mxu1 }
 0x4aa   :  { %v4500_v27 = vmax.f32 %v4474_v17, %v4476_v1  ;;  %v4403_v10 = vadd.f32 %v4376_v20, %v3752_v3  ;;  %v4321_v18 = vadd.f32 %v4320_v39, %v4291_v63  ;;  %v4293_v12 = vpop.f32.mrf.mxu0  ;;  %v16159_v3 = vld [vmem:[#allocation2_spill] sm:$0xff]  ;;  %v9187_v1 = vor.u32 %v10408_v33, %v9184_v9 }
 0x4ab   :  { %v3730_v22 = vadd.f32 %v16159_v3, %v16158_v8  ;;  %v9166_v20 = vld [vmem:[%s16094_s5 + $0x1c0] sm:$0xf]  ;;  %v10398_v3 = vld [vmem:[%s16094_s5 + $0x18c] sm:$0xf0] }
 0x4ac   :  { %v4512_v56 = vmax.f32 %v4498_v0, %v4500_v27  ;;  %v4445_v13 = vadd.f32 %v14619_v60, %v4403_v10  ;;  %v4406_v47 = vadd.f32 %v4321_v18, %v14144_v52  ;;  %v3759_v0 = vadd.f32 %v3672_v7, %v13826_v14  ;;  %v10368_v14 = vld [vmem:[%s16094_s5 + $0xa4] sm:$0xf]  ;;  %v9168_v10 = vld [vmem:[%s16094_s5 + $0x1d0] sm:$0xf0]  ;;  %v8990_v9 = vld [vmem:[%s16094_s5 + $0x60] sm:$0xf] }
 0x4ad   :  { %v10404_v27 = vld [vmem:[%s16094_s5 + $0x1c4] sm:$0xf]  ;;  %v9023_v18 = vor.u32 %v10370_v6, %v9022_v5  ;;  %v9027_v40 = vor.u32 %v10368_v14, %v9024_v37  ;;  %v9167_v4 = vor.u32 %v10406_v21, %v9166_v20  ;;  %v16162_v37 = vld [vmem:[#allocation3_spill] sm:$0xff]  ;;  %v8974_v21 = vld [vmem:[%s16094_s5 + $0x40] sm:$0xf] }
 0x4ae   :  { %v14709_v53 = vpack.c.bf16 %v4512_v56, %v4512_v56  ;;  %v4477_v34 = vmax.f32 %v4445_v13, 0.0  ;;  %v4448_v52 = vadd.f32 %v14577_v11, %v4406_v47  ;;  %v4479_v56 = vmax.f32 %v14406_v23, 0.0  ;;  %v10364_v7 = vld [vmem:[%s16094_s5 + $0x84] sm:$0xf] }
 0x4af   :  { %v4378_v15 = vpop.f32.mrf.mxu3  ;;  %v10360_v5 = vld [vmem:[%s16094_s5 + $0x64] sm:$0xf] }
 0x4b0   :  { %v4501_v59 = vmax.f32 %v4475_v48, %v4477_v34  ;;  %v4480_v62 = vmax.f32 %v4448_v52, 0.0  ;;  %v4379_v29 = vadd.f32 %v4378_v15, %v4349_v2  ;;  %4979 = vmatmul.bf16.vlgmr.msra.gmra.mxu0 %v14709_v53  ;;  %5005 = vmatmul.bf16.vlgmr.msra.gmra.mxu2 %v14709_v53  ;;  %v4351_v17 = vpop.f32.mrf.mxu2  ;;  %v9171_v48 = vor.u32 %v10404_v27, %v9168_v10  ;;  %v9150_v34 = vld [vmem:[%s16094_s5 + $0x1a0] sm:$0xf]  ;;  %v10402_v52 = vld [vmem:[%s16094_s5 + $0x1ac] sm:$0xf0] }
 0x4b1   :  { %5395 = vmatpush.bf16.msra.mxu0 %v9055_v41  ;;  %5421 = vmatpush.bf16.msra.mxu2 %v9059_v28  ;;  %v4322_v38 = vpop.f32.mrf.mxu1  ;;  %v16160_v41 = vld [vmem:[#allocation8_spill] sm:$0xff]  ;;  %v4483_v10 = vmax.f32 %v14477_v24, 0.0  ;;  %v9118_v24 = vld [vmem:[%s16094_s5 + $0x160] sm:$0xf] }
 0x4b2   :  { %v4513_v63 = vmax.f32 %v4499_v46, %v4501_v59  ;;  %v4502_v57 = vmax.f32 %v4478_v44, %v4480_v62  ;;  %v4407_v45 = vadd.f32 %v4379_v29, %v16157_v26  ;;  %v4323_v32 = vadd.f32 %v4322_v38, %v4293_v12  ;;  %v9008_v12 = vld [vmem:[%s16094_s5 + $0x90] sm:$0xf0]  ;;  %v4296_v31 = vpop.f32.mrf.mxu0  ;;  %v10400_v44 = vld [vmem:[%s16094_s5 + $0x1a4] sm:$0xf]  ;;  %v10358_v27 = vld [vmem:[%s16094_s5 + $0x4c] sm:$0xf0] }
 0x4b3   :  { %v9183_v46 = vor.u32 %v10410_v35, %v9182_v36  ;;  %v3760_v28 = vadd.f32 %v3730_v22, %v16160_v41  ;;  %v9152_v59 = vld [vmem:[%s16094_s5 + $0x1b0] sm:$0xf0]  ;;  %v9007_v29 = vor.u32 %v10366_v58, %v9006_v43  ;;  %v9011_v33 = vor.u32 %v10364_v7, %v9008_v12  ;;  %v10396_v22 = vld [vmem:[%s16094_s5 + $0x184] sm:$0xf]  ;;  %v10394_v7 = vld [vmem:[%s16094_s5 + $0x16c] sm:$0xf0] }
 0x4b4   :  { %v14752_v39 = vpack.c.bf16 %v4513_v63, %v4513_v63  ;;  %v4449_v2 = vadd.f32 %v14619_v60, %v4407_v45  ;;  %v4410_v54 = vadd.f32 %v4323_v32, %v3759_v0  ;;  %v8992_v63 = vld [vmem:[%s16094_s5 + $0x70] sm:$0xf0]  ;;  %v9151_v26 = vor.u32 %v10402_v52, %v9150_v34  ;;  %v9134_v32 = vld [vmem:[%s16094_s5 + $0x180] sm:$0xf]  ;;  %v10356_v43 = vld [vmem:[%s16094_s5 + $0x44] sm:$0xf] }
 0x4b5   :  { %5396 = vmatpush.bf16.msra.mxu0 %v9039_v51  ;;  %5422 = vmatpush.bf16.msra.mxu2 %v9043_v55  ;;  %v10362_v55 = vld [vmem:[%s16094_s5 + $0x6c] sm:$0xf0]  ;;  %v9155_v45 = vor.u32 %v10400_v44, %v9152_v59  ;;  %v8976_v58 = vld [vmem:[%s16094_s5 + $0x50] sm:$0xf0]  ;;  %v4486_v12 = vmax.f32 %v14493_v19, 0.0  ;;  %v8975_v49 = vor.u32 %v10358_v27, %v8974_v21  ;;  %v16166_v44 = vld [vmem:[#allocation7_spill] sm:$0xff] }
 0x4b6   :  { %v4481_v13 = vmax.f32 %v4449_v2, 0.0  ;;  %v4452_v47 = vadd.f32 %v14577_v11, %v4410_v54  ;;  %4992 = vmatmul.bf16.vlgmr.msra.gmra.mxu1 %v14752_v39  ;;  %5018 = vmatmul.bf16.vlgmr.msra.gmra.mxu3 %v14752_v39  ;;  %v8991_v2 = vor.u32 %v10362_v55, %v8990_v9  ;;  %v8995_v54 = vor.u32 %v10360_v5, %v8992_v63  ;;  %v8960_v9 = vld [vmem:[%s16094_s5 + $0x30] sm:$0xf0]  ;;  %v9102_v5 = vld [vmem:[%s16094_s5 + $0x140] sm:$0xf] }
 0x4b7   :  { %5408 = vmatpush.bf16.msra.mxu1 %v9183_v46  ;;  %5434 = vmatpush.bf16.msra.mxu3 %v9187_v1  ;;  %v4380_v23 = vpop.f32.mrf.mxu3  ;;  %v16163_v46 = vld [vmem:[#allocation4_spill] sm:$0xff]  ;;  %v16164_v1 = vld [vmem:[#allocation6_spill] sm:$0xff]  ;;  %v10377_v21 = vld [vmem:[%s16094_s5 + $0xec] sm:$0xf] }
 0x4b8   :  { %v14788_v15 = vmax.f32 %v4479_v56, %v4481_v13  ;;  %v4484_v36 = vmax.f32 %v4452_v47, 0.0  ;;  %v4381_v35 = vadd.f32 %v4380_v23, %v4351_v17  ;;  %v9136_v17 = vld [vmem:[%s16094_s5 + $0x190] sm:$0xf0]  ;;  %v4354_v20 = vpop.f32.mrf.mxu2  ;;  %v9135_v13 = vor.u32 %v10398_v3, %v9134_v32  ;;  %v10392_v23 = vld [vmem:[%s16094_s5 + $0x164] sm:$0xf] }
 0x4b9   :  { %5397 = vmatpush.bf16.msra.mxu0 %v9023_v18  ;;  %5423 = vmatpush.bf16.msra.mxu2 %v9027_v40  ;;  %v4325_v62 = vpop.f32.mrf.mxu1  ;;  %v9139_v47 = vor.u32 %v10396_v22, %v9136_v17  ;;  %v10390_v63 = vld [vmem:[%s16094_s5 + $0x14c] sm:$0xf0]  ;;  %v10348_v17 = vld [vmem:[%s16094_s5 + $0x4] sm:$0xf] }
 0x4ba   :  { %v4504_v0 = vmax.f32 %v4482_v50, %v4484_v36  ;;  %v4411_v38 = vadd.f32 %v4381_v35, %v3760_v28  ;;  %v4326_v51 = vadd.f32 %v4325_v62, %v4296_v31  ;;  %v4298_v52 = vpop.f32.mrf.mxu0  ;;  %v8979_v50 = vor.u32 %v10356_v43, %v8976_v58  ;;  %v16169_v27 = vld [vmem:[#allocation10_spill] sm:$0xff]  ;;  %v10386_v58 = vld [vmem:[%s16094_s5 + $0x12c] sm:$0xf0] }
 0x4bb   :  { %5409 = vmatpush.bf16.msra.mxu1 %v9167_v4  ;;  %5435 = vmatpush.bf16.msra.mxu3 %v9171_v48  ;;  %v9120_v4 = vld [vmem:[%s16094_s5 + $0x170] sm:$0xf0]  ;;  %v16165_v48 = vld [vmem:[#allocation9_spill] sm:$0xff]  ;;  %v9086_v43 = vld [vmem:[%s16094_s5 + $0x120] sm:$0xf] }
 0x4bc   :  { %v14811_v6 = vmax.f32 %v4502_v57, %v4504_v0  ;;  %v4453_v14 = vadd.f32 %v14619_v60, %v4411_v38  ;;  %v4414_v8 = vadd.f32 %v4326_v51, %v16162_v37  ;;  %v3677_v57 = vadd.f32 %v16164_v1, %v16163_v46  ;;  %v16167_v0 = vld [vmem:[#allocation5_spill] sm:$0xff]  ;;  %v8942_v37 = vld [vmem:[%s16094_s5] sm:$0xf]  ;;  %v8944_v46 = vld [vmem:[%s16094_s5 + $0x10] sm:$0xf0] }
 0x4bd   :  { %5398 = vmatpush.bf16.msra.mxu0 %v9007_v29  ;;  %5424 = vmatpush.bf16.msra.mxu2 %v9011_v33  ;;  %v10354_v29 = vld [vmem:[%s16094_s5 + $0x2c] sm:$0xf0]  ;;  %v10352_v33 = vld [vmem:[%s16094_s5 + $0x24] sm:$0xf]  ;;  %v9119_v51 = vor.u32 %v10394_v7, %v9118_v24  ;;  %v9123_v55 = vor.u32 %v10392_v23, %v9120_v4  ;;  %v9062_v1 = vld [vmem:[%s16094_s5 + $0xe8] sm:$0xf] }
 0x4be   :  { %v4485_v18 = vmax.f32 %v4453_v14, 0.0  ;;  %v4456_v40 = vadd.f32 %v14577_v11, %v4414_v8  ;;  %v3767_v34 = vadd.f32 %v3677_v57, %v16165_v48  ;;  %v9104_v14 = vld [vmem:[%s16094_s5 + $0x150] sm:$0xf0]  ;;  %v10350_v8 = vld [vmem:[%s16094_s5 + $0xc] sm:$0xf0]  ;;  %v8963_v22 = vor.u32 %v10352_v33, %v8960_v9 }
 0x4bf   :  { %5410 = vmatpush.bf16.msra.mxu1 %v9151_v26  ;;  %5436 = vmatpush.bf16.msra.mxu3 %v9155_v45  ;;  %v4383_v56 = vpop.f32.mrf.mxu3  ;;  %v10388_v26 = vld [vmem:[%s16094_s5 + $0x144] sm:$0xf]  ;;  %v4487_v57 = vmax.f32 %v14533_v42, 0.0  ;;  %v9072_v33 = vld [vmem:[%s16094_s5 + $0x110] sm:$0xf0] }
 0x4c0   :  { %v4505_v41 = vmax.f32 %v4483_v10, %v4485_v18  ;;  %v4488_v28 = vmax.f32 %v4456_v40, 0.0  ;;  %v4384_v31 = vadd.f32 %v4383_v56, %v4354_v20  ;;  %5031 = vmatmul.bf16.vlgmr.msrb.gmra.mxu0 %v14709_v53  ;;  %5057 = vmatmul.bf16.vlgmr.msrb.gmra.mxu2 %v14709_v53  ;;  %v8958_v53 = vld [vmem:[%s16094_s5 + $0x20] sm:$0xf]  ;;  %v4356_v18 = vpop.f32.mrf.mxu2  ;;  %v9103_v40 = vor.u32 %v10390_v63, %v9102_v5  ;;  %v10384_v7 = vld [vmem:[%s16094_s5 + $0x124] sm:$0xf] }
 0x4c1   :  { %5399 = vmatpush.bf16.msra.mxu0 %v8991_v2  ;;  %5425 = vmatpush.bf16.msra.mxu2 %v8995_v54  ;;  %v4327_v19 = vpop.f32.mrf.mxu1  ;;  %v8959_v3 = vor.u32 %v10354_v29, %v8958_v53  ;;  %v10379_v54 = vld [vmem:[%s16094_s5 + $0xf4] sm:$0xf0]  ;;  %v4490_v56 = vmax.f32 %v14549_v16, 0.0  ;;  %v9070_v53 = vld [vmem:[%s16094_s5 + $0x100] sm:$0xf] }
 0x4c2   :  { %v14860_v36 = vmax.f32 %v14788_v15, %v4505_v41  ;;  %v14862_v35 = vmax.f32 %v4486_v12, %v4488_v28  ;;  %v4415_v59 = vadd.f32 %v4384_v31, %v16166_v44  ;;  %v4328_v62 = vadd.f32 %v4327_v19, %v4298_v52  ;;  %v16168_v15 = vld [vmem:[#allocation13_spill] sm:$0xff]  ;;  %v9088_v12 = vld [vmem:[%s16094_s5 + $0x130] sm:$0xf0]  ;;  %v10382_v44 = vld [vmem:[%s16094_s5 + $0x10c] sm:$0xf0] }
 0x4c3   :  { %v3735_v38 = vadd.f32 %v16168_v15, %v16167_v0  ;;  %5411 = vmatpush.bf16.msra.mxu1 %v9135_v13  ;;  %5437 = vmatpush.bf16.msra.mxu3 %v9139_v47  ;;  %v4491_v41 = vmax.f32 %v14596_v25, 0.0  ;;  %v8943_v28 = vor.u32 %v10350_v8, %v8942_v37  ;;  %v8947_v31 = vor.u32 %v10348_v17, %v8944_v46  ;;  %v10375_v52 = vld [vmem:[%s16094_s5 + $0xd4] sm:$0xf0]  ;;  %v10373_v25 = vld [vmem:[%s16094_s5 + $0xcc] sm:$0xf] }
 0x4c4   :  { %v4457_v45 = vadd.f32 %v14619_v60, %v4415_v59  ;;  %v4418_v32 = vadd.f32 %v4328_v62, %v3767_v34  ;;  %v9063_v16 = vor.u32 %v10379_v54, %v9062_v1  ;;  %v9046_v34 = vld [vmem:[%s16094_s5 + $0xc8] sm:$0xf]  ;;  %v9087_v19 = vor.u32 %v10386_v58, %v9086_v43  ;;  %v10380_v29 = vld [vmem:[%s16094_s5 + $0x104] sm:$0xf]  ;;  %v9192_v0 = vld [vmem:[%s16094_s5 + $0x1f8] sm:$0xf0] }
 0x4c5   :  { %5400 = vmatpush.bf16.msra.mxu0 %v8975_v49  ;;  %5426 = vmatpush.bf16.msra.mxu2 %v8979_v50  ;;  %v3768_v10 = vadd.f32 %v3735_v38, %v16169_v27  ;;  %v9091_v49 = vor.u32 %v10384_v7, %v9088_v12  ;;  %v9048_v50 = vld [vmem:[%s16094_s5 + $0xd8] sm:$0xf0]  ;;  %v9190_v9 = vld [vmem:[%s16094_s5 + $0x1e8] sm:$0xf]  ;;  %v14974_v15 = vpack.c.bf16 %v14663_v30, %v14663_v30  ;;  %v10369_v30 = vld [vmem:[%s16094_s5 + $0xac] sm:$0xf] }
 0x4c6   :  { %v4489_v20 = vmax.f32 %v4457_v45, 0.0  ;;  %v4460_v2 = vadd.f32 %v14577_v11, %v4418_v32  ;;  %5044 = vmatmul.bf16.vlgmr.msrb.gmra.mxu1 %v14752_v39  ;;  %5070 = vmatmul.bf16.vlgmr.msrb.gmra.mxu3 %v14752_v39  ;;  %v9107_v11 = vor.u32 %v10388_v26, %v9104_v14  ;;  %v9064_v39 = vld [vmem:[%s16094_s5 + $0xf8] sm:$0xf0]  ;;  %v9030_v5 = vld [vmem:[%s16094_s5 + $0xa8] sm:$0xf]  ;;  %v9071_v63 = vor.u32 %v10382_v44, %v9070_v53 }
 0x4c7   :  { %5412 = vmatpush.bf16.msra.mxu1 %v9119_v51  ;;  %5438 = vmatpush.bf16.msra.mxu3 %v9123_v55  ;;  %v4385_v42 = vpop.f32.mrf.mxu3  ;;  %v9067_v48 = vor.u32 %v10377_v21, %v9064_v39  ;;  %v9047_v51 = vor.u32 %v10375_v52, %v9046_v34  ;;  %v9051_v55 = vor.u32 %v10373_v25, %v9048_v50  ;;  %v10371_v45 = vld [vmem:[%s16094_s5 + $0xb4] sm:$0xf0]  ;;  %v9032_v32 = vld [vmem:[%s16094_s5 + $0xb8] sm:$0xf0]  ;;  %v10405_v17 = vld [vmem:[%s16094_s5 + $0x1cc] sm:$0xf] }
 0x4c8   :  { %v4507_v13 = vmax.f32 %v4487_v57, %v4489_v20  ;;  %v4492_v47 = vmax.f32 %v4460_v2, 0.0  ;;  %v4386_v24 = vadd.f32 %v4385_v42, %v4356_v18  ;;  %v9075_v26 = vor.u32 %v10380_v29, %v9072_v33  ;;  %v9176_v46 = vld [vmem:[%s16094_s5 + $0x1d8] sm:$0xf0]  ;;  %v9014_v2 = vld [vmem:[%s16094_s5 + $0x88] sm:$0xf] }
 0x4c9   :  { %5401 = vmatpush.bf16.msra.mxu0 %v8959_v3  ;;  %5427 = vmatpush.bf16.msra.mxu2 %v8963_v22  ;;  %v9174_v3 = vld [vmem:[%s16094_s5 + $0x1c8] sm:$0xf]  ;;  %v10407_v22 = vld [vmem:[%s16094_s5 + $0x1d4] sm:$0xf0]  ;;  %v9031_v57 = vor.u32 %v10371_v45, %v9030_v5  ;;  %v9035_v20 = vor.u32 %v10369_v30, %v9032_v32  ;;  %v10365_v21 = vld [vmem:[%s16094_s5 + $0x8c] sm:$0xf]  ;;  %v9179_v18 = vor.u32 %v10405_v17, %v9176_v46 }
 0x4ca   :  { %v4508_v23 = vmax.f32 %v4490_v56, %v4492_v47  ;;  %v4419_v4 = vadd.f32 %v4386_v24, %v3768_v10  ;;  %v10367_v54 = vld [vmem:[%s16094_s5 + $0x94] sm:$0xf0]  ;;  %v9016_v27 = vld [vmem:[%s16094_s5 + $0x98] sm:$0xf0]  ;;  %v9175_v10 = vor.u32 %v10407_v22, %v9174_v3  ;;  %v9158_v42 = vld [vmem:[%s16094_s5 + $0x1a8] sm:$0xf] }
 0x4cb   :  { %5413 = vmatpush.bf16.msra.mxu1 %v9103_v40  ;;  %5439 = vmatpush.bf16.msra.mxu3 %v9107_v11  ;;  %v15021_v40 = vpack.c.bf16 %v14676_v61, %v14676_v61  ;;  %v10403_v11 = vld [vmem:[%s16094_s5 + $0x1b4] sm:$0xf0]  ;;  %v10401_v39 = vld [vmem:[%s16094_s5 + $0x1ac] sm:$0xf]  ;;  %v9160_v43 = vld [vmem:[%s16094_s5 + $0x1b8] sm:$0xf0]  ;;  %v9015_v58 = vor.u32 %v10367_v54, %v9014_v2  ;;  %v9019_v56 = vor.u32 %v10365_v21, %v9016_v27 }
 0x4cc   :  { %v14951_v59 = vmax.f32 %v14862_v35, %v4508_v23  ;;  %v4461_v62 = vadd.f32 %v14619_v60, %v4419_v4  ;;  %v10411_v35 = vld [vmem:[%s16094_s5 + $0x1f4] sm:$0xf0]  ;;  %v10409_v60 = vld [vmem:[%s16094_s5 + $0x1ec] sm:$0xf]  ;;  %v8998_v61 = vld [vmem:[%s16094_s5 + $0x68] sm:$0xf]  ;;  %v9159_v7 = vor.u32 %v10403_v11, %v9158_v42  ;;  %v9163_v12 = vor.u32 %v10401_v39, %v9160_v43 }
 0x4cd   :  { %5402 = vmatpush.bf16.msra.mxu0 %v8943_v28  ;;  %5428 = vmatpush.bf16.msra.mxu2 %v8947_v31  ;;  %v9191_v37 = vor.u32 %v10411_v35, %v9190_v9  ;;  %v9195_v8 = vor.u32 %v10409_v60, %v9192_v0  ;;  %v10361_v47 = vld [vmem:[%s16094_s5 + $0x6c] sm:$0xf]  ;;  %v9000_v24 = vld [vmem:[%s16094_s5 + $0x78] sm:$0xf0]  ;;  %v10399_v28 = vld [vmem:[%s16094_s5 + $0x194] sm:$0xf0] }
 0x4ce   :  { %v4493_v38 = vmax.f32 %v4461_v62, 0.0  ;;  %v10397_v31 = vld [vmem:[%s16094_s5 + $0x18c] sm:$0xf]  ;;  %v9144_v23 = vld [vmem:[%s16094_s5 + $0x198] sm:$0xf0] }
 0x4cf   :  { %5414 = vmatpush.bf16.msra.mxu1 %v9087_v19  ;;  %5440 = vmatpush.bf16.msra.mxu3 %v9091_v49  ;;  %v10359_v34 = vld [vmem:[%s16094_s5 + $0x54] sm:$0xf0]  ;;  %v10357_v52 = vld [vmem:[%s16094_s5 + $0x4c] sm:$0xf]  ;;  %v8984_v25 = vld [vmem:[%s16094_s5 + $0x58] sm:$0xf0]  ;;  %v9147_v49 = vor.u32 %v10397_v31, %v9144_v23 }
 0x4d0   :  { %v4509_v14 = vmax.f32 %v4491_v41, %v4493_v38  ;;  %5403 = vmatmul.bf16.vlgmr.msra.gmra.mxu0 %v14974_v15  ;;  %5429 = vmatmul.bf16.vlgmr.msra.gmra.mxu2 %v14974_v15  ;;  %v9142_v41 = vld [vmem:[%s16094_s5 + $0x188] sm:$0xf]  ;;  %v10395_v53 = vld [vmem:[%s16094_s5 + $0x174] sm:$0xf0]  ;;  %v10393_v44 = vld [vmem:[%s16094_s5 + $0x16c] sm:$0xf]  ;;  %v8987_v33 = vor.u32 %v10357_v52, %v8984_v25 }
 0x4d1   :  { %5447 = vmatpush.bf16.msrb.mxu0 %v9063_v16  ;;  %5473 = vmatpush.bf16.msrb.mxu2 %v9067_v48  ;;  %v9003_v16 = vor.u32 %v10361_v47, %v9000_v24  ;;  %v8982_v48 = vld [vmem:[%s16094_s5 + $0x48] sm:$0xf]  ;;  %v9143_v19 = vor.u32 %v10399_v28, %v9142_v41  ;;  %v9128_v62 = vld [vmem:[%s16094_s5 + $0x178] sm:$0xf0]  ;;  %v10355_v35 = vld [vmem:[%s16094_s5 + $0x34] sm:$0xf0] }
 0x4d2   :  { %v15002_v1 = vmax.f32 %v4507_v13, %v4509_v14  ;;  %v10363_v13 = vld [vmem:[%s16094_s5 + $0x74] sm:$0xf0]  ;;  %v9126_v50 = vld [vmem:[%s16094_s5 + $0x168] sm:$0xf]  ;;  %v8983_v29 = vor.u32 %v10359_v34, %v8982_v48  ;;  %v10353_v60 = vld [vmem:[%s16094_s5 + $0x2c] sm:$0xf] }
 0x4d3   :  { %5415 = vmatpush.bf16.msra.mxu1 %v9071_v63  ;;  %5441 = vmatpush.bf16.msra.mxu3 %v9075_v26  ;;  %v8999_v4 = vor.u32 %v10363_v13, %v8998_v61  ;;  %v8966_v9 = vld [vmem:[%s16094_s5 + $0x28] sm:$0xf]  ;;  %v8968_v0 = vld [vmem:[%s16094_s5 + $0x38] sm:$0xf0]  ;;  %v9127_v38 = vor.u32 %v10395_v53, %v9126_v50  ;;  %v10391_v5 = vld [vmem:[%s16094_s5 + $0x154] sm:$0xf0] }
 0x4d4   :  { %v10389_v63 = vld [vmem:[%s16094_s5 + $0x14c] sm:$0xf]  ;;  %v9112_v26 = vld [vmem:[%s16094_s5 + $0x158] sm:$0xf0]  ;;  %v8967_v45 = vor.u32 %v10355_v35, %v8966_v9  ;;  %v8971_v30 = vor.u32 %v10353_v60, %v8968_v0  ;;  %v8950_v32 = vld [vmem:[%s16094_s5 + $0x8] sm:$0xf] }
 0x4d5   :  { %5448 = vmatpush.bf16.msrb.mxu0 %v9047_v51  ;;  %5474 = vmatpush.bf16.msrb.mxu2 %v9051_v55  ;;  %v9131_v51 = vor.u32 %v10393_v44, %v9128_v62  ;;  %v9110_v55 = vld [vmem:[%s16094_s5 + $0x148] sm:$0xf]  ;;  %v10351_v14 = vld [vmem:[%s16094_s5 + $0x14] sm:$0xf0]  ;;  %v9374_v3 = vld [vmem:[%s16094_s5 + $0x4e0] sm:$0xf]  ;;  %v9115_v46 = vor.u32 %v10389_v63, %v9112_v26 }
 0x4d6   :  { %5416 = vmatmul.bf16.vlgmr.msra.gmra.mxu1 %v15021_v40  ;;  %5442 = vmatmul.bf16.vlgmr.msra.gmra.mxu3 %v15021_v40  ;;  %v10506_v22 = vld [vmem:[%s16094_s5 + $0x4ec] sm:$0xf0]  ;;  %v9111_v17 = vor.u32 %v10391_v5, %v9110_v55  ;;  %v9094_v2 = vld [vmem:[%s16094_s5 + $0x128] sm:$0xf]  ;;  %v10387_v54 = vld [vmem:[%s16094_s5 + $0x134] sm:$0xf0] }
 0x4d7   :  { %5460 = vmatpush.bf16.msrb.mxu1 %v9191_v37  ;;  %5486 = vmatpush.bf16.msrb.mxu3 %v9195_v8  ;;  %v10349_v37 = vld [vmem:[%s16094_s5 + $0xc] sm:$0xf]  ;;  %v8952_v8 = vld [vmem:[%s16094_s5 + $0x18] sm:$0xf0]  ;;  %v9375_v42 = vor.u32 %v10506_v22, %v9374_v3  ;;  %v9358_v39 = vld [vmem:[%s16094_s5 + $0x4c0] sm:$0xf] }
 0x4d8   :  { %v10385_v21 = vld [vmem:[%s16094_s5 + $0x12c] sm:$0xf]  ;;  %v9096_v27 = vld [vmem:[%s16094_s5 + $0x138] sm:$0xf0]  ;;  %v10502_v43 = vld [vmem:[%s16094_s5 + $0x4cc] sm:$0xf0] }
 0x4d9   :  { %5449 = vmatpush.bf16.msrb.mxu0 %v9031_v57  ;;  %5475 = vmatpush.bf16.msrb.mxu2 %v9035_v20  ;;  %v10504_v57 = vld [vmem:[%s16094_s5 + $0x4e4] sm:$0xf]  ;;  %v9376_v20 = vld [vmem:[%s16094_s5 + $0x4f0] sm:$0xf0]  ;;  %v9099_v61 = vor.u32 %v10385_v21, %v9096_v27  ;;  %v9078_v47 = vld [vmem:[%s16094_s5 + $0x108] sm:$0xf] }
 0x4da   :  { %v9379_v11 = vor.u32 %v10504_v57, %v9376_v20  ;;  %v9360_v13 = vld [vmem:[%s16094_s5 + $0x4d0] sm:$0xf0]  ;;  %v10383_v24 = vld [vmem:[%s16094_s5 + $0x114] sm:$0xf0]  ;;  %v9502_v41 = vld [vmem:[%s16094_s5 + $0x5e0] sm:$0xf] }
 0x4db   :  { %5461 = vmatpush.bf16.msrb.mxu1 %v9175_v10  ;;  %5487 = vmatpush.bf16.msrb.mxu3 %v9179_v18  ;;  %v8951_v10 = vor.u32 %v10351_v14, %v8950_v32  ;;  %v8955_v18 = vor.u32 %v10349_v37, %v8952_v8  ;;  %v10538_v28 = vld [vmem:[%s16094_s5 + $0x5ec] sm:$0xf0]  ;;  %v10536_v31 = vld [vmem:[%s16094_s5 + $0x5e4] sm:$0xf]  ;;  %v9504_v23 = vld [vmem:[%s16094_s5 + $0x5f0] sm:$0xf0]  ;;  %v9079_v48 = vor.u32 %v10383_v24, %v9078_v47 }
 0x4dc   :  { %v9342_v52 = vld [vmem:[%s16094_s5 + $0x4a0] sm:$0xf]  ;;  %v10498_v25 = vld [vmem:[%s16094_s5 + $0x4ac] sm:$0xf0]  ;;  %v10496_v50 = vld [vmem:[%s16094_s5 + $0x4a4] sm:$0xf] }
 0x4dd   :  { %5450 = vmatpush.bf16.msrb.mxu0 %v9015_v58  ;;  %5476 = vmatpush.bf16.msrb.mxu2 %v9019_v56  ;;  %v10500_v58 = vld [vmem:[%s16094_s5 + $0x4c4] sm:$0xf]  ;;  %v9095_v56 = vor.u32 %v10387_v54, %v9094_v2  ;;  %v9344_v53 = vld [vmem:[%s16094_s5 + $0x4b0] sm:$0xf0]  ;;  %v9486_v44 = vld [vmem:[%s16094_s5 + $0x5c0] sm:$0xf] }
 0x4de   :  { %v10534_v62 = vld [vmem:[%s16094_s5 + $0x5cc] sm:$0xf0]  ;;  %v9347_v9 = vor.u32 %v10496_v50, %v9344_v53  ;;  %v9326_v35 = vld [vmem:[%s16094_s5 + $0x480] sm:$0xf]  ;;  %v9328_v55 = vld [vmem:[%s16094_s5 + $0x490] sm:$0xf0] }
 0x4df   :  { %5462 = vmatpush.bf16.msrb.mxu1 %v9159_v7  ;;  %5488 = vmatpush.bf16.msrb.mxu3 %v9163_v12  ;;  %v10381_v7 = vld [vmem:[%s16094_s5 + $0x10c] sm:$0xf]  ;;  %v9080_v12 = vld [vmem:[%s16094_s5 + $0x118] sm:$0xf0]  ;;  %v10494_v60 = vld [vmem:[%s16094_s5 + $0x48c] sm:$0xf0]  ;;  %v9487_v0 = vor.u32 %v10534_v62, %v9486_v44 }
 0x4e0   :  { %v9083_v34 = vor.u32 %v10381_v7, %v9080_v12  ;;  %v9470_v5 = vld [vmem:[%s16094_s5 + $0x5a0] sm:$0xf]  ;;  %v10530_v63 = vld [vmem:[%s16094_s5 + $0x5ac] sm:$0xf0]  ;;  %v10528_v26 = vld [vmem:[%s16094_s5 + $0x5a4] sm:$0xf] }
 0x4e1   :  { %5451 = vmatpush.bf16.msrb.mxu0 %v8999_v4  ;;  %5477 = vmatpush.bf16.msrb.mxu2 %v9003_v16  ;;  %v9359_v4 = vor.u32 %v10502_v43, %v9358_v39  ;;  %v9363_v16 = vor.u32 %v10500_v58, %v9360_v13  ;;  %v9310_v14 = vld [vmem:[%s16094_s5 + $0x460] sm:$0xf]  ;;  %v10490_v37 = vld [vmem:[%s16094_s5 + $0x46c] sm:$0xf0]  ;;  %v9471_v8 = vor.u32 %v10530_v63, %v9470_v5  ;;  %v9312_v22 = vld [vmem:[%s16094_s5 + $0x470] sm:$0xf0] }
 0x4e2   :  { %v10524_v57 = vld [vmem:[%s16094_s5 + $0x584] sm:$0xf]  ;;  %v9456_v20 = vld [vmem:[%s16094_s5 + $0x590] sm:$0xf0]  ;;  %v9311_v2 = vor.u32 %v10490_v37, %v9310_v14  ;;  %v9294_v21 = vld [vmem:[%s16094_s5 + $0x440] sm:$0xf] }
 0x4e3   :  { %5463 = vmatpush.bf16.msrb.mxu1 %v9143_v19  ;;  %5489 = vmatpush.bf16.msrb.mxu3 %v9147_v49  ;;  %v9503_v19 = vor.u32 %v10538_v28, %v9502_v41  ;;  %v9507_v49 = vor.u32 %v10536_v31, %v9504_v23  ;;  %v10486_v27 = vld [vmem:[%s16094_s5 + $0x44c] sm:$0xf0]  ;;  %v9438_v39 = vld [vmem:[%s16094_s5 + $0x560] sm:$0xf]  ;;  %v10520_v58 = vld [vmem:[%s16094_s5 + $0x564] sm:$0xf] }
 0x4e4   :  { %v10522_v43 = vld [vmem:[%s16094_s5 + $0x56c] sm:$0xf0]  ;;  %v9278_v47 = vld [vmem:[%s16094_s5 + $0x420] sm:$0xf]  ;;  %v10480_v41 = vld [vmem:[%s16094_s5 + $0x424] sm:$0xf] }
 0x4e5   :  { %5452 = vmatpush.bf16.msrb.mxu0 %v8983_v29  ;;  %5478 = vmatpush.bf16.msrb.mxu2 %v8987_v33  ;;  %v9488_v29 = vld [vmem:[%s16094_s5 + $0x5d0] sm:$0xf0]  ;;  %v9343_v33 = vor.u32 %v10498_v25, %v9342_v52  ;;  %v10482_v24 = vld [vmem:[%s16094_s5 + $0x42c] sm:$0xf0]  ;;  %v9439_v7 = vor.u32 %v10522_v43, %v9438_v39  ;;  %v9422_v31 = vld [vmem:[%s16094_s5 + $0x540] sm:$0xf] }
 0x4e6   :  { %v9280_v28 = vld [vmem:[%s16094_s5 + $0x430] sm:$0xf0]  ;;  %v10518_v23 = vld [vmem:[%s16094_s5 + $0x54c] sm:$0xf0]  ;;  %v9262_v52 = vld [vmem:[%s16094_s5 + $0x400] sm:$0xf] }
 0x4e7   :  { %5464 = vmatpush.bf16.msrb.mxu1 %v9127_v38  ;;  %5490 = vmatpush.bf16.msrb.mxu3 %v9131_v51  ;;  %v10492_v51 = vld [vmem:[%s16094_s5 + $0x484] sm:$0xf]  ;;  %v10478_v25 = vld [vmem:[%s16094_s5 + $0x40c] sm:$0xf0]  ;;  %v9264_v53 = vld [vmem:[%s16094_s5 + $0x410] sm:$0xf0] }
 0x4e8   :  { %v9331_v32 = vor.u32 %v10492_v51, %v9328_v55  ;;  %v9382_v44 = vld [vmem:[%s16094_s5 + $0x4e8] sm:$0xf]  ;;  %v10507_v62 = vld [vmem:[%s16094_s5 + $0x4f4] sm:$0xf0]  ;;  %v9390_v14 = vld [vmem:[%s16094_s5 + $0x500] sm:$0xf] }
 0x4e9   :  { %5453 = vmatpush.bf16.msrb.mxu0 %v8967_v45  ;;  %5479 = vmatpush.bf16.msrb.mxu2 %v8971_v30  ;;  %v9472_v45 = vld [vmem:[%s16094_s5 + $0x5b0] sm:$0xf0]  ;;  %v9327_v30 = vor.u32 %v10494_v60, %v9326_v35  ;;  %v10512_v35 = vld [vmem:[%s16094_s5 + $0x524] sm:$0xf]  ;;  %v9383_v51 = vor.u32 %v10507_v62, %v9382_v44  ;;  %v9366_v5 = vld [vmem:[%s16094_s5 + $0x4c8] sm:$0xf] }
 0x4ea   :  { %v9475_v3 = vor.u32 %v10528_v26, %v9472_v45  ;;  %v9408_v60 = vld [vmem:[%s16094_s5 + $0x530] sm:$0xf0]  ;;  %v10503_v63 = vld [vmem:[%s16094_s5 + $0x4d4] sm:$0xf0]  ;;  %v10501_v26 = vld [vmem:[%s16094_s5 + $0x4cc] sm:$0xf] }
 0x4eb   :  { %5465 = vmatpush.bf16.msrb.mxu1 %v9111_v17  ;;  %5491 = vmatpush.bf16.msrb.mxu3 %v9115_v46  ;;  %v9454_v17 = vld [vmem:[%s16094_s5 + $0x580] sm:$0xf]  ;;  %v10526_v46 = vld [vmem:[%s16094_s5 + $0x58c] sm:$0xf0]  ;;  %v9494_v39 = vld [vmem:[%s16094_s5 + $0x5c8] sm:$0xf] }
 0x4ec   :  { %v10510_v37 = vld [vmem:[%s16094_s5 + $0x50c] sm:$0xf0]  ;;  %v10535_v43 = vld [vmem:[%s16094_s5 + $0x5d4] sm:$0xf0]  ;;  %v9462_v44 = vld [vmem:[%s16094_s5 + $0x588] sm:$0xf] }
 0x4ed   :  { %5454 = vmatpush.bf16.msrb.mxu0 %v8951_v10  ;;  %5480 = vmatpush.bf16.msrb.mxu2 %v8955_v18  ;;  %v9455_v10 = vor.u32 %v10526_v46, %v9454_v17  ;;  %v9459_v18 = vor.u32 %v10524_v57, %v9456_v20  ;;  %v10537_v17 = vld [vmem:[%s16094_s5 + $0x5ec] sm:$0xf]  ;;  %v9512_v46 = vld [vmem:[%s16094_s5 + $0x5f8] sm:$0xf0]  ;;  %v15376_v57 = vpack.c.bf16 %v14811_v6, %v14811_v6  ;;  %v10527_v62 = vld [vmem:[%s16094_s5 + $0x594] sm:$0xf0] }
 0x4ee   :  { %v9367_v20 = vor.u32 %v10503_v63, %v9366_v5  ;;  %v9446_v5 = vld [vmem:[%s16094_s5 + $0x568] sm:$0xf]  ;;  %v10523_v63 = vld [vmem:[%s16094_s5 + $0x574] sm:$0xf0] }
 0x4ef   :  { %5466 = vmatpush.bf16.msrb.mxu1 %v9095_v56  ;;  %5492 = vmatpush.bf16.msrb.mxu3 %v9099_v61  ;;  %v9440_v56 = vld [vmem:[%s16094_s5 + $0x570] sm:$0xf0]  ;;  %v9295_v61 = vor.u32 %v10486_v27, %v9294_v21  ;;  %v9350_v27 = vld [vmem:[%s16094_s5 + $0x4a8] sm:$0xf] }
 0x4f0   :  { %5455 = vmatmul.bf16.vlgmr.msrb.gmra.mxu0 %v14974_v15  ;;  %5481 = vmatmul.bf16.vlgmr.msrb.gmra.mxu2 %v14974_v15  ;;  %v10532_v15 = vld [vmem:[%s16094_s5 + $0x5c4] sm:$0xf]  ;;  %v9443_v12 = vor.u32 %v10520_v58, %v9440_v56  ;;  %v10533_v58 = vld [vmem:[%s16094_s5 + $0x5cc] sm:$0xf]  ;;  %v9496_v56 = vld [vmem:[%s16094_s5 + $0x5d8] sm:$0xf0] }
 0x4f1   :  { %5886 = vmatpush.bf16.msra.mxu0 %v9375_v42  ;;  %5912 = vmatpush.bf16.msra.mxu2 %v9379_v11  ;;  %v9491_v38 = vor.u32 %v10532_v15, %v9488_v29  ;;  %v10484_v42 = vld [vmem:[%s16094_s5 + $0x444] sm:$0xf]  ;;  %v9296_v11 = vld [vmem:[%s16094_s5 + $0x450] sm:$0xf0]  ;;  %v10505_v15 = vld [vmem:[%s16094_s5 + $0x4ec] sm:$0xf] }
 0x4f2   :  { %v9299_v13 = vor.u32 %v10484_v42, %v9296_v11  ;;  %v9384_v29 = vld [vmem:[%s16094_s5 + $0x4f8] sm:$0xf0]  ;;  %v10497_v42 = vld [vmem:[%s16094_s5 + $0x4ac] sm:$0xf] }
 0x4f3   :  { %5467 = vmatpush.bf16.msrb.mxu1 %v9079_v48  ;;  %5493 = vmatpush.bf16.msrb.mxu3 %v9083_v34  ;;  %v9279_v48 = vor.u32 %v10482_v24, %v9278_v47  ;;  %v9283_v34 = vor.u32 %v10480_v41, %v9280_v28  ;;  %v9387_v55 = vor.u32 %v10505_v15, %v9384_v29  ;;  %v9352_v11 = vld [vmem:[%s16094_s5 + $0x4b8] sm:$0xf0]  ;;  %v9334_v47 = vld [vmem:[%s16094_s5 + $0x488] sm:$0xf]  ;;  %v10495_v24 = vld [vmem:[%s16094_s5 + $0x494] sm:$0xf0] }
 0x4f4   :  { %v9499_v41 = vor.u32 %v10533_v58, %v9496_v56  ;;  %v10493_v28 = vld [vmem:[%s16094_s5 + $0x48c] sm:$0xf]  ;;  %v9464_v29 = vld [vmem:[%s16094_s5 + $0x598] sm:$0xf0]  ;;  %v10568_v58 = vld [vmem:[%s16094_s5 + $0x6e4] sm:$0xf] }
 0x4f5   :  { %5887 = vmatpush.bf16.msra.mxu0 %v9359_v4  ;;  %5913 = vmatpush.bf16.msra.mxu2 %v9363_v16  ;;  %v10516_v4 = vld [vmem:[%s16094_s5 + $0x544] sm:$0xf]  ;;  %v9424_v16 = vld [vmem:[%s16094_s5 + $0x550] sm:$0xf0]  ;;  %v10525_v15 = vld [vmem:[%s16094_s5 + $0x58c] sm:$0xf] }
 0x4f6   :  { %5468 = vmatmul.bf16.vlgmr.msrb.gmra.mxu1 %v15021_v40  ;;  %5494 = vmatmul.bf16.vlgmr.msrb.gmra.mxu3 %v15021_v40  ;;  %v10488_v40 = vld [vmem:[%s16094_s5 + $0x464] sm:$0xf]  ;;  %v9427_v50 = vor.u32 %v10516_v4, %v9424_v16  ;;  %v10529_v4 = vld [vmem:[%s16094_s5 + $0x5ac] sm:$0xf]  ;;  %v9480_v16 = vld [vmem:[%s16094_s5 + $0x5b8] sm:$0xf0] }
 0x4f7   :  { %5899 = vmatpush.bf16.msra.mxu1 %v9503_v19  ;;  %5925 = vmatpush.bf16.msra.mxu3 %v9507_v49  ;;  %v9315_v54 = vor.u32 %v10488_v40, %v9312_v22  ;;  %v10476_v19 = vld [vmem:[%s16094_s5 + $0x404] sm:$0xf]  ;;  %v9423_v49 = vor.u32 %v10518_v23, %v9422_v31  ;;  %v9510_v40 = vld [vmem:[%s16094_s5 + $0x5e8] sm:$0xf]  ;;  %v10539_v22 = vld [vmem:[%s16094_s5 + $0x5f4] sm:$0xf0] }
 0x4f8   :  { %v9511_v6 = vor.u32 %v10539_v22, %v9510_v40  ;;  %v9336_v31 = vld [vmem:[%s16094_s5 + $0x498] sm:$0xf0]  ;;  %v9478_v23 = vld [vmem:[%s16094_s5 + $0x5a8] sm:$0xf]  ;;  %v10481_v40 = vld [vmem:[%s16094_s5 + $0x42c] sm:$0xf] }
 0x4f9   :  { %5888 = vmatpush.bf16.msra.mxu0 %v9343_v33  ;;  %5914 = vmatpush.bf16.msra.mxu2 %v9347_v9  ;;  %v9406_v33 = vld [vmem:[%s16094_s5 + $0x520] sm:$0xf]  ;;  %v10514_v9 = vld [vmem:[%s16094_s5 + $0x52c] sm:$0xf0]  ;;  %v9288_v22 = vld [vmem:[%s16094_s5 + $0x438] sm:$0xf0] }
 0x4fa   :  { %v9407_v45 = vor.u32 %v10514_v9, %v9406_v33  ;;  %v9696_v56 = vld [vmem:[%s16094_s5 + $0x6f0] sm:$0xf0] }
 0x4fb   :  { %5900 = vmatpush.bf16.msra.mxu1 %v9487_v0  ;;  %5926 = vmatpush.bf16.msra.mxu3 %v9491_v38  ;;  %v9263_v0 = vor.u32 %v10478_v25, %v9262_v52  ;;  %v9267_v38 = vor.u32 %v10476_v19, %v9264_v53  ;;  %v9318_v52 = vld [vmem:[%s16094_s5 + $0x468] sm:$0xf]  ;;  %v10491_v25 = vld [vmem:[%s16094_s5 + $0x474] sm:$0xf0]  ;;  %v9320_v53 = vld [vmem:[%s16094_s5 + $0x478] sm:$0xf0] }
 0x4fc   :  { %v9319_v33 = vor.u32 %v10491_v25, %v9318_v52  ;;  %v9398_v52 = vld [vmem:[%s16094_s5 + $0x508] sm:$0xf]  ;;  %v10511_v25 = vld [vmem:[%s16094_s5 + $0x514] sm:$0xf0] }
 0x4fd   :  { %5889 = vmatpush.bf16.msra.mxu0 %v9327_v30  ;;  %5915 = vmatpush.bf16.msra.mxu2 %v9331_v32  ;;  %v9411_v30 = vor.u32 %v10512_v35, %v9408_v60  ;;  %v9368_v32 = vld [vmem:[%s16094_s5 + $0x4d8] sm:$0xf0]  ;;  %v9302_v35 = vld [vmem:[%s16094_s5 + $0x448] sm:$0xf]  ;;  %v10487_v60 = vld [vmem:[%s16094_s5 + $0x454] sm:$0xf0] }
 0x4ff   :  { %5901 = vmatpush.bf16.msra.mxu1 %v9471_v8  ;;  %5927 = vmatpush.bf16.msra.mxu3 %v9475_v3  ;;  %v10508_v8 = vld [vmem:[%s16094_s5 + $0x504] sm:$0xf]  ;;  %v9392_v3 = vld [vmem:[%s16094_s5 + $0x510] sm:$0xf0] }
 0x500   :  { %v9395_v21 = vor.u32 %v10508_v8, %v9392_v3  ;;  %v9447_v8 = vor.u32 %v10523_v63, %v9446_v5  ;;  %v9806_v5 = vld [vmem:[%s16094_s5 + $0x7c0] sm:$0xf]  ;;  %v10598_v63 = vld [vmem:[%s16094_s5 + $0x7cc] sm:$0xf0] }
 0x501   :  { %5890 = vmatpush.bf16.msra.mxu0 %v9311_v2  ;;  %5916 = vmatpush.bf16.msra.mxu2 %v9315_v54  ;;  %v9371_v2 = vor.u32 %v10501_v26, %v9368_v32  ;;  %v9391_v54 = vor.u32 %v10510_v37, %v9390_v14  ;;  %v10521_v26 = vld [vmem:[%s16094_s5 + $0x56c] sm:$0xf]  ;;  %v9286_v14 = vld [vmem:[%s16094_s5 + $0x428] sm:$0xf]  ;;  %v10483_v37 = vld [vmem:[%s16094_s5 + $0x434] sm:$0xf0] }
 0x503   :  { %5902 = vmatpush.bf16.msra.mxu1 %v9455_v10  ;;  %5928 = vmatpush.bf16.msra.mxu3 %v9459_v18  ;;  %v10499_v10 = vld [vmem:[%s16094_s5 + $0x4b4] sm:$0xf0]  ;;  %v9515_v18 = vor.u32 %v10537_v17, %v9512_v46  ;;  %v9430_v17 = vld [vmem:[%s16094_s5 + $0x548] sm:$0xf] }
 0x504   :  { %v10519_v46 = vld [vmem:[%s16094_s5 + $0x554] sm:$0xf0] }
 0x505   :  { %5891 = vmatpush.bf16.msra.mxu0 %v9295_v61  ;;  %5917 = vmatpush.bf16.msra.mxu2 %v9299_v13  ;;  %v9351_v61 = vor.u32 %v10499_v10, %v9350_v27  ;;  %v9355_v13 = vor.u32 %v10497_v42, %v9352_v11  ;;  %v9270_v27 = vld [vmem:[%s16094_s5 + $0x408] sm:$0xf]  ;;  %v10479_v10 = vld [vmem:[%s16094_s5 + $0x414] sm:$0xf0]  ;;  %v9272_v11 = vld [vmem:[%s16094_s5 + $0x418] sm:$0xf0] }
 0x507   :  { %5903 = vmatpush.bf16.msra.mxu1 %v9439_v7  ;;  %5929 = vmatpush.bf16.msra.mxu3 %v9443_v12  ;;  %v15412_v7 = vpack.c.bf16 %v14860_v36, %v14860_v36  ;;  %v9495_v12 = vor.u32 %v10535_v43, %v9494_v39  ;;  %v10531_v36 = vld [vmem:[%s16094_s5 + $0x5b4] sm:$0xf0]  ;;  %v9694_v39 = vld [vmem:[%s16094_s5 + $0x6e0] sm:$0xf]  ;;  %v10570_v43 = vld [vmem:[%s16094_s5 + $0x6ec] sm:$0xf0] }
 0x508   :  { %v9479_v19 = vor.u32 %v10531_v36, %v9478_v23  ;;  %v9678_v23 = vld [vmem:[%s16094_s5 + $0x6c0] sm:$0xf]  ;;  %v10566_v36 = vld [vmem:[%s16094_s5 + $0x6cc] sm:$0xf0] }
 0x509   :  { %5892 = vmatpush.bf16.msra.mxu0 %v9279_v48  ;;  %5918 = vmatpush.bf16.msra.mxu2 %v9283_v34  ;;  %v9335_v48 = vor.u32 %v10495_v24, %v9334_v47  ;;  %v9339_v34 = vor.u32 %v10493_v28, %v9336_v31  ;;  %v10513_v47 = vld [vmem:[%s16094_s5 + $0x52c] sm:$0xf]  ;;  %v9416_v24 = vld [vmem:[%s16094_s5 + $0x538] sm:$0xf0]  ;;  %v9695_v28 = vor.u32 %v10570_v43, %v9694_v39  ;;  %v10590_v39 = vld [vmem:[%s16094_s5 + $0x78c] sm:$0xf0] }
 0x50a   :  { %v9699_v31 = vor.u32 %v10568_v58, %v9696_v56  ;;  %v10588_v43 = vld [vmem:[%s16094_s5 + $0x784] sm:$0xf]  ;;  %v9776_v58 = vld [vmem:[%s16094_s5 + $0x790] sm:$0xf0] }
 0x50b   :  { %5904 = vmatpush.bf16.msra.mxu1 %v9423_v49  ;;  %5930 = vmatpush.bf16.msra.mxu3 %v9427_v50  ;;  %v9483_v49 = vor.u32 %v10529_v4, %v9480_v16  ;;  %v10489_v50 = vld [vmem:[%s16094_s5 + $0x46c] sm:$0xf]  ;;  %v10564_v4 = vld [vmem:[%s16094_s5 + $0x6c4] sm:$0xf] }
 0x50c   :  { %v9323_v9 = vor.u32 %v10489_v50, %v9320_v53  ;;  %v9822_v50 = vld [vmem:[%s16094_s5 + $0x7e0] sm:$0xf]  ;;  %v10602_v53 = vld [vmem:[%s16094_s5 + $0x7ec] sm:$0xf0] }
 0x50d   :  { %5893 = vmatpush.bf16.msra.mxu0 %v9263_v0  ;;  %5919 = vmatpush.bf16.msra.mxu2 %v9267_v38  ;;  %v9463_v0 = vor.u32 %v10527_v62, %v9462_v44  ;;  %v9467_v38 = vor.u32 %v10525_v15, %v9464_v29  ;;  %v10600_v44 = vld [vmem:[%s16094_s5 + $0x7e4] sm:$0xf]  ;;  %v9824_v62 = vld [vmem:[%s16094_s5 + $0x7f0] sm:$0xf0]  ;;  %v9679_v15 = vor.u32 %v10566_v36, %v9678_v23 }
 0x50e   :  { %v9779_v23 = vor.u32 %v10588_v43, %v9776_v58  ;;  %v10548_v36 = vld [vmem:[%s16094_s5 + $0x644] sm:$0xf]  ;;  %v9710_v43 = vld [vmem:[%s16094_s5 + $0x700] sm:$0xf]  ;;  %v10574_v58 = vld [vmem:[%s16094_s5 + $0x70c] sm:$0xf0] }
 0x50f   :  { %5905 = vmatpush.bf16.msra.mxu1 %v9407_v45  ;;  %5931 = vmatpush.bf16.msra.mxu3 %v9411_v30  ;;  %v9448_v45 = vld [vmem:[%s16094_s5 + $0x578] sm:$0xf0]  ;;  %v9303_v30 = vor.u32 %v10487_v60, %v9302_v35  ;;  %v9662_v35 = vld [vmem:[%s16094_s5 + $0x6a0] sm:$0xf]  ;;  %v10562_v60 = vld [vmem:[%s16094_s5 + $0x6ac] sm:$0xf0] }
 0x510   :  { %5894 = vmatmul.bf16.vlgmr.msra.gmra.mxu0 %v15376_v57  ;;  %5920 = vmatmul.bf16.vlgmr.msra.gmra.mxu2 %v15376_v57  ;;  %v9451_v3 = vor.u32 %v10521_v26, %v9448_v45  ;;  %v9808_v26 = vld [vmem:[%s16094_s5 + $0x7d0] sm:$0xf0]  ;;  %v9663_v45 = vor.u32 %v10562_v60, %v9662_v35  ;;  %v10582_v35 = vld [vmem:[%s16094_s5 + $0x74c] sm:$0xf0]  ;;  %v10580_v60 = vld [vmem:[%s16094_s5 + $0x744] sm:$0xf] }
 0x511   :  { %5938 = vmatpush.bf16.msrb.mxu0 %v9383_v51  ;;  %5964 = vmatpush.bf16.msrb.mxu2 %v9387_v55  ;;  %v10485_v51 = vld [vmem:[%s16094_s5 + $0x44c] sm:$0xf]  ;;  %v9304_v55 = vld [vmem:[%s16094_s5 + $0x458] sm:$0xf0] }
 0x512   :  { %v9307_v32 = vor.u32 %v10485_v51, %v9304_v55  ;;  %v10560_v51 = vld [vmem:[%s16094_s5 + $0x6a4] sm:$0xf]  ;;  %v9664_v55 = vld [vmem:[%s16094_s5 + $0x6b0] sm:$0xf0] }
 0x513   :  { %5906 = vmatpush.bf16.msra.mxu1 %v9391_v54  ;;  %5932 = vmatpush.bf16.msra.mxu3 %v9395_v21  ;;  %v9287_v54 = vor.u32 %v10483_v37, %v9286_v14  ;;  %v9291_v21 = vor.u32 %v10481_v40, %v9288_v22  ;;  %v10558_v14 = vld [vmem:[%s16094_s5 + $0x68c] sm:$0xf0]  ;;  %v10556_v40 = vld [vmem:[%s16094_s5 + $0x684] sm:$0xf]  ;;  %v9648_v22 = vld [vmem:[%s16094_s5 + $0x690] sm:$0xf0] }
 0x515   :  { %5939 = vmatpush.bf16.msrb.mxu0 %v9367_v20  ;;  %5965 = vmatpush.bf16.msrb.mxu2 %v9371_v2  ;;  %v10517_v20 = vld [vmem:[%s16094_s5 + $0x54c] sm:$0xf]  ;;  %v9432_v2 = vld [vmem:[%s16094_s5 + $0x558] sm:$0xf0] }
 0x516   :  { %5907 = vmatmul.bf16.vlgmr.msra.gmra.mxu1 %v15412_v7  ;;  %5933 = vmatmul.bf16.vlgmr.msra.gmra.mxu3 %v15412_v7  ;;  %v9435_v42 = vor.u32 %v10517_v20, %v9432_v2  ;;  %v10592_v20 = vld [vmem:[%s16094_s5 + $0x7a4] sm:$0xf]  ;;  %v9792_v2 = vld [vmem:[%s16094_s5 + $0x7b0] sm:$0xf0] }
 0x517   :  { %5951 = vmatpush.bf16.msrb.mxu1 %v9511_v6  ;;  %5977 = vmatpush.bf16.msrb.mxu3 %v9515_v18  ;;  %v10477_v6 = vld [vmem:[%s16094_s5 + $0x40c] sm:$0xf]  ;;  %v9431_v18 = vor.u32 %v10519_v46, %v9430_v17  ;;  %v9790_v17 = vld [vmem:[%s16094_s5 + $0x7a0] sm:$0xf]  ;;  %v10594_v46 = vld [vmem:[%s16094_s5 + $0x7ac] sm:$0xf0] }
 0x519   :  { %5940 = vmatpush.bf16.msrb.mxu0 %v9351_v61  ;;  %5966 = vmatpush.bf16.msrb.mxu2 %v9355_v13  ;;  %v9414_v61 = vld [vmem:[%s16094_s5 + $0x528] sm:$0xf]  ;;  %v10515_v13 = vld [vmem:[%s16094_s5 + $0x534] sm:$0xf0] }
 0x51a   :  { %v9415_v16 = vor.u32 %v10515_v13, %v9414_v61 }
 0x51b   :  { %5952 = vmatpush.bf16.msrb.mxu1 %v9495_v12  ;;  %5978 = vmatpush.bf16.msrb.mxu3 %v9499_v41  ;;  %v9271_v12 = vor.u32 %v10479_v10, %v9270_v27  ;;  %v9275_v41 = vor.u32 %v10477_v6, %v9272_v11  ;;  %v9630_v27 = vld [vmem:[%s16094_s5 + $0x660] sm:$0xf]  ;;  %v10554_v10 = vld [vmem:[%s16094_s5 + $0x66c] sm:$0xf0]  ;;  %v9791_v6 = vor.u32 %v10594_v46, %v9790_v17  ;;  %v10576_v46 = vld [vmem:[%s16094_s5 + $0x724] sm:$0xf] }
 0x51c   :  { %v9774_v11 = vld [vmem:[%s16094_s5 + $0x780] sm:$0xf]  ;;  %v10578_v17 = vld [vmem:[%s16094_s5 + $0x72c] sm:$0xf0] }
 0x51d   :  { %5941 = vmatpush.bf16.msrb.mxu0 %v9335_v48  ;;  %5967 = vmatpush.bf16.msrb.mxu2 %v9339_v34  ;;  %v9419_v48 = vor.u32 %v10513_v47, %v9416_v24  ;;  %v9680_v34 = vld [vmem:[%s16094_s5 + $0x6d0] sm:$0xf0]  ;;  %v9631_v47 = vor.u32 %v10554_v10, %v9630_v27 }
 0x51e   :  { %v9683_v29 = vor.u32 %v10564_v4, %v9680_v34  ;;  %v9616_v4 = vld [vmem:[%s16094_s5 + $0x650] sm:$0xf0]  ;;  %v10584_v34 = vld [vmem:[%s16094_s5 + $0x764] sm:$0xf] }
 0x51f   :  { %5953 = vmatpush.bf16.msrb.mxu1 %v9479_v19  ;;  %5979 = vmatpush.bf16.msrb.mxu3 %v9483_v49  ;;  %v10509_v19 = vld [vmem:[%s16094_s5 + $0x50c] sm:$0xf]  ;;  %v9400_v49 = vld [vmem:[%s16094_s5 + $0x518] sm:$0xf0] }
 0x521   :  { %5942 = vmatpush.bf16.msrb.mxu0 %v9319_v33  ;;  %5968 = vmatpush.bf16.msrb.mxu2 %v9323_v9  ;;  %v9399_v33 = vor.u32 %v10511_v25, %v9398_v52  ;;  %v9403_v9 = vor.u32 %v10509_v19, %v9400_v49  ;;  %v9760_v52 = vld [vmem:[%s16094_s5 + $0x770] sm:$0xf0]  ;;  %v9619_v19 = vor.u32 %v10548_v36, %v9616_v4  ;;  %v9598_v49 = vld [vmem:[%s16094_s5 + $0x620] sm:$0xf] }
 0x522   :  { %v15782_v36 = vpack.c.bf16 %v14951_v59, %v14951_v59 }
 0x523   :  { %5954 = vmatpush.bf16.msrb.mxu1 %v9463_v0  ;;  %5980 = vmatpush.bf16.msrb.mxu3 %v9467_v38  ;;  %v9823_v0 = vor.u32 %v10602_v53, %v9822_v50  ;;  %v9827_v38 = vor.u32 %v10600_v44, %v9824_v62  ;;  %v10546_v50 = vld [vmem:[%s16094_s5 + $0x62c] sm:$0xf0]  ;;  %v9763_v62 = vor.u32 %v10584_v34, %v9760_v52 }
 0x524   :  { %v9711_v34 = vor.u32 %v10574_v58, %v9710_v43 }
 0x525   :  { %5943 = vmatpush.bf16.msrb.mxu0 %v9303_v30  ;;  %5969 = vmatpush.bf16.msrb.mxu2 %v9307_v32  ;;  %v9667_v30 = vor.u32 %v10560_v51, %v9664_v55  ;;  %v9646_v32 = vld [vmem:[%s16094_s5 + $0x680] sm:$0xf]  ;;  %v9599_v55 = vor.u32 %v10546_v50, %v9598_v49  ;;  %v10561_v50 = vld [vmem:[%s16094_s5 + $0x6ac] sm:$0xf] }
 0x527   :  { %5955 = vmatpush.bf16.msrb.mxu1 %v9447_v8  ;;  %5981 = vmatpush.bf16.msrb.mxu3 %v9451_v3  ;;  %v9807_v8 = vor.u32 %v10598_v63, %v9806_v5  ;;  %v9582_v63 = vld [vmem:[%s16094_s5 + $0x600] sm:$0xf] }
 0x529   :  { %5944 = vmatpush.bf16.msrb.mxu0 %v9287_v54  ;;  %5970 = vmatpush.bf16.msrb.mxu2 %v9291_v21  ;;  %v9647_v54 = vor.u32 %v10558_v14, %v9646_v32  ;;  %v9651_v21 = vor.u32 %v10556_v40, %v9648_v22  ;;  %v9584_v14 = vld [vmem:[%s16094_s5 + $0x610] sm:$0xf0]  ;;  %v9704_v40 = vld [vmem:[%s16094_s5 + $0x6f8] sm:$0xf0]  ;;  %v9726_v22 = vld [vmem:[%s16094_s5 + $0x720] sm:$0xf] }
 0x52b   :  { %5956 = vmatpush.bf16.msrb.mxu1 %v9431_v18  ;;  %5982 = vmatpush.bf16.msrb.mxu3 %v9435_v42  ;;  %v9795_v18 = vor.u32 %v10592_v20, %v9792_v2  ;;  %v9632_v42 = vld [vmem:[%s16094_s5 + $0x670] sm:$0xf0] }
 0x52c   :  { %v9728_v20 = vld [vmem:[%s16094_s5 + $0x730] sm:$0xf0] }
 0x52d   :  { %5945 = vmatpush.bf16.msrb.mxu0 %v9271_v12  ;;  %5971 = vmatpush.bf16.msrb.mxu2 %v9275_v41  ;;  %v4980_v37 = vpop.f32.mrf.mxu0  ;;  %v9614_v12 = vld [vmem:[%s16094_s5 + $0x640] sm:$0xf]  ;;  %v10550_v41 = vld [vmem:[%s16094_s5 + $0x64c] sm:$0xf0] }
 0x52e   :  { %v9615_v25 = vor.u32 %v10550_v41, %v9614_v12  ;;  %v9830_v12 = vld [vmem:[%s16094_s5 + $0x7e8] sm:$0xf] }
 0x52f   :  { %5957 = vmatpush.bf16.msrb.mxu1 %v9415_v16  ;;  %5983 = vmatpush.bf16.msrb.mxu3 %v9419_v48  ;;  %v9758_v16 = vld [vmem:[%s16094_s5 + $0x760] sm:$0xf]  ;;  %v10586_v48 = vld [vmem:[%s16094_s5 + $0x76c] sm:$0xf0] }
 0x530   :  { %5946 = vmatmul.bf16.vlgmr.msrb.gmra.mxu0 %v15376_v57  ;;  %5972 = vmatmul.bf16.vlgmr.msrb.gmra.mxu2 %v15376_v57  ;;  %v10596_v57 = vld [vmem:[%s16094_s5 + $0x7c4] sm:$0xf]  ;;  %v9759_v44 = vor.u32 %v10586_v48, %v9758_v16 }
 0x531   :  { %6381 = vmatpush.bf16.msra.mxu0 %v9695_v28  ;;  %6407 = vmatpush.bf16.msra.mxu2 %v9699_v31  ;;  %v9811_v3 = vor.u32 %v10596_v57, %v9808_v26  ;;  %v9775_v31 = vor.u32 %v10590_v39, %v9774_v11  ;;  %v10542_v57 = vld [vmem:[%s16094_s5 + $0x60c] sm:$0xf0]  ;;  %v10540_v26 = vld [vmem:[%s16094_s5 + $0x604] sm:$0xf]  ;;  %v9731_v11 = vor.u32 %v10576_v46, %v9728_v20  ;;  %v9688_v39 = vld [vmem:[%s16094_s5 + $0x6d8] sm:$0xf0] }
 0x532   :  { %v9583_v2 = vor.u32 %v10542_v57, %v9582_v63  ;;  %v10555_v46 = vld [vmem:[%s16094_s5 + $0x674] sm:$0xf0] }
 0x533   :  { %5958 = vmatpush.bf16.msrb.mxu1 %v9399_v33  ;;  %5984 = vmatpush.bf16.msrb.mxu3 %v9403_v9  ;;  %v4993_v56 = vpop.f32.mrf.mxu1  ;;  %v5006_v61 = vpop.f32.mrf.mxu2  ;;  %v9742_v33 = vld [vmem:[%s16094_s5 + $0x740] sm:$0xf] }
 0x534   :  { %v15654_v13 = vadd.f32 %v4993_v56, %v4980_v37  ;;  %v9702_v37 = vld [vmem:[%s16094_s5 + $0x6e8] sm:$0xf] }
 0x535   :  { %6382 = vmatpush.bf16.msra.mxu0 %v9679_v15  ;;  %6408 = vmatpush.bf16.msra.mxu2 %v9683_v29  ;;  %v4982_v28 = vpop.f32.mrf.mxu0  ;;  %v10544_v15 = vld [vmem:[%s16094_s5 + $0x624] sm:$0xf]  ;;  %v9600_v29 = vld [vmem:[%s16094_s5 + $0x630] sm:$0xf0] }
 0x536   :  { %5959 = vmatmul.bf16.vlgmr.msrb.gmra.mxu1 %v15412_v7  ;;  %5985 = vmatmul.bf16.vlgmr.msrb.gmra.mxu3 %v15412_v7  ;;  %v10552_v7 = vld [vmem:[%s16094_s5 + $0x664] sm:$0xf]  ;;  %v9603_v5 = vor.u32 %v10544_v15, %v9600_v29  ;;  %v10603_v28 = vld [vmem:[%s16094_s5 + $0x7f4] sm:$0xf0]  ;;  %v10597_v15 = vld [vmem:[%s16094_s5 + $0x7cc] sm:$0xf] }
 0x537   :  { %6394 = vmatpush.bf16.msra.mxu1 %v9823_v0  ;;  %6420 = vmatpush.bf16.msra.mxu3 %v9827_v38  ;;  %v9635_v24 = vor.u32 %v10552_v7, %v9632_v42  ;;  %v9744_v0 = vld [vmem:[%s16094_s5 + $0x750] sm:$0xf0]  ;;  %v10565_v7 = vld [vmem:[%s16094_s5 + $0x6cc] sm:$0xf]  ;;  %v9727_v42 = vor.u32 %v10578_v17, %v9726_v22  ;;  %v9831_v59 = vor.u32 %v10603_v28, %v9830_v12  ;;  %v9816_v29 = vld [vmem:[%s16094_s5 + $0x7d8] sm:$0xf0] }
 0x538   :  { %v9747_v32 = vor.u32 %v10580_v60, %v9744_v0  ;;  %v9691_v48 = vor.u32 %v10565_v7, %v9688_v39  ;;  %v9638_v17 = vld [vmem:[%s16094_s5 + $0x668] sm:$0xf]  ;;  %v10551_v39 = vld [vmem:[%s16094_s5 + $0x654] sm:$0xf0] }
 0x539   :  { %6383 = vmatpush.bf16.msra.mxu0 %v9663_v45  ;;  %6409 = vmatpush.bf16.msra.mxu2 %v9667_v30  ;;  %v5019_v53 = vpop.f32.mrf.mxu3  ;;  %v9743_v30 = vor.u32 %v10582_v35, %v9742_v33  ;;  %v9639_v7 = vor.u32 %v10555_v46, %v9638_v17  ;;  %v9718_v17 = vld [vmem:[%s16094_s5 + $0x708] sm:$0xf]  ;;  %v10575_v46 = vld [vmem:[%s16094_s5 + $0x714] sm:$0xf0] }
 0x53a   :  { %v15695_v9 = vadd.f32 %v5019_v53, %v5006_v61  ;;  %v9672_v53 = vld [vmem:[%s16094_s5 + $0x6b8] sm:$0xf0] }
 0x53b   :  { %6395 = vmatpush.bf16.msra.mxu1 %v9807_v8  ;;  %6421 = vmatpush.bf16.msra.mxu3 %v9811_v3  ;;  %v4995_v38 = vpop.f32.mrf.mxu1  ;;  %v5008_v51 = vpop.f32.mrf.mxu2  ;;  %v10571_v8 = vld [vmem:[%s16094_s5 + $0x6f4] sm:$0xf0]  ;;  %v10569_v3 = vld [vmem:[%s16094_s5 + $0x6ec] sm:$0xf]  ;;  %v9675_v0 = vor.u32 %v10561_v50, %v9672_v53  ;;  %v9608_v50 = vld [vmem:[%s16094_s5 + $0x638] sm:$0xf0] }
 0x53c   :  { %v9703_v27 = vor.u32 %v10571_v8, %v9702_v37  ;;  %v9707_v10 = vor.u32 %v10569_v3, %v9704_v40  ;;  %v9654_v38 = vld [vmem:[%s16094_s5 + $0x688] sm:$0xf]  ;;  %v10559_v51 = vld [vmem:[%s16094_s5 + $0x694] sm:$0xf0]  ;;  %v9800_v37 = vld [vmem:[%s16094_s5 + $0x7b8] sm:$0xf0] }
 0x53d   :  { %6384 = vmatpush.bf16.msra.mxu0 %v9647_v54  ;;  %6410 = vmatpush.bf16.msra.mxu2 %v9651_v21  ;;  %v5032_v45 = vpop.f32.mrf.mxu0  ;;  %v9587_v54 = vor.u32 %v10540_v26, %v9584_v14  ;;  %v9819_v26 = vor.u32 %v10597_v15, %v9816_v29  ;;  %v10593_v14 = vld [vmem:[%s16094_s5 + $0x7ac] sm:$0xf]  ;;  %v9655_v40 = vor.u32 %v10559_v51, %v9654_v38  ;;  %v9750_v53 = vld [vmem:[%s16094_s5 + $0x748] sm:$0xf]  ;;  %v9752_v15 = vld [vmem:[%s16094_s5 + $0x758] sm:$0xf0] }
 0x53e   :  { %v10543_v38 = vld [vmem:[%s16094_s5 + $0x614] sm:$0xf0] }
 0x53f   :  { %6396 = vmatpush.bf16.msra.mxu1 %v9791_v6  ;;  %6422 = vmatpush.bf16.msra.mxu3 %v9795_v18  ;;  %v9686_v6 = vld [vmem:[%s16094_s5 + $0x6c8] sm:$0xf]  ;;  %v10567_v18 = vld [vmem:[%s16094_s5 + $0x6d4] sm:$0xf0] }
 0x540   :  { %v9687_v16 = vor.u32 %v10567_v18, %v9686_v6  ;;  %v9784_v6 = vld [vmem:[%s16094_s5 + $0x798] sm:$0xf0] }
 0x541   :  { %6385 = vmatpush.bf16.msra.mxu0 %v9631_v47  ;;  %6411 = vmatpush.bf16.msra.mxu2 %v9635_v24  ;;  %v5021_v21 = vpop.f32.mrf.mxu3  ;;  %v10572_v47 = vld [vmem:[%s16094_s5 + $0x704] sm:$0xf]  ;;  %v9712_v24 = vld [vmem:[%s16094_s5 + $0x710] sm:$0xf0] }
 0x542   :  { %v9715_v52 = vor.u32 %v10572_v47, %v9712_v24  ;;  %v9782_v21 = vld [vmem:[%s16094_s5 + $0x788] sm:$0xf]  ;;  %v9624_v47 = vld [vmem:[%s16094_s5 + $0x658] sm:$0xf0] }
 0x543   :  { %6397 = vmatpush.bf16.msra.mxu1 %v9775_v31  ;;  %6423 = vmatpush.bf16.msra.mxu3 %v9779_v23  ;;  %v5045_v56 = vpop.f32.mrf.mxu1  ;;  %v5058_v61 = vpop.f32.mrf.mxu2  ;;  %v10601_v31 = vld [vmem:[%s16094_s5 + $0x7ec] sm:$0xf]  ;;  %v9832_v23 = vld [vmem:[%s16094_s5 + $0x7f8] sm:$0xf0]  ;;  %v9766_v24 = vld [vmem:[%s16094_s5 + $0x768] sm:$0xf] }
 0x544   :  { %v15769_v41 = vadd.f32 %v5045_v56, %v5032_v45  ;;  %v9835_v49 = vor.u32 %v10601_v31, %v9832_v23  ;;  %v10557_v45 = vld [vmem:[%s16094_s5 + $0x68c] sm:$0xf]  ;;  %v10587_v31 = vld [vmem:[%s16094_s5 + $0x774] sm:$0xf0] }
 0x545   :  { %6386 = vmatpush.bf16.msra.mxu0 %v9615_v25  ;;  %6412 = vmatpush.bf16.msra.mxu2 %v9619_v19  ;;  %v5034_v4 = vpop.f32.mrf.mxu0  ;;  %v9670_v25 = vld [vmem:[%s16094_s5 + $0x6a8] sm:$0xf]  ;;  %v10563_v19 = vld [vmem:[%s16094_s5 + $0x6b4] sm:$0xf0]  ;;  %v10585_v23 = vld [vmem:[%s16094_s5 + $0x76c] sm:$0xf] }
 0x546   :  { %v9671_v60 = vor.u32 %v10563_v19, %v9670_v25  ;;  %v9768_v4 = vld [vmem:[%s16094_s5 + $0x778] sm:$0xf0]  ;;  %v10547_v25 = vld [vmem:[%s16094_s5 + $0x634] sm:$0xf0]  ;;  %v9767_v19 = vor.u32 %v10587_v31, %v9766_v24 }
 0x547   :  { %6398 = vmatpush.bf16.msra.mxu1 %v9759_v44  ;;  %6424 = vmatpush.bf16.msra.mxu3 %v9763_v62  ;;  %v9814_v44 = vld [vmem:[%s16094_s5 + $0x7c8] sm:$0xf]  ;;  %v10599_v62 = vld [vmem:[%s16094_s5 + $0x7d4] sm:$0xf0] }
 0x548   :  { %v9815_v57 = vor.u32 %v10599_v62, %v9814_v44  ;;  %v10583_v44 = vld [vmem:[%s16094_s5 + $0x754] sm:$0xf0]  ;;  %v10581_v62 = vld [vmem:[%s16094_s5 + $0x74c] sm:$0xf] }
 0x549   :  { %6387 = vmatpush.bf16.msra.mxu0 %v9599_v55  ;;  %6413 = vmatpush.bf16.msra.mxu2 %v9603_v5  ;;  %v5071_v33 = vpop.f32.mrf.mxu3  ;;  %v15820_v55 = vpack.c.bf16 %v15002_v1, %v15002_v1  ;;  %v10595_v1 = vld [vmem:[%s16094_s5 + $0x7b4] sm:$0xf0] }
 0x54a   :  { %v15810_v35 = vadd.f32 %v5071_v33, %v5058_v61  ;;  %v10549_v61 = vld [vmem:[%s16094_s5 + $0x64c] sm:$0xf] }
 0x54b   :  { %6399 = vmatpush.bf16.msra.mxu1 %v9743_v30  ;;  %6425 = vmatpush.bf16.msra.mxu3 %v9747_v32  ;;  %v5047_v5 = vpop.f32.mrf.mxu1  ;;  %v5060_v63 = vpop.f32.mrf.mxu2  ;;  %v9656_v30 = vld [vmem:[%s16094_s5 + $0x698] sm:$0xf0]  ;;  %v9798_v32 = vld [vmem:[%s16094_s5 + $0x7a8] sm:$0xf] }
 0x54c   :  { %v9659_v22 = vor.u32 %v10557_v45, %v9656_v30  ;;  %v9799_v20 = vor.u32 %v10595_v1, %v9798_v32  ;;  %v9751_v63 = vor.u32 %v10583_v44, %v9750_v53  ;;  %v9592_v45 = vld [vmem:[%s16094_s5 + $0x618] sm:$0xf0]  ;;  %v9734_v30 = vld [vmem:[%s16094_s5 + $0x728] sm:$0xf]  ;;  %v10579_v1 = vld [vmem:[%s16094_s5 + $0x734] sm:$0xf0] }
 0x54d   :  { %6388 = vmatpush.bf16.msra.mxu0 %v9583_v2  ;;  %6414 = vmatpush.bf16.msra.mxu2 %v9587_v54  ;;  %v5404_v8 = vpop.f32.mrf.mxu0  ;;  %v9803_v2 = vor.u32 %v10593_v14, %v9800_v37  ;;  %v10553_v54 = vld [vmem:[%s16094_s5 + $0x66c] sm:$0xf]  ;;  %v9736_v37 = vld [vmem:[%s16094_s5 + $0x738] sm:$0xf0]  ;;  %v10606_v44 = vld [vmem:[%s16097_s7 + $0x10] sm:$0xff] }
 0x54e   :  { %v5405_v3 = vadd.f32 %v5404_v8, %v15654_v13  ;;  %v9640_v13 = vld [vmem:[%s16094_s5 + $0x678] sm:$0xf0]  ;;  %v10577_v14 = vld [vmem:[%s16094_s5 + $0x72c] sm:$0xf] }
 0x54f   :  { %6400 = vmatpush.bf16.msra.mxu1 %v9727_v42  ;;  %6426 = vmatpush.bf16.msra.mxu3 %v9731_v11  ;;  %v9643_v42 = vor.u32 %v10553_v54, %v9640_v13  ;;  %v9622_v11 = vld [vmem:[%s16094_s5 + $0x648] sm:$0xf]  ;;  %v9719_v13 = vor.u32 %v10575_v46, %v9718_v17  ;;  %v10622_v46 = vld [vmem:[%s16097_s7 + $0x90] sm:$0xff] }
 0x550   :  { %6389 = vmatmul.bf16.vlgmr.msra.gmra.mxu0 %v15782_v36  ;;  %6415 = vmatmul.bf16.vlgmr.msra.gmra.mxu2 %v15782_v36 }
 0x551   :  { %6433 = vmatpush.bf16.msrb.mxu0 %v9703_v27  ;;  %6459 = vmatpush.bf16.msrb.mxu2 %v9707_v10  ;;  %v10591_v27 = vld [vmem:[%s16094_s5 + $0x794] sm:$0xf0]  ;;  %v10589_v10 = vld [vmem:[%s16094_s5 + $0x78c] sm:$0xf]  ;;  %v5073_v18 = vpop.f32.mrf.mxu3 }
 0x552   :  { %v9783_v58 = vor.u32 %v10591_v27, %v9782_v21  ;;  %v9787_v56 = vor.u32 %v10589_v10, %v9784_v6 }
 0x553   :  { %6401 = vmatpush.bf16.msra.mxu1 %v9711_v34  ;;  %6427 = vmatpush.bf16.msra.mxu3 %v9715_v52  ;;  %v5430_v43 = vpop.f32.mrf.mxu2  ;;  %v5417_v12 = vpop.f32.mrf.mxu1  ;;  %v9623_v34 = vor.u32 %v10551_v39, %v9622_v11  ;;  %v9627_v52 = vor.u32 %v10549_v61, %v9624_v47 }
 0x554   :  { %v5431_v28 = vadd.f32 %v5430_v43, %v15695_v9  ;;  %v9606_v9 = vld [vmem:[%s16094_s5 + $0x628] sm:$0xf] }
 0x555   :  { %6434 = vmatpush.bf16.msrb.mxu0 %v9687_v16  ;;  %6460 = vmatpush.bf16.msrb.mxu2 %v9691_v48  ;;  %v15892_v16 = vadd.f32 %v5417_v12, %v5405_v3  ;;  %v5406_v48 = vpop.f32.mrf.mxu0  ;;  %v9607_v33 = vor.u32 %v10547_v25, %v9606_v9  ;;  %v10618_v25 = vld [vmem:[%s16097_s7 + $0x70] sm:$0xff] }
 0x556   :  { %6402 = vmatmul.bf16.vlgmr.msra.gmra.mxu1 %v15820_v55  ;;  %6428 = vmatmul.bf16.vlgmr.msra.gmra.mxu3 %v15820_v55 }
 0x557   :  { %6446 = vmatpush.bf16.msrb.mxu1 %v9831_v59  ;;  %6472 = vmatpush.bf16.msrb.mxu3 %v9835_v49  ;;  %v9771_v59 = vor.u32 %v10585_v23, %v9768_v4  ;;  %v10545_v49 = vld [vmem:[%s16094_s5 + $0x62c] sm:$0xf] }
 0x559   :  { %6435 = vmatpush.bf16.msrb.mxu0 %v9671_v60  ;;  %6461 = vmatpush.bf16.msrb.mxu2 %v9675_v0  ;;  %v5443_v29 = vpop.f32.mrf.mxu3  ;;  %v9611_v60 = vor.u32 %v10545_v49, %v9608_v50  ;;  %v9590_v0 = vld [vmem:[%s16094_s5 + $0x608] sm:$0xf]  ;;  %v10607_v49 = vld [vmem:[%s16097_s7 + $0x18] sm:$0xff]  ;;  %v10616_v50 = vld [vmem:[%s16097_s7 + $0x60] sm:$0xff] }
 0x55a   :  { %v5444_v51 = vadd.f32 %v5443_v29, %v5431_v28  ;;  %v9591_v8 = vor.u32 %v10543_v38, %v9590_v0  ;;  %v10614_v0 = vld [vmem:[%s16097_s7 + $0x50] sm:$0xff]  ;;  %v10604_v38 = vld [vmem:[%s16097_s7] sm:$0xff] }
 0x55b   :  { %6447 = vmatpush.bf16.msrb.mxu1 %v9815_v57  ;;  %6473 = vmatpush.bf16.msrb.mxu3 %v9819_v26  ;;  %v5432_v5 = vpop.f32.mrf.mxu2  ;;  %v9755_v57 = vor.u32 %v10581_v62, %v9752_v15  ;;  %v10541_v26 = vld [vmem:[%s16094_s5 + $0x60c] sm:$0xf]  ;;  %v5419_v32 = vpop.f32.mrf.mxu1  ;;  %v10615_v62 = vld [vmem:[%s16097_s7 + $0x58] sm:$0xff] }
 0x55c   :  { %v9595_v3 = vor.u32 %v10541_v26, %v9592_v45  ;;  %v10627_v5 = vld [vmem:[%s16097_s7 + $0xb8] sm:$0xff]  ;;  %v10626_v45 = vld [vmem:[%s16097_s7 + $0xb0] sm:$0xff] }
 0x55d   :  { %6436 = vmatpush.bf16.msrb.mxu0 %v9655_v40  ;;  %6462 = vmatpush.bf16.msrb.mxu2 %v9659_v22  ;;  %v9735_v40 = vor.u32 %v10579_v1, %v9734_v30  ;;  %v9739_v22 = vor.u32 %v10577_v14, %v9736_v37  ;;  %v10612_v30 = vld [vmem:[%s16097_s7 + $0x40] sm:$0xff]  ;;  %v10635_v32 = vld [vmem:[%s16097_s7 + $0xf8] sm:$0xff]  ;;  %v10625_v14 = vld [vmem:[%s16097_s7 + $0xa8] sm:$0xff] }
 0x55e   :  { %v10634_v37 = vld [vmem:[%s16097_s7 + $0xf0] sm:$0xff] }
 0x55f   :  { %6448 = vmatpush.bf16.msrb.mxu1 %v9799_v20  ;;  %6474 = vmatpush.bf16.msrb.mxu3 %v9803_v2  ;;  %v10573_v20 = vld [vmem:[%s16094_s5 + $0x70c] sm:$0xf]  ;;  %v9720_v2 = vld [vmem:[%s16094_s5 + $0x718] sm:$0xf0] }
 0x560   :  { %v9723_v21 = vor.u32 %v10573_v20, %v9720_v2  ;;  %v6489_v20 = vld [vmem:[%s16098_s6] sm:$0xf]  ;;  %v10631_v2 = vld [vmem:[%s16097_s7 + $0xd8] sm:$0xff] }
 0x561   :  { %6437 = vmatpush.bf16.msrb.mxu0 %v9639_v7  ;;  %6463 = vmatpush.bf16.msrb.mxu2 %v9643_v42  ;;  %v5445_v54 = vpop.f32.mrf.mxu3 }
 0x563   :  { %6449 = vmatpush.bf16.msrb.mxu1 %v9783_v58  ;;  %6475 = vmatpush.bf16.msrb.mxu3 %v9787_v56 }
 0x565   :  { %6438 = vmatpush.bf16.msrb.mxu0 %v9623_v34  ;;  %6464 = vmatpush.bf16.msrb.mxu2 %v9627_v52  ;;  %v10610_v34 = vld [vmem:[%s16097_s7 + $0x30] sm:$0xff]  ;;  %v10609_v52 = vld [vmem:[%s16097_s7 + $0x28] sm:$0xff] }
 0x567   :  { %6450 = vmatpush.bf16.msrb.mxu1 %v9767_v19  ;;  %6476 = vmatpush.bf16.msrb.mxu3 %v9771_v59  ;;  %v10608_v19 = vld [vmem:[%s16097_s7 + $0x20] sm:$0xff]  ;;  %v10617_v59 = vld [vmem:[%s16097_s7 + $0x68] sm:$0xff] }
 0x569   :  { %6439 = vmatpush.bf16.msrb.mxu0 %v9607_v33  ;;  %6465 = vmatpush.bf16.msrb.mxu2 %v9611_v60  ;;  %v10605_v33 = vld [vmem:[%s16097_s7 + $0x8] sm:$0xff] }
 0x56b   :  { %6451 = vmatpush.bf16.msrb.mxu1 %v9751_v63  ;;  %6477 = vmatpush.bf16.msrb.mxu3 %v9755_v57  ;;  %v10613_v63 = vld [vmem:[%s16097_s7 + $0x48] sm:$0xff] }
 0x56d   :  { %6440 = vmatpush.bf16.msrb.mxu0 %v9591_v8  ;;  %6466 = vmatpush.bf16.msrb.mxu2 %v9595_v3  ;;  %v5456_v27 = vpop.f32.mrf.mxu0  ;;  %v10624_v8 = vld [vmem:[%s16097_s7 + $0xa0] sm:$0xff]  ;;  %v10633_v3 = vld [vmem:[%s16097_s7 + $0xe8] sm:$0xff] }
 0x56e   :  { %v5457_v10 = vadd.f32 %v5456_v27, %v15769_v41 }
 0x56f   :  { %6452 = vmatpush.bf16.msrb.mxu1 %v9735_v40  ;;  %6478 = vmatpush.bf16.msrb.mxu3 %v9739_v22  ;;  %v10623_v40 = vld [vmem:[%s16097_s7 + $0x98] sm:$0xff]  ;;  %v10632_v22 = vld [vmem:[%s16097_s7 + $0xe0] sm:$0xff] }
 0x570   :  { %6441 = vmatmul.bf16.vlgmr.msrb.gmra.mxu0 %v15782_v36  ;;  %6467 = vmatmul.bf16.vlgmr.msrb.gmra.mxu2 %v15782_v36 }
 0x571   :  { %6797 = vmatpush.bf16.msra.mxu2 %v10627_v5 }
 0x573   :  { %6453 = vmatpush.bf16.msrb.mxu1 %v9719_v13  ;;  %6479 = vmatpush.bf16.msrb.mxu3 %v9723_v21  ;;  %v5469_v6 = vpop.f32.mrf.mxu1  ;;  %v5482_v18 = vpop.f32.mrf.mxu2  ;;  %v10621_v21 = vld [vmem:[%s16097_s7 + $0x88] sm:$0xff] }
 0x574   :  { %v15959_v7 = vadd.f32 %v5469_v6, %v5457_v10  ;;  %v5483_v42 = vadd.f32 %v5482_v18, %v15810_v35  ;;  %v10611_v35 = vld [vmem:[%s16097_s7 + $0x38] sm:$0xff]  ;;  %v6491_v10 = vperm.slane %v6489_v20, 0  ;;  %v10630_v18 = vld [vmem:[%s16097_s7 + $0xd0] sm:$0xff] }
 0x575   :  { %v5458_v11 = vpop.f32.mrf.mxu0  ;;  %6771 = vmatpush.bf16.msra.mxu0 %v10611_v35  ;;  %6798 = vmatpush.bf16.msra.mxu2 %v10626_v45 }
 0x576   :  { %6454 = vmatmul.bf16.vlgmr.msrb.gmra.mxu1 %v15820_v55  ;;  %6480 = vmatmul.bf16.vlgmr.msrb.gmra.mxu3 %v15820_v55  ;;  %v10620_v11 = vld [vmem:[%s16097_s7 + $0x80] sm:$0xff] }
 0x577   :  { %6810 = vmatpush.bf16.msra.mxu3 %v10635_v32 }
 0x579   :  { %v5495_v39 = vpop.f32.mrf.mxu3  ;;  %6772 = vmatpush.bf16.msra.mxu0 %v10610_v34  ;;  %6799 = vmatpush.bf16.msra.mxu2 %v10625_v14 }
 0x57a   :  { %v15962_v43 = vadd.f32 %v5495_v39, %v5483_v42 }
 0x57b   :  { %v5471_v36 = vpop.f32.mrf.mxu1  ;;  %v5484_v58 = vpop.f32.mrf.mxu2  ;;  %6811 = vmatpush.bf16.msra.mxu3 %v10634_v37 }
 0x57c   :  { %v10629_v58 = vld [vmem:[%s16097_s7 + $0xc8] sm:$0xff] }
 0x57d   :  { %6773 = vmatpush.bf16.msra.mxu0 %v10609_v52  ;;  %6800 = vmatpush.bf16.msra.mxu2 %v10624_v8 }
 0x57f   :  { %6812 = vmatpush.bf16.msra.mxu3 %v10633_v3 }
 0x581   :  { %v5497_v56 = vpop.f32.mrf.mxu3  ;;  %6774 = vmatpush.bf16.msra.mxu0 %v10608_v19  ;;  %6801 = vmatpush.bf16.msra.mxu2 %v10623_v40 }
 0x583   :  { %6813 = vmatpush.bf16.msra.mxu3 %v10632_v22 }
 0x585   :  { %6775 = vmatpush.bf16.msra.mxu0 %v10607_v49  ;;  %6802 = vmatpush.bf16.msra.mxu2 %v10622_v46 }
 0x587   :  { %6814 = vmatpush.bf16.msra.mxu3 %v10631_v2 }
 0x589   :  { %6776 = vmatpush.bf16.msra.mxu0 %v10606_v44  ;;  %6803 = vmatpush.bf16.msra.mxu2 %v10621_v21 }
 0x58b   :  { %6815 = vmatpush.bf16.msra.mxu3 %v10630_v18 }
 0x58d   :  { %v5895_v61 = vpop.f32.mrf.mxu0  ;;  %6777 = vmatpush.bf16.msra.mxu0 %v10605_v33  ;;  %6804 = vmatpush.bf16.msra.mxu2 %v10620_v11 }
 0x58f   :  { %6816 = vmatpush.bf16.msra.mxu3 %v10629_v58 }
 0x591   :  { %6778 = vmatpush.bf16.msra.mxu0 %v10604_v38  ;;  %v6494_v38 = vperm.slane %v6489_v20, 3 }
 0x593   :  { %v5908_v47 = vpop.f32.mrf.mxu1  ;;  %v5921_v24 = vpop.f32.mrf.mxu2 }
 0x594   :  { %v5909_v55 = vadd.f32 %v5908_v47, %v5895_v61  ;;  %v6492_v47 = vperm.slane %v6489_v20, 1 }
 0x595   :  { %v5897_v12 = vpop.f32.mrf.mxu0 }
 0x596   :  { %v15965_v41 = vadd.f32 %v5909_v55, %v15892_v16  ;;  %v10619_v16 = vld [vmem:[%s16097_s7 + $0x78] sm:$0xff] }
 0x597   :  { %6784 = vmatpush.bf16.msra.mxu1 %v10619_v16 }
 0x599   :  { %v5934_v28 = vpop.f32.mrf.mxu3 }
 0x59a   :  { %v5935_v31 = vadd.f32 %v5934_v28, %v5921_v24  ;;  %v10628_v28 = vld [vmem:[%s16097_s7 + $0xc0] sm:$0xff] }
 0x59b   :  { %v5910_v23 = vpop.f32.mrf.mxu1  ;;  %v5923_v4 = vpop.f32.mrf.mxu2  ;;  %6785 = vmatpush.bf16.msra.mxu1 %v10618_v25  ;;  %6817 = vmatpush.bf16.msra.mxu3 %v10628_v28 }
 0x59c   :  { %v15970_v48 = vadd.f32 %v5935_v31, %v5444_v51 }
 0x59f   :  { %6786 = vmatpush.bf16.msra.mxu1 %v10617_v59 }
 0x5a1   :  { %v5936_v9 = vpop.f32.mrf.mxu3 }
 0x5a3   :  { %6787 = vmatpush.bf16.msra.mxu1 %v10616_v50 }
 0x5a7   :  { %6788 = vmatpush.bf16.msra.mxu1 %v10615_v62 }
 0x5ab   :  { %6789 = vmatpush.bf16.msra.mxu1 %v10614_v0 }
 0x5ad   :  { %v15996_v53 = vpop.f32.mrf.mxu0 }
 0x5af   :  { %6790 = vmatpush.bf16.msra.mxu1 %v10613_v63 }
 0x5b3   :  { %v16004_v15 = vpop.f32.mrf.mxu1  ;;  %v16006_v29 = vpop.f32.mrf.mxu2  ;;  %6791 = vmatpush.bf16.msra.mxu1 %v10612_v30 }
 0x5b4   :  { %v5961_v16 = vadd.f32 %v16004_v15, %v15996_v53 }
 0x5b5   :  { %v5949_v60 = vpop.f32.mrf.mxu0 }
 0x5b6   :  { %v5992_v9 = vadd.f32 %v5961_v16, %v15959_v7 }
 0x5b9   :  { %v16017_v51 = vpop.f32.mrf.mxu3 }
 0x5ba   :  { %v5987_v59 = vadd.f32 %v16017_v51, %v16006_v29 }
 0x5bb   :  { %v5962_v57 = vpop.f32.mrf.mxu1  ;;  %v5975_v26 = vpop.f32.mrf.mxu2 }
 0x5bc   :  { %v5993_v33 = vadd.f32 %v5987_v59, %v15962_v43  ;;  %v10636_v43 = vld [vmem:[%s16096_s8] ss:$0 sm:$0xff] }
 0x5c1   :  { %v5988_v1 = vpop.f32.mrf.mxu3 }
 0x5cd   :  { %v6390_v17 = vpop.f32.mrf.mxu0 }
 0x5d3   :  { %v6403_v54 = vpop.f32.mrf.mxu1  ;;  %v6416_v13 = vpop.f32.mrf.mxu2 }
 0x5d4   :  { %v6404_v27 = vadd.f32 %v6403_v54, %v6390_v17 }
 0x5d5   :  { %v6392_v6 = vpop.f32.mrf.mxu0 }
 0x5d6   :  { %v6485_v42 = vadd.f32 %v6404_v27, %v15965_v41 }
 0x5d8   :  { %v6499_v39 = vadd.f32 %v6491_v10, %v6485_v42 }
 0x5d9   :  { %v6429_v36 = vpop.f32.mrf.mxu3 }
 0x5da   :  { %v6503_v56 = vmax.f32 %v6499_v39, 0.0  ;;  %v6430_v61 = vadd.f32 %v6429_v36, %v6416_v13 }
 0x5db   :  { %v6405_v24 = vpop.f32.mrf.mxu1  ;;  %v6418_v55 = vpop.f32.mrf.mxu2 }
 0x5dc   :  { %v6507_v12 = vpack.c.bf16 %v6503_v56, %v6503_v56  ;;  %v6486_v41 = vadd.f32 %v6430_v61, %v15970_v48  ;;  %v6493_v48 = vperm.slane %v6489_v20, 2 }
 0x5de   :  { %v6500_v31 = vadd.f32 %v6492_v47, %v6486_v41  ;;  %6779 = vmatmul.bf16.vlgmr.msra.gmra.mxu0 %v6507_v12 }
 0x5e0   :  { %v6504_v35 = vmax.f32 %v6500_v31, 0.0 }
 0x5e1   :  { %v6431_v23 = vpop.f32.mrf.mxu3 }
 0x5e2   :  { %v6508_v4 = vpack.c.bf16 %v6504_v35, %v6504_v35 }
 0x5e4   :  { %6792 = vmatmul.bf16.vlgmr.msra.gmra.mxu1 %v6508_v4 }
 0x5ed   :  { %v6442_v34 = vpop.f32.mrf.mxu0 }
 0x5f3   :  { %v6455_v52 = vpop.f32.mrf.mxu1  ;;  %v6468_v19 = vpop.f32.mrf.mxu2 }
 0x5f4   :  { %v6456_v25 = vadd.f32 %v6455_v52, %v6442_v34 }
 0x5f5   :  { %v6444_v50 = vpop.f32.mrf.mxu0 }
 0x5f6   :  { %v6487_v49 = vadd.f32 %v6456_v25, %v5992_v9 }
 0x5f8   :  { %v6501_v44 = vadd.f32 %v6493_v48, %v6487_v49 }
 0x5f9   :  { %v6481_v62 = vpop.f32.mrf.mxu3 }
 0x5fa   :  { %v6505_v60 = vmax.f32 %v6501_v44, 0.0  ;;  %v6482_v0 = vadd.f32 %v6481_v62, %v6468_v19 }
 0x5fb   :  { %v6457_v5 = vpop.f32.mrf.mxu1  ;;  %v6470_v63 = vpop.f32.mrf.mxu2 }
 0x5fc   :  { %v6509_v53 = vpack.c.bf16 %v6505_v60, %v6505_v60  ;;  %v6488_v15 = vadd.f32 %v6482_v0, %v5993_v33 }
 0x5fe   :  { %v6502_v7 = vadd.f32 %v6494_v38, %v6488_v15  ;;  %6805 = vmatmul.bf16.vlgmr.msra.gmra.mxu2 %v6509_v53 }
 0x600   :  { %v6506_v57 = vmax.f32 %v6502_v7, 0.0 }
 0x601   :  { %v6483_v26 = vpop.f32.mrf.mxu3 }
 0x602   :  { %v6510_v45 = vpack.c.bf16 %v6506_v57, %v6506_v57 }
 0x604   :  { %6818 = vmatmul.bf16.vlgmr.msra.gmra.mxu3 %v6510_v45 }
 0x65b   :  { %v6780_v29 = vpop.f32.mrf.mxu0 }
 0x65c   :  { %v6781_v14 = vadd.f32 %v10636_v43, %v6780_v29 }
 0x661   :  { %v6793_v51 = vpop.f32.mrf.mxu1 }
 0x662   :  { %v6794_v37 = vadd.f32 %v6793_v51, %v6781_v14 }
 0x663   :  { %v6782_v30 = vpop.f32.mrf.mxu0 }
 0x669   :  { %v6795_v32 = vpop.f32.mrf.mxu1 }
 0x681   :  { %v6806_v1 = vpop.f32.mrf.mxu2 }
 0x682   :  { %v6807_v8 = vadd.f32 %v6806_v1, %v6794_v37 }
 0x687   :  { %v6819_v3 = vpop.f32.mrf.mxu3 }
 0x688   :  { %v6820_v40 = vadd.f32 %v6819_v3, %v6807_v8 }
 0x689   :  { %v6808_v22 = vpop.f32.mrf.mxu2 }
 0x68a   :  { %6823 = vst [vmem:[%s16099_s9] sm:$0xff] %v6820_v40 }
 0x68f   :  { %v6821_v17 = vpop.f32.mrf.mxu3 }

</bundles_post_ra>
